<compile_context>
chip_gen: v6e
topology: v6e:2x2x1
jax: 0.10.0
libtpu: 0.0.40
codegen_flags: <defaults>
</compile_context>

<pallas_src>
import jax
import jax.numpy as jnp
from jax.experimental import pallas as pl
from jax.experimental.pallas import tpu as pltpu

# ---- "config" values (deterministic, in-script) -----------------------------
NUM_COARSE_SAMPLE = 8                    # config: model.num_coarse_sample
NUM_FINE_SAMPLE   = 16                   # config: model.num_fine_sample (TODO above)
HIDDEN            = 64                   # NeRFNetwork hidden width
NUM_FREQ          = 4                    # positional-encoding frequencies
ENC_DIM           = 3 * (1 + 2 * NUM_FREQ)   # 27
NEAR, FAR         = 2.0, 6.0             # sample_method == 'near_far'

_W2_COL     = ENC_DIM                    # layer-2 weight columns start in wslab
_WSLAB_ROWS = HIDDEN + 16                # 80 (bf16 sublane-tile friendly)
_WSLAB_COLS = 128


def _renderer_kernel(rays_o_ref, rays_d_ref, wslab_ref, bslab_ref, out_ref):
    Rb = rays_o_ref.shape[1]                  # rays in this block (lane axis)
    S = NUM_COARSE_SAMPLE
    B = S * Rb                                # flattened batch, column = s*Rb + r

    o = rays_o_ref[...]                       # [3, Rb] f32
    d = rays_d_ref[...]                       # [3, Rb] f32
    t_col = bslab_ref[0:S, 3:4]               # [S, 1]  sample depths
    delta_col = bslab_ref[0:S, 4:5]           # [S, 1]  deltas (terminal 1e10)

    # ----- RaySamplerNearFar: points along each ray (batch on lanes) ---------
    x = jnp.concatenate(
        [o + t_col[s:s + 1, 0:1] * d for s in range(S)], axis=1)      # [3, B]

    # ----- positional encoding: base sin/cos + exact double-angle steps ------
    s1 = jnp.sin(x)
    c1 = jnp.cos(x)
    s2 = 2.0 * s1 * c1
    c2 = 1.0 - 2.0 * s1 * s1
    s4 = 2.0 * s2 * c2
    c4 = 1.0 - 2.0 * s2 * s2
    s8 = 2.0 * s4 * c4
    c8 = 1.0 - 2.0 * s4 * s4
    enc = jnp.concatenate([x, s1, s2, s4, s8, c1, c2, c4, c8], axis=0)  # [27, B]

    # ----- NeRFNetwork MLP: bf16 MXU operands, f32 accumulation --------------
    w1 = wslab_ref[0:HIDDEN, 0:ENC_DIM]                     # [64, 27] bf16
    w2 = wslab_ref[0:HIDDEN, _W2_COL:_W2_COL + HIDDEN]      # [64, 64] bf16
    whd = wslab_ref[HIDDEN:HIDDEN + 4, 0:HIDDEN]            # [4, 64]  bf16
    b1 = bslab_ref[:, 0:1]                                  # [64, 1]  f32
    b2 = bslab_ref[:, 1:2]                                  # [64, 1]
    bhd = bslab_ref[0:4, 2:3]                               # [4, 1]

    h = jnp.dot(w1, enc.astype(jnp.bfloat16),
                preferred_element_type=jnp.float32) + b1
    h = jnp.maximum(h, 0.0)
    h = jnp.dot(w2, h.astype(jnp.bfloat16),
                preferred_element_type=jnp.float32) + b2
    h = jnp.maximum(h, 0.0)
    head = jnp.dot(whd, h.astype(jnp.bfloat16),
                   preferred_element_type=jnp.float32) + bhd           # [4, B]
    rgb = jax.nn.sigmoid(head[0:3, :])                                 # [3, B]
    sig = head[3:4, :]                                                 # [1, B]

    # ----- VolumeRenderer (f32; samples on sublanes, rays on lanes) ----------
    sigma = jnp.concatenate(
        [sig[:, s * Rb:(s + 1) * Rb] for s in range(S)], axis=0)       # [S, Rb]
    alpha = 1.0 - jnp.exp(-jnp.maximum(sigma, 0.0) * delta_col)        # [S, Rb]
    lg = jnp.log(1.0 - alpha + 1e-10)

    # exclusive log-space prefix sum over samples: Hillis-Steele sublane shifts
    p = lg
    shift = 1
    while shift < S:
        p = p + jnp.concatenate(
            [jnp.zeros((shift, Rb), jnp.float32), p[:-shift]], axis=0)
        shift *= 2
    trans = jnp.exp(jnp.concatenate(
        [jnp.zeros((1, Rb), jnp.float32), p[:-1]], axis=0))            # [S, Rb]
    w = trans * alpha                                                  # [S, Rb]

    # weighted sums over samples (all lane-dense)
    rgb_map = jnp.zeros((3, Rb), jnp.float32)
    for s in range(S):
        rgb_map = rgb_map + w[s:s + 1, :] * rgb[:, s * Rb:(s + 1) * Rb]
    depth = jnp.sum(w * t_col, axis=0, keepdims=True)                  # [1, Rb]
    acc = jnp.sum(w, axis=0, keepdims=True)                            # [1, Rb]

    # one lane-dense store: rows [rgb(3) | depth | acc | pad(3)]
    out_ref[...] = jnp.concatenate(
        [rgb_map, depth, acc, jnp.zeros((3, Rb), jnp.float32)], axis=0)


def render(rays_o, rays_d, t_vals, params, *, block_rays=256):
    R = rays_o.shape[0]
    S = t_vals.shape[1]
    assert S == NUM_COARSE_SAMPLE
    w1, b1, w2, b2, wsig, bsig, wrgb, brgb = params
    H = HIDDEN
    block_rays = min(block_rays, R)
    # TODO(synk): pad R / mask the last block for ray counts not divisible by block_rays.
    # Guidance: v5e/v6e can use block_rays up to 1024-2048; keep <=512 on v7x
    # (64 MiB VMEM) and keep R//block_rays >= 2 so both v7x TensorCores work.
    assert R % block_rays == 0 and block_rays % 128 == 0

    # -- transposed ray layout: rays on the lane axis --------------------------
    rays_o_t = rays_o.T                                   # [3, R]
    rays_d_t = rays_d.T

    # -- wrapper-side weight re-packing (free; outside the hot loop) ----------
    # layer-1 rows reordered to match the kernel encoding [x | sin f0..f3 | cos f0..f3]
    w1_sin = jnp.concatenate([w1[3 + 6 * l:6 + 6 * l] for l in range(NUM_FREQ)], 0)
    w1_cos = jnp.concatenate([w1[6 + 6 * l:9 + 6 * l] for l in range(NUM_FREQ)], 0)
    w1_perm = jnp.concatenate([w1[0:3], w1_sin, w1_cos], 0)            # [27, H]
    w_head = jnp.concatenate([wrgb, wsig], axis=1)                     # [H, 4]
    b_head = jnp.concatenate([brgb, bsig], axis=1)                     # [1, 4]

    # single bf16 weight slab (one VMEM window / DMA instead of many tiny ones)
    wslab = jnp.zeros((_WSLAB_ROWS, _WSLAB_COLS), jnp.float32)
    wslab = wslab.at[0:H, 0:ENC_DIM].set(w1_perm.T)
    wslab = wslab.at[0:H, _W2_COL:_W2_COL + H].set(w2.T)
    wslab = wslab.at[H:H + 4, 0:H].set(w_head.T)
    wslab = wslab.astype(jnp.bfloat16)

    # single f32 slab: biases + sample depths + deltas (terminal 1e10)
    t_row = t_vals[0]
    deltas = jnp.concatenate(
        [t_row[1:] - t_row[:-1], jnp.full((1,), 1e10, jnp.float32)], axis=0)
    bslab = jnp.zeros((H, 8), jnp.float32)
    bslab = bslab.at[:, 0].set(b1[0])
    bslab = bslab.at[:, 1].set(b2[0])
    bslab = bslab.at[0:4, 2].set(b_head[0])
    bslab = bslab.at[0:S, 3].set(t_row)
    bslab = bslab.at[0:S, 4].set(deltas)

    ray_spec = pl.BlockSpec((3, block_rays), lambda i: (0, i))
    wslab_spec = pl.BlockSpec(wslab.shape, lambda i: (0, 0))
    bslab_spec = pl.BlockSpec(bslab.shape, lambda i: (0, 0))
    out_spec = pl.BlockSpec((8, block_rays), lambda i: (0, i))

    # advisory cost estimate for the XLA scheduler
    flops = R * S * 2 * (ENC_DIM * H + H * H + H * 4)
    transcendentals = R * S * (3 + 3 + 3 + 2 + 1)         # sin,cos,sigmoid,exp,log
    bytes_accessed = 4 * (6 * R + 8 * R) + (R // block_rays) * (
        wslab.size * 2 + bslab.size * 4)

    out = pl.pallas_call(
        _renderer_kernel,
        out_shape=jax.ShapeDtypeStruct((8, R), jnp.float32),
        grid_spec=pltpu.PrefetchScalarGridSpec(
            num_scalar_prefetch=0,
            grid=(R // block_rays,),
            in_specs=[ray_spec, ray_spec, wslab_spec, bslab_spec],
            out_specs=out_spec,
        ),
        compiler_params=pltpu.CompilerParams(
            dimension_semantics=("parallel",),
            vmem_limit_bytes=48 * 1024 * 1024,
        ),
        cost_estimate=pl.CostEstimate(
            flops=int(flops),
            transcendentals=int(transcendentals),
            bytes_accessed=int(bytes_accessed)),
    )(rays_o_t, rays_d_t, wslab, bslab)

    return out[0:3, :].T, out[3:4, :].T, out[4:5, :].T


def render_ref(rays_o, rays_d, t_vals, params):
    """Plain-JAX reference (original module semantics).  Matmul operands are
    cast to bf16 with f32 accumulation to mirror the kernel's MXU operand
    precision; everything else is f32."""
    w1, b1, w2, b2, wsig, bsig, wrgb, brgb = params
    R = rays_o.shape[0]
    S = t_vals.shape[1]
    t = t_vals[0]
    dot = lambda a, b: jnp.dot(a.astype(jnp.bfloat16), b.astype(jnp.bfloat16),
                               preferred_element_type=jnp.float32)
    pts = rays_o[:, None, :] + t[None, :, None] * rays_d[:, None, :]
    x = pts.reshape(R * S, 3)
    feats = [x]
    for l in range(NUM_FREQ):
        xs = x * (2.0 ** l)
        feats += [jnp.sin(xs), jnp.cos(xs)]
    enc = jnp.concatenate(feats, -1)
    h = jnp.maximum(dot(enc, w1) + b1, 0.0)
    h = jnp.maximum(dot(h, w2) + b2, 0.0)
    sigma = (dot(h, wsig) + bsig).reshape(R, S)
    rgb = jax.nn.sigmoid(dot(h, wrgb) + brgb).reshape(R, S, 3)
    deltas = jnp.concatenate([t[1:] - t[:-1], jnp.array([1e10], jnp.float32)])
    alpha = 1.0 - jnp.exp(-jnp.maximum(sigma, 0.0) * deltas[None])
    trans = jnp.cumprod(1.0 - alpha + 1e-10, axis=-1)
    trans = jnp.concatenate([jnp.ones((R, 1), jnp.float32), trans[:, :-1]], axis=-1)
    w = trans * alpha
    rgb_map = jnp.sum(w[..., None] * rgb, axis=1)
    depth = jnp.sum(w * t[None], axis=1, keepdims=True)
    acc = jnp.sum(w, axis=1, keepdims=True)
    return rgb_map, depth, acc


def init_params(key):
    ks = jax.random.split(key, 4)
    w1 = 0.2 * jax.random.normal(ks[0], (ENC_DIM, HIDDEN), jnp.float32)
    b1 = jnp.zeros((1, HIDDEN), jnp.float32)
    w2 = 0.2 * jax.random.normal(ks[1], (HIDDEN, HIDDEN), jnp.float32)
    b2 = jnp.zeros((1, HIDDEN), jnp.float32)
    wsig = 0.2 * jax.random.normal(ks[2], (HIDDEN, 1), jnp.float32)
    bsig = jnp.full((1, 1), 0.5, jnp.float32)
    wrgb = 0.2 * jax.random.normal(ks[3], (HIDDEN, 3), jnp.float32)
    brgb = jnp.zeros((1, 3), jnp.float32)
    return (w1, b1, w2, b2, wsig, bsig, wrgb, brgb)


if __name__ == "__main__":
    key = jax.random.PRNGKey(0)
    k_o, k_d, k_p = jax.random.split(key, 3)

    R = 512                                       # rays (grid of 2 blocks)
    S = NUM_COARSE_SAMPLE                         # samples per ray
    rays_o = 0.1 * jax.random.normal(k_o, (R, 3), jnp.float32)
    rays_d = jax.random.normal(k_d, (R, 3), jnp.float32)
    rays_d = rays_d / jnp.linalg.norm(rays_d, axis=-1, keepdims=True)
    t_vals = jnp.linspace(NEAR, FAR, S, dtype=jnp.float32)[None, :]   # [1, S]

    params = init_params(k_p)

    rgb, depth, acc = render(rays_o, rays_d, t_vals, params, block_rays=256)
    jax.block_until_ready((rgb, depth, acc))

    rgb_r, depth_r, acc_r = render_ref(rays_o, rays_d, t_vals, params)
    assert jnp.allclose(rgb, rgb_r, rtol=5e-3, atol=5e-3), \
        float(jnp.max(jnp.abs(rgb - rgb_r)))
    assert jnp.allclose(depth, depth_r, rtol=5e-3, atol=5e-3), \
        float(jnp.max(jnp.abs(depth - depth_r)))
    assert jnp.allclose(acc, acc_r, rtol=5e-3, atol=5e-3), \
        float(jnp.max(jnp.abs(acc - acc_r)))

    print("KERNEL_OK")
</pallas_src>

<mosaic_0001>
module attributes {stable_mosaic.version = 11 : i64} {
  func.func @_renderer_kernel(%arg0: i32, %arg1: memref<3x256xf32, #tpu.memory_space<vmem>>, %arg2: memref<3x256xf32, #tpu.memory_space<vmem>>, %arg3: memref<80x128xbf16, #tpu.memory_space<vmem>>, %arg4: memref<64x8xf32, #tpu.memory_space<vmem>>, %arg5: memref<8x256xf32, #tpu.memory_space<vmem>>) attributes {dimension_semantics = [#tpu.dimension_semantics<parallel>], iteration_bounds = array<i64: 2>, scalar_prefetch = 0 : i64, scratch_operands = 0 : i64, tpu.core_type = #tpu.core_type<tc>, window_params = [{transform_indices = @transform_0, window_bounds = array<i64: 3, 256>}, {transform_indices = @transform_1, window_bounds = array<i64: 3, 256>}, {pipeline_mode = #tpu.pipeline_mode<synchronous>, transform_indices = @transform_2, window_bounds = array<i64: 80, 128>}, {pipeline_mode = #tpu.pipeline_mode<synchronous>, transform_indices = @transform_3, window_bounds = array<i64: 64, 8>}, {transform_indices = @transform_4, window_bounds = array<i64: 8, 256>}]} {
    %c0 = arith.constant 0 : index
    %c0_0 = arith.constant 0 : index
    %0 = vector.load %arg1[%c0, %c0_0] : memref<3x256xf32, #tpu.memory_space<vmem>>, vector<3x256xf32>
    %c0_1 = arith.constant 0 : index
    %c0_2 = arith.constant 0 : index
    %1 = vector.load %arg2[%c0_1, %c0_2] : memref<3x256xf32, #tpu.memory_space<vmem>>, vector<3x256xf32>
    %c0_3 = arith.constant 0 : index
    %c3 = arith.constant 3 : index
    %2 = vector.load %arg4[%c0_3, %c3] : memref<64x8xf32, #tpu.memory_space<vmem>>, vector<8x1xf32>
    %c0_4 = arith.constant 0 : index
    %c4 = arith.constant 4 : index
    %3 = vector.load %arg4[%c0_4, %c4] : memref<64x8xf32, #tpu.memory_space<vmem>>, vector<8x1xf32>
    %4 = vector.extract_strided_slice %2 {offsets = [0, 0], sizes = [1, 1], strides = [1, 1]} : vector<8x1xf32> to vector<1x1xf32>
    %5 = vector.broadcast %4 : vector<1x1xf32> to vector<3x256xf32>
    %6 = arith.mulf %5, %1 : vector<3x256xf32>
    %7 = arith.addf %0, %6 : vector<3x256xf32>
    %8 = vector.extract_strided_slice %2 {offsets = [1, 0], sizes = [1, 1], strides = [1, 1]} : vector<8x1xf32> to vector<1x1xf32>
    %9 = vector.broadcast %8 : vector<1x1xf32> to vector<3x256xf32>
    %10 = arith.mulf %9, %1 : vector<3x256xf32>
    %11 = arith.addf %0, %10 : vector<3x256xf32>
    %12 = vector.extract_strided_slice %2 {offsets = [2, 0], sizes = [1, 1], strides = [1, 1]} : vector<8x1xf32> to vector<1x1xf32>
    %13 = vector.broadcast %12 : vector<1x1xf32> to vector<3x256xf32>
    %14 = arith.mulf %13, %1 : vector<3x256xf32>
    %15 = arith.addf %0, %14 : vector<3x256xf32>
    %16 = vector.extract_strided_slice %2 {offsets = [3, 0], sizes = [1, 1], strides = [1, 1]} : vector<8x1xf32> to vector<1x1xf32>
    %17 = vector.broadcast %16 : vector<1x1xf32> to vector<3x256xf32>
    %18 = arith.mulf %17, %1 : vector<3x256xf32>
    %19 = arith.addf %0, %18 : vector<3x256xf32>
    %20 = vector.extract_strided_slice %2 {offsets = [4, 0], sizes = [1, 1], strides = [1, 1]} : vector<8x1xf32> to vector<1x1xf32>
    %21 = vector.broadcast %20 : vector<1x1xf32> to vector<3x256xf32>
    %22 = arith.mulf %21, %1 : vector<3x256xf32>
    %23 = arith.addf %0, %22 : vector<3x256xf32>
    %24 = vector.extract_strided_slice %2 {offsets = [5, 0], sizes = [1, 1], strides = [1, 1]} : vector<8x1xf32> to vector<1x1xf32>
    %25 = vector.broadcast %24 : vector<1x1xf32> to vector<3x256xf32>
    %26 = arith.mulf %25, %1 : vector<3x256xf32>
    %27 = arith.addf %0, %26 : vector<3x256xf32>
    %28 = vector.extract_strided_slice %2 {offsets = [6, 0], sizes = [1, 1], strides = [1, 1]} : vector<8x1xf32> to vector<1x1xf32>
    %29 = vector.broadcast %28 : vector<1x1xf32> to vector<3x256xf32>
    %30 = arith.mulf %29, %1 : vector<3x256xf32>
    %31 = arith.addf %0, %30 : vector<3x256xf32>
    %32 = vector.extract_strided_slice %2 {offsets = [7, 0], sizes = [1, 1], strides = [1, 1]} : vector<8x1xf32> to vector<1x1xf32>
    %33 = vector.broadcast %32 : vector<1x1xf32> to vector<3x256xf32>
    %34 = arith.mulf %33, %1 : vector<3x256xf32>
    %35 = arith.addf %0, %34 : vector<3x256xf32>
    %36 = tpu.concatenate %7, %11, %15, %19, %23, %27, %31, %35 in 1 : vector<3x256xf32>, vector<3x256xf32>, vector<3x256xf32>, vector<3x256xf32>, vector<3x256xf32>, vector<3x256xf32>, vector<3x256xf32>, vector<3x256xf32> -> vector<3x2048xf32>
    %37 = math.sin %36 : vector<3x2048xf32>
    %38 = math.cos %36 : vector<3x2048xf32>
    %cst = arith.constant 2.000000e+00 : f32
    %39 = vector.broadcast %cst : f32 to vector<3x2048xf32>
    %40 = arith.mulf %39, %37 : vector<3x2048xf32>
    %41 = arith.mulf %40, %38 : vector<3x2048xf32>
    %cst_5 = arith.constant 2.000000e+00 : f32
    %42 = vector.broadcast %cst_5 : f32 to vector<3x2048xf32>
    %43 = arith.mulf %42, %37 : vector<3x2048xf32>
    %44 = arith.mulf %43, %37 : vector<3x2048xf32>
    %cst_6 = arith.constant 1.000000e+00 : f32
    %45 = vector.broadcast %cst_6 : f32 to vector<3x2048xf32>
    %46 = arith.subf %45, %44 : vector<3x2048xf32>
    %cst_7 = arith.constant 2.000000e+00 : f32
    %47 = vector.broadcast %cst_7 : f32 to vector<3x2048xf32>
    %48 = arith.mulf %47, %41 : vector<3x2048xf32>
    %49 = arith.mulf %48, %46 : vector<3x2048xf32>
    %cst_8 = arith.constant 2.000000e+00 : f32
    %50 = vector.broadcast %cst_8 : f32 to vector<3x2048xf32>
    %51 = arith.mulf %50, %41 : vector<3x2048xf32>
    %52 = arith.mulf %51, %41 : vector<3x2048xf32>
    %cst_9 = arith.constant 1.000000e+00 : f32
    %53 = vector.broadcast %cst_9 : f32 to vector<3x2048xf32>
    %54 = arith.subf %53, %52 : vector<3x2048xf32>
    %cst_10 = arith.constant 2.000000e+00 : f32
    %55 = vector.broadcast %cst_10 : f32 to vector<3x2048xf32>
    %56 = arith.mulf %55, %49 : vector<3x2048xf32>
    %57 = arith.mulf %56, %54 : vector<3x2048xf32>
    %cst_11 = arith.constant 2.000000e+00 : f32
    %58 = vector.broadcast %cst_11 : f32 to vector<3x2048xf32>
    %59 = arith.mulf %58, %49 : vector<3x2048xf32>
    %60 = arith.mulf %59, %49 : vector<3x2048xf32>
    %cst_12 = arith.constant 1.000000e+00 : f32
    %61 = vector.broadcast %cst_12 : f32 to vector<3x2048xf32>
    %62 = arith.subf %61, %60 : vector<3x2048xf32>
    %63 = tpu.concatenate %36, %37, %41, %49, %57, %38, %46, %54, %62 in 0 : vector<3x2048xf32>, vector<3x2048xf32>, vector<3x2048xf32>, vector<3x2048xf32>, vector<3x2048xf32>, vector<3x2048xf32>, vector<3x2048xf32>, vector<3x2048xf32>, vector<3x2048xf32> -> vector<27x2048xf32>
    %c0_13 = arith.constant 0 : index
    %c0_14 = arith.constant 0 : index
    %64 = vector.load %arg3[%c0_13, %c0_14] : memref<80x128xbf16, #tpu.memory_space<vmem>>, vector<64x27xbf16>
    %c0_15 = arith.constant 0 : index
    %c27 = arith.constant 27 : index
    %65 = vector.load %arg3[%c0_15, %c27] : memref<80x128xbf16, #tpu.memory_space<vmem>>, vector<64x64xbf16>
    %c64 = arith.constant 64 : index
    %c0_16 = arith.constant 0 : index
    %66 = vector.load %arg3[%c64, %c0_16] : memref<80x128xbf16, #tpu.memory_space<vmem>>, vector<4x64xbf16>
    %c0_17 = arith.constant 0 : index
    %c0_18 = arith.constant 0 : index
    %67 = vector.load %arg4[%c0_17, %c0_18] : memref<64x8xf32, #tpu.memory_space<vmem>>, vector<64x1xf32>
    %c0_19 = arith.constant 0 : index
    %c1 = arith.constant 1 : index
    %68 = vector.load %arg4[%c0_19, %c1] : memref<64x8xf32, #tpu.memory_space<vmem>>, vector<64x1xf32>
    %c0_20 = arith.constant 0 : index
    %c2 = arith.constant 2 : index
    %69 = vector.load %arg4[%c0_20, %c2] : memref<64x8xf32, #tpu.memory_space<vmem>>, vector<4x1xf32>
    %70 = arith.truncf %63 : vector<27x2048xf32> to vector<27x2048xbf16>
    %cst_21 = arith.constant dense<0.000000e+00> : vector<64x2048xf32>
    %71 = tpu.matmul %64, %70, %cst_21 {dimension_numbers = #tpu.dot_dimension_numbers<[1], [0], [0], [1], [0, 0, 1, 1], [], []>} : vector<64x27xbf16>, vector<27x2048xbf16>, vector<64x2048xf32> -> vector<64x2048xf32>
    %72 = vector.broadcast %67 : vector<64x1xf32> to vector<64x2048xf32>
    %73 = arith.addf %71, %72 : vector<64x2048xf32>
    %cst_22 = arith.constant 0.000000e+00 : f32
    %74 = vector.broadcast %cst_22 : f32 to vector<64x2048xf32>
    %75 = arith.maximumf %73, %74 : vector<64x2048xf32>
    %76 = arith.truncf %75 : vector<64x2048xf32> to vector<64x2048xbf16>
    %cst_23 = arith.constant dense<0.000000e+00> : vector<64x2048xf32>
    %77 = tpu.matmul %65, %76, %cst_23 {dimension_numbers = #tpu.dot_dimension_numbers<[1], [0], [0], [1], [0, 0, 1, 1], [], []>} : vector<64x64xbf16>, vector<64x2048xbf16>, vector<64x2048xf32> -> vector<64x2048xf32>
    %78 = vector.broadcast %68 : vector<64x1xf32> to vector<64x2048xf32>
    %79 = arith.addf %77, %78 : vector<64x2048xf32>
    %cst_24 = arith.constant 0.000000e+00 : f32
    %80 = vector.broadcast %cst_24 : f32 to vector<64x2048xf32>
    %81 = arith.maximumf %79, %80 : vector<64x2048xf32>
    %82 = arith.truncf %81 : vector<64x2048xf32> to vector<64x2048xbf16>
    %cst_25 = arith.constant dense<0.000000e+00> : vector<4x2048xf32>
    %83 = tpu.matmul %66, %82, %cst_25 {dimension_numbers = #tpu.dot_dimension_numbers<[1], [0], [0], [1], [0, 0, 1, 1], [], []>} : vector<4x64xbf16>, vector<64x2048xbf16>, vector<4x2048xf32> -> vector<4x2048xf32>
    %84 = vector.broadcast %69 : vector<4x1xf32> to vector<4x2048xf32>
    %85 = arith.addf %83, %84 : vector<4x2048xf32>
    %86 = vector.extract_strided_slice %85 {offsets = [0, 0], sizes = [3, 2048], strides = [1, 1]} : vector<4x2048xf32> to vector<3x2048xf32>
    %87 = arith.negf %86 : vector<3x2048xf32>
    %88 = math.exp %87 : vector<3x2048xf32>
    %cst_26 = arith.constant 1.000000e+00 : f32
    %89 = vector.broadcast %cst_26 : f32 to vector<3x2048xf32>
    %90 = arith.addf %89, %88 : vector<3x2048xf32>
    %91 = arith.divf %89, %90 : vector<3x2048xf32>
    %92 = vector.extract_strided_slice %85 {offsets = [3, 0], sizes = [1, 2048], strides = [1, 1]} : vector<4x2048xf32> to vector<1x2048xf32>
    %93 = vector.extract_strided_slice %92 {offsets = [0, 0], sizes = [1, 256], strides = [1, 1]} : vector<1x2048xf32> to vector<1x256xf32>
    %94 = vector.extract_strided_slice %92 {offsets = [0, 256], sizes = [1, 256], strides = [1, 1]} : vector<1x2048xf32> to vector<1x256xf32>
    %95 = vector.extract_strided_slice %92 {offsets = [0, 512], sizes = [1, 256], strides = [1, 1]} : vector<1x2048xf32> to vector<1x256xf32>
    %96 = vector.extract_strided_slice %92 {offsets = [0, 768], sizes = [1, 256], strides = [1, 1]} : vector<1x2048xf32> to vector<1x256xf32>
    %97 = vector.extract_strided_slice %92 {offsets = [0, 1024], sizes = [1, 256], strides = [1, 1]} : vector<1x2048xf32> to vector<1x256xf32>
    %98 = vector.extract_strided_slice %92 {offsets = [0, 1280], sizes = [1, 256], strides = [1, 1]} : vector<1x2048xf32> to vector<1x256xf32>
    %99 = vector.extract_strided_slice %92 {offsets = [0, 1536], sizes = [1, 256], strides = [1, 1]} : vector<1x2048xf32> to vector<1x256xf32>
    %100 = vector.extract_strided_slice %92 {offsets = [0, 1792], sizes = [1, 256], strides = [1, 1]} : vector<1x2048xf32> to vector<1x256xf32>
    %101 = tpu.concatenate %93, %94, %95, %96, %97, %98, %99, %100 in 0 : vector<1x256xf32>, vector<1x256xf32>, vector<1x256xf32>, vector<1x256xf32>, vector<1x256xf32>, vector<1x256xf32>, vector<1x256xf32>, vector<1x256xf32> -> vector<8x256xf32>
    %cst_27 = arith.constant 0.000000e+00 : f32
    %102 = vector.broadcast %cst_27 : f32 to vector<8x256xf32>
    %103 = arith.maximumf %101, %102 : vector<8x256xf32>
    %cst_28 = arith.constant 0.000000e+00 : f32
    %104 = vector.broadcast %cst_28 : f32 to vector<8x256xf32>
    %105 = arith.subf %104, %103 : vector<8x256xf32>
    %106 = vector.broadcast %3 : vector<8x1xf32> to vector<8x256xf32>
    %107 = arith.mulf %105, %106 : vector<8x256xf32>
    %108 = math.exp %107 : vector<8x256xf32>
    %cst_29 = arith.constant 1.000000e+00 : f32
    %109 = vector.broadcast %cst_29 : f32 to vector<8x256xf32>
    %110 = arith.subf %109, %108 : vector<8x256xf32>
    %cst_30 = arith.constant 1.000000e+00 : f32
    %111 = vector.broadcast %cst_30 : f32 to vector<8x256xf32>
    %112 = arith.subf %111, %110 : vector<8x256xf32>
    %cst_31 = arith.constant 1.000000e-10 : f32
    %113 = vector.broadcast %cst_31 : f32 to vector<8x256xf32>
    %114 = arith.addf %112, %113 : vector<8x256xf32>
    %115 = math.log %114 : vector<8x256xf32>
    %cst_32 = arith.constant 0.000000e+00 : f32
    %116 = vector.broadcast %cst_32 : f32 to vector<1x256xf32>
    %117 = vector.extract_strided_slice %115 {offsets = [0, 0], sizes = [7, 256], strides = [1, 1]} : vector<8x256xf32> to vector<7x256xf32>
    %118 = tpu.concatenate %116, %117 in 0 : vector<1x256xf32>, vector<7x256xf32> -> vector<8x256xf32>
    %119 = arith.addf %115, %118 : vector<8x256xf32>
    %cst_33 = arith.constant 0.000000e+00 : f32
    %120 = vector.broadcast %cst_33 : f32 to vector<2x256xf32>
    %121 = vector.extract_strided_slice %119 {offsets = [0, 0], sizes = [6, 256], strides = [1, 1]} : vector<8x256xf32> to vector<6x256xf32>
    %122 = tpu.concatenate %120, %121 in 0 : vector<2x256xf32>, vector<6x256xf32> -> vector<8x256xf32>
    %123 = arith.addf %119, %122 : vector<8x256xf32>
    %cst_34 = arith.constant 0.000000e+00 : f32
    %124 = vector.broadcast %cst_34 : f32 to vector<4x256xf32>
    %125 = vector.extract_strided_slice %123 {offsets = [0, 0], sizes = [4, 256], strides = [1, 1]} : vector<8x256xf32> to vector<4x256xf32>
    %126 = tpu.concatenate %124, %125 in 0 : vector<4x256xf32>, vector<4x256xf32> -> vector<8x256xf32>
    %127 = arith.addf %123, %126 : vector<8x256xf32>
    %cst_35 = arith.constant 0.000000e+00 : f32
    %128 = vector.broadcast %cst_35 : f32 to vector<1x256xf32>
    %129 = vector.extract_strided_slice %127 {offsets = [0, 0], sizes = [7, 256], strides = [1, 1]} : vector<8x256xf32> to vector<7x256xf32>
    %130 = tpu.concatenate %128, %129 in 0 : vector<1x256xf32>, vector<7x256xf32> -> vector<8x256xf32>
    %131 = math.exp %130 : vector<8x256xf32>
    %132 = arith.mulf %131, %110 : vector<8x256xf32>
    %cst_36 = arith.constant 0.000000e+00 : f32
    %133 = vector.broadcast %cst_36 : f32 to vector<3x256xf32>
    %134 = vector.extract_strided_slice %132 {offsets = [0, 0], sizes = [1, 256], strides = [1, 1]} : vector<8x256xf32> to vector<1x256xf32>
    %135 = vector.extract_strided_slice %91 {offsets = [0, 0], sizes = [3, 256], strides = [1, 1]} : vector<3x2048xf32> to vector<3x256xf32>
    %136 = vector.broadcast %134 : vector<1x256xf32> to vector<3x256xf32>
    %137 = arith.mulf %136, %135 : vector<3x256xf32>
    %138 = arith.addf %133, %137 : vector<3x256xf32>
    %139 = vector.extract_strided_slice %132 {offsets = [1, 0], sizes = [1, 256], strides = [1, 1]} : vector<8x256xf32> to vector<1x256xf32>
    %140 = vector.extract_strided_slice %91 {offsets = [0, 256], sizes = [3, 256], strides = [1, 1]} : vector<3x2048xf32> to vector<3x256xf32>
    %141 = vector.broadcast %139 : vector<1x256xf32> to vector<3x256xf32>
    %142 = arith.mulf %141, %140 : vector<3x256xf32>
    %143 = arith.addf %138, %142 : vector<3x256xf32>
    %144 = vector.extract_strided_slice %132 {offsets = [2, 0], sizes = [1, 256], strides = [1, 1]} : vector<8x256xf32> to vector<1x256xf32>
    %145 = vector.extract_strided_slice %91 {offsets = [0, 512], sizes = [3, 256], strides = [1, 1]} : vector<3x2048xf32> to vector<3x256xf32>
    %146 = vector.broadcast %144 : vector<1x256xf32> to vector<3x256xf32>
    %147 = arith.mulf %146, %145 : vector<3x256xf32>
    %148 = arith.addf %143, %147 : vector<3x256xf32>
    %149 = vector.extract_strided_slice %132 {offsets = [3, 0], sizes = [1, 256], strides = [1, 1]} : vector<8x256xf32> to vector<1x256xf32>
    %150 = vector.extract_strided_slice %91 {offsets = [0, 768], sizes = [3, 256], strides = [1, 1]} : vector<3x2048xf32> to vector<3x256xf32>
    %151 = vector.broadcast %149 : vector<1x256xf32> to vector<3x256xf32>
    %152 = arith.mulf %151, %150 : vector<3x256xf32>
    %153 = arith.addf %148, %152 : vector<3x256xf32>
    %154 = vector.extract_strided_slice %132 {offsets = [4, 0], sizes = [1, 256], strides = [1, 1]} : vector<8x256xf32> to vector<1x256xf32>
    %155 = vector.extract_strided_slice %91 {offsets = [0, 1024], sizes = [3, 256], strides = [1, 1]} : vector<3x2048xf32> to vector<3x256xf32>
    %156 = vector.broadcast %154 : vector<1x256xf32> to vector<3x256xf32>
    %157 = arith.mulf %156, %155 : vector<3x256xf32>
    %158 = arith.addf %153, %157 : vector<3x256xf32>
    %159 = vector.extract_strided_slice %132 {offsets = [5, 0], sizes = [1, 256], strides = [1, 1]} : vector<8x256xf32> to vector<1x256xf32>
    %160 = vector.extract_strided_slice %91 {offsets = [0, 1280], sizes = [3, 256], strides = [1, 1]} : vector<3x2048xf32> to vector<3x256xf32>
    %161 = vector.broadcast %159 : vector<1x256xf32> to vector<3x256xf32>
    %162 = arith.mulf %161, %160 : vector<3x256xf32>
    %163 = arith.addf %158, %162 : vector<3x256xf32>
    %164 = vector.extract_strided_slice %132 {offsets = [6, 0], sizes = [1, 256], strides = [1, 1]} : vector<8x256xf32> to vector<1x256xf32>
    %165 = vector.extract_strided_slice %91 {offsets = [0, 1536], sizes = [3, 256], strides = [1, 1]} : vector<3x2048xf32> to vector<3x256xf32>
    %166 = vector.broadcast %164 : vector<1x256xf32> to vector<3x256xf32>
    %167 = arith.mulf %166, %165 : vector<3x256xf32>
    %168 = arith.addf %163, %167 : vector<3x256xf32>
    %169 = vector.extract_strided_slice %132 {offsets = [7, 0], sizes = [1, 256], strides = [1, 1]} : vector<8x256xf32> to vector<1x256xf32>
    %170 = vector.extract_strided_slice %91 {offsets = [0, 1792], sizes = [3, 256], strides = [1, 1]} : vector<3x2048xf32> to vector<3x256xf32>
    %171 = vector.broadcast %169 : vector<1x256xf32> to vector<3x256xf32>
    %172 = arith.mulf %171, %170 : vector<3x256xf32>
    %173 = arith.addf %168, %172 : vector<3x256xf32>
    %174 = vector.broadcast %2 : vector<8x1xf32> to vector<8x256xf32>
    %175 = arith.mulf %132, %174 : vector<8x256xf32>
    %cst_37 = arith.constant dense<0.000000e+00> : vector<256xf32>
    %176 = vector.multi_reduction <add>, %175, %cst_37 [0] : vector<8x256xf32> to vector<256xf32>
    %177 = vector.shape_cast %176 : vector<256xf32> to vector<1x256xf32>
    %cst_38 = arith.constant dense<0.000000e+00> : vector<256xf32>
    %178 = vector.multi_reduction <add>, %132, %cst_38 [0] : vector<8x256xf32> to vector<256xf32>
    %179 = vector.shape_cast %178 : vector<256xf32> to vector<1x256xf32>
    %cst_39 = arith.constant 0.000000e+00 : f32
    %180 = vector.broadcast %cst_39 : f32 to vector<3x256xf32>
    %181 = tpu.concatenate %173, %177, %179, %180 in 0 : vector<3x256xf32>, vector<1x256xf32>, vector<1x256xf32>, vector<3x256xf32> -> vector<8x256xf32>
    %c0_40 = arith.constant 0 : index
    %c0_41 = arith.constant 0 : index
    %182 = vector.load %arg5[%c0_40, %c0_41] : memref<8x256xf32, #tpu.memory_space<vmem>>, vector<8x256xf32>
    tpu.vector_store %arg5[%c0_40, %c0_41], %181 {strides = array<i32>} : memref<8x256xf32, #tpu.memory_space<vmem>>, vector<8x256xf32>,
    return
  }
  func.func @transform_0(%arg0: i32) -> (i32, i32) {
    %c0_i32 = arith.constant 0 : i32
    %c0_i32_0 = arith.constant 0 : i32
    return %c0_i32, %arg0 : i32, i32
  }
  func.func @transform_1(%arg0: i32) -> (i32, i32) {
    %c0_i32 = arith.constant 0 : i32
    %c0_i32_0 = arith.constant 0 : i32
    return %c0_i32, %arg0 : i32, i32
  }
  func.func @transform_2(%arg0: i32) -> (i32, i32) {
    %c0_i32 = arith.constant 0 : i32
    %c0_i32_0 = arith.constant 0 : i32
    %c0_i32_1 = arith.constant 0 : i32
    return %c0_i32, %c0_i32_0 : i32, i32
  }
  func.func @transform_3(%arg0: i32) -> (i32, i32) {
    %c0_i32 = arith.constant 0 : i32
    %c0_i32_0 = arith.constant 0 : i32
    %c0_i32_1 = arith.constant 0 : i32
    return %c0_i32, %c0_i32_0 : i32, i32
  }
  func.func @transform_4(%arg0: i32) -> (i32, i32) {
    %c0_i32 = arith.constant 0 : i32
    %c0_i32_0 = arith.constant 0 : i32
    return %c0_i32, %arg0 : i32, i32
  }
}

</mosaic_0001>

<bundles_post_ra>
// kernel: tpu_custom_call.1
= control target key start
LH: loop header
LB: loop body
LE: loop exit
PB: predicated region body
PF: predicated region fallthrough
CT: control target
= control target key end

     0   :  { %9 = vsyncpa [#allocation3], 0  ;;  %s10947_s0 = inlined_call_operand.vmem [shape: f32[3,512], index: 0, kind: input, shape index: {}]   ;;  %s10948_s1 = inlined_call_operand.vmem [shape: f32[3,512], index: 1, kind: input, shape index: {}]   ;;  %s10949_s2 = inlined_call_operand.vmem [shape: bf16[80,128], index: 2, kind: input, shape index: {}]   ;;  %s10950_s3 = inlined_call_operand.vmem [shape: f32[64,8], index: 3, kind: input, shape index: {}]   ;;  %s10951_s4 = inlined_call_operand.hbm [shape: f32[8,512], index: 4, kind: output, shape index: {}]  }
   0x1   :  { %11 = vsyncpa [#allocation3 + $0x1], 0  ;;  %s7461_s15 = smov 0   ;;  %s7463_s16 = smov 0  }
   0x2   :  { %s7465_s17 = smov 0   ;;  %s7467_s18 = smov 0  }
   0x3 LB: > { %s7482_s19 = sadd.s32 4294967295, %s7419_s18   ;;  %s6824_s20 = sadd.s32 4294967294, %s7419_s18   ;;  %s7419_s18 = sphi %s7467_s18, %s11328_s18   ;;  %s7415_s17 = sphi %s7465_s17, %s11327_s17   ;;  %s7411_s16 = sphi %s7463_s16, %s11326_s16   ;;  %s7407_s15 = sphi %s7461_s15, %s11325_s15  }
   0x4   : > { %s7486_s21 = sadd.s32 1, %s7419_s18   ;;  %s118_s22 = sadd.s32 1, %s7415_s17 }
   0x5   : > { %s115_s23 = ssub.s32 %s7419_s18, %s7486_s21  ;;  %p128_p0 = scmp.ne.s32.totalorder %s7415_s17, %s7411_s16 }
   0x6   : > { %p116_p1 = scmp.eq.s32.totalorder %s115_s23, 0  ;;  %p129_p2 = scmp.eq.s32.totalorder %s7482_s19, 1 }
   0x7   : > { %p134_p3 = scmp.ne.s32.totalorder %s7411_s16, %s7407_s15  ;;  %p135_p4 = scmp.eq.s32.totalorder %s6824_s20, 1 }
   0x8   : > { %s7497_s24 = scalar_select %p116_p1, %s7415_s17, %s118_s22  }
   0x9   : > { %p7499_p5 = por %p129_p2, %p128_p0  ;;  %p7503_p6 = por %p135_p4, %p134_p3 }
   0xa   : > { %p6827_p7 = scmp.ge.s32.totalorder %s7419_s18, 1  ;;  %p177_p8 = scmp.lt.s32.totalorder %s7419_s18, 3 }
   0xc   : > { %p178_p9 = pnand %p6827_p7, %p177_p8 }
   0xe   : > { %181 = sbr.rel (%p178_p9) target bundleno = 1607 (0x647), region = 36 }
  0x13   : > { %v224_v0 = vld [vmem:[%s10950_s3] sm:$0xff]  ;;  %s7421_s29 = smov 125   ;;  %s6829_s30 = sshll.u32 %s7482_s19, 1  ;;  %v10963_v39 = vmov 683565275  }
  0x14   : > { %226 = vrot.lane.b32.xlu0 %v224_v0, %s7421_s29  ;;  %v241_v1 = vrot.slane %v224_v0, 2  ;;  %v233_v2 = vrot.slane %v224_v0, 1  ;;  %v249_v3 = vrot.slane %v224_v0, 3  ;;  %v257_v4 = vrot.slane %v224_v0, 4  ;;  %p209_p10 = scmp.lt.s32.totalorder %s6829_s30, 3  ;;  %s7058_s11 = sshll.u32 %s7482_s19, 8 }
  0x15   : > { %v265_v5 = vrot.slane %v224_v0, 5  ;;  %v273_v6 = vrot.slane %v224_v0, 6  ;;  %v281_v7 = vrot.slane %v224_v0, 7  ;;  %v10961_v41 = vmov 2475754826  }
  0x16   : > { %242 = vrot.lane.b32.xlu1 %v241_v1, %s7421_s29  ;;  %s11330_s30 = smov (!%p209_p10, %s6829_s30), 3  ;;  %v10959_v43 = vmov 2131351028   ;;  %v10955_v45 = vmov 2102212464  }
  0x17   : > { %s6830_s5 = sshll.u32 %s11330_s30, 2  ;;  %v10957_v47 = vmov 920167782   ;;  %v10967_v56 = vmov 1326507024  }
  0x18   : > { %234 = vrot.lane.b32.xlu0 %v233_v2, %s7421_s29  ;;  %s218_s8 = scalar_lea.vmem %s10948_s1, %s6830_s5  ;;  %s212_s13 = scalar_lea.vmem %s10947_s0, %s6830_s5 }
  0x19   : > { %v7523_v16 = vld [vmem:[%s218_s8] sm:$0x77] }
  0x1a   : > { %250 = vrot.lane.b32.xlu1 %v249_v3, %s7421_s29  ;;  %v7526_v20 = vld [vmem:[%s212_s13] sm:$0x77] }
  0x1c   : > { %258 = vrot.lane.b32.xlu0 %v257_v4, %s7421_s29 }
  0x1e   : > { %266 = vrot.lane.b32.xlu1 %v265_v5, %s7421_s29 }
  0x20   : > { %274 = vrot.lane.b32.xlu0 %v273_v6, %s7421_s29 }
  0x22   : > { %282 = vrot.lane.b32.xlu1 %v281_v7, %s7421_s29 }
  0x86   : > { %v227_v8 = vpop.permute.xlu0 %226 }
  0x87   : > { %7059 = vpush %v227_v8 }
  0x88   : > { %v243_v9 = vpop.permute.xlu1 %242 }
  0x8a   : > { %v235_v10 = vpop.permute.xlu0 %234 }
  0x8b   : > { %7061 = vpush %v235_v10 }
  0x8c   : > { %7063 = vpush %v243_v9  ;;  %v251_v11 = vpop.permute.xlu1 %250 }
  0x8d   : > { %7065 = vpush %v251_v11 }
  0x8e   : > { %v259_v12 = vpop.permute.xlu0 %258 }
  0x8f   : > { %7067 = vpush %v259_v12 }
  0x90   : > { %v267_v13 = vpop.permute.xlu1 %266 }
  0x91   : > { %7069 = vpush %v267_v13 }
  0x92   : > { %v275_v14 = vpop.permute.xlu0 %274 }
  0x93   : > { %7071 = vpush %v275_v14 }
  0x94   : > { %v283_v15 = vpop.permute.xlu1 %282 }
  0x95   : > { %7073 = vpush %v283_v15 }
  0xb8   : > { %s7516_s9 = spop %7059 }
  0xbc   : > { %s7518_s10 = spop %7061 }
  0xbd   : > { %s7064_s14 = spop %7063 }
  0xbe   : > { %v245_v17 = vstv %s7064_s14  ;;  %s7066_s20 = spop %7065 }
  0xbf   : > { %v247_v18 = vmul.f32 %v245_v17, %v7523_v16  ;;  %v253_v19 = vstv %s7066_s20 }
  0xc0   : > { %v255_v21 = vmul.f32 %v253_v19, %v7523_v16  ;;  %s7554_s22 = spop %7067 }
  0xc1   : > { %v7530_v22 = vadd.f32 %v247_v18, %v7526_v20  ;;  %v261_v6 = vstv %s7554_s22  ;;  %s7430_s22 = smov 101  }
  0xc2   : > { %v7535_v25 = vadd.f32 %v255_v21, %v7526_v20  ;;  %s7070_s23 = spop %7069 }
  0xc3   : > { %11031 = vst [vmem:[#allocation5_spill] sm:$0xff] %v7530_v22  ;;  %v732_v23 = vand.u32 2139095040, %v7530_v22  ;;  %v10965_v24 = vand.u32 2147483647, %v7530_v22 }
  0xc4   : > { %v940_v29 = vand.u32 2139095040, %v7535_v25  ;;  %v10954_v50 = vand.u32 2147483647, %v7535_v25  ;;  %s7072_s27 = spop %7071 }
  0xc5   : > { %v733_v26 = vshrl.u32 %v732_v23, 23  ;;  %v736_v28 = vand.u32 8388607, %v10965_v24 }
  0xc6   : > { %v941_v31 = vshrl.u32 %v940_v29, 23  ;;  %v944_v5 = vand.u32 8388607, %v10954_v50  ;;  %s7074_s28 = spop %7073 }
  0xc7   : > { %v6849_v27 = vadd.s32 4294967169, %v733_v26  ;;  %v737_v32 = vor.u32 8388608, %v736_v28 }
  0xc8   : > { %v6857_v34 = vadd.s32 4294967169, %v941_v31  ;;  %v945_v29 = vor.u32 8388608, %v944_v5  ;;  %v263_v31 = vmul.f32 %v261_v6, %v7523_v16 }
  0xc9   : > { %v739_v30 = vadd.s32 1, %v6849_v27  ;;  %v7545_v49 = vshll.u32 %v737_v32, 8 }
  0xca   : > { %v947_v37 = vadd.s32 1, %v6857_v34 }
  0xcb   : > { %vm740_vm0 = vcmp.gt.s32.totalorder %v739_v30, 0 }
  0xcc   : > { %v741_v33 = vsel %vm740_vm0, %v739_v30, 0  ;;  %vm948_vm3 = vcmp.gt.s32.totalorder %v947_v37, 0 }
  0xcd   : > { %v742_v35 = vshrl.u32 %v741_v33, 5  ;;  %v743_v36 = vand.u32 31, %v741_v33  ;;  %v949_v63 = vsel %vm948_vm3, %v947_v37, 0 }
  0xce   : > { %v951_v10 = vand.u32 31, %v949_v63  ;;  %v7564_v14 = vshrl.u32 %v949_v63, 5  ;;  %v7612_v63 = vadd.f32 %v263_v31, %v7526_v20 }
  0xcf   : > { %v744_v38 = vsub.s32 32, %v743_v36  ;;  %v746_v40 = vshll.u32 %v10963_v39, %v743_v36  ;;  %v749_v42 = vshll.u32 %v10961_v41, %v743_v36  ;;  %v752_v44 = vshll.u32 %v10959_v43, %v743_v36 }
  0xd0   : > { %v755_v46 = vshll.u32 %v10955_v45, %v743_v36  ;;  %v758_v48 = vshll.u32 %v10957_v47, %v743_v36  ;;  %vm761_vm1 = vcmp.lt.s32.totalorder %v742_v35, 1  ;;  %vm764_vm2 = vcmp.lt.s32.totalorder %v742_v35, 4 }
  0xd1   : > { %v747_v51 = vshrl.u32 %v10961_v41, %v744_v38  ;;  %v750_v52 = vshrl.u32 %v10959_v43, %v744_v38  ;;  %v753_v53 = vshrl.u32 %v10955_v45, %v744_v38  ;;  %v745_v54 = vshrl.u32 %v10963_v39, %v744_v38 }
  0xd2   : > { %v756_v55 = vshrl.u32 %v10957_v47, %v744_v38  ;;  %v759_v57 = vshrl.u32 %v10967_v56, %v744_v38  ;;  %vm763_vm4 = vcmp.lt.s32.totalorder %v742_v35, 3  ;;  %vm762_vm5 = vcmp.lt.s32.totalorder %v742_v35, 2 }
  0xd3   : > { %v748_v58 = vor.u32 %v747_v51, %v746_v40  ;;  %v751_v59 = vor.u32 %v750_v52, %v749_v42  ;;  %v754_v60 = vor.u32 %v753_v53, %v752_v44  ;;  %v952_v21 = vsub.s32 32, %v951_v10 }
  0xd4   : > { %v757_v61 = vor.u32 %v756_v55, %v755_v46  ;;  %v760_v62 = vor.u32 %v759_v57, %v758_v48  ;;  %v954_v23 = vshll.u32 %v10963_v39, %v951_v10  ;;  %v957_v26 = vshll.u32 %v10961_v41, %v951_v10 }
  0xd5   : > { %v766_v0 = vsel %vm764_vm2, %v754_v60, 2102212464  ;;  %v769_v1 = vsel %vm761_vm1, %v748_v58, %v751_v59  ;;  %v773_v2 = vsel %vm761_vm1, %v751_v59, %v754_v60  ;;  %v765_v7 = vsel %vm761_vm1, %v745_v54, %v748_v58 }
  0xd6   : > { %v770_v3 = vsel %vm764_vm2, %v757_v61, 920167782  ;;  %v774_v4 = vsel %vm764_vm2, %v760_v62, 1326507024  ;;  %v767_v11 = vsel %vm763_vm4, %v751_v59, %v766_v0  ;;  %v960_v27 = vshll.u32 %v10959_v43, %v951_v10 }
  0xd7   : > { %v771_v8 = vsel %vm763_vm4, %v754_v60, %v770_v3  ;;  %v775_v9 = vsel %vm763_vm4, %v757_v61, %v774_v4  ;;  %v768_v28 = vsel %vm762_vm5, %v765_v7, %v767_v11  ;;  %v963_v30 = vshll.u32 %v10955_v45, %v951_v10 }
  0xd8   : > { %v772_v12 = vsel %vm762_vm5, %v769_v1, %v771_v8  ;;  %v776_v13 = vsel %vm762_vm5, %v773_v2, %v775_v9  ;;  %v955_v32 = vshrl.u32 %v10961_v41, %v952_v21  ;;  %v958_v33 = vshrl.u32 %v10959_v43, %v952_v21 }
  0xd9   : > { %v7567_v15 = vmul.u32.u64.low %v7545_v49, %v776_v13  ;;  %v7568_v17 = vmul.u32.u64.high %v7545_v49, %v776_v13, %v7567_v15  ;;  %v7571_v18 = vmul.u32.u64.low %v7545_v49, %v772_v12  ;;  %v7572_v19 = vmul.u32.u64.high %v7545_v49, %v772_v12, %v7571_v18 }
  0xda   : > { %v961_v34 = vshrl.u32 %v10955_v45, %v952_v21  ;;  %v966_v36 = vshll.u32 %v10957_v47, %v951_v10  ;;  %v964_v35 = vshrl.u32 %v10957_v47, %v952_v21  ;;  %vm969_vm7 = vcmp.lt.s32.totalorder %v7564_v14, 1 }
  0xdb   : > { %vm786_vm6 = vc.u32 %v7568_v17, %v7571_v18  ;;  %v787_v37 = vadd.s32 1, %v7572_v19  ;;  %v956_v38 = vor.u32 %v955_v32, %v954_v23  ;;  %v959_v40 = vor.u32 %v958_v33, %v957_v26 }
  0xdc   : > { %v962_v42 = vor.u32 %v961_v34, %v960_v27  ;;  %v967_v44 = vshrl.u32 %v10967_v56, %v952_v21  ;;  %v784_v46 = vmul.u32 %v7545_v49, %v768_v28  ;;  %v965_v48 = vor.u32 %v964_v35, %v963_v30 }
  0xdd   : > { %vm971_vm8 = vcmp.lt.s32.totalorder %v7564_v14, 3  ;;  %vm972_vm9 = vcmp.lt.s32.totalorder %v7564_v14, 4  ;;  %v788_v51 = vsel %vm786_vm6, %v787_v37, %v7572_v19  ;;  %vm970_vm10 = vcmp.lt.s32.totalorder %v7564_v14, 2 }
  0xde   : > { %v968_v52 = vor.u32 %v967_v44, %v966_v36  ;;  %v977_v53 = vsel %vm969_vm7, %v956_v38, %v959_v40  ;;  %v978_v54 = vsel %vm972_vm9, %v965_v48, 920167782  ;;  %v981_v55 = vsel %vm969_vm7, %v959_v40, %v962_v42 }
  0xdf   : > { %v985_v49 = vshll.u32 %v945_v29, 8  ;;  %v229_v57 = vstv %s7516_s9  ;;  %v979_v58 = vsel %vm971_vm8, %v962_v42, %v978_v54  ;;  %v789_v60 = vadd.s32 %v788_v51, %v784_v46  ;;  %s205_s9 = sand.u32 1, %s7411_s16  }
  0xe0   : > { %v982_v59 = vsel %vm972_vm9, %v968_v52, 1326507024  ;;  %v980_v61 = vsel %vm970_vm10, %v977_v53, %v979_v58  ;;  %v231_v1 = vmul.f32 %v229_v57, %v7523_v16  ;;  %v953_v4 = vshrl.u32 %v10963_v39, %v952_v21  ;;  %s6739_s19 = scalar_lea.sflag [#allocation3], %s205_s9 }
  0xe1   : > { %v983_v62 = vsel %vm971_vm8, %v965_v48, %v982_v59  ;;  %v7617_v2 = vmul.u32.u64.low %v985_v49, %v980_v61  ;;  %v7618_v3 = vmul.u32.u64.high %v985_v49, %v980_v61, %v7617_v2  ;;  %v1148_v7 = vand.u32 2139095040, %v7612_v63 }
  0xe2   : > { %v984_v0 = vsel %vm970_vm10, %v981_v55, %v983_v62  ;;  %v790_v8 = vadd.s32 536870912, %v789_v60  ;;  %v974_v9 = vsel %vm972_vm9, %v962_v42, 2102212464  ;;  %v269_v11 = vstv %s7070_s23 }
  0xe3   : > { %v7622_v5 = vmul.u32.u64.low %v985_v49, %v984_v0  ;;  %v7623_v6 = vmul.u32.u64.high %v985_v49, %v984_v0, %v7622_v5  ;;  %v1149_v10 = vshrl.u32 %v1148_v7, 23  ;;  %v7629_v12 = vadd.f32 %v231_v1, %v7526_v20 }
  0xe4   : > { %v973_v13 = vsel %vm969_vm7, %v953_v4, %v956_v38  ;;  %v975_v15 = vsel %vm971_vm8, %v959_v40, %v974_v9  ;;  %v237_v21 = vstv %s7518_s10  ;;  %v7636_v23 = vshrl.u32 %v790_v8, 30  ;;  %s6828_s10 = sshll.u32 %s205_s9, 4 }
  0xe5   : > { %v6865_v19 = vadd.s32 4294967169, %v1149_v10  ;;  %v271_v27 = vmul.f32 %v269_v11, %v7523_v16  ;;  %v976_v28 = vsel %vm970_vm10, %v973_v13, %v975_v15  ;;  %v995_v29 = vadd.s32 1, %v7618_v3  ;;  %s207_s12 = scalar_lea.vmem [#allocation2], %s6828_s10 }
  0xe6   : > { %11032 = vst [vmem:[#allocation6_spill] sm:$0xff] %v7636_v23  ;;  %v316_v30 = vand.u32 2139095040, %v7629_v12  ;;  %v239_v31 = vmul.f32 %v237_v21, %v7523_v16  ;;  %vm994_vm11 = vc.u32 %v7623_v6, %v7617_v2  ;;  %v792_v32 = vshll.u32 %v7636_v23, 30  ;;  %s6753_s13 = sshll.u32 %s207_s12, 4  ;;  %s10905_s13 = int_to_ptr.vmem [resolvable:$true] %s6753_s13 }
  0xe7   : > { %v1155_v26 = vadd.s32 1, %v6865_v19  ;;  %v10953_v33 = vand.u32 2147483647, %v7612_v63  ;;  %v992_v36 = vmul.u32 %v985_v49, %v976_v28  ;;  %v7649_v14 = vadd.f32 %v271_v27, %v7526_v20  ;;  %s7359_s23 = scalar_lea.vmem %s10905_s13, 256 }
  0xe8   : > { %v996_v35 = vsel %vm994_vm11, %v995_v29, %v7618_v3  ;;  %v317_v38 = vshrl.u32 %v316_v30, 23  ;;  %v7653_v40 = vadd.f32 %v239_v31, %v7526_v20  ;;  %v7655_v44 = vsub.s32 %v789_v60, %v792_v32  ;;  %p7360_p11 = scmp.ne.s32.totalorder %s10905_s13, %s7359_s23 }
  0xe9   : > { %vm1156_vm12 = vcmp.gt.s32.totalorder %v1155_v26, 0  ;;  %11033 = vst [vmem:[#allocation7_spill] sm:$0xff] %v7649_v14  ;;  %v1152_v46 = vand.u32 8388607, %v10953_v33  ;;  %v7661_v52 = vadd.s32 %v996_v35, %v992_v36  ;;  %v1356_v55 = vand.u32 2139095040, %v7649_v14 }
  0xea   : > { %v1157_v34 = vsel %vm1156_vm12, %v1155_v26, 0  ;;  %v6833_v62 = vadd.s32 4294967169, %v317_v38  ;;  %v795_v4 = vsub.s32 0, %v7655_v44  ;;  %v524_v9 = vand.u32 2139095040, %v7653_v40  ;;  %p7361_p12 = pnand %p7360_p11, %p7499_p5 }
  0xeb   : > { %v1159_v37 = vand.u32 31, %v1157_v34  ;;  %v1158_v49 = vshrl.u32 %v1157_v34, 5  ;;  %v1153_v0 = vor.u32 8388608, %v1152_v46  ;;  %v998_v10 = vadd.s32 536870912, %v7661_v52 }
  0xec   : > { %v1357_v11 = vshrl.u32 %v1356_v55, 23  ;;  %v7678_v19 = vcombine.high %v7530_v22, %v7530_v22  ;;  %v6850_v27 = vmin.u32 %v795_v4, %v7655_v44  ;;  %v323_v46 = vadd.s32 1, %v6833_v62  ;;  %p7362_p13 = pneg %p7361_p12 }
  0xed   : > { %v1160_v42 = vsub.s32 32, %v1159_v37  ;;  %v1162_v48 = vshll.u32 %v10963_v39, %v1159_v37  ;;  %v1165_v51 = vshll.u32 %v10961_v41, %v1159_v37  ;;  %v1168_v53 = vshll.u32 %v10959_v43, %v1159_v37 }
  0xee   : > { %v1171_v54 = vshll.u32 %v10955_v45, %v1159_v37  ;;  %v1174_v61 = vshll.u32 %v10957_v47, %v1159_v37  ;;  %vm1177_vm13 = vcmp.lt.s32.totalorder %v1158_v49, 1  ;;  %vm1179_vm14 = vcmp.lt.s32.totalorder %v1158_v49, 3  ;;  %11034 = vst [vmem:[#allocation8_spill] sm:$0xff] %v7678_v19 }
  0xef   : > { %v1163_v57 = vshrl.u32 %v10961_v41, %v1160_v42  ;;  %v1166_v58 = vshrl.u32 %v10959_v43, %v1160_v42  ;;  %v1169_v59 = vshrl.u32 %v10955_v45, %v1160_v42  ;;  %v1172_v60 = vshrl.u32 %v10957_v47, %v1160_v42 }
  0xf0   : > { %v1175_v8 = vshrl.u32 %v10967_v56, %v1160_v42  ;;  %v1161_v13 = vshrl.u32 %v10963_v39, %v1160_v42  ;;  %vm1180_vm15 = vcmp.lt.s32.totalorder %v1158_v49, 4  ;;  %vm1178_vm0 = vcmp.lt.s32.totalorder %v1158_v49, 2 }
  0xf1   : > { %v1164_v1 = vor.u32 %v1163_v57, %v1162_v48  ;;  %v1167_v3 = vor.u32 %v1166_v58, %v1165_v51  ;;  %v1170_v5 = vor.u32 %v1169_v59, %v1168_v53  ;;  %v1173_v7 = vor.u32 %v1172_v60, %v1171_v54 }
  0xf2   : > { %v1176_v15 = vor.u32 %v1175_v8, %v1174_v61  ;;  %v1193_v30 = vshll.u32 %v1153_v0, 8  ;;  %v7683_v31 = vshrl.u32 %v998_v10, 30  ;;  %v6873_v36 = vadd.s32 4294967169, %v1357_v11 }
  0xf3   : > { %v1182_v21 = vsel %vm1180_vm15, %v1170_v5, 2102212464  ;;  %v1185_v26 = vsel %vm1177_vm13, %v1164_v1, %v1167_v3  ;;  %v1186_v28 = vsel %vm1180_vm15, %v1173_v7, 920167782  ;;  %v1189_v29 = vsel %vm1177_vm13, %v1167_v3, %v1170_v5 }
  0xf4   : > { %11035 = vst [vmem:[#allocation9_spill] sm:$0xff] %v7683_v31  ;;  %v1187_v32 = vsel %vm1179_vm14, %v1170_v5, %v1186_v28  ;;  %v1190_v34 = vsel %vm1180_vm15, %v1176_v15, 1326507024  ;;  %v1181_v37 = vsel %vm1177_vm13, %v1161_v13, %v1164_v1  ;;  %v1183_v35 = vsel %vm1179_vm14, %v1167_v3, %v1182_v21 }
  0xf5   : > { %v1188_v38 = vsel %vm1178_vm0, %v1185_v26, %v1187_v32  ;;  %v1191_v42 = vsel %vm1179_vm14, %v1173_v7, %v1190_v34  ;;  %v525_v48 = vshrl.u32 %v524_v9, 23  ;;  %v10952_v53 = vand.u32 2147483647, %v7649_v14 }
  0xf6   : > { %v1192_v51 = vsel %vm1178_vm0, %v1189_v29, %v1191_v42  ;;  %v277_v57 = vstv %s7072_s27  ;;  %v797_v58 = vclz %v6850_v27  ;;  %v1184_v59 = vsel %vm1178_vm0, %v1181_v37, %v1183_v35  ;;  %s7435_s27 = smov [#allocation2]  }
  0xf7   : > { %v7692_v54 = vmul.u32.u64.low %v1193_v30, %v1192_v51  ;;  %v7693_v55 = vmul.u32.u64.high %v1193_v30, %v1192_v51, %v7692_v54  ;;  %v7696_v60 = vmul.u32.u64.low %v1193_v30, %v1188_v38  ;;  %v7697_v61 = vmul.u32.u64.high %v1193_v30, %v1188_v38, %v7696_v60 }
  0xf8   : > { %v1000_v0 = vshll.u32 %v7683_v31, 30  ;;  %v1363_v1 = vadd.s32 1, %v6873_v36  ;;  %vm324_vm1 = vcmp.gt.s32.totalorder %v323_v46, 0  ;;  %v6841_v62 = vadd.s32 4294967169, %v525_v48 }
  0xf9   : > { %v836_v3 = vand.u32 2139095040, %v7678_v19  ;;  %v1360_v4 = vand.u32 8388607, %v10952_v53  ;;  %v1200_v5 = vmul.u32 %v1193_v30, %v1184_v59  ;;  %vm1202_vm2 = vc.u32 %v7693_v55, %v7696_v60 }
  0xfa   : > { %vm1364_vm3 = vcmp.gt.s32.totalorder %v1363_v1, 0  ;;  %v279_v49 = vmul.f32 %v277_v57, %v7523_v16  ;;  %v6851_v7 = vadd.s32 4294967294, %v797_v58  ;;  %v1203_v8 = vadd.s32 1, %v7697_v61 }
  0xfb   : > { %v7710_v9 = vcombine.high %v7629_v12, %v7629_v12  ;;  %v7713_v10 = vsub.s32 %v7661_v52, %v1000_v0  ;;  %v1365_v11 = vsel %vm1364_vm3, %v1363_v1, 0  ;;  %v7716_v15 = vsel %vm324_vm1, %v323_v46, 0 }
  0xfc   : > { %v7718_v21 = vshrl.u32 %v836_v3, 23  ;;  %v1204_v26 = vsel %vm1202_vm2, %v1203_v8, %v7697_v61  ;;  %v1367_v27 = vand.u32 31, %v1365_v11  ;;  %v7721_v28 = vadd.s32 1, %v6841_v62 }
  0xfd   : > { %v1205_v29 = vadd.s32 %v1204_v26, %v1200_v5  ;;  %v1361_v30 = vor.u32 8388608, %v1360_v4  ;;  %v7724_v32 = vadd.f32 %v279_v49, %v7526_v20  ;;  %vm6852_vm4 = vcmp.lt.s32.totalorder %v6851_v7, 0 }
  0xfe   : > { %v1368_v52 = vsub.s32 32, %v1367_v27  ;;  %v1370_v34 = vshll.u32 %v10963_v39, %v1367_v27  ;;  %v1373_v36 = vshll.u32 %v10961_v41, %v1367_v27  ;;  %v1003_v37 = vsub.s32 0, %v7713_v10 }
  0xff   : > { %11036 = vst [vmem:[#allocation10_spill] sm:$0xff] %v7724_v32  ;;  %v1366_v35 = vshrl.u32 %v1365_v11, 5  ;;  %v1376_v38 = vshll.u32 %v10959_v43, %v1367_v27  ;;  %v1379_v42 = vshll.u32 %v10955_v45, %v1367_v27  ;;  %v1206_v46 = vadd.s32 536870912, %v1205_v29 }
 0x100   : > { %v1371_v48 = vshrl.u32 %v10961_v41, %v1368_v52  ;;  %v1374_v51 = vshrl.u32 %v10959_v43, %v1368_v52  ;;  %v1382_v54 = vshll.u32 %v10957_v47, %v1367_v27  ;;  %v1369_v57 = vshrl.u32 %v10963_v39, %v1368_v52 }
 0x101   : > { %v1377_v58 = vshrl.u32 %v10955_v45, %v1368_v52  ;;  %v1380_v59 = vshrl.u32 %v10957_v47, %v1368_v52  ;;  %v1383_v61 = vshrl.u32 %v10967_v56, %v1368_v52  ;;  %v7739_v0 = vsel %vm6852_vm4, 0, %v6851_v7 }
 0x102   : > { %v1372_v1 = vor.u32 %v1371_v48, %v1370_v34  ;;  %v1375_v62 = vor.u32 %v1374_v51, %v1373_v36  ;;  %v1401_v3 = vshll.u32 %v1361_v30, 8  ;;  %v6858_v4 = vmin.u32 %v1003_v37, %v7713_v10 }
 0x103   : > { %v1378_v5 = vor.u32 %v1377_v58, %v1376_v38  ;;  %v1381_v49 = vor.u32 %v1380_v59, %v1379_v42  ;;  %vm1385_vm5 = vcmp.lt.s32.totalorder %v1366_v35, 1  ;;  %v7742_v8 = vshrl.u32 %v1206_v46, 30 }
 0x104   : > { %v1384_v11 = vor.u32 %v1383_v61, %v1382_v54  ;;  %vm1387_vm6 = vcmp.lt.s32.totalorder %v1366_v35, 3  ;;  %v1564_v26 = vand.u32 2139095040, %v7724_v32  ;;  %v805_v27 = vsub.s32 4294967266, %v7739_v0 }
 0x105   : > { %11037 = vst [vmem:[#allocation11_spill] sm:$0xff] %v7742_v8  ;;  %vm1386_vm7 = vcmp.lt.s32.totalorder %v1366_v35, 2  ;;  %vm1388_vm8 = vcmp.lt.s32.totalorder %v1366_v35, 4  ;;  %v1389_v7 = vsel %vm1385_vm5, %v1369_v57, %v1372_v1  ;;  %v1393_v34 = vsel %vm1385_vm5, %v1372_v1, %v1375_v62 }
 0x106   : > { %v1390_v52 = vsel %vm1388_vm8, %v1378_v5, 2102212464  ;;  %v1394_v36 = vsel %vm1388_vm8, %v1381_v49, 920167782  ;;  %v1397_v30 = vsel %vm1385_vm5, %v1375_v62, %v1378_v5  ;;  %v1005_v48 = vclz %v6858_v4 }
 0x107   : > { %v1391_v37 = vsel %vm1387_vm6, %v1375_v62, %v1390_v52  ;;  %v1395_v38 = vsel %vm1387_vm6, %v1378_v5, %v1394_v36  ;;  %v1398_v42 = vsel %vm1388_vm8, %v1384_v11, 1326507024  ;;  %v1208_v46 = vshll.u32 %v7742_v8, 30 }
 0x108   : > { %v1396_v51 = vsel %vm1386_vm7, %v1393_v34, %v1395_v38  ;;  %v1399_v54 = vsel %vm1387_vm6, %v1381_v49, %v1398_v42  ;;  %v1565_v58 = vshrl.u32 %v1564_v26, 23  ;;  %v1392_v59 = vsel %vm1386_vm7, %v1389_v7, %v1391_v37 }
 0x109   : > { %v1400_v57 = vsel %vm1386_vm7, %v1397_v30, %v1399_v54  ;;  %v7753_v61 = vmul.u32.u64.low %v1401_v3, %v1396_v51  ;;  %v7754_v1 = vmul.u32.u64.high %v1401_v3, %v1396_v51, %v7753_v61  ;;  %v801_v62 = vsub.s32 32, %v7739_v0 }
 0x10a   : > { %v7758_v4 = vmul.u32.u64.low %v1401_v3, %v1400_v57  ;;  %v7759_v5 = vmul.u32.u64.high %v1401_v3, %v1400_v57, %v7758_v4  ;;  %v6881_v11 = vadd.s32 4294967169, %v1565_v58  ;;  %v785_v52 = vadd.s32 %v7571_v18, %v7568_v17 }
 0x10b   : > { %v806_v34 = vadd.s32 127, %v805_v27  ;;  %v6859_v35 = vadd.s32 4294967294, %v1005_v48  ;;  %v7765_v7 = vsub.s32 %v1205_v29, %v1208_v46  ;;  %v1408_v36 = vmul.u32 %v1401_v3, %v1392_v59 }
 0x10c   : > { %v1571_v30 = vadd.s32 1, %v6881_v11  ;;  %v7768_v37 = vand.u32 31, %v7716_v15  ;;  %v6853_v38 = vadd.s32 4294967169, %v7718_v21  ;;  %v7773_v42 = vcombine.high %v7535_v25, %v7535_v25 }
 0x10d   : > { %v1411_v17 = vadd.s32 1, %v7754_v1  ;;  %vm532_vm9 = vcmp.gt.s32.totalorder %v7721_v28, 0  ;;  %v803_v18 = vshrl.u32 %v785_v52, %v801_v62  ;;  %vm1410_vm10 = vc.u32 %v7759_v5, %v7753_v61 }
 0x10e   : > { %11038 = vst [vmem:[#allocation12_spill] sm:$0xff] %v7773_v42  ;;  %vm1572_vm11 = vcmp.gt.s32.totalorder %v1571_v30, 0  ;;  %v802_v29 = vshll.u32 %v7655_v44, %v7739_v0  ;;  %v807_v3 = vshll.u32 %v806_v34, 23  ;;  %vm6860_vm12 = vcmp.lt.s32.totalorder %v6859_v35, 0 }
 0x10f   : > { %v1412_v27 = vsel %vm1410_vm10, %v1411_v17, %v7754_v1  ;;  %v1573_v21 = vsel %vm1572_vm11, %v1571_v30, 0  ;;  %v1211_v48 = vsub.s32 0, %v7765_v7  ;;  %v7786_v54 = vshrl.u32 %v7716_v15, 5 }
 0x110   : > { %v7783_v46 = vadd.s32 %v1412_v27, %v1408_v36  ;;  %v1575_v51 = vand.u32 31, %v1573_v21  ;;  %v7789_v58 = vsub.s32 32, %v7768_v37  ;;  %v7793_v59 = vcombine.high %v7653_v40, %v7653_v40 }
 0x111   : > { %v1044_v44 = vand.u32 2139095040, %v7773_v42  ;;  %v533_v0 = vsel %vm532_vm9, %v7721_v28, 0  ;;  %v804_v57 = vor.u32 %v803_v18, %v802_v29  ;;  %v7799_v1 = vadd.s32 1, %v6853_v38 }
 0x112   : > { %v7801_v62 = vsub.s32 32, %v1575_v51  ;;  %v808_v15 = vor.u32 4788187, %v807_v3  ;;  %v7803_v4 = vsel %vm6860_vm12, 0, %v6859_v35  ;;  %v1414_v11 = vadd.s32 536870912, %v7783_v46 }
 0x113   : > { %11039 = vst [vmem:[#allocation13_spill] sm:$0xff] %v7799_v1  ;;  %v1587_v52 = vshll.u32 %v10955_v45, %v1575_v51  ;;  %v6866_v34 = vmin.u32 %v1211_v48, %v7765_v7  ;;  %v10966_v36 = vand.u32 2147483647, %v7724_v32  ;;  %v7809_v30 = vshrl.u32 %v1573_v21, 5 }
 0x114   : > { %v285_v17 = vstv %s7074_s28  ;;  %v1578_v28 = vshll.u32 %v10963_v39, %v1575_v51  ;;  %v1581_v38 = vshll.u32 %v10961_v41, %v1575_v51  ;;  %v1584_v18 = vshll.u32 %v10959_v43, %v1575_v51  ;;  %s7363_s28 = sshll.u32 %s7435_s27, 4  ;;  %s7364_s28 = int_to_ptr.vmem [resolvable:$false] %s7363_s28 }
 0x115   : > { %v1588_v35 = vshrl.u32 %v10957_v47, %v7801_v62  ;;  %v1579_v29 = vshrl.u32 %v10961_v41, %v7801_v62  ;;  %v1582_v3 = vshrl.u32 %v10959_v43, %v7801_v62  ;;  %v1585_v27 = vshrl.u32 %v10955_v45, %v7801_v62  ;;  %s7365_s29 = scalar_lea.vmem %s7364_s28, 512  ;;  %p7366_p0 = scmp.lt.s32.totalorder %s10905_s13, %s7364_s28 }
 0x116   : > { %v1590_v21 = vshll.u32 %v10957_v47, %v1575_v51  ;;  %v7825_v48 = vcombine.high %v7612_v63, %v7612_v63  ;;  %v7829_v53 = vcombine.high %v7649_v14, %v7649_v14  ;;  %v7831_v13 = vshrl.u32 %v1414_v11, 30  ;;  %p7367_p1 = scmp.lt.s32.totalorder %s7365_s29, %s7359_s23 }
 0x117   : > { %v1589_v33 = vor.u32 %v1588_v35, %v1587_v52  ;;  %v809_v50 = vand.u32 2147483647, %v808_v15  ;;  %v1568_v49 = vand.u32 8388607, %v10966_v36  ;;  %v1591_v45 = vshrl.u32 %v10967_v56, %v7801_v62 }
 0x118   : > { %11040 = vst [vmem:[#allocation14_spill] sm:$0xff] %v7825_v48  ;;  %11041 = vst [vmem:[#allocation15_spill] sm:$0xff] %v7829_v53  ;;  %v287_v51 = vmul.f32 %v285_v17, %v7523_v16  ;;  %v811_v47 = vcvt.s32.f32 %v804_v57  ;;  %v1013_v43 = vsub.s32 4294967266, %v7803_v4  ;;  %v1213_v41 = vclz %v6866_v34  ;;  %p7368_p2 = por %p7367_p1, %p7366_p0 }
 0x119   : > { %11042 = vst [vmem:[#allocation16_spill] sm:$0xff] %v7831_v13  ;;  %vm1596_vm13 = vcmp.lt.s32.totalorder %v7809_v30, 4  ;;  %v1580_v26 = vor.u32 %v1579_v29, %v1578_v28  ;;  %v1583_v39 = vor.u32 %v1582_v3, %v1581_v38  ;;  %v1586_v11 = vor.u32 %v1585_v27, %v1584_v18 }
 0x11a   : > { %v1592_v24 = vor.u32 %v1591_v45, %v1590_v21  ;;  %v1416_v15 = vshll.u32 %v7831_v13, 30  ;;  %vm1593_vm14 = vcmp.lt.s32.totalorder %v7809_v30, 1  ;;  %vm1595_vm15 = vcmp.lt.s32.totalorder %v7809_v30, 3  ;;  %p7369_p3 = pnand %p7368_p2, %p7362_p13 }
 0x11b   : > { %v1602_v52 = vsel %vm1596_vm13, %v1589_v33, 920167782  ;;  %v812_v16 = vmul.f32 %v811_v47, %v809_v50  ;;  %v1569_v57 = vor.u32 8388608, %v1568_v49  ;;  %v7848_v17 = vadd.f32 %v287_v51, %v7526_v20 }
 0x11c   : > { %v1606_v34 = vsel %vm1596_vm13, %v1592_v24, 1326507024  ;;  %vm11006_vm0 = vcmp.lt.s32.totalorder %v7530_v22, 0  ;;  %v1009_v45 = vsub.s32 32, %v7803_v4  ;;  %v1014_v28 = vadd.s32 127, %v1013_v43 }
 0x11d   : > { %11043 = vst [vmem:[#allocation17_spill] sm:$0xff] %v7848_v17  ;;  %v6867_v38 = vadd.s32 4294967294, %v1213_v41  ;;  %vm1594_vm1 = vcmp.lt.s32.totalorder %v7809_v30, 2  ;;  %v1601_v18 = vsel %vm1593_vm14, %v1580_v26, %v1583_v39  ;;  %v1603_v47 = vsel %vm1595_vm15, %v1586_v11, %v1602_v52 }
 0x11e   : > { %v1605_v24 = vsel %vm1593_vm14, %v1583_v39, %v1586_v11  ;;  %v1607_v20 = vsel %vm1595_vm15, %v1589_v33, %v1606_v34  ;;  %v7861_v50 = vshrl.u32 %v533_v0, 5  ;;  %v7863_v49 = vand.u32 31, %v533_v0 }
 0x11f   : > { %v993_v41 = vadd.s32 %v7617_v2, %v7623_v6  ;;  %v7868_v43 = vsub.s32 %v7783_v46, %v1416_v15  ;;  %v11044_v35 = vand.u32 2147483647, %v7530_v22  ;;  %v11045_v29 = vmov 0 }
 0x120   : > { %v7876_v3 = vshrl.u32 %v1044_v44, 23  ;;  %v1252_v33 = vand.u32 2139095040, %v7825_v48  ;;  %v7879_v27 = vshll.u32 %v1569_v57, 8  ;;  %v1772_v0 = vand.u32 2139095040, %v7848_v17 }
 0x121   : > { %vm7872_vm2 = vcmp.le.f32.partialorder %v11044_v35, 0.7853982  ;;  %v1011_v21 = vshrl.u32 %v993_v41, %v1009_v45  ;;  %v1460_v2 = vand.u32 2139095040, %v7829_v53  ;;  %v1604_v6 = vsel %vm1594_vm1, %v1601_v18, %v1603_v47 }
 0x122   : > { %v11046_v29 = vsel %vm7872_vm2, 4294967295, %v11045_v29  ;;  %v1608_v46 = vsel %vm1594_vm1, %v1605_v24, %v1607_v20  ;;  %v813_v51 = vxor.u32 2147483648, %v812_v16  ;;  %v1015_v15 = vshll.u32 %v1014_v28, 23 }
 0x123   : > { %11047 = vst [vmem:[#allocation18_spill] sm:$0xff] %v11046_v29  ;;  %vm6868_vm3 = vcmp.lt.s32.totalorder %v6867_v38, 0  ;;  %v1773_v44 = vshrl.u32 %v1772_v0, 23  ;;  %v1010_v52 = vshll.u32 %v7713_v10, %v7803_v4  ;;  %v1419_v57 = vsub.s32 0, %v7868_v43 }
 0x124   : > { %v11048_v34 = vmov 683565275   ;;  %v11049_v41 = vand.u32 2139095040, %v7710_v9  ;;  %v7895_v18 = vmul.u32.u64.low %v7879_v27, %v1608_v46  ;;  %v7896_v47 = vmul.u32.u64.high %v7879_v27, %v1608_v46, %v7895_v18 }
 0x125   : > { %v1577_v45 = vshrl.u32 %v11048_v34, %v7801_v62  ;;  %v7899_v24 = vmul.u32.u64.low %v7879_v27, %v1604_v6  ;;  %v7900_v28 = vmul.u32.u64.high %v7879_v27, %v1604_v6, %v7899_v24  ;;  %v7903_v20 = vor.u32 %v1011_v21, %v1010_v52 }
 0x126   : > { %v421_v35 = vshrl.u32 %v11049_v41, 23  ;;  %v1216_v10 = vsel %vm6868_vm3, 0, %v6867_v38  ;;  %v1598_v4 = vsel %vm1596_vm13, %v1586_v11, 2102212464  ;;  %v6889_v0 = vadd.s32 4294967169, %v1773_v44 }
 0x127   : > { %v814_v62 = vsel %vm11006_vm0, %v813_v51, %v812_v16  ;;  %v7909_v41 = vor.u32 4788187, %v1015_v15  ;;  %v1201_v46 = vadd.s32 %v7696_v60, %v7693_v55  ;;  %v1217_v18 = vsub.s32 32, %v1216_v10 }
 0x128   : > { %v7913_v36 = vshrl.u32 %v1252_v33, 23  ;;  %v10969_v6 = vand.u32 2147483647, %v7848_v17  ;;  %v1779_v21 = vadd.s32 1, %v6889_v0  ;;  %v6837_v52 = vadd.s32 4294967169, %v421_v35 }
 0x129   : > { %v1221_v38 = vsub.s32 4294967266, %v1216_v10  ;;  %v6874_v56 = vmin.u32 %v1419_v57, %v7868_v43  ;;  %v1597_v11 = vsel %vm1593_vm14, %v1577_v45, %v1580_v26  ;;  %v1599_v16 = vsel %vm1595_vm15, %v1583_v39, %v1598_v4 }
 0x12a   : > { %v7924_v55 = vsel %vm7872_vm2, %v7530_v22, %v814_v62  ;;  %v1019_v60 = vcvt.s32.f32 %v7903_v20  ;;  %v7927_v33 = vshrl.u32 %v1460_v2, 23  ;;  %vm1780_vm4 = vcmp.gt.s32.totalorder %v1779_v21, 0 }
 0x12b   : > { %v1017_v51 = vand.u32 2147483647, %v7909_v41  ;;  %v1218_v15 = vshll.u32 %v7765_v7, %v1216_v10  ;;  %v1219_v44 = vshrl.u32 %v1201_v46, %v1217_v18  ;;  %v1781_v57 = vsel %vm1780_vm4, %v1779_v21, 0 }
 0x12c   : > { %v1600_v26 = vsel %vm1594_vm1, %v1597_v11, %v1599_v16  ;;  %v1776_v39 = vand.u32 8388607, %v10969_v6  ;;  %v1783_v45 = vand.u32 31, %v1781_v57  ;;  %v427_v35 = vadd.s32 1, %v6837_v52 }
 0x12d   : > { %v1222_v4 = vadd.s32 127, %v1221_v38  ;;  %v1421_v0 = vclz %v6874_v56  ;;  %vm1618_vm5 = vc.u32 %v7896_v47, %v7899_v24  ;;  %v1619_v2 = vadd.s32 1, %v7900_v28 }
 0x12e   : > { %v1782_v20 = vshrl.u32 %v1781_v57, 5  ;;  %v1784_v62 = vsub.s32 32, %v1783_v45  ;;  %v1786_v7 = vshll.u32 %v11048_v34, %v1783_v45  ;;  %v11050_v10 = vmov 2475754826  }
 0x12f   : > { %v1789_v41 = vshll.u32 %v11050_v10, %v1783_v45  ;;  %v1616_v30 = vmul.u32 %v7879_v27, %v1600_v26  ;;  %v11051_v46 = vmov 2131351028   ;;  %v11052_v21 = vmov 2102212464  }
 0x130   : > { %v1792_v18 = vshll.u32 %v11051_v46, %v1783_v45  ;;  %v1795_v11 = vshll.u32 %v11052_v21, %v1783_v45  ;;  %v11053_v52 = vmov 920167782   ;;  %v1777_v56 = vor.u32 8388608, %v1776_v39 }
 0x131   : > { %v1798_v38 = vshll.u32 %v11053_v52, %v1783_v45  ;;  %v1787_v16 = vshrl.u32 %v11050_v10, %v1784_v62  ;;  %v1790_v6 = vshrl.u32 %v11051_v46, %v1784_v62  ;;  %vm428_vm6 = vcmp.gt.s32.totalorder %v427_v35, 0 }
 0x132   : > { %v1620_v57 = vsel %vm1618_vm5, %v1619_v2, %v7900_v28  ;;  %v1793_v13 = vshrl.u32 %v11052_v21, %v1784_v62  ;;  %v1796_v8 = vshrl.u32 %v11053_v52, %v1784_v62  ;;  %v11054_v53 = vmov 1326507024  }
 0x133   : > { %v1799_v27 = vshrl.u32 %v11054_v53, %v1784_v62  ;;  %v6875_v26 = vadd.s32 4294967294, %v1421_v0  ;;  %v1788_v48 = vor.u32 %v1787_v16, %v1786_v7  ;;  %v1791_v31 = vor.u32 %v1790_v6, %v1789_v41 }
 0x134   : > { %vm1801_vm7 = vcmp.lt.s32.totalorder %v1782_v20, 1  ;;  %v1794_v42 = vor.u32 %v1793_v13, %v1792_v18  ;;  %v1797_v45 = vor.u32 %v1796_v8, %v1795_v11  ;;  %v429_v29 = vsel %vm428_vm6, %v427_v35, 0 }
 0x135   : > { %v1800_v39 = vor.u32 %v1799_v27, %v1798_v38  ;;  %v7950_v22 = vor.u32 %v1219_v44, %v1218_v15  ;;  %v1223_v23 = vshll.u32 %v1222_v4, 23  ;;  %v7952_v19 = vadd.s32 %v1620_v57, %v1616_v30 }
 0x136   : > { %vm1803_vm8 = vcmp.lt.s32.totalorder %v1782_v20, 3  ;;  %vm1802_vm9 = vcmp.lt.s32.totalorder %v1782_v20, 2  ;;  %vm1804_vm10 = vcmp.lt.s32.totalorder %v1782_v20, 4  ;;  %v1809_v28 = vsel %vm1801_vm7, %v1788_v48, %v1791_v31 }
 0x137   : > { %v7955_v2 = vshll.u32 %v1777_v56, 8  ;;  %vm6876_vm11 = vcmp.lt.s32.totalorder %v6875_v26, 0  ;;  %v1785_v6 = vshrl.u32 %v11048_v34, %v1784_v62  ;;  %v1810_v0 = vsel %vm1804_vm10, %v1797_v45, 920167782 }
 0x138   : > { %v431_v13 = vand.u32 31, %v429_v29  ;;  %v1806_v8 = vsel %vm1804_vm10, %v1794_v42, 2102212464  ;;  %v1811_v35 = vsel %vm1803_vm8, %v1794_v42, %v1810_v0  ;;  %v1813_v15 = vsel %vm1801_vm7, %v1791_v31, %v1794_v42 }
 0x139   : > { %v1814_v44 = vsel %vm1804_vm10, %v1800_v39, 1326507024  ;;  %v7960_v4 = vor.u32 4788187, %v1223_v23  ;;  %v1622_v7 = vadd.s32 536870912, %v7952_v19  ;;  %v1812_v41 = vsel %vm1802_vm9, %v1809_v28, %v1811_v35 }
 0x13a   : > { %v1815_v30 = vsel %vm1803_vm8, %v1797_v45, %v1814_v44  ;;  %v7965_v18 = vsel %vm6876_vm11, 0, %v6875_v26  ;;  %v7969_v11 = vmul.u32.u64.low %v7955_v2, %v1812_v41  ;;  %v7970_v38 = vmul.u32.u64.high %v7955_v2, %v1812_v41, %v7969_v11 }
 0x13b   : > { %v1816_v62 = vsel %vm1802_vm9, %v1813_v15, %v1815_v30  ;;  %v7973_v56 = vmul.f32 %v1019_v60, %v1017_v51  ;;  %v1409_v23 = vadd.s32 %v7753_v61, %v7759_v5  ;;  %v1805_v42 = vsel %vm1801_vm7, %v1785_v6, %v1788_v48 }
 0x13c   : > { %v1807_v16 = vsel %vm1803_vm8, %v1791_v31, %v1806_v8  ;;  %v7980_v57 = vmul.u32.u64.low %v7955_v2, %v1816_v62  ;;  %v7981_v27 = vmul.u32.u64.high %v7955_v2, %v1816_v62, %v7980_v57  ;;  %v11055_v26 = vand.u32 2147483647, %v7710_v9 }
 0x13d   : > { %v432_v39 = vsub.s32 32, %v431_v13  ;;  %v1429_v51 = vsub.s32 4294967266, %v7965_v18  ;;  %v7988_v0 = vshrl.u32 %v1622_v7, 30  ;;  %v1808_v61 = vsel %vm1802_vm9, %v1805_v42, %v1807_v16 }
 0x13e   : > { %v424_v45 = vand.u32 8388607, %v11055_v26  ;;  %v434_v31 = vshll.u32 %v11048_v34, %v431_v13  ;;  %v1827_v6 = vadd.s32 1, %v7970_v38  ;;  %v437_v8 = vshll.u32 %v11050_v10, %v431_v13 }
 0x13f   : > { %11056 = vst [vmem:[#allocation19_spill] sm:$0xff] %v7988_v0  ;;  %v435_v5 = vshrl.u32 %v11050_v10, %v432_v39  ;;  %v438_v48 = vshrl.u32 %v11051_v46, %v432_v39  ;;  %v440_v35 = vshll.u32 %v11051_v46, %v431_v13  ;;  %v441_v15 = vshrl.u32 %v11052_v21, %v432_v39 }
 0x140   : > { %v1425_v44 = vsub.s32 32, %v7965_v18  ;;  %vm1826_vm12 = vc.u32 %v7981_v27, %v7969_v11  ;;  %v425_v20 = vor.u32 8388608, %v424_v45  ;;  %v430_v7 = vshrl.u32 %v429_v29, 5 }
 0x141   : > { %v1824_v41 = vmul.u32 %v7955_v2, %v1808_v61  ;;  %v436_v30 = vor.u32 %v435_v5, %v434_v31  ;;  %v439_v62 = vor.u32 %v438_v48, %v437_v8  ;;  %v442_v42 = vor.u32 %v441_v15, %v440_v35 }
 0x142   : > { %v443_v16 = vshll.u32 %v11052_v21, %v431_v13  ;;  %v444_v57 = vshrl.u32 %v11053_v52, %v432_v39  ;;  %v446_v26 = vshll.u32 %v11053_v52, %v431_v13  ;;  %v447_v60 = vshrl.u32 %v11054_v53, %v432_v39 }
 0x143   : > { %v1426_v28 = vshll.u32 %v7868_v43, %v7965_v18  ;;  %v1430_v1 = vadd.s32 127, %v1429_v51  ;;  %v1624_v45 = vshll.u32 %v7988_v0, 30  ;;  %v1828_v29 = vsel %vm1826_vm12, %v1827_v6, %v7970_v38 }
 0x144   : > { %v445_v2 = vor.u32 %v444_v57, %v443_v16  ;;  %v448_v61 = vor.u32 %v447_v60, %v446_v26  ;;  %vm449_vm13 = vcmp.lt.s32.totalorder %v430_v7, 1  ;;  %vm452_vm14 = vcmp.lt.s32.totalorder %v430_v7, 4 }
 0x145   : > { %vm11005_vm15 = vcmp.lt.s32.totalorder %v7535_v25, 0  ;;  %v433_v31 = vshrl.u32 %v11048_v34, %v432_v39  ;;  %v454_v5 = vsel %vm452_vm14, %v442_v42, 2102212464  ;;  %v457_v13 = vsel %vm449_vm13, %v436_v30, %v439_v62 }
 0x146   : > { %v465_v48 = vshll.u32 %v425_v20, 8  ;;  %v8013_v8 = vadd.s32 %v1828_v29, %v1824_v41  ;;  %vm451_vm1 = vcmp.lt.s32.totalorder %v430_v7, 3  ;;  %v458_v43 = vsel %vm452_vm14, %v445_v2, 920167782 }
 0x147   : > { %v461_v18 = vsel %vm449_vm13, %v439_v62, %v442_v42  ;;  %v8017_v38 = vsub.s32 %v7952_v19, %v1624_v45  ;;  %vm450_vm3 = vcmp.lt.s32.totalorder %v430_v7, 2  ;;  %v459_v60 = vsel %vm451_vm1, %v442_v42, %v458_v43 }
 0x148   : > { %v462_v51 = vsel %vm452_vm14, %v448_v61, 1326507024  ;;  %v11057_v6 = vand.u32 2147483647, %v7535_v25  ;;  %v453_v35 = vsel %vm449_vm13, %v433_v31, %v436_v30  ;;  %v455_v15 = vsel %vm451_vm1, %v439_v62, %v454_v5 }
 0x149   : > { %v460_v20 = vsel %vm450_vm3, %v457_v13, %v459_v60  ;;  %v463_v41 = vsel %vm451_vm1, %v445_v2, %v462_v51  ;;  %v1427_v16 = vshrl.u32 %v1409_v23, %v1425_v44  ;;  %v1021_v42 = vxor.u32 2147483648, %v7973_v56 }
 0x14a   : > { %vm8021_vm4 = vcmp.le.f32.partialorder %v11057_v6, 0.7853982  ;;  %v464_v57 = vsel %vm450_vm3, %v461_v18, %v463_v41  ;;  %v8028_v19 = vmul.u32.u64.low %v465_v48, %v460_v20  ;;  %v8029_v26 = vmul.u32.u64.high %v465_v48, %v460_v20, %v8028_v19 }
 0x14b   : > { %v1830_v45 = vadd.s32 536870912, %v8013_v8  ;;  %v8034_v29 = vmul.u32.u64.low %v465_v48, %v464_v57  ;;  %v8035_v61 = vmul.u32.u64.high %v465_v48, %v464_v57, %v8034_v29  ;;  %v8038_v30 = vsub.s32 32, %v7863_v49 }
 0x14c   : > { %v6861_v62 = vadd.s32 4294967169, %v7876_v3  ;;  %v6869_v23 = vadd.s32 4294967169, %v7913_v36  ;;  %v456_v44 = vsel %vm450_vm3, %v453_v35, %v455_v15  ;;  %v1431_v2 = vshll.u32 %v1430_v1, 23 }
 0x14d   : > { %v6877_v31 = vadd.s32 4294967169, %v7927_v33  ;;  %v8046_v5 = vcombine.high %v7724_v32, %v7724_v32  ;;  %v1627_v13 = vsub.s32 0, %v8017_v38  ;;  %7204 = vcosq.f32 %v7924_v55 }
 0x14e   : > { %v11061_v43 = vand.u32 2147483647, %v7960_v4  ;;  %v11062_v18 = vcvt.s32.f32 %v7950_v22  ;;  %v1428_v60 = vor.u32 %v1427_v16, %v1426_v28  ;;  %v475_v36 = vadd.s32 1, %v8029_v26 }
 0x14f   : > { %11060 = vst [vmem:[#allocation20_spill] sm:$0xff] %v8046_v5  ;;  %v1022_v1 = vsel %vm11005_vm15, %v1021_v42, %v7973_v56  ;;  %v8058_v33 = vshrl.u32 %v1830_v45, 30  ;;  %v472_v7 = vmul.u32 %v465_v48, %v456_v44  ;;  %vm474_vm5 = vc.u32 %v8035_v61, %v8028_v19 }
 0x150   : > { %v1228_v3 = vmul.f32 %v11062_v18, %v11061_v43  ;;  %7206 = vsinq.f32 %v7924_v55  ;;  %v8063_v51 = vadd.s32 1, %v6861_v62  ;;  %v8065_v4 = vadd.s32 1, %v6869_v23 }
 0x151   : > { %11063 = vst [vmem:[#allocation21_spill] sm:$0xff] %v8058_v33  ;;  %v476_v22 = vsel %vm474_vm5, %v475_v36, %v8029_v26  ;;  %vm11004_vm6 = vcmp.lt.s32.totalorder %v7612_v63, 0  ;;  %v1432_v28 = vor.u32 4788187, %v1431_v2  ;;  %v8069_v6 = vadd.s32 1, %v6877_v31 }
 0x152   : > { %v6882_v56 = vmin.u32 %v1627_v13, %v8017_v38  ;;  %v477_v35 = vadd.s32 %v476_v22, %v472_v7  ;;  %v8075_v48 = vsel %vm8021_vm4, %v7535_v25, %v1022_v1  ;;  %v1229_v55 = vxor.u32 2147483648, %v1228_v3 }
 0x153   : > { %v1435_v15 = vcvt.s32.f32 %v1428_v60  ;;  %v1668_v20 = vand.u32 2139095040, %v8046_v5  ;;  %v1832_v41 = vshll.u32 %v8058_v33, 30  ;;  %v331_v57 = vshrl.u32 %v11050_v10, %v7789_v58 }
 0x154   : > { %v478_v16 = vadd.s32 536870912, %v477_v35  ;;  %v340_v26 = vshrl.u32 %v11053_v52, %v7789_v58  ;;  %v11064_v42 = vand.u32 2147483647, %v7612_v63  ;;  %v11065_v45 = vmov 0 }
 0x155   : > { %v334_v29 = vshrl.u32 %v11051_v46, %v7789_v58  ;;  %v337_v62 = vshrl.u32 %v11052_v21, %v7789_v58  ;;  %v339_v23 = vshll.u32 %v11052_v21, %v7768_v37  ;;  %v343_v44 = vshrl.u32 %v11054_v53, %v7789_v58 }
 0x156   : > { %vm8085_vm7 = vcmp.le.f32.partialorder %v11064_v42, 0.7853982  ;;  %v1433_v2 = vand.u32 2147483647, %v1432_v28  ;;  %v1629_v31 = vclz %v6882_v56  ;;  %v8097_v13 = vshrl.u32 %v478_v16, 30 }
 0x157   : > { %v11066_v45 = vsel %vm8085_vm7, 4294967295, %v11065_v45  ;;  %v330_v43 = vshll.u32 %v11048_v34, %v7768_v37  ;;  %v333_v18 = vshll.u32 %v11050_v10, %v7768_v37  ;;  %v336_v60 = vshll.u32 %v11051_v46, %v7768_v37 }
 0x158   : > { %11067 = vst [vmem:[#allocation22_spill] sm:$0xff] %v11066_v45  ;;  %v341_v36 = vor.u32 %v340_v26, %v339_v23  ;;  %v342_v1 = vshll.u32 %v11053_v52, %v7768_v37  ;;  %7208 = vcosq.f32 %v8075_v48  ;;  %v8109_v7 = vsub.s32 %v8013_v8, %v1832_v41 }
 0x159   : > { %v480_v22 = vshll.u32 %v8097_v13, 30  ;;  %v11068_v28 = vand.u32 2147483647, %v7629_v12  ;;  %v332_v16 = vor.u32 %v331_v57, %v330_v43  ;;  %v335_v42 = vor.u32 %v334_v29, %v333_v18 }
 0x15a   : > { %v338_v33 = vor.u32 %v337_v62, %v336_v60  ;;  %v344_v0 = vor.u32 %v343_v44, %v342_v1  ;;  %v6883_v5 = vadd.s32 4294967294, %v1629_v31  ;;  %v1669_v32 = vshrl.u32 %v1668_v20, 23  ;;  %v8126_v29 = vpop.eup %7204 }
 0x15b   : > { %v320_v56 = vand.u32 8388607, %v11068_v28  ;;  %v8114_v26 = vsub.s32 %v477_v35, %v480_v22  ;;  %vm348_vm8 = vcmp.lt.s32.totalorder %v7786_v54, 4  ;;  %v1230_v37 = vsel %vm11004_vm6, %v1229_v55, %v1228_v3 }
 0x15c   : > { %vm11003_vm9 = vcmp.lt.s32.totalorder %v7649_v14, 0  ;;  %v1436_v8 = vmul.f32 %v1435_v15, %v1433_v2  ;;  %v8122_v41 = vcombine.high %v7848_v17, %v7848_v17  ;;  %v354_v57 = vsel %vm348_vm8, %v341_v36, 920167782 }
 0x15d   : > { %v483_v35 = vsub.s32 0, %v8114_v26  ;;  %v321_v20 = vor.u32 8388608, %v320_v56  ;;  %vm345_vm10 = vcmp.lt.s32.totalorder %v7786_v54, 1  ;;  %vm347_vm11 = vcmp.lt.s32.totalorder %v7786_v54, 3  ;;  %v8138_v23 = vpop.eup %7206 }
 0x15e   : > { %11069 = vst [vmem:[#allocation23_spill] sm:$0xff] %v8122_v41  ;;  %v1835_v3 = vsub.s32 0, %v8109_v7  ;;  %v353_v55 = vsel %vm345_vm10, %v332_v16, %v335_v42  ;;  %v355_v15 = vsel %vm347_vm11, %v338_v33, %v354_v57  ;;  %v358_v62 = vsel %vm348_vm8, %v344_v0, 1326507024 }
 0x15f   : > { %v1233_v44 = vsel %vm8085_vm7, %v7612_v63, %v1230_v37  ;;  %v11070_v2 = vand.u32 2147483647, %v7649_v14  ;;  %v11071_v31 = vmov 0  ;;  %vm6884_vm13 = vcmp.lt.s32.totalorder %v6883_v5, 0 }
 0x160   : > { %v6838_v43 = vmin.u32 %v483_v35, %v8114_v26  ;;  %v357_v18 = vsel %vm345_vm10, %v335_v42, %v338_v33  ;;  %v1437_v60 = vxor.u32 2147483648, %v1436_v8  ;;  %v329_v0 = vshrl.u32 %v11048_v34, %v7789_v58 }
 0x161   : > { %vm8145_vm12 = vcmp.le.f32.partialorder %v11070_v2, 0.7853982  ;;  %vm346_vm14 = vcmp.lt.s32.totalorder %v7786_v54, 2  ;;  %v350_v1 = vsel %vm348_vm8, %v338_v33, 2102212464  ;;  %v359_v56 = vsel %vm347_vm11, %v341_v36, %v358_v62 }
 0x162   : > { %v11072_v31 = vsel %vm8145_vm12, 4294967295, %v11071_v31  ;;  %v485_v22 = vclz %v6838_v43  ;;  %v356_v28 = vsel %vm346_vm14, %v353_v55, %v355_v15  ;;  %v361_v37 = vshll.u32 %v321_v20, 8 }
 0x163   : > { %11073 = vst [vmem:[#allocation24_spill] sm:$0xff] %v11072_v31  ;;  %v1632_v57 = vsel %vm6884_vm13, 0, %v6883_v5  ;;  %v6890_v35 = vmin.u32 %v1835_v3, %v8109_v7  ;;  %v349_v2 = vsel %vm345_vm10, %v329_v0, %v332_v16  ;;  %v360_v58 = vsel %vm346_vm14, %v357_v18, %v359_v56 }
 0x164   : > { %v6839_v17 = vadd.s32 4294967294, %v485_v22  ;;  %v351_v33 = vsel %vm347_vm11, %v335_v42, %v350_v1  ;;  %v8168_v43 = vmul.u32.u64.low %v361_v37, %v360_v58  ;;  %v8169_v45 = vmul.u32.u64.high %v361_v37, %v360_v58, %v8168_v43 }
 0x165   : > { %7210 = vsinq.f32 %v8075_v48  ;;  %v8172_v36 = vadd.s32 4294967169, %v1669_v32  ;;  %v8174_v5 = vmul.u32.u64.low %v361_v37, %v356_v28  ;;  %v8175_v20 = vmul.u32.u64.high %v361_v37, %v356_v28, %v8174_v5  ;;  %v8182_v42 = vpop.eup %7208 }
 0x166   : > { %7212 = vcosq.f32 %v1233_v44  ;;  %v1438_v16 = vsel %vm11003_vm9, %v1437_v60, %v1436_v8  ;;  %vm419_vm1 = vcmp.lt.s32.totalorder %v7710_v9, 0  ;;  %vm6840_vm3 = vcmp.lt.s32.totalorder %v6839_v17, 0 }
 0x167   : > { %11074 = vst [vmem:[#allocation25_spill] sm:$0xff] %v8172_v36  ;;  %v1617_v48 = vadd.s32 %v7899_v24, %v7896_v47  ;;  %v1637_v32 = vsub.s32 4294967266, %v1632_v57  ;;  %v488_v55 = vsel %vm6840_vm3, 0, %v6839_v17  ;;  %v352_v15 = vsel %vm346_vm14, %v349_v2, %v351_v33 }
 0x168   : > { %v1837_v62 = vclz %v6890_v35  ;;  %v473_v18 = vadd.s32 %v8028_v19, %v8035_v61  ;;  %v489_v8 = vsub.s32 32, %v488_v55  ;;  %v493_v60 = vsub.s32 4294967266, %v488_v55 }
 0x169   : > { %v8193_v0 = vsel %vm8145_vm12, %v7649_v14, %v1438_v16  ;;  %v1633_v1 = vsub.s32 32, %v1632_v57  ;;  %v11075_v22 = vand.u32 2147483647, %v7710_v9  ;;  %vm370_vm8 = vc.u32 %v8169_v45, %v8174_v5 }
 0x16a   : > { %v371_v54 = vadd.s32 1, %v8175_v20  ;;  %v490_v17 = vshll.u32 %v8114_v26, %v488_v55  ;;  %v491_v24 = vshrl.u32 %v473_v18, %v489_v8  ;;  %v494_v19 = vadd.s32 127, %v493_v60 }
 0x16b   : > { %vm8197_vm5 = vcmp.le.f32.partialorder %v11075_v22, 0.7853982  ;;  %v368_v61 = vmul.u32 %v361_v37, %v352_v15  ;;  %v1638_v28 = vadd.s32 127, %v1637_v32  ;;  %v503_v56 = vsub.s32 4, %v8097_v13 }
 0x16c   : > { %v372_v35 = vsel %vm370_vm8, %v371_v54, %v8175_v20  ;;  %v628_v2 = vand.u32 2139095040, %v7793_v59  ;;  %v6891_v58 = vadd.s32 4294967294, %v1837_v62  ;;  %v492_v33 = vor.u32 %v491_v24, %v490_v17 }
 0x16d   : > { %v495_v43 = vshll.u32 %v494_v19, 23  ;;  %v373_v16 = vadd.s32 %v372_v35, %v368_v61  ;;  %7214 = vsinq.f32 %v1233_v44  ;;  %v1634_v22 = vshll.u32 %v8017_v38, %v1632_v57 }
 0x16e   : > { %v1635_v3 = vshrl.u32 %v1617_v48, %v1633_v1  ;;  %v629_v36 = vshrl.u32 %v628_v2, 23  ;;  %7216 = vcosq.f32 %v8193_v0  ;;  %vm11007_vm10 = vcmask 1045504  }
 0x16f   : > { %v496_v26 = vor.u32 4788187, %v495_v43  ;;  %v374_v37 = vadd.s32 536870912, %v373_v16  ;;  %v1639_v32 = vshll.u32 %v1638_v28, 23  ;;  %v504_v20 = vsel %vm419_vm1, %v503_v56, %v8097_v13 }
 0x170   : > { %v6845_v55 = vadd.s32 4294967169, %v629_v36  ;;  %vm6892_vm11 = vcmp.lt.s32.totalorder %v6891_v58, 0  ;;  %v499_v62 = vcvt.s32.f32 %v492_v33  ;;  %v8215_v44 = vor.u32 %v1635_v3, %v1634_v22 }
 0x171   : > { %v497_v15 = vand.u32 2147483647, %v496_v26  ;;  %v8213_v18 = vshrl.u32 %v374_v37, 30  ;;  %v1825_v38 = vadd.s32 %v7969_v11, %v7981_v27  ;;  %v11002_v57 = vand.u32 2147483647, %v7793_v59 }
 0x172   : > { %v635_v48 = vadd.s32 1, %v6845_v55  ;;  %v8220_v8 = vpop.eup %7210  ;;  %v506_v13 = vsel %vm8197_vm5, 0, %v504_v20  ;;  %vm11008_vm13 = vcmask 1044480   ;;  %v8227_v54 = vor.u32 4788187, %v1639_v32 }
 0x173   : > { %v500_v60 = vmul.f32 %v499_v62, %v497_v15  ;;  %v376_v36 = vshll.u32 %v8213_v18, 30  ;;  %v8225_v1 = vpop.eup %7212  ;;  %v8229_v3 = vsel %vm6892_vm11, 0, %v6891_v58  ;;  %v7428_v17 = vmov 65535  }
 0x174   : > { %11078 = vst [vmem:[#allocation26_spill] sm:$0xff] %v8225_v1  ;;  %v4393_v11 = vsel %vm11008_vm13, 4294967295, %v7428_v17  ;;  %vm636_vm14 = vcmp.gt.s32.totalorder %v635_v48, 0  ;;  %v1841_v27 = vsub.s32 32, %v8229_v3  ;;  %v510_v56 = vadd.s32 3, %v506_v13 }
 0x175   : > { %v501_v24 = vxor.u32 2147483648, %v500_v60  ;;  %v8233_v19 = vsub.s32 %v373_v16, %v376_v36  ;;  %v637_v61 = vsel %vm636_vm14, %v635_v48, 0  ;;  %v632_v35 = vand.u32 8388607, %v11002_v57 }
 0x176   : > { %v639_v2 = vand.u32 31, %v637_v61  ;;  %v8241_v33 = vsel %vm11007_vm10, %v4393_v11, 0  ;;  %v11001_v22 = vand.u32 2147483647, %v7653_v40  ;;  %v8251_v20 = vshrl.u32 %v1825_v38, %v1841_v27 }
 0x177   : > { %v502_v58 = vsel %vm419_vm1, %v501_v24, %v500_v60  ;;  %v379_v43 = vsub.s32 0, %v8233_v19  ;;  %v8253_v55 = vand.u32 3, %v506_v13  ;;  %v8256_v62 = vand.u32 3, %v510_v56 }
 0x178   : > { %v505_v37 = vsel %vm8197_vm5, %v7710_v9, %v502_v58  ;;  %v640_v32 = vsub.s32 32, %v639_v2  ;;  %v369_v48 = vadd.s32 %v8174_v5, %v8169_v45  ;;  %v633_v60 = vor.u32 8388608, %v632_v35 }
 0x179   : > { %7218 = vcosq.f32 %v505_v37  ;;  %v6834_v15 = vmin.u32 %v379_v43, %v8233_v19  ;;  %v8262_v47 = vshrl.u32 %v637_v61, 5  ;;  %v642_v38 = vshll.u32 %v11048_v34, %v639_v2 }
 0x17a   : > { %7220 = vsinq.f32 %v505_v37  ;;  %v8260_v36 = vpop.eup %7214  ;;  %v8267_v13 = vand.u32 8388607, %v11001_v22  ;;  %v643_v27 = vshrl.u32 %v11050_v10, %v640_v32  ;;  %v645_v24 = vshll.u32 %v11050_v10, %v639_v2 }
 0x17b   : > { %11079 = vst [vmem:[#allocation27_spill] sm:$0xff] %v8260_v36  ;;  %v381_v17 = vclz %v6834_v15  ;;  %v8269_v11 = vpop.eup %7216  ;;  %v646_v45 = vshrl.u32 %v11051_v46, %v640_v32  ;;  %v649_v5 = vshrl.u32 %v11052_v21, %v640_v32  ;;  %v648_v61 = vshll.u32 %v11051_v46, %v639_v2 }
 0x17c   : > { %11080 = vst [vmem:[#allocation28_spill] sm:$0xff] %v8269_v11  ;;  %v651_v35 = vshll.u32 %v11052_v21, %v639_v2  ;;  %v652_v58 = vshrl.u32 %v11053_v52, %v640_v32  ;;  %v644_v43 = vor.u32 %v643_v27, %v642_v38  ;;  %v654_v15 = vshll.u32 %v11053_v52, %v639_v2 }
 0x17d   : > { %v6835_v56 = vadd.s32 4294967294, %v381_v17  ;;  %v647_v37 = vor.u32 %v646_v45, %v645_v24  ;;  %v655_v28 = vshrl.u32 %v11054_v53, %v640_v32  ;;  %v650_v16 = vor.u32 %v649_v5, %v648_v61 }
 0x17e   : > { %v653_v22 = vor.u32 %v652_v58, %v651_v35  ;;  %v8282_v26 = vshrl.u32 %v11048_v34, %v8038_v30  ;;  %vm516_vm3 = vcmp.eq.s32.totalorder %v8256_v62, 2  ;;  %vm2178_vm5 = vcmp.eq.s32.totalorder %v8253_v55, 2 }
 0x17f   : > { %vm6836_vm1 = vcmp.lt.s32.totalorder %v6835_v56, 0  ;;  %v656_v57 = vor.u32 %v655_v28, %v654_v15  ;;  %vm657_vm8 = vcmp.lt.s32.totalorder %v8262_v47, 1  ;;  %v8287_v38 = vshll.u32 %v633_v60, 8 }
 0x180   : > { %v384_v17 = vsel %vm6836_vm1, 0, %v6835_v56  ;;  %vm513_vm11 = vcmp.eq.s32.totalorder %v8256_v62, 0  ;;  %vm2175_vm14 = vcmp.eq.s32.totalorder %v8253_v55, 0  ;;  %vm315_vm9 = vcmp.lt.s32.totalorder %v7629_v12, 0 }
 0x181   : > { %v385_v2 = vsub.s32 32, %v384_v17  ;;  %v389_v27 = vsub.s32 4294967266, %v384_v17  ;;  %vm658_vm6 = vcmp.lt.s32.totalorder %v8262_v47, 2  ;;  %vm660_vm15 = vcmp.lt.s32.totalorder %v8262_v47, 4 }
 0x182   : > { %vm512_vm0 = vcmp.lt.s32.totalorder %v8256_v62, 2  ;;  %vm2174_vm1 = vcmp.lt.s32.totalorder %v8253_v55, 2  ;;  %v386_v28 = vshll.u32 %v8233_v19, %v384_v17  ;;  %vm659_vm10 = vcmp.lt.s32.totalorder %v8262_v47, 3 }
 0x183   : > { %v665_v60 = vsel %vm657_vm8, %v644_v43, %v647_v37  ;;  %v666_v24 = vsel %vm660_vm15, %v653_v22, 920167782  ;;  %v387_v45 = vshrl.u32 %v369_v48, %v385_v2  ;;  %v390_v5 = vadd.s32 127, %v389_v27 }
 0x184   : > { %v667_v56 = vsel %vm659_vm10, %v650_v16, %v666_v24  ;;  %v669_v61 = vsel %vm657_vm8, %v647_v37, %v650_v16  ;;  %v641_v19 = vshrl.u32 %v11048_v34, %v640_v32  ;;  %v670_v58 = vsel %vm660_vm15, %v656_v57, 1326507024 }
 0x185   : > { %v668_v35 = vsel %vm658_vm6, %v665_v60, %v667_v56  ;;  %v538_v15 = vshll.u32 %v11048_v34, %v7863_v49  ;;  %v11081_v48 = vand.u32 2147483647, %v7629_v12  ;;  %v388_v2 = vor.u32 %v387_v45, %v386_v28 }
 0x186   : > { %v391_v27 = vshll.u32 %v390_v5, 23  ;;  %v662_v32 = vsel %vm660_vm15, %v650_v16, 2102212464  ;;  %v671_v60 = vsel %vm659_vm10, %v653_v22, %v670_v58  ;;  %v7219_v24 = vpop.eup %7218  ;;  %v399_v57 = vsub.s32 4, %v8213_v18 }
 0x187   : > { %vm8316_vm13 = vcmp.le.f32.partialorder %v11081_v48, 0.7853982  ;;  %v672_v56 = vsel %vm658_vm6, %v669_v61, %v671_v60  ;;  %v8328_v11 = vmul.u32.u64.low %v8287_v38, %v668_v35  ;;  %v8329_v48 = vmul.u32.u64.high %v8287_v38, %v668_v35, %v8328_v11  ;;  %v7221_v31 = vpop.eup %7220 }
 0x188   : > { %v517_v28 = vxor.u32 2147483648, %v7219_v24  ;;  %v392_v45 = vor.u32 4788187, %v391_v27  ;;  %v661_v16 = vsel %vm657_vm8, %v641_v19, %v644_v43  ;;  %v539_v22 = vshrl.u32 %v11050_v10, %v8038_v30 }
 0x189   : > { %v514_v5 = vxor.u32 2147483648, %v7221_v31  ;;  %v663_v58 = vsel %vm659_vm10, %v647_v37, %v662_v32  ;;  %v8339_v61 = vmul.u32.u64.low %v8287_v38, %v672_v56  ;;  %v8340_v60 = vmul.u32.u64.high %v8287_v38, %v672_v56, %v8339_v61 }
 0x18a   : > { %v518_v35 = vsel %vm516_vm3, %v517_v28, %v7221_v31  ;;  %v2180_v27 = vsel %vm2178_vm5, %v517_v28, %v7221_v31  ;;  %v393_v41 = vand.u32 2147483647, %v392_v45  ;;  %v395_v14 = vcvt.s32.f32 %v388_v2 }
 0x18b   : > { %v515_v43 = vsel %vm513_vm11, %v7219_v24, %v514_v5  ;;  %v2177_v19 = vsel %vm2175_vm14, %v7219_v24, %v514_v5  ;;  %v400_v37 = vsel %vm315_vm9, %v399_v57, %v8213_v18  ;;  %v683_v32 = vadd.s32 1, %v8329_v48 }
 0x18c   : > { %v519_v56 = vsel %vm512_vm0, %v515_v43, %v518_v35  ;;  %v2181_v31 = vsel %vm2174_vm1, %v2177_v19, %v2180_v27  ;;  %v396_v28 = vmul.f32 %v395_v14, %v393_v41  ;;  %v664_v2 = vsel %vm658_vm6, %v661_v16, %v663_v58 }
 0x18d   : > { %vm11084_vm15 = vweird.f32 %v7710_v9  ;;  %vm682_vm10 = vc.u32 %v8340_v60, %v8328_v11  ;;  %v541_v62 = vshll.u32 %v11050_v10, %v7863_v49  ;;  %v8370_v57 = vor.u32 %v539_v22, %v538_v15 }
 0x18e   : > { %v8362_v45 = vsel %vm11084_vm15, nan, %v519_v56  ;;  %v397_v55 = vxor.u32 2147483648, %v396_v28  ;;  %v542_v14 = vshrl.u32 %v11051_v46, %v8038_v30  ;;  %vm11085_vm0 = vmmov %vm11084_vm15  ;;  %v402_v47 = vsel %vm8316_vm13, 0, %v400_v37 }
 0x18f   : > { %v3626_v24 = vmul.f32 2.0, %v8362_v45  ;;  %v8376_v41 = vsel %vm11085_vm0, nan, %v2181_v31  ;;  %v680_v16 = vmul.u32 %v8287_v38, %v664_v2  ;;  %v684_v5 = vsel %vm682_vm10, %v683_v32, %v8329_v48 }
 0x190   : > { %vm11017_vm6 = vcmask 1041408   ;;  %v398_v22 = vsel %vm315_vm9, %v397_v55, %v396_v28  ;;  %v548_v61 = vshrl.u32 %v11053_v52, %v8038_v30  ;;  %v545_v38 = vshrl.u32 %v11052_v21, %v8038_v30 }
 0x191   : > { %v8383_v58 = vmul.f32 %v3626_v24, %v8376_v41  ;;  %v3658_v15 = vmul.f32 %v3626_v24, %v8362_v45  ;;  %v401_v35 = vsel %vm8316_vm13, %v7629_v12, %v398_v22  ;;  %v685_v27 = vadd.s32 %v684_v5, %v680_v16 }
 0x192   : > { %v551_v48 = vshrl.u32 %v11054_v53, %v8038_v30  ;;  %7222 = vcosq.f32 %v401_v35  ;;  %v547_v37 = vshll.u32 %v11052_v21, %v7863_v49  ;;  %v406_v32 = vadd.s32 3, %v402_v47 }
 0x193   : > { %v3674_v43 = vsub.f32 1.0, %v3658_v15  ;;  %v3690_v19 = vmul.f32 2.0, %v8383_v58  ;;  %7224 = vsinq.f32 %v401_v35  ;;  %v686_v56 = vadd.s32 536870912, %v685_v27 }
 0x194   : > { %v550_v17 = vshll.u32 %v11053_v52, %v7863_v49  ;;  %v544_v30 = vshll.u32 %v11051_v46, %v7863_v49  ;;  %v549_v2 = vor.u32 %v548_v61, %v547_v37  ;;  %v8407_v55 = vand.u32 3, %v402_v47 }
 0x195   : > { %v8402_v31 = vmul.f32 %v3690_v19, %v3674_v43  ;;  %v3722_v28 = vmul.f32 %v3690_v19, %v8383_v58  ;;  %v4074_v24 = vrot.slane %v3674_v43, 6  ;;  %vm11018_vm9 = vcmask 1042432  }
 0x196   : > { %v8409_v16 = vshrl.u32 %v686_v56, 30  ;;  %v552_v5 = vor.u32 %v551_v48, %v550_v17  ;;  %v543_v35 = vor.u32 %v542_v14, %v541_v62  ;;  %v546_v18 = vor.u32 %v545_v38, %v544_v30 }
 0x197   : > { %v3738_v15 = vsub.f32 1.0, %v3722_v28  ;;  %v3754_v22 = vmul.f32 2.0, %v8402_v31  ;;  %v4026_v1 = vrot.slane %v8376_v41, 1  ;;  %v8413_v36 = vand.u32 3, %v406_v32 }
 0x198   : > { %v688_v19 = vshll.u32 %v8409_v16, 30  ;;  %vm556_vm13 = vcmp.lt.s32.totalorder %v7861_v50, 4  ;;  %vm553_vm3 = vcmp.lt.s32.totalorder %v7861_v50, 1  ;;  %vm2075_vm5 = vcmp.eq.s32.totalorder %v8407_v55, 2 }
 0x199   : > { %v3786_v49 = vmul.f32 %v3754_v22, %v8402_v31  ;;  %v4122_v47 = vrot.slane %v3738_v15, 3  ;;  %v562_v61 = vsel %vm556_vm13, %v549_v2, 920167782  ;;  %v4240_v62 = vsel %vm11017_vm6, %v4026_v1, %v4074_v24 }
 0x19a   : > { %v3834_v14 = vrot.slane %v8362_v45, 5  ;;  %v8426_v38 = vsub.s32 %v685_v27, %v688_v19  ;;  %v566_v48 = vsel %vm556_vm13, %v552_v5, 1326507024  ;;  %vm11086_vm8 = vcmask 1044480  }
 0x19b   : > { %v3802_v43 = vsub.f32 1.0, %v3786_v49  ;;  %v4257_v37 = vsel %vm11086_vm8, %v4240_v62, %v4122_v47  ;;  %vm555_vm1 = vcmp.lt.s32.totalorder %v7861_v50, 3  ;;  %v565_v32 = vsel %vm553_vm3, %v543_v35, %v546_v18 }
 0x19c   : > { %v691_v45 = vsub.s32 0, %v8426_v38  ;;  %v561_v27 = vsel %vm553_vm3, %v8370_v57, %v543_v35  ;;  %v563_v56 = vsel %vm555_vm1, %v546_v18, %v562_v61  ;;  %v567_v17 = vsel %vm555_vm1, %v549_v2, %v566_v48 }
 0x19d   : > { %v4306_v28 = vpack.c.bf16 %v3802_v43, %v4257_v37  ;;  %vm405_vm10 = vweird.f32 %v7629_v12  ;;  %vm408_vm0 = vcmp.lt.s32.totalorder %v8413_v36, 2  ;;  %vm409_vm8 = vcmp.eq.s32.totalorder %v8413_v36, 0 }
 0x19e   : > { %vm554_vm6 = vcmp.lt.s32.totalorder %v7861_v50, 2  ;;  %vm412_vm15 = vcmp.eq.s32.totalorder %v8413_v36, 2  ;;  %vm11020_vm14 = vcmask 1040384   ;;  %v11087_v30 = vand.u32 2147483647, %v7793_v59 }
 0x19f   : > { %v681_v2 = vadd.s32 %v8328_v11, %v8340_v60  ;;  %v6846_v5 = vmin.u32 %v691_v45, %v8426_v38  ;;  %v568_v19 = vsel %vm554_vm6, %v565_v32, %v567_v17  ;;  %v4399_v49 = vand.u32 %v8241_v33, %v4306_v28  ;;  %v7223_v43 = vpop.eup %7222 }
 0x1a0   : > { %vm8452_vm11 = vcmp.le.f32.partialorder %v11087_v30, 0.7853982  ;;  %v4155_v47 = vsel %vm11018_vm9, %v7710_v9, %v3834_v14  ;;  %v564_v61 = vsel %vm554_vm6, %v561_v27, %v563_v56  ;;  %v11090_v62 = vor.u32 8388608, %v8267_v13  ;;  %v7225_v45 = vpop.eup %7224 }
 0x1a1   : > { %v693_v37 = vclz %v6846_v5  ;;  %v711_v11 = vsub.s32 4, %v8409_v16  ;;  %v557_v60 = vsel %vm553_vm3, %v8282_v26, %v8370_v57  ;;  %v558_v32 = vsel %vm556_vm13, %v546_v18, 2102212464  ;;  %4455 = vmatprep.subr.bf16.mxu0 %v4399_v49 }
 0x1a2   : > { %v569_v48 = vshll.u32 %v11090_v62, 8  ;;  %v3770_v9 = vmul.f32 %v3754_v22, %v3738_v15  ;;  %v413_v14 = vxor.u32 2147483648, %v7223_v43  ;;  %v410_v56 = vxor.u32 2147483648, %v7225_v45 }
 0x1a3   : > { %v6847_v17 = vadd.s32 4294967294, %v693_v37  ;;  %v3930_v5 = vrot.slane %v8402_v31, 7  ;;  %v559_v57 = vsel %vm555_vm1, %v543_v35, %v558_v32  ;;  %vm11091_vm13 = vcmp.eq.s32.totalorder %v8407_v55, 0 }
 0x1a4   : > { %v8475_v27 = vmul.u32.u64.low %v569_v48, %v568_v19  ;;  %v8476_v13 = vmul.u32.u64.high %v569_v48, %v568_v19, %v8475_v27  ;;  %v8478_v28 = vmul.u32.u64.low %v569_v48, %v564_v61  ;;  %v8479_v30 = vmul.u32.u64.high %v569_v48, %v564_v61, %v8478_v28 }
 0x1a5   : > { %v414_v26 = vsel %vm412_vm15, %v413_v14, %v7225_v45  ;;  %v2077_v18 = vsel %vm2075_vm5, %v413_v14, %v7225_v45  ;;  %v411_v15 = vsel %vm409_vm8, %v7223_v43, %v410_v56  ;;  %v2074_v22 = vsel %vm11091_vm13, %v7223_v43, %v410_v56 }
 0x1a6   : > { %vm6848_vm3 = vcmp.lt.s32.totalorder %v6847_v17, 0  ;;  %vm11092_vm9 = vcmp.lt.s32.totalorder %v7793_v59, 0  ;;  %v415_v19 = vsel %vm408_vm0, %v411_v15, %v414_v26  ;;  %vm11093_vm15 = vcmp.lt.s32.totalorder %v8407_v55, 2  ;;  %v11095_v26 = vld [vmem:[#allocation13_spill] sm:$0xff] }
 0x1a7   : > { %v712_v31 = vsel %vm11092_vm9, %v711_v11, %v8409_v16  ;;  %v2078_v49 = vsel %vm11093_vm15, %v2074_v22, %v2077_v18  ;;  %v3882_v61 = vrot.slane %v8383_v58, 2  ;;  %vm11019_vm5 = vcmask 1046528  }
 0x1a8   : > { %v696_v35 = vsel %vm6848_vm3, 0, %v6847_v17  ;;  %v3978_v62 = vrot.slane %v3770_v9, 4  ;;  %v8503_v37 = vsel %vm405_vm10, nan, %v415_v19  ;;  %v560_v32 = vsel %vm554_vm6, %v557_v60, %v559_v57 }
 0x1a9   : > { %v697_v43 = vsub.s32 32, %v696_v35  ;;  %v3625_v16 = vmul.f32 2.0, %v8503_v37  ;;  %v4189_v36 = vsel %vm11020_vm14, %v3882_v61, %v3930_v5  ;;  %v701_v11 = vsub.s32 4294967266, %v696_v35 }
 0x1aa   : > { %v714_v55 = vsel %vm8452_vm11, 0, %v712_v31  ;;  %v8513_v58 = vsel %vm405_vm10, nan, %v2078_v49  ;;  %vm578_vm9 = vc.u32 %v8476_v13, %v8478_v28  ;;  %v579_v9 = vadd.s32 1, %v8479_v30 }
 0x1ab   : > { %v699_v45 = vshrl.u32 %v681_v2, %v697_v43  ;;  %v8519_v50 = vmul.f32 %v3625_v16, %v8513_v58  ;;  %v3657_v60 = vmul.f32 %v3625_v16, %v8503_v37  ;;  %v698_v14 = vshll.u32 %v8426_v38, %v696_v35 }
 0x1ac   : > { %v702_v27 = vadd.s32 127, %v701_v11  ;;  %vm11094_vm6 = vcmask 1043456   ;;  %v576_v17 = vmul.u32 %v569_v48, %v560_v32  ;;  %v580_v5 = vsel %vm578_vm9, %v579_v9, %v8479_v30 }
 0x1ad   : > { %v4206_v56 = vsel %vm11094_vm6, %v4189_v36, %v3978_v62  ;;  %vm844_vm1 = vcmp.gt.s32.totalorder %v11095_v26, 0  ;;  %v3673_v2 = vsub.f32 1.0, %v3657_v60  ;;  %v3689_v18 = vmul.f32 2.0, %v8519_v50  ;;  %vm11100_vm3 = vmmov %vm11094_vm6 }
 0x1ae   : > { %v700_v57 = vor.u32 %v699_v45, %v698_v14  ;;  %v703_v15 = vshll.u32 %v702_v27, 23  ;;  %vm11096_vm10 = vcmask 1045504   ;;  %v718_v31 = vadd.s32 3, %v714_v55 }
 0x1af   : > { %v4172_v22 = vsel %vm11096_vm10, %v4155_v47, %v3882_v61  ;;  %v581_v19 = vadd.s32 %v580_v5, %v576_v17  ;;  %v845_v49 = vsel %vm844_vm1, %v11095_v26, 0  ;;  %v3705_v38 = vmul.f32 %v3689_v18, %v3673_v2 }
 0x1b0   : > { %v3721_v35 = vmul.f32 %v3689_v18, %v8519_v50  ;;  %v704_v62 = vor.u32 4788187, %v703_v15  ;;  %v8530_v48 = vand.u32 3, %v714_v55  ;;  %v4073_v30 = vrot.slane %v3673_v2, 6 }
 0x1b1   : > { %v4223_v43 = vsel %vm11019_vm5, %v4206_v56, %v4026_v1  ;;  %v582_v32 = vadd.s32 536870912, %v581_v19  ;;  %v847_v16 = vand.u32 31, %v845_v49  ;;  %v3753_v11 = vmul.f32 2.0, %v3705_v38 }
 0x1b2   : > { %v3737_v36 = vsub.f32 1.0, %v3721_v35  ;;  %v705_v47 = vand.u32 2147483647, %v704_v62  ;;  %v707_v61 = vcvt.s32.f32 %v700_v57  ;;  %v4025_v45 = vrot.slane %v8513_v58, 1 }
 0x1b3   : > { %v8536_v9 = vand.u32 3, %v718_v31  ;;  %v3929_v60 = vrot.slane %v3705_v38, 7  ;;  %v8538_v14 = vshrl.u32 %v582_v32, 30  ;;  %v3785_v27 = vmul.f32 %v3753_v11, %v3705_v38  ;;  %v11101_v32 = vld [vmem:[#allocation8_spill] sm:$0xff] }
 0x1b4   : > { %v3769_v55 = vmul.f32 %v3753_v11, %v3737_v36  ;;  %v4121_v17 = vrot.slane %v3737_v36, 3  ;;  %v708_v5 = vmul.f32 %v707_v61, %v705_v47  ;;  %vm11097_vm0 = vcmask 1041408  }
 0x1b5   : > { %v4239_v41 = vsel %vm11097_vm0, %v4025_v45, %v4073_v30  ;;  %v3881_v1 = vrot.slane %v8519_v50, 2  ;;  %v584_v56 = vshll.u32 %v8538_v14, 30  ;;  %v848_v26 = vsub.s32 32, %v847_v16 }
 0x1b6   : > { %v3801_v2 = vsub.f32 1.0, %v3785_v27  ;;  %v3977_v18 = vrot.slane %v3769_v55, 4  ;;  %vm11098_vm8 = vcmask 1044480   ;;  %v709_v57 = vxor.u32 2147483648, %v708_v5 }
 0x1b7   : > { %v4256_v58 = vsel %vm11098_vm8, %v4239_v41, %v4121_v17  ;;  %v4290_v15 = vpack.c.bf16 %v4223_v43, %v4172_v22  ;;  %v3833_v31 = vrot.slane %v8503_v37, 5  ;;  %v4188_v35 = vsel %vm11020_vm14, %v3881_v1, %v3929_v60 }
 0x1b8   : > { %v8546_v38 = vsub.s32 %v581_v19, %v584_v56  ;;  %v4305_v62 = vpack.c.bf16 %v3801_v2, %v4256_v58  ;;  %vm11099_vm13 = vcmp.lt.s32.totalorder %v7793_v59, 0  ;;  %v4205_v50 = vsel %vm11100_vm3, %v4188_v35, %v3977_v18 }
 0x1b9   : > { %v710_v30 = vsel %vm11099_vm13, %v709_v57, %v708_v5  ;;  %v833_v36 = vand.u32 2147483647, %v11101_v32  ;;  %v850_v37 = vshll.u32 %v11048_v34, %v847_v16  ;;  %v851_v43 = vshrl.u32 %v11050_v10, %v848_v26 }
 0x1ba   : > { %v713_v11 = vsel %vm8452_vm11, %v7793_v59, %v710_v30  ;;  %v587_v22 = vsub.s32 0, %v8546_v38  ;;  %v4396_v19 = vand.u32 %v8241_v33, %v4305_v62  ;;  %v4222_v47 = vsel %vm11019_vm5, %v4205_v50, %v4025_v45  ;;  %vm11103_vm11 = vmmov %vm11096_vm10 }
 0x1bb   : > { %7226 = vcosq.f32 %v713_v11  ;;  %v853_v61 = vshll.u32 %v11050_v10, %v847_v16  ;;  %vm11102_vm15 = vcmask 1042432   ;;  %v577_v24 = vadd.s32 %v8478_v28, %v8476_v13 }
 0x1bc   : > { %7228 = vsinq.f32 %v713_v11  ;;  %v4154_v60 = vsel %vm11102_vm15, %v7629_v12, %v3833_v31  ;;  %v6842_v55 = vmin.u32 %v587_v22, %v8546_v38  ;;  %4456 = vmatpush1.bf16.msra.mxu0 %v4396_v19  ;;  %v840_v17 = vand.u32 8388607, %v833_v36 }
 0x1bd   : > { %v4171_v27 = vsel %vm11103_vm11, %v4154_v60, %v3881_v1  ;;  %v846_v5 = vshrl.u32 %v845_v49, 5  ;;  %v854_v45 = vshrl.u32 %v11051_v46, %v848_v26  ;;  %4457 = vmatprep.subr.bf16.mxu0 %v4290_v15  ;;  %v849_v2 = vshrl.u32 %v11048_v34, %v848_v26 }
 0x1be   : > { %v4289_v41 = vpack.c.bf16 %v4222_v47, %v4171_v27  ;;  %v589_v56 = vclz %v6842_v55  ;;  %v852_v12 = vor.u32 %v851_v43, %v850_v37  ;;  %v856_v13 = vshll.u32 %v11051_v46, %v847_v16 }
 0x1bf   : > { %v855_v18 = vor.u32 %v854_v45, %v853_v61  ;;  %v857_v28 = vshrl.u32 %v11052_v21, %v848_v26  ;;  %v859_v58 = vshll.u32 %v11052_v21, %v847_v16  ;;  %v860_v57 = vshrl.u32 %v11053_v52, %v848_v26 }
 0x1c0   : > { %v6843_v1 = vadd.s32 4294967294, %v589_v56  ;;  %v862_v49 = vshll.u32 %v11053_v52, %v847_v16  ;;  %v863_v31 = vshrl.u32 %v11054_v53, %v848_v26  ;;  %4458 = vmatpush1.bf16.msra.mxu0 %v4289_v41  ;;  %v841_v15 = vor.u32 8388608, %v840_v17 }
 0x1c1   : > { %v858_v35 = vor.u32 %v857_v28, %v856_v13  ;;  %vm865_vm9 = vcmp.lt.s32.totalorder %v846_v5, 1  ;;  %vm866_vm6 = vcmp.lt.s32.totalorder %v846_v5, 2  ;;  %vm724_vm1 = vcmp.eq.s32.totalorder %v8536_v9, 2 }
 0x1c2   : > { %vm2384_vm10 = vcmp.eq.s32.totalorder %v8530_v48, 2  ;;  %vm6844_vm0 = vcmp.lt.s32.totalorder %v6843_v1, 0  ;;  %v861_v62 = vor.u32 %v860_v57, %v859_v58  ;;  %v864_v30 = vor.u32 %v863_v31, %v862_v49 }
 0x1c3   : > { %vm868_vm8 = vcmp.lt.s32.totalorder %v846_v5, 4  ;;  %vm721_vm13 = vcmp.eq.s32.totalorder %v8536_v9, 0  ;;  %vm2381_vm3 = vcmp.eq.s32.totalorder %v8530_v48, 0  ;;  %v592_v16 = vsel %vm6844_vm0, 0, %v6843_v1 }
 0x1c4   : > { %vm867_vm15 = vcmp.lt.s32.totalorder %v846_v5, 3  ;;  %v869_v26 = vsel %vm865_vm9, %v849_v2, %v852_v12  ;;  %v870_v50 = vsel %vm868_vm8, %v858_v35, 2102212464  ;;  %vm720_vm11 = vcmp.lt.s32.totalorder %v8536_v9, 2 }
 0x1c5   : > { %vm2380_vm5 = vcmp.lt.s32.totalorder %v8530_v48, 2  ;;  %v593_v11 = vsub.s32 32, %v592_v16  ;;  %v594_v22 = vshll.u32 %v8546_v38, %v592_v16  ;;  %v597_v37 = vsub.s32 4294967266, %v592_v16  ;;  %v8597_v38 = vld [vmem:[%s10949_s2] sm:$0xff]  }
 0x1c6   : > { %v873_v43 = vsel %vm865_vm9, %v852_v12, %v855_v18  ;;  %vm717_vm14 = vweird.f32 %v7793_v59  ;;  %v871_v19 = vsel %vm867_vm15, %v855_v18, %v870_v50  ;;  %v874_v47 = vsel %vm868_vm8, %v861_v62, 920167782 }
 0x1c7   : > { %v877_v61 = vsel %vm865_vm9, %v855_v18, %v858_v35  ;;  %v878_v60 = vsel %vm868_vm8, %v864_v30, 1326507024  ;;  %v595_v55 = vshrl.u32 %v577_v24, %v593_v11  ;;  %v598_v27 = vadd.s32 127, %v597_v37 }
 0x1c8   : > { %v875_v17 = vsel %vm867_vm15, %v858_v35, %v874_v47  ;;  %v879_v45 = vsel %vm867_vm15, %v861_v62, %v878_v60  ;;  %v607_v41 = vsub.s32 4, %v8538_v14  ;;  %v881_v12 = vshll.u32 %v841_v15, 8  ;;  %v7227_v18 = vpop.eup %7226  ;;  %v11104_v15 = vld [vmem:[#allocation6_spill] sm:$0xff] }
 0x1c9   : > { %v876_v56 = vsel %vm866_vm6, %v873_v43, %v875_v17  ;;  %v880_v2 = vsel %vm866_vm6, %v877_v61, %v879_v45  ;;  %v596_v13 = vor.u32 %v595_v55, %v594_v22  ;;  %v599_v24 = vshll.u32 %v598_v27, 23  ;;  %v7229_v28 = vpop.eup %7228 }
 0x1ca   : > { %vm11021_vm9 = vcmask 220160   ;;  %v725_v58 = vxor.u32 2147483648, %v7227_v18  ;;  %v872_v1 = vsel %vm866_vm6, %v869_v26, %v871_v19  ;;  %v11023_v31 = vmov 0   ;;  %v11105_v19 = vld [vmem:[#allocation5_spill] sm:$0xff] }
 0x1cb   : > { %v8603_v57 = vmul.u32.u64.low %v881_v12, %v880_v2  ;;  %v8604_v49 = vmul.u32.u64.high %v881_v12, %v880_v2, %v8603_v57  ;;  %4475 = vmatprep.mubr.bf16.mxu0 %v11023_v31  ;;  %4548 = vmatprep.mubr.bf16.mxu1 %v11023_v31  ;;  %v722_v35 = vxor.u32 2147483648, %v7229_v28  ;;  %v600_v62 = vor.u32 4788187, %v599_v24 }
 0x1cc   : > { %v603_v30 = vcvt.s32.f32 %v596_v13  ;;  %6965 = vmatmul.mubr.msk.bf16.vlgmr.msra.gmra.mxu0 %vm11021_vm9, %v8597_v38  ;;  %v815_v16 = vsub.s32 4, %v11104_v15  ;;  %7193 = vset.pattern.permute.xlu1 %v11023_v31  ;;  %v726_v5 = vsel %vm724_vm1, %v725_v58, %v7229_v28  ;;  %v2386_v26 = vsel %vm2384_vm10, %v725_v58, %v7229_v28 }
 0x1cd   : > { %v8616_v50 = vmul.u32.u64.low %v881_v12, %v876_v56  ;;  %v8617_v11 = vmul.u32.u64.high %v881_v12, %v876_v56, %v8616_v50  ;;  %4485 = vmatprep.mubr.bf16.mxu0 %v11023_v31  ;;  %7192 = vset.pattern.permute.xlu0 %v11023_v31  ;;  %v723_v22 = vsel %vm721_vm13, %v7227_v18, %v722_v35  ;;  %v2383_v37 = vsel %vm2381_vm3, %v7227_v18, %v722_v35 }
 0x1ce   : > { %v601_v43 = vand.u32 2147483647, %v600_v62  ;;  %vm11106_vm6 = vcmp.lt.s32.totalorder %v11105_v19, 0  ;;  %v727_v61 = vsel %vm720_vm11, %v723_v22, %v726_v5  ;;  %v2387_v60 = vsel %vm2380_vm5, %v2383_v37, %v2386_v26 }
 0x1cf   : > { %v816_v47 = vsel %vm11106_vm6, %v815_v16, %v11104_v15  ;;  %vm523_vm1 = vcmp.lt.s32.totalorder %v7653_v40, 0  ;;  %v888_v55 = vmul.u32 %v881_v12, %v872_v1  ;;  %v8636_v27 = vsel %vm717_vm14, nan, %v727_v61 }
 0x1d0   : > { %v604_v17 = vmul.f32 %v603_v30, %v601_v43  ;;  %vm890_vm10 = vc.u32 %v8604_v49, %v8616_v50  ;;  %v818_v56 = vsel %vm7872_vm2, 0, %v816_v47  ;;  %v3628_v2 = vmul.f32 2.0, %v8636_v27 }
 0x1d1   : > { %v608_v48 = vsel %vm523_vm1, %v607_v41, %v8538_v14  ;;  %v891_v12 = vadd.s32 1, %v8617_v11  ;;  %v11108_v18 = vsub.s32 4294967266, %v8229_v3  ;;  %v8654_v24 = vsel %vm717_vm14, nan, %v2387_v60 }
 0x1d2   : > { %v605_v28 = vxor.u32 2147483648, %v604_v17  ;;  %v822_v58 = vadd.s32 3, %v818_v56  ;;  %v8657_v1 = vmul.f32 %v3628_v2, %v8654_v24  ;;  %v3660_v57 = vmul.f32 %v3628_v2, %v8636_v27 }
 0x1d3   : > { %v8650_v13 = vadd.s32 127, %v11108_v18  ;;  %v11109_v35 = vand.u32 2147483647, %v7653_v40  ;;  %v892_v14 = vsel %vm890_vm10, %v891_v12, %v8617_v11  ;;  %v11110_v41 = vshll.u32 %v8109_v7, %v8229_v3 }
 0x1d4   : > { %v606_v30 = vsel %vm523_vm1, %v605_v28, %v604_v17  ;;  %v893_v16 = vadd.s32 %v892_v14, %v888_v55  ;;  %v3676_v5 = vsub.f32 1.0, %v3660_v57  ;;  %v3692_v26 = vmul.f32 2.0, %v8657_v1 }
 0x1d5   : > { %vm522_vm2 = vcmp.le.f32.partialorder %v11109_v35, 0.7853982  ;;  %v8667_v62 = vor.u32 %v8251_v20, %v11110_v41  ;;  %v823_v37 = vand.u32 3, %v822_v58  ;;  %v826_v11 = vxor.u32 2147483648, %v8138_v23 }
 0x1d6   : > { %v610_v15 = vsel %vm522_vm2, 0, %v608_v48  ;;  %v609_v22 = vsel %vm522_vm2, %v7653_v40, %v606_v30  ;;  %v894_v43 = vadd.s32 536870912, %v893_v16  ;;  %v829_v7 = vxor.u32 2147483648, %v8126_v29 }
 0x1d7   : > { %7230 = vcosq.f32 %v609_v22  ;;  %v3708_v3 = vmul.f32 %v3692_v26, %v3676_v5  ;;  %v3724_v20 = vmul.f32 %v3692_v26, %v8657_v1  ;;  %v614_v47 = vadd.s32 3, %v610_v15 }
 0x1d8   : > { %7232 = vsinq.f32 %v609_v22  ;;  %v4076_v61 = vrot.slane %v3676_v5, 6  ;;  %v8676_v60 = vand.u32 3, %v610_v15  ;;  %vm835_vm14 = vcmp.lt.s32.totalorder %v11101_v32, 0 }
 0x1d9   : > { %v895_v55 = vshrl.u32 %v894_v43, 30  ;;  %v3740_v17 = vsub.f32 1.0, %v3724_v20  ;;  %v3756_v45 = vmul.f32 2.0, %v3708_v3  ;;  %vm825_vm5 = vcmp.eq.s32.totalorder %v823_v37, 0 }
 0x1da   : > { %vm828_vm0 = vcmp.eq.s32.totalorder %v823_v37, 2  ;;  %v4028_v2 = vrot.slane %v8654_v24, 1  ;;  %v827_v12 = vsel %vm825_vm5, %v8126_v29, %v826_v11  ;;  %v615_v57 = vand.u32 3, %v614_v47 }
 0x1db   : > { %v896_v48 = vshll.u32 %v895_v55, 30  ;;  %v830_v18 = vsel %vm828_vm0, %v829_v7, %v8138_v23  ;;  %v3788_v28 = vmul.f32 %v3756_v45, %v3708_v3  ;;  %v4124_v58 = vrot.slane %v3740_v17, 3 }
 0x1dc   : > { %vm8684_vm8 = vcmp.le.f32.partialorder %v833_v36, 0.7853982  ;;  %vm11113_vm13 = vcmask 1041408   ;;  %v919_v30 = vsub.s32 4, %v895_v55  ;;  %vm824_vm3 = vcmp.lt.s32.totalorder %v823_v37, 2 }
 0x1dd   : > { %v4242_v14 = vsel %vm11113_vm13, %v4028_v2, %v4076_v61  ;;  %v8691_v41 = vsub.s32 %v893_v16, %v896_v48  ;;  %v3772_v15 = vmul.f32 %v3756_v45, %v3740_v17  ;;  %v3804_v5 = vsub.f32 1.0, %v3788_v28 }
 0x1de   : > { %vm11114_vm15 = vcmask 1044480   ;;  %v831_v22 = vsel %vm824_vm3, %v827_v12, %v830_v18  ;;  %v3932_v43 = vrot.slane %v3708_v3, 7  ;;  %vm2278_vm11 = vcmp.eq.s32.totalorder %v8676_v60, 0 }
 0x1df   : > { %v4259_v26 = vsel %vm11114_vm15, %v4242_v14, %v4124_v58  ;;  %vm2281_vm6 = vcmp.eq.s32.totalorder %v8676_v60, 2  ;;  %v899_v36 = vsub.s32 0, %v8691_v41  ;;  %v2482_v20 = vand.u32 3, %v818_v56 }
 0x1e0   : > { %v4308_v47 = vpack.c.bf16 %v3804_v5, %v4259_v26  ;;  %vm616_vm1 = vcmp.lt.s32.totalorder %v615_v57, 2  ;;  %vm617_vm10 = vcmp.eq.s32.totalorder %v615_v57, 0  ;;  %vm2277_vm2 = vcmp.lt.s32.totalorder %v8676_v60, 2 }
 0x1e1   : > { %vm821_vm5 = vweird.f32 %v11105_v19  ;;  %vm620_vm13 = vcmp.eq.s32.totalorder %v615_v57, 2  ;;  %v3884_v16 = vrot.slane %v8657_v1, 2  ;;  %v6854_v37 = vmin.u32 %v899_v36, %v8691_v41 }
 0x1e2   : > { %v8704_v3 = vsel %vm821_vm5, nan, %v831_v22  ;;  %v3980_v61 = vrot.slane %v3772_v15, 4  ;;  %v4405_v56 = vand.u32 %v8241_v33, %v4308_v47  ;;  %v3836_v17 = vrot.slane %v8636_v27, 5 }
 0x1e3   : > { %v920_v45 = vsel %vm835_vm14, %v919_v30, %v895_v55  ;;  %vm11115_vm3 = vcmask 1040384   ;;  %v901_v12 = vclz %v6854_v37  ;;  %vm2484_vm15 = vcmp.eq.s32.totalorder %v2482_v20, 0 }
 0x1e4   : > { %v4191_v48 = vsel %vm11115_vm3, %v3884_v16, %v3932_v43  ;;  %vm2487_vm9 = vcmp.eq.s32.totalorder %v2482_v20, 2  ;;  %v7231_v1 = vpop.eup %7230  ;;  %4528 = vmatprep.subr.bf16.mxu1 %v4405_v56  ;;  %vm2483_vm0 = vcmp.lt.s32.totalorder %v2482_v20, 2  ;;  %v2486_v18 = vsel %vm2484_vm15, %v8126_v29, %v826_v11 }
 0x1e5   : > { %v2489_v28 = vsel %vm2487_vm9, %v829_v7, %v8138_v23  ;;  %v3629_v58 = vmul.f32 2.0, %v8704_v3  ;;  %v7233_v14 = vpop.eup %7232  ;;  %v621_v15 = vxor.u32 2147483648, %v7231_v1  ;;  %v6855_v27 = vadd.s32 4294967294, %v901_v12 }
 0x1e6   : > { %v922_v55 = vsel %vm8684_vm8, 0, %v920_v45  ;;  %v2490_v30 = vsel %vm2483_vm0, %v2486_v18, %v2489_v28  ;;  %v618_v5 = vxor.u32 2147483648, %v7233_v14  ;;  %vm11116_vm3 = vcmask 1043456  }
 0x1e7   : > { %v4208_v26 = vsel %vm11116_vm3, %v4191_v48, %v3980_v61  ;;  %v8719_v22 = vsel %vm821_vm5, nan, %v2490_v30  ;;  %v3661_v29 = vmul.f32 %v3629_v58, %v8704_v3  ;;  %v622_v23 = vsel %vm620_vm13, %v621_v15, %v7233_v14 }
 0x1e8   : > { %v2283_v11 = vsel %vm2281_vm6, %v621_v15, %v7233_v14  ;;  %vm6856_vm9 = vcmp.lt.s32.totalorder %v6855_v27, 0  ;;  %v8726_v7 = vmul.f32 %v3629_v58, %v8719_v22  ;;  %v619_v43 = vsel %vm617_vm10, %v7231_v1, %v618_v5 }
 0x1e9   : > { %v2280_v36 = vsel %vm2278_vm11, %v7231_v1, %v618_v5  ;;  %v904_v20 = vsel %vm6856_vm9, 0, %v6855_v27  ;;  %v3677_v47 = vsub.f32 1.0, %v3661_v29  ;;  %v623_v37 = vsel %vm616_vm1, %v619_v43, %v622_v23 }
 0x1ea   : > { %v2284_v61 = vsel %vm2277_vm2, %v2280_v36, %v2283_v11  ;;  %v889_v56 = vadd.s32 %v8616_v50, %v8604_v49  ;;  %v905_v45 = vsub.s32 32, %v904_v20  ;;  %vm11117_vm6 = vweird.f32 %v7653_v40 }
 0x1eb   : > { %v624_v48 = vsel %vm11117_vm6, nan, %v623_v37  ;;  %vm11118_vm5 = vcmask 1042432   ;;  %v909_v18 = vsub.s32 4294967266, %v904_v20  ;;  %v3693_v1 = vmul.f32 2.0, %v8726_v7  ;;  %vm11120_vm1 = vmmov %vm11117_vm6 }
 0x1ec   : > { %v4157_v12 = vsel %vm11118_vm5, %v7793_v59, %v3836_v17  ;;  %v3627_v28 = vmul.f32 2.0, %v624_v48  ;;  %vm11119_vm11 = vcmask 1046528   ;;  %v907_v60 = vshrl.u32 %v889_v56, %v905_v45  ;;  %vm11123_vm2 = vmmov %vm11118_vm5 }
 0x1ed   : > { %v8744_v57 = vsel %vm11119_vm11, %v4208_v26, %v4028_v2  ;;  %v926_v58 = vadd.s32 3, %v922_v55  ;;  %v8748_v49 = vsel %vm11120_vm1, nan, %v2284_v61  ;;  %v906_v50 = vshll.u32 %v8691_v41, %v904_v20  ;;  %v11122_v20 = vld [vmem:[#allocation12_spill] sm:$0xff] }
 0x1ee   : > { %v910_v14 = vadd.s32 127, %v909_v18  ;;  %v8751_v15 = vmul.f32 %v3693_v1, %v3677_v47  ;;  %v3643_v59 = vmul.f32 %v3627_v28, %v8748_v49  ;;  %v3659_v17 = vmul.f32 %v3627_v28, %v624_v48 }
 0x1ef   : > { %vm11121_vm10 = vcmask 1045504   ;;  %v3835_v24 = vrot.slane %v624_v48, 5  ;;  %v908_v2 = vor.u32 %v907_v60, %v906_v50  ;;  %v8757_v5 = vand.u32 3, %v922_v55 }
 0x1f0   : > { %v8755_v27 = vsel %vm11121_vm10, %v4157_v12, %v3884_v16  ;;  %v911_v30 = vshll.u32 %v910_v14, 23  ;;  %v8760_v26 = vmul.f32 %v3693_v1, %v8726_v7  ;;  %v3675_v29 = vsub.f32 1.0, %v3659_v17  ;;  %vm11126_vm3 = vmmov %vm11121_vm10 }
 0x1f1   : > { %v3691_v23 = vmul.f32 2.0, %v3643_v59  ;;  %v4292_v41 = vpack.c.bf16 %v8744_v57, %v8755_v27  ;;  %v8764_v11 = vand.u32 3, %v926_v58  ;;  %v4027_v43 = vrot.slane %v8748_v49, 1 }
 0x1f2   : > { %v912_v36 = vor.u32 4788187, %v911_v30  ;;  %v8768_v16 = vmul.f32 2.0, %v8751_v15  ;;  %v11022_v37 = vand.u32 2147483647, %v11122_v20  ;;  %v4156_v56 = vsel %vm11123_vm2, %v7653_v40, %v3835_v24 }
 0x1f3   : > { %v3707_v55 = vmul.f32 %v3691_v23, %v3675_v29  ;;  %v3723_v61 = vmul.f32 %v3691_v23, %v3643_v59  ;;  %v4029_v45 = vrot.slane %v8719_v22, 1  ;;  %v4075_v48 = vrot.slane %v3675_v29, 6 }
 0x1f4   : > { %v913_v12 = vand.u32 2147483647, %v912_v36  ;;  %v915_v18 = vcvt.s32.f32 %v908_v2  ;;  %v3741_v1 = vsub.f32 1.0, %v8760_v26  ;;  %v3883_v60 = vrot.slane %v3643_v59, 2 }
 0x1f5   : > { %v3739_v28 = vsub.f32 1.0, %v3723_v61  ;;  %v3755_v57 = vmul.f32 2.0, %v3707_v55  ;;  %v4077_v58 = vrot.slane %v3677_v47, 6  ;;  %v3931_v50 = vrot.slane %v3707_v55, 7 }
 0x1f6   : > { %v916_v49 = vmul.f32 %v915_v18, %v913_v12  ;;  %v8777_v14 = vmul.f32 %v8768_v16, %v8751_v15  ;;  %vm1052_vm0 = vcmp.gt.s32.totalorder %v8063_v51, 0  ;;  %v1048_v24 = vand.u32 8388607, %v11022_v37 }
 0x1f7   : > { %v3771_v40 = vmul.f32 %v3755_v57, %v3739_v28  ;;  %v3787_v17 = vmul.f32 %v3755_v57, %v3707_v55  ;;  %v4123_v27 = vrot.slane %v3739_v28, 3  ;;  %vm11124_vm13 = vcmask 1041408  }
 0x1f8   : > { %v4241_v2 = vsel %vm11124_vm13, %v4027_v43, %v4075_v48  ;;  %v917_v30 = vxor.u32 2147483648, %v916_v49  ;;  %v4125_v47 = vrot.slane %v3741_v1, 3  ;;  %v1053_v59 = vsel %vm1052_vm0, %v8063_v51, 0  ;;  %vm11130_vm10 = vmmov %vm11124_vm13 }
 0x1f9   : > { %v3803_v29 = vsub.f32 1.0, %v3787_v17  ;;  %v3979_v23 = vrot.slane %v3771_v40, 4  ;;  %vm11125_vm15 = vcmask 1044480   ;;  %v1054_v61 = vshrl.u32 %v1053_v59, 5 }
 0x1fa   : > { %v4258_v36 = vsel %vm11125_vm15, %v4241_v2, %v4123_v27  ;;  %v918_v55 = vsel %vm835_vm14, %v917_v30, %v916_v49  ;;  %v4173_v12 = vsel %vm11126_vm3, %v4156_v56, %v3883_v60  ;;  %vm11127_vm9 = vcmask 1040384   ;;  %vm11129_vm14 = vmmov %vm11119_vm11 }
 0x1fb   : > { %v4190_v18 = vsel %vm11127_vm9, %v3883_v60, %v3931_v50  ;;  %v1055_v28 = vand.u32 31, %v1053_v59  ;;  %v4307_v48 = vpack.c.bf16 %v3803_v29, %v4258_v36  ;;  %v921_v57 = vsel %vm8684_vm8, %v11101_v32, %v918_v55  ;;  %vm11131_vm2 = vmmov %vm11125_vm15 }
 0x1fc   : > { %vm11128_vm6 = vcmask 1043456   ;;  %v1049_v17 = vor.u32 8388608, %v1048_v24  ;;  %7234 = vcosq.f32 %v921_v57  ;;  %vm1073_vm5 = vcmp.lt.s32.totalorder %v1054_v61, 1 }
 0x1fd   : > { %v4207_v51 = vsel %vm11128_vm6, %v4190_v18, %v3979_v23  ;;  %v1056_v40 = vsub.s32 32, %v1055_v28  ;;  %v1058_v27 = vshll.u32 %v11048_v34, %v1055_v28  ;;  %v4402_v49 = vand.u32 %v8241_v33, %v4307_v48 }
 0x1fe   : > { %7236 = vsinq.f32 %v921_v57  ;;  %v4224_v56 = vsel %vm11129_vm14, %v4207_v51, %v4027_v43  ;;  %v1061_v60 = vshll.u32 %v11050_v10, %v1055_v28  ;;  %v1064_v24 = vshll.u32 %v11051_v46, %v1055_v28 }
 0x1ff   : > { %v1057_v50 = vshrl.u32 %v11048_v34, %v1056_v40  ;;  %v1059_v35 = vshrl.u32 %v11050_v10, %v1056_v40  ;;  %v1062_v2 = vshrl.u32 %v11051_v46, %v1056_v40  ;;  %4529 = vmatpush1.bf16.msra.mxu1 %v4402_v49  ;;  %v1065_v30 = vshrl.u32 %v11052_v21, %v1056_v40 }
 0x200   : > { %v1067_v59 = vshll.u32 %v11052_v21, %v1055_v28  ;;  %v1068_v29 = vshrl.u32 %v11053_v52, %v1056_v40  ;;  %v1070_v23 = vshll.u32 %v11053_v52, %v1055_v28  ;;  %4530 = vmatprep.subr.bf16.mxu1 %v4292_v41  ;;  %v4291_v43 = vpack.c.bf16 %v4224_v56, %v4173_v12 }
 0x201   : > { %v1060_v36 = vor.u32 %v1059_v35, %v1058_v27  ;;  %v1063_v55 = vor.u32 %v1062_v2, %v1061_v60  ;;  %v1071_v18 = vshrl.u32 %v11054_v53, %v1056_v40  ;;  %v1066_v48 = vor.u32 %v1065_v30, %v1064_v24 }
 0x202   : > { %v1069_v57 = vor.u32 %v1068_v29, %v1067_v59  ;;  %vm1075_vm8 = vcmp.lt.s32.totalorder %v1054_v61, 3  ;;  %vm1076_vm11 = vcmp.lt.s32.totalorder %v1054_v61, 4  ;;  %vm1074_vm1 = vcmp.lt.s32.totalorder %v1054_v61, 2  ;;  %v11134_v59 = vld [vmem:[#allocation9_spill] sm:$0xff] }
 0x203   : > { %v1072_v51 = vor.u32 %v1071_v18, %v1070_v23  ;;  %v1081_v49 = vsel %vm1073_vm5, %v1060_v36, %v1063_v55  ;;  %v1089_v9 = vshll.u32 %v1049_v17, 8  ;;  %4531 = vmatpush1.bf16.msra.mxu1 %v4291_v43  ;;  %v1077_v37 = vsel %vm1073_vm5, %v1057_v50, %v1060_v36 }
 0x204   : > { %v1078_v31 = vsel %vm1076_vm11, %v1066_v48, 2102212464  ;;  %v1082_v28 = vsel %vm1076_vm11, %v1069_v57, 920167782  ;;  %v1085_v41 = vsel %vm1073_vm5, %v1063_v55, %v1066_v48  ;;  %v4243_v12 = vsel %vm11130_vm10, %v4029_v45, %v4077_v58 }
 0x205   : > { %v1079_v40 = vsel %vm1075_vm8, %v1063_v55, %v1078_v31  ;;  %v1083_v27 = vsel %vm1075_vm8, %v1066_v48, %v1082_v28  ;;  %v1086_v56 = vsel %vm1076_vm11, %v1072_v51, 1326507024  ;;  %v3805_v60 = vsub.f32 1.0, %v8777_v14  ;;  %v8832_v31 = vld [vmem:[%s10949_s2 + $0x8] sm:$0xff]  }
 0x206   : > { %v4260_v17 = vsel %vm11131_vm2, %v4243_v12, %v4125_v47  ;;  %v1084_v35 = vsel %vm1074_vm1, %v1081_v49, %v1083_v27  ;;  %v1087_v50 = vsel %vm1075_vm8, %v1069_v57, %v1086_v56  ;;  %vm925_vm0 = vweird.f32 %v11101_v32 }
 0x207   : > { %v1080_v2 = vsel %vm1074_vm1, %v1077_v37, %v1079_v40  ;;  %v1088_v24 = vsel %vm1074_vm1, %v1085_v41, %v1087_v50  ;;  %v8823_v58 = vmul.u32.u64.low %v1089_v9, %v1084_v35  ;;  %v8824_v30 = vmul.u32.u64.high %v1089_v9, %v1084_v35, %v8823_v58 }
 0x208   : > { %vm11132_vm13 = vcmask 220160   ;;  %vm2586_vm15 = vcmp.lt.s32.totalorder %v8757_v5, 2  ;;  %v8835_v14 = vmul.u32.u64.low %v1089_v9, %v1088_v24  ;;  %v8836_v47 = vmul.u32.u64.high %v1089_v9, %v1088_v24, %v8835_v14 }
 0x209   : > { %6969 = vmatmul.mubr.msk.bf16.vlgmr.msra.gmra.mxu1 %vm11132_vm13, %v8597_v38  ;;  %v3773_v37 = vmul.f32 %v8768_v16, %v3741_v1  ;;  %v11133_v61 = vmov 0   ;;  %vm928_vm3 = vcmp.lt.s32.totalorder %v8764_v11, 2  ;;  %vm2587_vm9 = vcmp.eq.s32.totalorder %v8757_v5, 0  ;;  %vm11135_vm5 = vmmov %vm11132_vm13  ;;  %v7235_v23 = vpop.eup %7234 }
 0x20a   : > { %4558 = vmatprep.mubr.bf16.mxu1 %v11133_v61  ;;  %vm2590_vm6 = vcmp.eq.s32.totalorder %v8757_v5, 2  ;;  %v1023_v29 = vsub.s32 4, %v11134_v59  ;;  %6966 = vmatmul.mubr.msk.bf16.gmra.mxu0 %vm11135_vm5, %v8832_v31  ;;  %vm929_vm14 = vcmp.eq.s32.totalorder %v8764_v11, 0  ;;  %vm932_vm8 = vcmp.eq.s32.totalorder %v8764_v11, 2 }
 0x20b   : > { %v8850_v26 = vpack.c.bf16 %v3805_v60, %v4260_v17  ;;  %v1096_v16 = vmul.u32 %v1089_v9, %v1080_v2  ;;  %4495 = vmatprep.mubr.bf16.mxu0 %v11133_v61  ;;  %v7237_v1 = vpop.eup %7236  ;;  %v933_v43 = vxor.u32 2147483648, %v7235_v23  ;;  %v1099_v36 = vadd.s32 1, %v8824_v30 }
 0x20c   : > { %v3933_v55 = vrot.slane %v8751_v15, 7  ;;  %vm11136_vm11 = vcmp.lt.s32.totalorder %v7535_v25, 0  ;;  %v930_v48 = vxor.u32 2147483648, %v7237_v1  ;;  %vm1098_vm1 = vc.u32 %v8836_v47, %v8823_v58 }
 0x20d   : > { %v1024_v18 = vsel %vm11136_vm11, %v1023_v29, %v11134_v59  ;;  %v3981_v57 = vrot.slane %v3773_v37, 4  ;;  %v934_v51 = vsel %vm932_vm8, %v933_v43, %v7237_v1  ;;  %v2592_v49 = vsel %vm2590_vm6, %v933_v43, %v7237_v1 }
 0x20e   : > { %v1026_v9 = vsel %vm8021_vm4, 0, %v1024_v18  ;;  %v1100_v28 = vsel %vm1098_vm1, %v1099_v36, %v8824_v30  ;;  %v931_v15 = vsel %vm929_vm14, %v7235_v23, %v930_v48  ;;  %v2589_v12 = vsel %vm2587_vm9, %v7235_v23, %v930_v48  ;;  %vm11137_vm4 = vmmov %vm11135_vm5 }
 0x20f   : > { %v1030_v41 = vadd.s32 3, %v1026_v9  ;;  %v1101_v40 = vadd.s32 %v1100_v28, %v1096_v16  ;;  %v3885_v27 = vrot.slane %v8726_v7, 2  ;;  %v935_v39 = vsel %vm928_vm3, %v931_v15, %v934_v51 }
 0x210   : > { %v2593_v56 = vsel %vm2586_vm15, %v2589_v12, %v2592_v49  ;;  %v1034_v17 = vxor.u32 2147483648, %v8220_v8  ;;  %v8879_v35 = vsel %vm925_vm0, nan, %v935_v39  ;;  %vm11138_vm10 = vcmask 1040384  }
 0x211   : > { %v1031_v60 = vand.u32 3, %v1030_v41  ;;  %6970 = vmatmul.mubr.msk.bf16.gmra.mxu1 %vm11137_vm4, %v8832_v31  ;;  %v1102_v50 = vadd.s32 536870912, %v1101_v40  ;;  %v4192_v2 = vsel %vm11138_vm10, %v3885_v27, %v3933_v55  ;;  %v1037_v11 = vxor.u32 2147483648, %v8182_v42 }
 0x212   : > { %4568 = vmatprep.mubr.bf16.mxu1 %v11133_v61  ;;  %v1847_v5 = vshll.u32 %v8650_v13, 23  ;;  %v3630_v24 = vmul.f32 2.0, %v8879_v35  ;;  %v3837_v30 = vrot.slane %v8704_v3, 5  ;;  %vm11139_vm2 = vcmask 1043456  }
 0x213   : > { %v4209_v14 = vsel %vm11139_vm2, %v4192_v2, %v3981_v57  ;;  %v2594_v37 = vsel %vm925_vm0, nan, %v2593_v56  ;;  %v1103_v59 = vshrl.u32 %v1102_v50, 30  ;;  %vm1033_vm13 = vcmp.eq.s32.totalorder %v1031_v60, 0 }
 0x214   : > { %v2688_v29 = vand.u32 3, %v1026_v9  ;;  %v3646_v23 = vmul.f32 %v3630_v24, %v2594_v37  ;;  %v3662_v16 = vmul.f32 %v3630_v24, %v8879_v35  ;;  %v1035_v1 = vsel %vm1033_vm13, %v8182_v42, %v1034_v17 }
 0x215   : > { %vm1036_vm15 = vcmp.eq.s32.totalorder %v1031_v60, 2  ;;  %v4408_v43 = vand.u32 %v8241_v33, %v8850_v26  ;;  %v1104_v36 = vshll.u32 %v1103_v59, 30  ;;  %vm1032_vm3 = vcmp.lt.s32.totalorder %v1031_v60, 2 }
 0x216   : > { %v1038_v3 = vsel %vm1036_vm15, %v1037_v11, %v8220_v8  ;;  %v3678_v55 = vsub.f32 1.0, %v3662_v16  ;;  %v3694_v18 = vmul.f32 2.0, %v3646_v23  ;;  %vm1043_vm0 = vcmp.lt.s32.totalorder %v11122_v20, 0 }
 0x217   : > { %vm11140_vm9 = vcmask 1042432   ;;  %v1039_v57 = vsel %vm1032_vm3, %v1035_v1, %v1038_v3  ;;  %v8902_v9 = vsub.s32 %v1101_v40, %v1104_v36  ;;  %vm11141_vm6 = vcmask 1046528  }
 0x218   : > { %v8900_v48 = vsel %vm11140_vm9, %v11105_v19, %v3837_v30  ;;  %v8907_v51 = vsel %vm11141_vm6, %v4209_v14, %v4029_v45  ;;  %vm1029_vm5 = vweird.f32 %v7535_v25  ;;  %vm2689_vm14 = vcmp.lt.s32.totalorder %v2688_v29, 2  ;;  %vm11150_vm15 = vmmov %vm11140_vm9 }
 0x219   : > { %v3710_v49 = vmul.f32 %v3694_v18, %v3678_v55  ;;  %v3726_v28 = vmul.f32 %v3694_v18, %v3646_v23  ;;  %v4030_v41 = vrot.slane %v2594_v37, 1  ;;  %vm2690_vm8 = vcmp.eq.s32.totalorder %v2688_v29, 0  ;;  %vm11151_vm3 = vmmov %vm11141_vm6 }
 0x21a   : > { %v4078_v15 = vrot.slane %v3678_v55, 6  ;;  %v1107_v12 = vsub.s32 0, %v8902_v9  ;;  %v8913_v19 = vsel %vm1029_vm5, nan, %v1039_v57  ;;  %vm2693_vm11 = vcmp.eq.s32.totalorder %v2688_v29, 2 }
 0x21b   : > { %v3742_v40 = vsub.f32 1.0, %v3726_v28  ;;  %v3758_v22 = vmul.f32 2.0, %v3710_v49  ;;  %v11142_v45 = vand.u32 2147483647, %v11122_v20  ;;  %v2692_v56 = vsel %vm2690_vm8, %v8182_v42, %v1034_v17 }
 0x21c   : > { %v2695_v60 = vsel %vm2693_vm11, %v1037_v11, %v8220_v8  ;;  %v3838_v50 = vrot.slane %v8879_v35, 5  ;;  %v3934_v2 = vrot.slane %v3710_v49, 7  ;;  %v6862_v24 = vmin.u32 %v1107_v12, %v8902_v9  ;;  %v11147_v35 = vld [vmem:[#allocation14_spill] sm:$0xff] }
 0x21d   : > { %vm8917_vm1 = vcmp.le.f32.partialorder %v11142_v45, 0.7853982  ;;  %v1127_v30 = vsub.s32 4, %v1103_v59  ;;  %v3790_v14 = vmul.f32 %v3758_v22, %v3710_v49  ;;  %v4126_v37 = vrot.slane %v3742_v40, 3 }
 0x21e   : > { %v3774_v16 = vmul.f32 %v3758_v22, %v3742_v40  ;;  %v3631_v1 = vmul.f32 2.0, %v8913_v19  ;;  %vm11145_vm4 = vcmask 1041408   ;;  %v3886_v3 = vrot.slane %v3646_v23, 2 }
 0x21f   : > { %v4244_v36 = vsel %vm11145_vm4, %v4030_v41, %v4078_v15  ;;  %v1109_v55 = vclz %v6862_v24  ;;  %v2696_v18 = vsel %vm2689_vm14, %v2692_v56, %v2695_v60  ;;  %v3806_v42 = vsub.f32 1.0, %v3790_v14 }
 0x220   : > { %vm11146_vm10 = vcmask 1044480   ;;  %v3982_v17 = vrot.slane %v3774_v16, 4  ;;  %v1249_v11 = vand.u32 2147483647, %v11147_v35  ;;  %vm11148_vm2 = vcmask 1040384  }
 0x221   : > { %v4261_v8 = vsel %vm11146_vm10, %v4244_v36, %v4126_v37  ;;  %v4193_v57 = vsel %vm11148_vm2, %v3886_v3, %v3934_v2  ;;  %v1097_v49 = vadd.s32 %v8823_v58, %v8836_v47  ;;  %v6863_v28 = vadd.s32 4294967294, %v1109_v55 }
 0x222   : > { %v1128_v12 = vsel %vm1043_vm0, %v1127_v30, %v1103_v59  ;;  %v4310_v15 = vpack.c.bf16 %v3806_v42, %v4261_v8  ;;  %vm11149_vm13 = vcmask 1043456   ;;  %v8938_v29 = vsel %vm1029_vm5, nan, %v2696_v18 }
 0x223   : > { %v4210_v23 = vsel %vm11149_vm13, %v4193_v57, %v3982_v17  ;;  %v3663_v40 = vmul.f32 %v3631_v1, %v8913_v19  ;;  %v4159_v22 = vsel %vm11150_vm15, %v11101_v32, %v3838_v50  ;;  %vm6864_vm9 = vcmp.lt.s32.totalorder %v6863_v28, 0 }
 0x224   : > { %v4227_v45 = vsel %vm11151_vm3, %v4210_v23, %v4030_v41  ;;  %v8945_v58 = vmul.f32 %v3631_v1, %v8938_v29  ;;  %v4411_v47 = vand.u32 %v8241_v33, %v4310_v15  ;;  %vm11152_vm6 = vcmask 1045504  }
 0x225   : > { %v4176_v59 = vsel %vm11152_vm6, %v4159_v22, %v3886_v3  ;;  %v1112_v56 = vsel %vm6864_vm9, 0, %v6863_v28  ;;  %v3679_v60 = vsub.f32 1.0, %v3663_v40  ;;  %v8951_v30 = vsel %vm8917_vm1, 0, %v1128_v12  ;;  %vm11155_vm14 = vmmov %vm11152_vm6 }
 0x226   : > { %v1113_v2 = vsub.s32 32, %v1112_v56  ;;  %v1117_v24 = vsub.s32 4294967266, %v1112_v56  ;;  %v3695_v32 = vmul.f32 2.0, %v8945_v58  ;;  %4601 = vmatprep.subr.bf16.mxu0 %v4411_v47  ;;  %v4294_v41 = vpack.c.bf16 %v4227_v45, %v4176_v59 }
 0x227   : > { %v1114_v50 = vshll.u32 %v8902_v9, %v1112_v56  ;;  %v1256_v14 = vand.u32 8388607, %v1249_v11  ;;  %vm1260_vm5 = vcmp.gt.s32.totalorder %v8065_v4, 0  ;;  %4602 = vmatpush1.bf16.msra.mxu0 %v4408_v43  ;;  %v11153_v3 = vand.u32 2147483647, %v8227_v54 }
 0x228   : > { %v1115_v37 = vshrl.u32 %v1097_v49, %v1113_v2  ;;  %v1118_v16 = vadd.s32 127, %v1117_v24  ;;  %v8961_v1 = vmul.f32 %v3695_v32, %v3679_v60  ;;  %v8964_v36 = vmul.f32 %v3695_v32, %v8945_v58  ;;  %4603 = vmatprep.subr.bf16.mxu0 %v4294_v41 }
 0x229   : > { %v11154_v9 = vcvt.s32.f32 %v8215_v44  ;;  %v8974_v18 = vor.u32 4788187, %v1847_v5  ;;  %v4175_v26 = vsel %vm11155_vm14, %v8900_v48, %v3885_v27  ;;  %v1261_v43 = vsel %vm1260_vm5, %v8065_v4, 0  ;;  %v8994_v48 = vld [vmem:[%s10949_s2 + $0x10] sm:$0xff]  }
 0x22a   : > { %v1851_v42 = vcvt.s32.f32 %v8667_v62  ;;  %v1116_v8 = vor.u32 %v1115_v37, %v1114_v50  ;;  %v1119_v54 = vshll.u32 %v1118_v16, 23  ;;  %v4293_v44 = vpack.c.bf16 %v8907_v51, %v4175_v26  ;;  %v9019_v26 = vld [vmem:[%s10949_s2 + $0x18] sm:$0xff]  }
 0x22b   : > { %v8970_v55 = vmul.f32 %v11154_v9, %v11153_v3  ;;  %v8984_v17 = vadd.s32 3, %v8951_v30  ;;  %v4031_v13 = vrot.slane %v8938_v29, 1  ;;  %v1257_v5 = vor.u32 8388608, %v1256_v14 }
 0x22c   : > { %v1263_v57 = vand.u32 31, %v1261_v43  ;;  %v1120_v49 = vor.u32 4788187, %v1119_v54  ;;  %4604 = vmatpush1.bf16.msra.mxu0 %v4293_v44  ;;  %v3743_v7 = vsub.f32 1.0, %v8964_v36  ;;  %v3759_v27 = vmul.f32 2.0, %v8961_v1 }
 0x22d   : > { %v8989_v4 = vrot.slane %v3679_v60, 6  ;;  %v1123_v40 = vcvt.s32.f32 %v1116_v8  ;;  %v1262_v22 = vshrl.u32 %v1261_v43, 5  ;;  %vm11156_vm8 = vcmask 220160  }
 0x22e   : > { %v1264_v51 = vsub.s32 32, %v1263_v57  ;;  %v1266_v28 = vshll.u32 %v11048_v34, %v1263_v57  ;;  %v1269_v12 = vshll.u32 %v11050_v10, %v1263_v57  ;;  %v1272_v15 = vshll.u32 %v11051_v46, %v1263_v57  ;;  %6967 = vmatmul.mubr.msk.bf16.gmra.mxu0 %vm11156_vm8, %v8994_v48  ;;  %vm11157_vm11 = vmmov %vm11156_vm8 }
 0x22f   : > { %v1121_v23 = vand.u32 2147483647, %v1120_v49  ;;  %v1275_v45 = vshll.u32 %v11052_v21, %v1263_v57  ;;  %6971 = vmatmul.mubr.msk.bf16.gmra.mxu1 %vm11157_vm11, %v8994_v48  ;;  %v9007_v60 = vshll.u32 %v1257_v5, 8  ;;  %4505 = vmatprep.mubr.bf16.mxu0 %v11133_v61  ;;  %v1278_v41 = vshll.u32 %v11053_v52, %v1263_v57  ;;  %vm11158_vm15 = vmmov %vm11156_vm8 }
 0x230   : > { %v1267_v47 = vshrl.u32 %v11050_v10, %v1264_v51  ;;  %v1270_v59 = vshrl.u32 %v11051_v46, %v1264_v51  ;;  %v1273_v56 = vshrl.u32 %v11052_v21, %v1264_v51  ;;  %v1265_v24 = vshrl.u32 %v11048_v34, %v1264_v51  ;;  %4578 = vmatprep.mubr.bf16.mxu1 %v11133_v61 }
 0x231   : > { %v1124_v2 = vmul.f32 %v1123_v40, %v1121_v23  ;;  %v1276_v32 = vshrl.u32 %v11053_v52, %v1264_v51  ;;  %v1279_v16 = vshrl.u32 %v11054_v53, %v1264_v51  ;;  %v3791_v3 = vmul.f32 %v3759_v27, %v8961_v1 }
 0x232   : > { %v1268_v50 = vor.u32 %v1267_v47, %v1266_v28  ;;  %v1271_v14 = vor.u32 %v1270_v59, %v1269_v12  ;;  %v1274_v37 = vor.u32 %v1273_v56, %v1272_v15  ;;  %vm1281_vm4 = vcmp.lt.s32.totalorder %v1262_v22, 1 }
 0x233   : > { %v1125_v36 = vxor.u32 2147483648, %v1124_v2  ;;  %v1277_v9 = vor.u32 %v1276_v32, %v1275_v45  ;;  %v1280_v43 = vor.u32 %v1279_v16, %v1278_v41  ;;  %vm1282_vm10 = vcmp.lt.s32.totalorder %v1262_v22, 2 }
 0x234   : > { %vm1283_vm2 = vcmp.lt.s32.totalorder %v1262_v22, 3  ;;  %vm1284_vm13 = vcmp.lt.s32.totalorder %v1262_v22, 4  ;;  %v1285_v54 = vsel %vm1281_vm4, %v1265_v24, %v1268_v50  ;;  %v1289_v5 = vsel %vm1281_vm4, %v1268_v50, %v1271_v14 }
 0x235   : > { %v1126_v8 = vsel %vm1043_vm0, %v1125_v36, %v1124_v2  ;;  %v1286_v44 = vsel %vm1284_vm13, %v1274_v37, 2102212464  ;;  %v1290_v51 = vsel %vm1284_vm13, %v1277_v9, 920167782  ;;  %v1293_v28 = vsel %vm1281_vm4, %v1271_v14, %v1274_v37  ;;  %vm11159_vm0 = vmmov %vm11156_vm8  ;;  %v11162_v36 = vld [vmem:[#allocation15_spill] sm:$0xff] }
 0x236   : > { %v1129_v57 = vsel %vm8917_vm1, %v11122_v20, %v1126_v8  ;;  %v1287_v49 = vsel %vm1283_vm2, %v1271_v14, %v1286_v44  ;;  %v4127_v12 = vrot.slane %v3743_v7, 3  ;;  %v1291_v15 = vsel %vm1283_vm2, %v1274_v37, %v1290_v51  ;;  %6968 = vmatmul.mubr.msk.bf16.gmra.mxu0 %vm11158_vm15, %v9019_v26  ;;  %vm11165_vm8 = vmmov %vm11159_vm0 }
 0x237   : > { %7238 = vcosq.f32 %v1129_v57  ;;  %v1294_v23 = vsel %vm1284_vm13, %v1280_v43, 1326507024  ;;  %6972 = vmatmul.mubr.msk.bf16.gmra.mxu1 %vm11159_vm0, %v9019_v26  ;;  %v1288_v40 = vsel %vm1282_vm10, %v1285_v54, %v1287_v49  ;;  %v1292_v39 = vsel %vm1282_vm10, %v1289_v5, %v1291_v15  ;;  %4621 = vmatprep.mubr.bf16.mxu0 %v11133_v61 }
 0x238   : > { %7240 = vsinq.f32 %v1129_v57  ;;  %v1295_v45 = vsel %vm1283_vm2, %v1277_v9, %v1294_v23  ;;  %4694 = vmatprep.mubr.bf16.mxu1 %v11133_v61  ;;  %v9039_v59 = vmul.u32.u64.low %v9007_v60, %v1292_v39  ;;  %v9040_v56 = vmul.u32.u64.high %v9007_v60, %v1292_v39, %v9039_v59 }
 0x239   : > { %v1296_v47 = vsel %vm1282_vm10, %v1293_v28, %v1295_v45  ;;  %v3775_v2 = vmul.f32 %v3759_v27, %v3743_v7  ;;  %v1849_v24 = vand.u32 2147483647, %v8974_v18  ;;  %v3935_v50 = vrot.slane %v8961_v1, 7 }
 0x23a   : > { %v9044_v32 = vmul.u32.u64.low %v9007_v60, %v1296_v47  ;;  %v9045_v41 = vmul.u32.u64.high %v9007_v60, %v1296_v47, %v9044_v32  ;;  %v9049_v14 = vand.u32 3, %v8951_v30  ;;  %v3807_v37 = vsub.f32 1.0, %v3791_v3 }
 0x23b   : > { %vm11160_vm1 = vcmask 1041408   ;;  %v3983_v16 = vrot.slane %v3775_v2, 4  ;;  %vm11161_vm3 = vcmask 1044480   ;;  %v1304_v18 = vmul.u32 %v9007_v60, %v1288_v40  ;;  %v11169_v40 = vld [vmem:[#allocation11_spill] sm:$0xff] }
 0x23c   : > { %v4245_v22 = vsel %vm11160_vm1, %v4031_v13, %v8989_v4  ;;  %v3887_v27 = vrot.slane %v8945_v58, 2  ;;  %vm1468_vm9 = vcmp.gt.s32.totalorder %v8069_v6, 0  ;;  %7242 = vsinq.f32 %v8193_v0 }
 0x23d   : > { %v4262_v7 = vsel %vm11161_vm3, %v4245_v22, %v4127_v12  ;;  %v1135_v30 = vand.u32 3, %v8984_v17  ;;  %v1307_v1 = vadd.s32 1, %v9040_v56  ;;  %v1457_v3 = vand.u32 2147483647, %v11162_v36 }
 0x23e   : > { %v1645_v9 = vxor.u32 2147483648, %v8970_v55  ;;  %vm1306_vm6 = vc.u32 %v9045_v41, %v9039_v59  ;;  %vm11163_vm5 = vcmask 1040384   ;;  %v1469_v60 = vsel %vm1468_vm9, %v8069_v6, 0  ;;  %6973 = vmatmul.mubr.msk.bf16.vlgmr.msra.gmra.mxu0 %vm11165_vm8, %v8597_v38 }
 0x23f   : > { %v4194_v4 = vsel %vm11163_vm5, %v3887_v27, %v3935_v50  ;;  %v9067_v43 = vpack.c.bf16 %v3807_v37, %v4262_v7  ;;  %v1308_v58 = vsel %vm1306_vm6, %v1307_v1, %v9040_v56  ;;  %v3839_v0 = vrot.slane %v8913_v19, 5  ;;  %4631 = vmatprep.mubr.bf16.mxu0 %v11133_v61 }
 0x240   : > { %vm11164_vm14 = vcmask 1043456   ;;  %v9076_v8 = vmul.f32 %v1851_v42, %v1849_v24  ;;  %vm2792_vm11 = vcmp.lt.s32.totalorder %v9049_v14, 2  ;;  %v1309_v54 = vadd.s32 %v1308_v58, %v1304_v18 }
 0x241   : > { %v4211_v17 = vsel %vm11164_vm14, %v4194_v4, %v3983_v16  ;;  %v1471_v44 = vand.u32 31, %v1469_v60  ;;  %vm1133_vm4 = vweird.f32 %v11122_v20  ;;  %vm1136_vm10 = vcmp.lt.s32.totalorder %v1135_v30, 2  ;;  %vm11170_vm14 = vmmov %vm11165_vm8 }
 0x242   : > { %vm2793_vm2 = vcmp.eq.s32.totalorder %v9049_v14, 0  ;;  %vm2796_vm13 = vcmp.eq.s32.totalorder %v9049_v14, 2  ;;  %v1464_v6 = vand.u32 8388607, %v1457_v3  ;;  %vm1137_vm15 = vcmp.eq.s32.totalorder %v1135_v30, 0 }
 0x243   : > { %vm1140_vm0 = vcmp.eq.s32.totalorder %v1135_v30, 2  ;;  %v1310_v38 = vadd.s32 536870912, %v1309_v54  ;;  %vm11166_vm1 = vcmask 1046528   ;;  %v4414_v19 = vand.u32 %v8241_v33, %v9067_v43 }
 0x244   : > { %v9088_v62 = vsel %vm11166_vm1, %v4211_v17, %v4031_v13  ;;  %vm1251_vm3 = vcmp.lt.s32.totalorder %v11147_v35, 0  ;;  %vm11167_vm9 = vcmask 1042432   ;;  %v9095_v5 = vshrl.u32 %v1469_v60, 5  ;;  %v7239_v57 = vpop.eup %7238 }
 0x245   : > { %v4160_v42 = vsel %vm11167_vm9, %v7535_v25, %v3839_v0  ;;  %v9098_v49 = vadd.s32 %v9039_v59, %v9045_v41  ;;  %v1311_v51 = vshrl.u32 %v1310_v38, 30  ;;  %vm11168_vm6 = vcmask 1045504   ;;  %v7241_v28 = vpop.eup %7240 }
 0x246   : > { %v9101_v29 = vsel %vm11168_vm6, %v4160_v42, %v3887_v27  ;;  %v1472_v13 = vsub.s32 32, %v1471_v44  ;;  %v1141_v12 = vxor.u32 2147483648, %v7239_v57  ;;  %v1465_v23 = vor.u32 8388608, %v1464_v6  ;;  %6974 = vmatmul.mubr.msk.bf16.gmra.mxu0 %vm11170_vm14, %v8832_v31 }
 0x247   : > { %v4295_v15 = vpack.c.bf16 %v9088_v62, %v9101_v29  ;;  %v1231_v39 = vsub.s32 4, %v11169_v40  ;;  %v1138_v25 = vxor.u32 2147483648, %v7241_v28  ;;  %v1312_v45 = vshll.u32 %v1311_v51, 30  ;;  %4641 = vmatprep.mubr.bf16.mxu0 %v11133_v61 }
 0x248   : > { %v1474_v47 = vshll.u32 %v11048_v34, %v1471_v44  ;;  %v1477_v59 = vshll.u32 %v11050_v10, %v1471_v44  ;;  %v1142_v56 = vsel %vm1140_vm0, %v1141_v12, %v7241_v28  ;;  %v2798_v2 = vsel %vm2796_vm13, %v1141_v12, %v7241_v28 }
 0x249   : > { %v1480_v24 = vshll.u32 %v11051_v46, %v1471_v44  ;;  %v1483_v32 = vshll.u32 %v11052_v21, %v1471_v44  ;;  %vm1489_vm5 = vcmp.lt.s32.totalorder %v9095_v5, 1  ;;  %v1139_v41 = vsel %vm1137_vm15, %v7239_v57, %v1138_v25  ;;  %v9129_v1 = vpop.eup %7242 }
 0x24a   : > { %v2795_v50 = vsel %vm2793_vm2, %v7239_v57, %v1138_v25  ;;  %v9119_v37 = vsub.s32 %v1309_v54, %v1312_v45  ;;  %v1475_v22 = vshrl.u32 %v11050_v10, %v1472_v13  ;;  %v1143_v16 = vsel %vm1136_vm10, %v1139_v41, %v1142_v56 }
 0x24b   : > { %v2799_v7 = vsel %vm2792_vm11, %v2795_v50, %v2798_v2  ;;  %v1478_v18 = vshrl.u32 %v11051_v46, %v1472_v13  ;;  %v1481_v27 = vshrl.u32 %v11052_v21, %v1472_v13  ;;  %vm1491_vm8 = vcmp.lt.s32.totalorder %v9095_v5, 3 }
 0x24c   : > { %v9133_v4 = vsel %vm1133_vm4, nan, %v1143_v16  ;;  %v1315_v60 = vsub.s32 0, %v9119_v37  ;;  %v1335_v58 = vsub.s32 4, %v1311_v51  ;;  %v1484_v30 = vshrl.u32 %v11053_v52, %v1472_v13 }
 0x24d   : > { %v3632_v14 = vmul.f32 2.0, %v9133_v4  ;;  %v1486_v0 = vshll.u32 %v11053_v52, %v1471_v44  ;;  %vm1490_vm11 = vcmp.lt.s32.totalorder %v9095_v5, 2  ;;  %vm1492_vm10 = vcmp.lt.s32.totalorder %v9095_v5, 4 }
 0x24e   : > { %v9141_v17 = vshll.u32 %v1465_v23, 8  ;;  %v2800_v54 = vsel %vm1133_vm4, nan, %v2799_v7  ;;  %v6870_v6 = vmin.u32 %v1315_v60, %v9119_v37  ;;  %v1473_v38 = vshrl.u32 %v11048_v34, %v1472_v13  ;;  %vm11171_vm4 = vmmov %vm11170_vm14 }
 0x24f   : > { %v1487_v42 = vshrl.u32 %v11054_v53, %v1472_v13  ;;  %v9148_v57 = vmul.f32 %v3632_v14, %v2800_v54  ;;  %v3664_v28 = vmul.f32 %v3632_v14, %v9133_v4  ;;  %v1476_v44 = vor.u32 %v1475_v22, %v1474_v47  ;;  %6975 = vmatmul.mubr.msk.bf16.gmra.mxu0 %vm11171_vm4, %v8994_v48  ;;  %vm11177_vm9 = vmmov %vm11171_vm4 }
 0x250   : > { %v1479_v12 = vor.u32 %v1478_v18, %v1477_v59  ;;  %v1317_v25 = vclz %v6870_v6  ;;  %v9153_v23 = vsel %vm1251_vm3, %v1335_v58, %v1311_v51  ;;  %v1482_v45 = vor.u32 %v1481_v27, %v1480_v24  ;;  %4651 = vmatprep.mubr.bf16.mxu0 %v11133_v61 }
 0x251   : > { %v1485_v56 = vor.u32 %v1484_v30, %v1483_v32  ;;  %v3680_v2 = vsub.f32 1.0, %v3664_v28  ;;  %v3696_v41 = vmul.f32 2.0, %v9148_v57  ;;  %v4032_v50 = vrot.slane %v2800_v54, 1 }
 0x252   : > { %v3840_v16 = vrot.slane %v9133_v4, 5  ;;  %v6871_v13 = vadd.s32 4294967294, %v1317_v25  ;;  %v1488_v7 = vor.u32 %v1487_v42, %v1486_v0  ;;  %v1493_v47 = vsel %vm1489_vm5, %v1473_v38, %v1476_v44 }
 0x253   : > { %v1494_v51 = vsel %vm1492_vm10, %v1482_v45, 2102212464  ;;  %v3712_v59 = vmul.f32 %v3696_v41, %v3680_v2  ;;  %v3728_v24 = vmul.f32 %v3696_v41, %v9148_v57  ;;  %v4080_v32 = vrot.slane %v3680_v2, 6 }
 0x254   : > { %v3888_v22 = vrot.slane %v9148_v57, 2  ;;  %vm6872_vm2 = vcmp.lt.s32.totalorder %v6871_v13, 0  ;;  %v1495_v18 = vsel %vm1491_vm8, %v1479_v12, %v1494_v51  ;;  %v1497_v27 = vsel %vm1489_vm5, %v1476_v44, %v1479_v12 }
 0x255   : > { %v1498_v4 = vsel %vm1492_vm10, %v1485_v56, 920167782  ;;  %v3744_v60 = vsub.f32 1.0, %v3728_v24  ;;  %v3760_v58 = vmul.f32 2.0, %v3712_v59  ;;  %v3936_v30 = vrot.slane %v3712_v59, 7 }
 0x256   : > { %v1501_v14 = vsel %vm1489_vm5, %v1479_v12, %v1482_v45  ;;  %vm11172_vm13 = vcmask 1041408   ;;  %vm9177_vm15 = vcmp.le.f32.partialorder %v1249_v11, 0.7853982  ;;  %v1320_v6 = vsel %vm6872_vm2, 0, %v6871_v13 }
 0x257   : > { %v4246_v0 = vsel %vm11172_vm13, %v4032_v50, %v4080_v32  ;;  %v9183_v38 = vsel %vm1490_vm11, %v1493_v47, %v1495_v18  ;;  %v1502_v42 = vsel %vm1492_vm10, %v1488_v7, 1326507024  ;;  %v3792_v57 = vmul.f32 %v3760_v58, %v3712_v59  ;;  %6976 = vmatmul.mubr.msk.bf16.gmra.mxu0 %vm11177_vm9, %v9019_v26 }
 0x258   : > { %v4128_v28 = vrot.slane %v3744_v60, 3  ;;  %v3776_v44 = vmul.f32 %v3760_v58, %v3744_v60  ;;  %v1499_v12 = vsel %vm1491_vm8, %v1482_v45, %v1498_v4  ;;  %vm11175_vm0 = vcmask 1040384   ;;  %4767 = vmatprep.mubr.bf16.mxu0 %v11133_v61 }
 0x259   : > { %v4195_v25 = vsel %vm11175_vm0, %v3888_v22, %v3936_v30  ;;  %v1321_v11 = vsub.s32 32, %v1320_v6  ;;  %v1322_v2 = vshll.u32 %v9119_v37, %v1320_v6  ;;  %v1325_v41 = vsub.s32 4294967266, %v1320_v6 }
 0x25a   : > { %v3808_v13 = vsub.f32 1.0, %v3792_v57  ;;  %vm11176_vm1 = vcmask 1044480   ;;  %v3984_v47 = vrot.slane %v3776_v44, 4  ;;  %v1503_v24 = vsel %vm1491_vm8, %v1485_v56, %v1502_v42 }
 0x25b   : > { %v4263_v51 = vsel %vm11176_vm1, %v4246_v0, %v4128_v28  ;;  %v1323_v7 = vshrl.u32 %v9098_v49, %v1321_v11  ;;  %v1326_v59 = vadd.s32 127, %v1325_v41  ;;  %v1500_v45 = vsel %vm1490_vm11, %v1497_v27, %v1499_v12  ;;  %v11181_v27 = vld [vmem:[#allocation10_spill] sm:$0xff] }
 0x25c   : > { %v1504_v37 = vsel %vm1490_vm11, %v1501_v14, %v1503_v24  ;;  %v4312_v32 = vpack.c.bf16 %v3808_v13, %v4263_v51  ;;  %vm11178_vm6 = vcmask 1043456   ;;  %vm11179_vm5 = vcmask 1046528   ;;  %v11187_v13 = vld [vmem:[#allocation16_spill] sm:$0xff] }
 0x25d   : > { %v4212_v18 = vsel %vm11178_vm6, %v4195_v25, %v3984_v47  ;;  %v9204_v4 = vmul.u32.u64.low %v9141_v17, %v1504_v37  ;;  %v9205_v56 = vmul.u32.u64.high %v9141_v17, %v1504_v37, %v9204_v4  ;;  %v1324_v58 = vor.u32 %v1323_v7, %v1322_v2 }
 0x25e   : > { %v4229_v60 = vsel %vm11179_vm5, %v4212_v18, %v4032_v50  ;;  %v1327_v49 = vshll.u32 %v1326_v59, 23  ;;  %vm11180_vm14 = vcmp.lt.s32.totalorder %v7612_v63, 0  ;;  %vm11026_vm8 = vcmp.lt.s32.totalorder %v11181_v27, 0  ;;  %v11191_v4 = vld [vmem:[#allocation7_spill] sm:$0xff] }
 0x25f   : > { %v1232_v5 = vsel %vm11180_vm14, %v1231_v39, %v11169_v40  ;;  %v4417_v30 = vand.u32 %v8241_v33, %v4312_v32  ;;  %vm11182_vm11 = vcmask 1042432   ;;  %vm1237_vm10 = vweird.f32 %v7612_v63 }
 0x260   : > { %v4161_v14 = vsel %vm11182_vm11, %v11122_v20, %v3840_v16  ;;  %v9218_v0 = vmul.u32.u64.low %v9141_v17, %v1500_v45  ;;  %v9219_v6 = vmul.u32.u64.high %v9141_v17, %v1500_v45, %v9218_v0  ;;  %vm11183_vm4 = vcmask 1045504   ;;  %v11185_v16 = vld [vmem:[#allocation27_spill] sm:$0xff] }
 0x261   : > { %v4178_v50 = vsel %vm11183_vm4, %v4161_v14, %v3888_v22  ;;  %v1328_v42 = vor.u32 4788187, %v1327_v49  ;;  %v1331_v57 = vcvt.s32.f32 %v1324_v58  ;;  %v1234_v40 = vsel %vm8085_vm7, 0, %v1232_v5  ;;  %4674 = vmatprep.subr.bf16.mxu1 %v4417_v30  ;;  %v11186_v22 = vld [vmem:[#allocation26_spill] sm:$0xff] }
 0x262   : > { %v4296_v39 = vpack.c.bf16 %v4229_v60, %v4178_v50  ;;  %v1512_v44 = vmul.u32 %v9141_v17, %v9183_v38  ;;  %v1238_v20 = vadd.s32 3, %v1234_v40  ;;  %v1242_v12 = vxor.u32 2147483648, %v11185_v16  ;;  %4675 = vmatpush1.bf16.msra.mxu1 %v4414_v19 }
 0x263   : > { %v1329_v25 = vand.u32 2147483647, %v1328_v42  ;;  %vm1514_vm2 = vc.u32 %v9205_v56, %v9218_v0  ;;  %v1245_v11 = vxor.u32 2147483648, %v11186_v22  ;;  %v2894_v2 = vand.u32 3, %v1234_v40  ;;  %v9270_v42 = vld [vmem:[%s10949_s2] sm:$0xff]  }
 0x264   : > { %4676 = vmatprep.subr.bf16.mxu1 %v4296_v39  ;;  %v1338_v41 = vsel %vm9177_vm15, 0, %v9153_v23  ;;  %v1515_v17 = vadd.s32 1, %v9219_v6  ;;  %v1239_v38 = vand.u32 3, %v1238_v20  ;;  %v1439_v51 = vsub.s32 4, %v11187_v13 }
 0x265   : > { %v1332_v47 = vmul.f32 %v1331_v57, %v1329_v25  ;;  %vm2895_vm7 = vcmp.lt.s32.totalorder %v2894_v2, 2  ;;  %vm2896_vm13 = vcmp.eq.s32.totalorder %v2894_v2, 0  ;;  %vm2899_vm0 = vcmp.eq.s32.totalorder %v2894_v2, 2  ;;  %v11197_v2 = vld [vmem:[#allocation25_spill] sm:$0xff] }
 0x266   : > { %v11188_v43 = vand.u32 2147483647, %v11181_v27  ;;  %v1516_v24 = vsel %vm1514_vm2, %v1515_v17, %v9219_v6  ;;  %vm1240_vm9 = vcmp.lt.s32.totalorder %v1239_v38, 2  ;;  %vm1241_vm6 = vcmp.eq.s32.totalorder %v1239_v38, 0  ;;  %4677 = vmatpush1.bf16.msra.mxu1 %v4295_v15  ;;  %v11193_v15 = vld [vmem:[#allocation23_spill] sm:$0xff] }
 0x267   : > { %vm1244_vm5 = vcmp.eq.s32.totalorder %v1239_v38, 2  ;;  %v1333_v23 = vxor.u32 2147483648, %v1332_v47  ;;  %v1517_v7 = vadd.s32 %v1516_v24, %v1512_v44  ;;  %v1243_v59 = vsel %vm1241_vm6, %v11186_v22, %v1242_v12  ;;  %v11198_v38 = vld [vmem:[#allocation17_spill] sm:$0xff] }
 0x268   : > { %vm9242_vm1 = vcmp.le.f32.partialorder %v11188_v43, 0.7853982  ;;  %v1246_v45 = vsel %vm1244_vm5, %v1245_v11, %v11185_v16  ;;  %v2898_v32 = vsel %vm2896_vm13, %v11186_v22, %v1242_v12  ;;  %v2901_v18 = vsel %vm2899_vm0, %v1245_v11, %v11185_v16 }
 0x269   : > { %v1247_v37 = vsel %vm1240_vm9, %v1243_v59, %v1246_v45  ;;  %vm11192_vm14 = vcmp.lt.s32.totalorder %v11191_v4, 0  ;;  %v1334_v58 = vsel %vm1251_vm3, %v1333_v23, %v1332_v47  ;;  %v1518_v49 = vadd.s32 536870912, %v1517_v7 }
 0x26a   : > { %v1440_v60 = vsel %vm11192_vm14, %v1439_v51, %v11187_v13  ;;  %v1248_v62 = vsel %vm1237_vm10, nan, %v1247_v37  ;;  %v2902_v29 = vsel %vm2895_vm7, %v2898_v32, %v2901_v18  ;;  %v11194_v5 = vand.u32 2139095040, %v11193_v15 }
 0x26b   : > { %v1337_v14 = vsel %vm9177_vm15, %v11147_v35, %v1334_v58  ;;  %v1342_v6 = vadd.s32 3, %v1338_v41  ;;  %v3633_v50 = vmul.f32 2.0, %v1248_v62  ;;  %vm11195_vm3 = vcmask 220160   ;;  %v11202_v58 = vld [vmem:[#allocation28_spill] sm:$0xff] }
 0x26c   : > { %v1877_v30 = vshrl.u32 %v11194_v5, 23  ;;  %6977 = vmatmul.mubr.msk.bf16.vlgmr.msra.gmra.mxu1 %vm11195_vm3, %v9270_v42  ;;  %v1646_v57 = vsel %vm11026_vm8, %v1645_v9, %v8970_v55  ;;  %7244 = vcosq.f32 %v1337_v14  ;;  %v1519_v28 = vshrl.u32 %v1518_v49, 30  ;;  %vm11201_vm2 = vmmov %vm11195_vm3 }
 0x26d   : > { %v9281_v54 = vsel %vm1237_vm10, nan, %v2902_v29  ;;  %4704 = vmatprep.mubr.bf16.mxu1 %v11133_v61  ;;  %7246 = vsinq.f32 %v1337_v14  ;;  %v3665_v39 = vmul.f32 %v3633_v50, %v1248_v62  ;;  %v1442_v20 = vsel %vm8145_vm12, 0, %v1440_v60 }
 0x26e   : > { %v9285_v40 = vmul.f32 %v3633_v50, %v9281_v54  ;;  %v1853_v16 = vxor.u32 2147483648, %v9076_v8  ;;  %vm11027_vm15 = vcmp.lt.s32.totalorder %v11162_v36, 0  ;;  %v1520_v55 = vshll.u32 %v1519_v28, 30  ;;  %v11204_v50 = vld [vmem:[#allocation20_spill] sm:$0xff] }
 0x26f   : > { %v1543_v9 = vsub.s32 4, %v1519_v28  ;;  %v9291_v12 = vand.u32 3, %v1342_v6  ;;  %v9293_v25 = vand.u32 3, %v1338_v41  ;;  %v3681_v22 = vsub.f32 1.0, %v3665_v39 }
 0x270   : > { %v3697_v11 = vmul.f32 2.0, %v9285_v40  ;;  %v9297_v17 = vadd.s32 1, %v11197_v2  ;;  %vm11025_vm11 = vcmp.lt.s32.totalorder %v11198_v38, 0  ;;  %v9300_v13 = vsub.s32 %v1517_v7, %v1520_v55 }
 0x271   : > { %v1446_v51 = vadd.s32 3, %v1442_v20  ;;  %vm9304_vm12 = vcmp.le.f32.partialorder %v1457_v3, 0.7853982  ;;  %v1544_v41 = vsel %vm11027_vm15, %v1543_v9, %v1519_v28  ;;  %v9316_v23 = vsel %vm9242_vm1, %v11181_v27, %v1646_v57 }
 0x272   : > { %v9310_v43 = vmul.f32 %v3697_v11, %v3681_v22  ;;  %v3729_v24 = vmul.f32 %v3697_v11, %v9285_v40  ;;  %v9318_v7 = vadd.s32 4294967169, %v1877_v30  ;;  %v1523_v59 = vsub.s32 0, %v9300_v13 }
 0x273   : > { %v3841_v3 = vrot.slane %v1248_v62, 5  ;;  %v9324_v45 = vsel %vm11025_vm11, %v1853_v16, %v9076_v8  ;;  %vm1348_vm10 = vcmp.eq.s32.totalorder %v9291_v12, 2  ;;  %vm3002_vm4 = vcmp.eq.s32.totalorder %v9293_v25, 2 }
 0x274   : > { %v1513_v37 = vadd.s32 %v9218_v0, %v9205_v56  ;;  %6978 = vmatmul.mubr.msk.bf16.gmra.mxu1 %vm11201_vm2, %v8832_v31  ;;  %vm1345_vm7 = vcmp.eq.s32.totalorder %v9291_v12, 0  ;;  %vm2999_vm13 = vcmp.eq.s32.totalorder %v9293_v25, 0  ;;  %v6878_v32 = vmin.u32 %v1523_v59, %v9300_v13 }
 0x275   : > { %v9337_v8 = vsel %vm9304_vm12, 0, %v1544_v41  ;;  %v4081_v18 = vrot.slane %v3681_v22, 6  ;;  %v1447_v60 = vand.u32 3, %v1446_v51  ;;  %4714 = vmatprep.mubr.bf16.mxu1 %v11133_v61  ;;  %vm1344_vm0 = vcmp.lt.s32.totalorder %v9291_v12, 2 }
 0x276   : > { %vm2998_vm9 = vcmp.lt.s32.totalorder %v9293_v25, 2  ;;  %v3745_v56 = vsub.f32 1.0, %v3729_v24  ;;  %v3761_v31 = vmul.f32 2.0, %v9310_v43  ;;  %v1450_v0 = vxor.u32 2147483648, %v9129_v1 }
 0x277   : > { %v1453_v49 = vxor.u32 2147483648, %v11202_v58  ;;  %vm1341_vm6 = vweird.f32 %v11147_v35  ;;  %v1525_v62 = vclz %v6878_v32  ;;  %v4033_v29 = vrot.slane %v9281_v54, 1 }
 0x278   : > { %vm11203_vm5 = vcmask 1042432   ;;  %vm1445_vm14 = vweird.f32 %v11191_v4  ;;  %v9353_v30 = vadd.s32 3, %v9337_v8  ;;  %v3889_v14 = vrot.slane %v9285_v40, 2 }
 0x279   : > { %v9349_v5 = vsel %vm11203_vm5, %v7612_v63, %v3841_v3  ;;  %v3100_v6 = vand.u32 3, %v1442_v20  ;;  %v1665_v57 = vand.u32 2147483647, %v11204_v50  ;;  %v6879_v28 = vadd.s32 4294967294, %v1525_v62  ;;  %v7245_v44 = vpop.eup %7244 }
 0x27a   : > { %vm11205_vm3 = vcmask 1041408   ;;  %vm1449_vm2 = vcmp.eq.s32.totalorder %v1447_v60, 0  ;;  %vm1452_vm11 = vcmp.eq.s32.totalorder %v1447_v60, 2  ;;  %v3777_v63 = vmul.f32 %v3761_v31, %v3745_v56  ;;  %v7247_v20 = vpop.eup %7246 }
 0x27b   : > { %v4247_v39 = vsel %vm11205_vm3, %v4033_v29, %v4081_v18  ;;  %v3937_v16 = vrot.slane %v9310_v43, 7  ;;  %v1451_v55 = vsel %vm1449_vm2, %v11202_v58, %v1450_v0  ;;  %v1454_v9 = vsel %vm1452_vm11, %v1453_v49, %v9129_v1 }
 0x27c   : > { %v1349_v22 = vxor.u32 2147483648, %v7245_v44  ;;  %vm6880_vm5 = vcmp.lt.s32.totalorder %v6879_v28, 0  ;;  %v3793_v11 = vmul.f32 %v3761_v31, %v9310_v43  ;;  %vm1448_vm8 = vcmp.lt.s32.totalorder %v1447_v60, 2 }
 0x27d   : > { %v1346_v2 = vxor.u32 2147483648, %v7247_v20  ;;  %v1528_v51 = vsel %vm6880_vm5, 0, %v6879_v28  ;;  %v4129_v41 = vrot.slane %v3745_v56, 3  ;;  %v1455_v24 = vsel %vm1448_vm8, %v1451_v55, %v1454_v9 }
 0x27e   : > { %vm3101_vm3 = vcmp.lt.s32.totalorder %v3100_v6, 2  ;;  %vm11206_vm15 = vcmask 220160   ;;  %v1350_v59 = vsel %vm1348_vm10, %v1349_v22, %v7247_v20  ;;  %v3004_v3 = vsel %vm3002_vm4, %v1349_v22, %v7247_v20 }
 0x27f   : > { %6979 = vmatmul.mubr.msk.bf16.gmra.mxu1 %vm11206_vm15, %v8994_v48  ;;  %v1529_v32 = vsub.s32 32, %v1528_v51  ;;  %v1530_v18 = vshll.u32 %v9300_v13, %v1528_v51  ;;  %v1347_v43 = vsel %vm1345_vm7, %v7245_v44, %v1346_v2  ;;  %v3001_v60 = vsel %vm2999_vm13, %v7245_v44, %v1346_v2 }
 0x280   : > { %4724 = vmatprep.mubr.bf16.mxu1 %v11133_v61  ;;  %v1533_v56 = vsub.s32 4294967266, %v1528_v51  ;;  %v3985_v31 = vrot.slane %v3777_v63, 4  ;;  %v1351_v48 = vsel %vm1344_vm0, %v1347_v43, %v1350_v59  ;;  %v3005_v62 = vsel %vm2998_vm9, %v3001_v60, %v3004_v3 }
 0x281   : > { %v1531_v28 = vshrl.u32 %v1513_v37, %v1529_v32  ;;  %v3809_v55 = vsub.f32 1.0, %v3793_v11  ;;  %v9384_v13 = vsel %vm1341_vm6, nan, %v1351_v48  ;;  %vm11207_vm8 = vcmask 1044480  }
 0x282   : > { %v1534_v9 = vadd.s32 127, %v1533_v56  ;;  %v4264_v20 = vsel %vm11207_vm8, %v4247_v39, %v4129_v41  ;;  %v9389_v44 = vsel %vm1445_vm14, nan, %v1455_v24  ;;  %v3634_v63 = vmul.f32 2.0, %v9384_v13  ;;  %vm11215_vm2 = vmmov %vm11207_vm8 }
 0x283   : > { %v1532_v12 = vor.u32 %v1531_v28, %v1530_v18  ;;  %vm11208_vm15 = vcmask 1040384   ;;  %vm3102_vm11 = vcmp.eq.s32.totalorder %v3100_v6, 0  ;;  %v3006_v37 = vsel %vm1341_vm6, nan, %v3005_v62 }
 0x284   : > { %v4196_v25 = vsel %vm11208_vm15, %v3889_v14, %v3937_v16  ;;  %v1535_v22 = vshll.u32 %v1534_v9, 23  ;;  %vm11209_vm10 = vcmask 1043456   ;;  %v3104_v39 = vsel %vm3102_vm11, %v11202_v58, %v1450_v0  ;;  %vm11216_vm5 = vmmov %vm11208_vm15 }
 0x285   : > { %v4213_v11 = vsel %vm11209_vm10, %v4196_v25, %v3985_v31  ;;  %v9399_v2 = vmul.f32 %v3634_v63, %v3006_v37  ;;  %v3666_v51 = vmul.f32 %v3634_v63, %v9384_v13  ;;  %vm3105_vm4 = vcmp.eq.s32.totalorder %v3100_v6, 2  ;;  %vm11218_vm8 = vmmov %vm11209_vm10 }
 0x286   : > { %v3635_v41 = vmul.f32 2.0, %v9389_v44  ;;  %v1536_v24 = vor.u32 4788187, %v1535_v22  ;;  %v1539_v59 = vcvt.s32.f32 %v1532_v12  ;;  %v9403_v3 = vpack.c.bf16 %v3809_v55, %v4264_v20 }
 0x287   : > { %v3107_v16 = vsel %vm3105_vm4, %v1453_v49, %v9129_v1  ;;  %vm11210_vm7 = vcmask 220160   ;;  %v3682_v32 = vsub.f32 1.0, %v3666_v51  ;;  %v3698_v0 = vmul.f32 2.0, %v9399_v2 }
 0x288   : > { %6980 = vmatmul.mubr.msk.bf16.gmra.mxu1 %vm11210_vm7, %v9019_v26  ;;  %v9412_v18 = vand.u32 3, %v9337_v8  ;;  %v3108_v43 = vsel %vm3101_vm3, %v3104_v39, %v3107_v16  ;;  %v1537_v60 = vand.u32 2147483647, %v1536_v24  ;;  %v9417_v56 = vand.u32 3, %v9353_v30 }
 0x289   : > { %4840 = vmatprep.mubr.bf16.mxu1 %v11133_v61  ;;  %vm11211_vm13 = vcmask 1045504   ;;  %vm11212_vm0 = vcmask 1046528   ;;  %v3714_v8 = vmul.f32 %v3698_v0, %v3682_v32  ;;  %v3730_v58 = vmul.f32 %v3698_v0, %v9399_v2 }
 0x28a   : > { %v9423_v1 = vsel %vm11211_vm13, %v9349_v5, %v3889_v14  ;;  %v9428_v26 = vsel %vm11212_vm0, %v4213_v11, %v4033_v29  ;;  %v9433_v49 = vsel %vm1445_vm14, nan, %v3108_v43  ;;  %v3667_v30 = vmul.f32 %v3635_v41, %v9389_v44  ;;  %vm11219_vm15 = vmmov %vm11212_vm0 }
 0x28b   : > { %v4082_v6 = vrot.slane %v3682_v32, 6  ;;  %v1540_v40 = vmul.f32 %v1539_v59, %v1537_v60  ;;  %v4420_v5 = vand.u32 %v8241_v33, %v9403_v3  ;;  %v9439_v14 = vmul.f32 %v3635_v41, %v9433_v49 }
 0x28c   : > { %v3746_v54 = vsub.f32 1.0, %v3730_v58  ;;  %v3762_v29 = vmul.f32 2.0, %v3714_v8  ;;  %v4034_v31 = vrot.slane %v3006_v37, 1  ;;  %v4297_v48 = vpack.c.bf16 %v9428_v26, %v9423_v1 }
 0x28d   : > { %v1541_v62 = vxor.u32 2147483648, %v1540_v40  ;;  %v3842_v28 = vrot.slane %v9384_v13, 5  ;;  %v3890_v55 = vrot.slane %v9399_v2, 2  ;;  %v3938_v9 = vrot.slane %v3714_v8, 7 }
 0x28e   : > { %v3794_v20 = vmul.f32 %v3762_v29, %v3714_v8  ;;  %v4130_v63 = vrot.slane %v3746_v54, 3  ;;  %v3778_v12 = vmul.f32 %v3762_v29, %v3746_v54  ;;  %v3683_v25 = vsub.f32 1.0, %v3667_v30  ;;  %v4287_v8 = vld [vmem:[%s10950_s3 + $0x38] sm:$0xff] }
 0x28f   : > { %vm11213_vm9 = vcmask 1041408   ;;  %vm11214_vm6 = vcmp.lt.s32.totalorder %v11162_v36, 0  ;;  %v3699_v37 = vmul.f32 2.0, %v9439_v14  ;;  %vm1676_vm14 = vcmp.gt.s32.totalorder %v9297_v17, 0  ;;  %4357 = vperm.xlu1 %7193, %v4287_v8  }
 0x290   : > { %v4248_v22 = vsel %vm11213_vm9, %v4034_v31, %v4082_v6  ;;  %v1542_v11 = vsel %vm11214_vm6, %v1541_v62, %v1540_v40  ;;  %v3810_v39 = vsub.f32 1.0, %v3794_v20  ;;  %v3986_v2 = vrot.slane %v3778_v12, 4  ;;  %v4284_v62 = vld [vmem:[%s10950_s3 + $0x20] sm:$0xff] }
 0x291   : > { %v4265_v51 = vsel %vm11215_vm2, %v4248_v22, %v4130_v63  ;;  %v1545_v13 = vsel %vm9304_vm12, %v11162_v36, %v1542_v11  ;;  %v4197_v41 = vsel %vm11216_vm5, %v3890_v55, %v3938_v9  ;;  %v9457_v24 = vand.u32 8388607, %v1665_v57  ;;  %vm11220_vm12 = vmmov %vm11211_vm13  ;;  %v4285_v63 = vld [vmem:[%s10950_s3 + $0x28] sm:$0xff] }
 0x292   : > { %7248 = vcosq.f32 %v1545_v13  ;;  %v1677_v59 = vsel %vm1676_vm14, %v9297_v17, 0  ;;  %v4314_v3 = vpack.c.bf16 %v3810_v39, %v4265_v51  ;;  %vm11217_vm3 = vcmask 1042432   ;;  %v4286_v17 = vld [vmem:[%s10950_s3 + $0x30] sm:$0xff] }
 0x293   : > { %7250 = vsinq.f32 %v1545_v13  ;;  %v4163_v16 = vsel %vm11217_vm3, %v11147_v35, %v3842_v28  ;;  %v4214_v32 = vsel %vm11218_vm8, %v4197_v41, %v3986_v2  ;;  %v9464_v0 = vmul.f32 %v3699_v37, %v3683_v25  ;;  %4352 = vperm.xlu0 %7192, %v4286_v17   ;;  %4342 = vperm.xlu1 %7193, %v4284_v62   ;;  %v4282_v41 = vld [vmem:[%s10950_s3 + $0x10] sm:$0xff] }
 0x294   : > { %v4231_v47 = vsel %vm11219_vm15, %v4214_v32, %v4034_v31  ;;  %v9467_v43 = vmul.f32 %v3699_v37, %v9439_v14  ;;  %v1679_v60 = vand.u32 31, %v1677_v59  ;;  %v4423_v35 = vand.u32 %v8241_v33, %v4314_v3 }
 0x295   : > { %v4180_v58 = vsel %vm11220_vm12, %v4163_v16, %v3890_v55  ;;  %v9477_v30 = vrot.slane %v3683_v25, 6  ;;  %v9479_v6 = vshrl.u32 %v1677_v59, 5  ;;  %v1673_v54 = vor.u32 8388608, %v9457_v24 }
 0x296   : > { %v4298_v40 = vpack.c.bf16 %v4231_v47, %v4180_v58  ;;  %v1680_v29 = vsub.s32 32, %v1679_v60  ;;  %v1682_v31 = vshll.u32 %v11048_v34, %v1679_v60  ;;  %4747 = vmatprep.subr.bf16.mxu0 %v4423_v35  ;;  %v1685_v28 = vshll.u32 %v11050_v10, %v1679_v60  ;;  %v4283_v47 = vld [vmem:[%s10950_s3 + $0x18] sm:$0xff] }
 0x297   : > { %v1688_v55 = vshll.u32 %v11051_v46, %v1679_v60  ;;  %v1691_v9 = vshll.u32 %v11052_v21, %v1679_v60  ;;  %v1694_v20 = vshll.u32 %v11053_v52, %v1679_v60  ;;  %4748 = vmatpush1.bf16.msra.mxu0 %v4420_v5  ;;  %v3747_v12 = vsub.f32 1.0, %v9467_v43  ;;  %4347 = vperm.xlu0 %7192, %v4285_v63  }
 0x298   : > { %v9495_v25 = vmul.f32 2.0, %v9464_v0  ;;  %v1683_v22 = vshrl.u32 %v11050_v10, %v1680_v29  ;;  %v1686_v11 = vshrl.u32 %v11051_v46, %v1680_v29  ;;  %vm3208_vm11 = vcmp.eq.s32.totalorder %v9412_v18, 2  ;;  %4749 = vmatprep.subr.bf16.mxu0 %v4298_v40  ;;  %4332 = vperm.xlu1 %7193, %v4282_v41  }
 0x299   : > { %v1689_v37 = vshrl.u32 %v11052_v21, %v1680_v29  ;;  %v1692_v39 = vshrl.u32 %v11053_v52, %v1680_v29  ;;  %v1695_v51 = vshrl.u32 %v11054_v53, %v1680_v29  ;;  %vm1697_vm10 = vcmp.lt.s32.totalorder %v9479_v6, 1 }
 0x29a   : > { %vm1553_vm4 = vcmp.eq.s32.totalorder %v9417_v56, 0  ;;  %vm3205_vm7 = vcmp.eq.s32.totalorder %v9412_v18, 0  ;;  %v1681_v5 = vshrl.u32 %v11048_v34, %v1680_v29  ;;  %v1684_v13 = vor.u32 %v1683_v22, %v1682_v31 }
 0x29b   : > { %v1687_v2 = vor.u32 %v1686_v11, %v1685_v28  ;;  %vm1700_vm13 = vcmp.lt.s32.totalorder %v9479_v6, 4  ;;  %v11221_v24 = vand.u32 2147483647, %v11198_v38  ;;  %vm1552_vm9 = vcmp.lt.s32.totalorder %v9417_v56, 2  ;;  %4750 = vmatpush1.bf16.msra.mxu0 %v4297_v48  ;;  %4337 = vperm.xlu0 %7192, %v4283_v47  }
 0x29c   : > { %vm3204_vm6 = vcmp.lt.s32.totalorder %v9412_v18, 2  ;;  %v1690_v3 = vor.u32 %v1689_v37, %v1688_v55  ;;  %v1693_v16 = vor.u32 %v1692_v39, %v1691_v9  ;;  %v1696_v32 = vor.u32 %v1695_v51, %v1694_v20  ;;  %v4281_v9 = vld [vmem:[%s10950_s3 + $0x8] sm:$0xff] }
 0x29d   : > { %vm9513_vm0 = vcmp.le.f32.partialorder %v11221_v24, 0.7853982  ;;  %vm1699_vm14 = vcmp.lt.s32.totalorder %v9479_v6, 3  ;;  %vm1549_vm2 = vweird.f32 %v11162_v36  ;;  %v3795_v60 = vmul.f32 %v9495_v25, %v9464_v0 }
 0x29e   : > { %vm1698_vm5 = vcmp.lt.s32.totalorder %v9479_v6, 2  ;;  %v1705_v8 = vsel %vm1697_vm10, %v1684_v13, %v1687_v2  ;;  %v1713_v17 = vshll.u32 %v1673_v54, 8  ;;  %v1702_v35 = vsel %vm1700_vm13, %v1690_v3, 2102212464 }
 0x29f   : > { %v1706_v58 = vsel %vm1700_vm13, %v1693_v16, 920167782  ;;  %v1709_v40 = vsel %vm1697_vm10, %v1687_v2, %v1690_v3  ;;  %v1710_v1 = vsel %vm1700_vm13, %v1696_v32, 1326507024  ;;  %v1701_v26 = vsel %vm1697_vm10, %v1681_v5, %v1684_v13  ;;  %v7249_v31 = vpop.eup %7248  ;;  %4327 = vperm.xlu0 %7192, %v4281_v9  }
 0x2a0   : > { %v1703_v48 = vsel %vm1699_vm14, %v1687_v2, %v1702_v35  ;;  %v1707_v54 = vsel %vm1699_vm14, %v1690_v3, %v1706_v58  ;;  %v1711_v29 = vsel %vm1699_vm14, %v1693_v16, %v1710_v1  ;;  %vm1556_vm3 = vcmp.eq.s32.totalorder %v9417_v56, 2  ;;  %v7251_v20 = vpop.eup %7250  ;;  %v7345_v2 = vld [vmem:[%s10950_s3] sm:$0xff] }
 0x2a1   : > { %v4131_v62 = vrot.slane %v3747_v12, 3  ;;  %v1708_v28 = vsel %vm1698_vm5, %v1705_v8, %v1707_v54  ;;  %v1712_v55 = vsel %vm1698_vm5, %v1709_v40, %v1711_v29  ;;  %vm11224_vm8 = vcmask 220160   ;;  %4322 = vperm.xlu1 %7193, %v7345_v2  }
 0x2a2   : > { %6981 = vmatmul.mubr.msk.bf16.vlgmr.msra.gmra.mxu0 %vm11224_vm8, %v9270_v42  ;;  %v1557_v63 = vxor.u32 2147483648, %v7249_v31  ;;  %v4035_v22 = vrot.slane %v9433_v49, 1  ;;  %v9561_v11 = vmul.u32.u64.low %v1713_v17, %v1712_v55  ;;  %v9562_v37 = vmul.u32.u64.high %v1713_v17, %v1712_v55, %v9561_v11  ;;  %vm11227_vm10 = vmmov %vm11224_vm8 }
 0x2a3   : > { %4777 = vmatprep.mubr.bf16.mxu0 %v11133_v61  ;;  %v1554_v39 = vxor.u32 2147483648, %v7251_v20  ;;  %v1704_v51 = vsel %vm1698_vm5, %v1701_v26, %v1703_v48  ;;  %v9567_v5 = vmul.u32.u64.low %v1713_v17, %v1708_v28  ;;  %v9568_v13 = vmul.u32.u64.high %v1713_v17, %v1708_v28, %v9567_v5 }
 0x2a4   : > { %v1558_v41 = vsel %vm1556_vm3, %v1557_v63, %v7251_v20  ;;  %v3210_v24 = vsel %vm3208_vm11, %v1557_v63, %v7251_v20  ;;  %v3811_v3 = vsub.f32 1.0, %v3795_v60  ;;  %vm11225_vm15 = vcmask 1041408  }
 0x2a5   : > { %v4249_v6 = vsel %vm11225_vm15, %v4035_v22, %v9477_v30  ;;  %v1555_v16 = vsel %vm1553_vm4, %v7249_v31, %v1554_v39  ;;  %v3207_v32 = vsel %vm3205_vm7, %v7249_v31, %v1554_v39  ;;  %vm11226_vm12 = vcmask 1044480   ;;  %vm11235_vm5 = vmmov %vm11225_vm15  ;;  %5251 = vrot.lane.b32.xlu1 %v9270_v42, %s7430_s22 }
 0x2a6   : > { %v4266_v47 = vsel %vm11226_vm12, %v4249_v6, %v4131_v62  ;;  %v3779_v8 = vmul.f32 %v9495_v25, %v3747_v12  ;;  %v1559_v60 = vsel %vm1552_vm9, %v1555_v16, %v1558_v41  ;;  %v3211_v35 = vsel %vm3204_vm6, %v3207_v32, %v3210_v24  ;;  %vm11236_vm3 = vmmov %vm11226_vm12 }
 0x2a7   : > { %v1720_v30 = vmul.u32 %v1713_v17, %v1704_v51  ;;  %vm1722_vm11 = vc.u32 %v9562_v37, %v9567_v5  ;;  %7252 = vcosq.f32 %v9316_v23  ;;  %v1883_v58 = vadd.s32 1, %v9318_v7 }
 0x2a8   : > { %v9598_v40 = vsel %vm1549_vm2, nan, %v1559_v60  ;;  %v1723_v43 = vadd.s32 1, %v9568_v13  ;;  %v9605_v56 = vsel %vm9513_vm0, %v11198_v38, %v9324_v45  ;;  %v9608_v12 = vpack.c.bf16 %v3811_v3, %v4266_v47  ;;  %v9621_v45 = vld [vmem:[%s10949_s2 + $0x8] sm:$0xff]  }
 0x2a9   : > { %v3636_v18 = vmul.f32 2.0, %v9598_v40  ;;  %v3843_v25 = vrot.slane %v9389_v44, 5  ;;  %v9613_v7 = vsel %vm1549_vm2, nan, %v3211_v35  ;;  %v3891_v1 = vrot.slane %v9439_v14, 2  ;;  %vm11234_vm2 = vmmov %vm11224_vm8  ;;  %5253 = vrot.lane.b32.xlu0 %v9621_v45, %s7430_s22 }
 0x2aa   : > { %v1724_v17 = vsel %vm1722_vm11, %v1723_v43, %v9568_v13  ;;  %v3939_v26 = vrot.slane %v9464_v0, 7  ;;  %6982 = vmatmul.mubr.msk.bf16.gmra.mxu0 %vm11227_vm10, %v9621_v45  ;;  %v3987_v29 = vrot.slane %v3779_v8, 4  ;;  %7254 = vsinq.f32 %v9316_v23  ;;  %v9659_v8 = vld [vmem:[%s10949_s2 + $0x10] sm:$0xff]  }
 0x2ab   : > { %v9626_v44 = vmul.f32 %v3636_v18, %v9613_v7  ;;  %v3668_v48 = vmul.f32 %v3636_v18, %v9598_v40  ;;  %v1725_v54 = vadd.s32 %v1724_v17, %v1720_v30  ;;  %4787 = vmatprep.mubr.bf16.mxu0 %v11133_v61  ;;  %vm1884_vm4 = vcmp.gt.s32.totalorder %v1883_v58, 0  ;;  %11233 = vst [vmem:[#allocation13_spill] sm:$0xff] %v9659_v8 }
 0x2ac   : > { %7256 = vsinq.f32 %v9605_v56  ;;  %v4426_v62 = vand.u32 %v8241_v33, %v9608_v12  ;;  %vm11228_vm7 = vcmask 1042432   ;;  %vm11229_vm13 = vcmask 1040384   ;;  %5255 = vrot.lane.b32.xlu1 %v9659_v8, %s7430_s22 }
 0x2ad   : > { %v3684_v14 = vsub.f32 1.0, %v3668_v48  ;;  %v3700_v0 = vmul.f32 2.0, %v9626_v44  ;;  %v1726_v31 = vadd.s32 536870912, %v1725_v54  ;;  %v4164_v28 = vsel %vm11228_vm7, %v11191_v4, %v3843_v25  ;;  %vm11237_vm8 = vmmov %vm11229_vm13 }
 0x2ae   : > { %v4198_v55 = vsel %vm11229_vm13, %v3891_v1, %v3939_v26  ;;  %v1885_v9 = vsel %vm1884_vm4, %v1883_v58, 0  ;;  %vm11230_vm9 = vcmask 1045504   ;;  %vm11231_vm6 = vcmask 1043456   ;;  %vm11239_vm12 = vmmov %vm11228_vm7 }
 0x2af   : > { %v3716_v20 = vmul.f32 %v3700_v0, %v3684_v14  ;;  %v3732_v63 = vmul.f32 %v3700_v0, %v9626_v44  ;;  %v9640_v23 = vsel %vm11230_vm9, %v4164_v28, %v3891_v1  ;;  %v4215_v11 = vsel %vm11231_vm6, %v4198_v55, %v3987_v29  ;;  %vm11238_vm15 = vmmov %vm11231_vm6 }
 0x2b0   : > { %v4084_v39 = vrot.slane %v3684_v14, 6  ;;  %v9643_v51 = vshrl.u32 %v1726_v31, 30  ;;  %v1873_v13 = vand.u32 2147483647, %v11193_v15  ;;  %v1887_v2 = vand.u32 31, %v1885_v9  ;;  %vm11241_vm10 = vmmov %vm11230_vm9 }
 0x2b1   : > { %v3748_v41 = vsub.f32 1.0, %v3732_v63  ;;  %v3764_v24 = vmul.f32 2.0, %v3716_v20  ;;  %v4036_v4 = vrot.slane %v9613_v7, 1  ;;  %v9648_v3 = vadd.s32 %v9567_v5, %v9562_v37  ;;  %vm11243_vm4 = vmmov %vm11234_vm2 }
 0x2b2   : > { %v3940_v6 = vrot.slane %v3716_v20, 7  ;;  %v1728_v16 = vshll.u32 %v9643_v51, 30  ;;  %vm11232_vm14 = vcmask 1046528   ;;  %v1888_v47 = vsub.s32 32, %v1887_v2  ;;  %6983 = vmatmul.mubr.msk.bf16.gmra.mxu0 %vm11234_vm2, %v9659_v8 }
 0x2b3   : > { %v9654_v32 = vsel %vm11232_vm14, %v4215_v11, %v4035_v22  ;;  %v3796_v60 = vmul.f32 %v3764_v24, %v3716_v20  ;;  %v4132_v37 = vrot.slane %v3748_v41, 3  ;;  %v3780_v5 = vmul.f32 %v3764_v24, %v3748_v41  ;;  %4797 = vmatprep.mubr.bf16.mxu0 %v11133_v61  ;;  %vm11240_vm11 = vmmov %vm11232_vm14 }
 0x2b4   : > { %v3844_v35 = vrot.slane %v9598_v40, 5  ;;  %v4250_v49 = vsel %vm11235_vm5, %v4036_v4, %v4084_v39  ;;  %v3892_v22 = vrot.slane %v9626_v44, 2  ;;  %v9667_v30 = vsub.s32 %v1725_v54, %v1728_v16  ;;  %v9671_v43 = vpop.eup %7252  ;;  %v9702_v16 = vld [vmem:[%s10949_s2 + $0x18] sm:$0xff]  }
 0x2b5   : > { %v1880_v58 = vand.u32 8388607, %v1873_v13  ;;  %v3812_v18 = vsub.f32 1.0, %v3796_v60  ;;  %v4267_v25 = vsel %vm11236_vm3, %v4250_v49, %v4132_v37  ;;  %v3988_v7 = vrot.slane %v3780_v5, 4  ;;  %5257 = vrot.lane.b32.xlu0 %v9702_v16, %s7430_s22  ;;  %vm11245_vm3 = vmmov %vm11243_vm4  ;;  %s10903_s22 = scalar_lea.hbm %s10951_s4, %s7058_s11 }
 0x2b6   : > { %v4299_v40 = vpack.c.bf16 %v9654_v32, %v9640_v23  ;;  %v4199_v17 = vsel %vm11237_vm8, %v3892_v22, %v3940_v6  ;;  %v1731_v1 = vsub.s32 0, %v9667_v30  ;;  %v1890_v26 = vshll.u32 %v11048_v34, %v1887_v2 }
 0x2b7   : > { %v1891_v44 = vshrl.u32 %v11050_v10, %v1888_v47  ;;  %v4316_v48 = vpack.c.bf16 %v3812_v18, %v4267_v25  ;;  %v4216_v54 = vsel %vm11238_vm15, %v4199_v17, %v3988_v7  ;;  %v1893_v29 = vshll.u32 %v11050_v10, %v1887_v2  ;;  %v9691_v20 = vpop.eup %7254 }
 0x2b8   : > { %v1894_v14 = vshrl.u32 %v11051_v46, %v1888_v47  ;;  %v4165_v0 = vsel %vm11239_vm12, %v11162_v36, %v3844_v35  ;;  %v4233_v31 = vsel %vm11240_vm11, %v4216_v54, %v4036_v4  ;;  %v6886_v28 = vmin.u32 %v1731_v1, %v9667_v30  ;;  %v11242_v36 = vld [vmem:[#allocation19_spill] sm:$0xff] }
 0x2b9   : > { %v1881_v55 = vor.u32 8388608, %v1880_v58  ;;  %v4429_v10 = vand.u32 %v8241_v33, %v4316_v48  ;;  %v4182_v63 = vsel %vm11241_vm10, %v4165_v0, %v3892_v22  ;;  %v1886_v23 = vshrl.u32 %v1885_v9, 5  ;;  %v9696_v39 = vpop.eup %7256 }
 0x2ba   : > { %v1647_v11 = vsub.s32 4, %v11242_v36  ;;  %v4300_v41 = vpack.c.bf16 %v4233_v31, %v4182_v63  ;;  %v1733_v24 = vclz %v6886_v28  ;;  %v1889_v4 = vshrl.u32 %v11048_v34, %v1888_v47  ;;  %6984 = vmatmul.mubr.msk.bf16.gmra.mxu0 %vm11243_vm4, %v9702_v16 }
 0x2bb   : > { %v1892_v6 = vor.u32 %v1891_v44, %v1890_v26  ;;  %4820 = vmatprep.subr.bf16.mxu1 %v4429_v10  ;;  %v1895_v32 = vor.u32 %v1894_v14, %v1893_v29  ;;  %v1896_v9 = vshll.u32 %v11051_v46, %v1887_v2  ;;  %v1897_v60 = vshrl.u32 %v11052_v21, %v1888_v47 }
 0x2bc   : > { %v1899_v37 = vshll.u32 %v11052_v21, %v1887_v2  ;;  %4821 = vmatpush1.bf16.msra.mxu1 %v4426_v62  ;;  %v6887_v34 = vadd.s32 4294967294, %v1733_v24  ;;  %v1900_v5 = vshrl.u32 %v11053_v52, %v1888_v47  ;;  %v1902_v35 = vshll.u32 %v11053_v52, %v1887_v2  ;;  %4913 = vmatprep.mubr.bf16.mxu0 %v11133_v61 }
 0x2bd   : > { %v1903_v49 = vshrl.u32 %v11054_v53, %v1888_v47  ;;  %4822 = vmatprep.subr.bf16.mxu1 %v4300_v41  ;;  %v1898_v22 = vor.u32 %v1897_v60, %v1896_v9  ;;  %vm1905_vm7 = vcmp.lt.s32.totalorder %v1886_v23, 1  ;;  %vm1906_vm13 = vcmp.lt.s32.totalorder %v1886_v23, 2 }
 0x2be   : > { %v9716_v46 = vshll.u32 %v1881_v55, 8  ;;  %vm6888_vm9 = vcmp.lt.s32.totalorder %v6887_v34, 0  ;;  %v1901_v21 = vor.u32 %v1900_v5, %v1899_v37  ;;  %vm1908_vm6 = vcmp.lt.s32.totalorder %v1886_v23, 4 }
 0x2bf   : > { %v1904_v12 = vor.u32 %v1903_v49, %v1902_v35  ;;  %v1736_v52 = vsel %vm6888_vm9, 0, %v6887_v34  ;;  %vm1907_vm14 = vcmp.lt.s32.totalorder %v1886_v23, 3  ;;  %v1909_v53 = vsel %vm1905_vm7, %v1889_v4, %v1892_v6  ;;  %vm11248_vm9 = vmmov %vm11245_vm3 }
 0x2c0   : > { %v1910_v62 = vsel %vm1908_vm6, %v1898_v22, 2102212464  ;;  %v1737_v2 = vsub.s32 32, %v1736_v52  ;;  %v1738_v47 = vshll.u32 %v9667_v30, %v1736_v52  ;;  %v1741_v58 = vsub.s32 4294967266, %v1736_v52  ;;  %4823 = vmatpush1.bf16.msra.mxu1 %v4299_v40 }
 0x2c1   : > { %v1913_v18 = vsel %vm1905_vm7, %v1892_v6, %v1895_v32  ;;  %v1911_v25 = vsel %vm1907_vm14, %v1895_v32, %v1910_v62  ;;  %v1914_v7 = vsel %vm1908_vm6, %v1901_v21, 920167782  ;;  %v1917_v17 = vsel %vm1905_vm7, %v1895_v32, %v1898_v22 }
 0x2c2   : > { %v1918_v1 = vsel %vm1908_vm6, %v1904_v12, 1326507024  ;;  %v1739_v26 = vshrl.u32 %v9648_v3, %v1737_v2  ;;  %v1742_v44 = vadd.s32 127, %v1741_v58  ;;  %v1915_v48 = vsel %vm1907_vm14, %v1898_v22, %v1914_v7  ;;  %vm11249_vm6 = vmmov %vm11245_vm3 }
 0x2c3   : > { %v1919_v54 = vsel %vm1907_vm14, %v1901_v21, %v1918_v1  ;;  %vm1667_vm2 = vcmp.lt.s32.totalorder %v11204_v50, 0  ;;  %v1916_v29 = vsel %vm1906_vm13, %v1913_v18, %v1915_v48  ;;  %vm11244_vm5 = vcmp.lt.s32.totalorder %v11181_v27, 0  ;;  %6985 = vmatmul.mubr.msk.bf16.vlgmr.msra.gmra.mxu1 %vm11245_vm3, %v9270_v42  ;;  %v11250_v1 = vld [vmem:[#allocation21_spill] sm:$0xff] }
 0x2c4   : > { %v1920_v30 = vsel %vm1906_vm13, %v1917_v17, %v1919_v54  ;;  %v1648_v40 = vsel %vm11244_vm5, %v1647_v11, %v11242_v36  ;;  %vm9737_vm8 = vcmp.le.f32.partialorder %v1665_v57, 0.7853982  ;;  %v1740_v14 = vor.u32 %v1739_v26, %v1738_v47  ;;  %4850 = vmatprep.mubr.bf16.mxu1 %v11133_v61 }
 0x2c5   : > { %v1743_v0 = vshll.u32 %v1742_v44, 23  ;;  %v9742_v31 = vmul.u32.u64.low %v9716_v46, %v1920_v30  ;;  %v9743_v28 = vmul.u32.u64.high %v9716_v46, %v1920_v30, %v9742_v31  ;;  %v1912_v55 = vsel %vm1906_vm13, %v1909_v53, %v1911_v25 }
 0x2c6   : > { %v9748_v10 = vmul.u32.u64.low %v9716_v46, %v1916_v29  ;;  %v9749_v63 = vmul.u32.u64.high %v9716_v46, %v1916_v29, %v9748_v10  ;;  %v1650_v42 = vsel %vm9242_vm1, 0, %v1648_v40  ;;  %v1747_v36 = vcvt.s32.f32 %v1740_v14 }
 0x2c7   : > { %v1744_v57 = vor.u32 4788187, %v1743_v0  ;;  %vm1653_vm15 = vweird.f32 %v11181_v27  ;;  %v1654_v11 = vadd.s32 3, %v1650_v42  ;;  %v1751_v41 = vsub.s32 4, %v9643_v51 }
 0x2c8   : > { %v1658_v24 = vxor.u32 2147483648, %v9691_v20  ;;  %v1661_v23 = vxor.u32 2147483648, %v9671_v43  ;;  %v3306_v4 = vand.u32 3, %v1650_v42  ;;  %v1928_v32 = vmul.u32 %v9716_v46, %v1912_v55 }
 0x2c9   : > { %v1745_v6 = vand.u32 2147483647, %v1744_v57  ;;  %vm1930_vm12 = vc.u32 %v9743_v28, %v9748_v10  ;;  %v1655_v19 = vand.u32 3, %v1654_v11  ;;  %v1931_v9 = vadd.s32 1, %v9749_v63 }
 0x2ca   : > { %vm3307_vm1 = vcmp.lt.s32.totalorder %v3306_v4, 2  ;;  %vm3308_vm11 = vcmp.eq.s32.totalorder %v3306_v4, 0  ;;  %vm3311_vm10 = vcmp.eq.s32.totalorder %v3306_v4, 2  ;;  %7258 = vcosq.f32 %v9605_v56 }
 0x2cb   : > { %v1748_v60 = vmul.f32 %v1747_v36, %v1745_v6  ;;  %vm1656_vm4 = vcmp.lt.s32.totalorder %v1655_v19, 2  ;;  %vm1657_vm7 = vcmp.eq.s32.totalorder %v1655_v19, 0  ;;  %vm1660_vm13 = vcmp.eq.s32.totalorder %v1655_v19, 2  ;;  %6986 = vmatmul.mubr.msk.bf16.gmra.mxu1 %vm11248_vm9, %v9621_v45 }
 0x2cc   : > { %v1932_v37 = vsel %vm1930_vm12, %v1931_v9, %v9749_v63  ;;  %v1659_v34 = vsel %vm1657_vm7, %v9671_v43, %v1658_v24  ;;  %v1662_v5 = vsel %vm1660_vm13, %v1661_v23, %v9691_v20  ;;  %v3310_v35 = vsel %vm3308_vm11, %v9671_v43, %v1658_v24  ;;  %4860 = vmatprep.mubr.bf16.mxu1 %v11133_v61  ;;  %v9821_v24 = vpop.f32.mrf.mxu0 }
 0x2cd   : > { %v1749_v49 = vxor.u32 2147483648, %v1748_v60  ;;  %v1933_v22 = vadd.s32 %v1932_v37, %v1928_v32  ;;  %v1663_v46 = vsel %vm1656_vm4, %v1659_v34, %v1662_v5  ;;  %v3313_v21 = vsel %vm3311_vm10, %v1661_v23, %v9691_v20 }
 0x2ce   : > { %v1752_v12 = vsel %vm1667_vm2, %v1751_v41, %v9643_v51  ;;  %v9778_v53 = vsel %vm1653_vm15, nan, %v1663_v46  ;;  %v3314_v62 = vsel %vm3307_vm1, %v3310_v35, %v3313_v21  ;;  %v1855_v26 = vsub.s32 4, %v11250_v1  ;;  %vm11252_vm1 = vmmov %vm11249_vm6  ;;  %v9833_v46 = vpop.f32.mrf.mxu0 }
 0x2cf   : > { %v1750_v52 = vsel %vm1667_vm2, %v1749_v49, %v1748_v60  ;;  %v1934_v43 = vadd.s32 536870912, %v1933_v22  ;;  %v1754_v56 = vsel %vm9737_vm8, 0, %v1752_v12  ;;  %v3637_v51 = vmul.f32 2.0, %v9778_v53 }
 0x2d0   : > { %v1753_v20 = vsel %vm9737_vm8, %v11204_v50, %v1750_v52  ;;  %v9792_v58 = vsel %vm1653_vm15, nan, %v3314_v62  ;;  %v1758_v18 = vadd.s32 3, %v1754_v56  ;;  %v3409_v44 = vand.u32 3, %v1754_v56 }
 0x2d1   : > { %7260 = vcosq.f32 %v1753_v20  ;;  %v9786_v2 = vshrl.u32 %v1934_v43, 30  ;;  %v9798_v7 = vmul.f32 %v3637_v51, %v9792_v58  ;;  %v3669_v17 = vmul.f32 %v3637_v51, %v9778_v53 }
 0x2d2   : > { %7262 = vsinq.f32 %v1753_v20  ;;  %v1759_v54 = vand.u32 3, %v1758_v18  ;;  %vm11251_vm14 = vcmp.lt.s32.totalorder %v11198_v38, 0  ;;  %vm1757_vm2 = vweird.f32 %v11204_v50  ;;  %v9837_v20 = vpop.f32.mrf.mxu1 }
 0x2d3   : > { %v1936_v47 = vshll.u32 %v9786_v2, 30  ;;  %6987 = vmatmul.mubr.msk.bf16.gmra.mxu1 %vm11249_vm6, %v9659_v8  ;;  %v3685_v30 = vsub.f32 1.0, %v3669_v17  ;;  %v3701_v40 = vmul.f32 2.0, %v9798_v7  ;;  %v1856_v3 = vsel %vm11251_vm14, %v1855_v26, %v11250_v1 }
 0x2d4   : > { %4870 = vmatprep.mubr.bf16.mxu1 %v11133_v61  ;;  %vm3410_vm5 = vcmp.lt.s32.totalorder %v3409_v44, 2  ;;  %vm1760_vm3 = vcmp.lt.s32.totalorder %v1759_v54, 2  ;;  %vm1761_vm8 = vcmp.eq.s32.totalorder %v1759_v54, 0  ;;  %vm3411_vm15 = vcmp.eq.s32.totalorder %v3409_v44, 0 }
 0x2d5   : > { %v1937_v25 = vsub.s32 %v1933_v22, %v1936_v47  ;;  %vm3414_vm12 = vcmp.eq.s32.totalorder %v3409_v44, 2  ;;  %vm1764_vm11 = vcmp.eq.s32.totalorder %v1759_v54, 2  ;;  %v1858_v55 = vsel %vm9513_vm0, 0, %v1856_v3 }
 0x2d6   : > { %v1866_v63 = vxor.u32 2147483648, %v9696_v39  ;;  %v1929_v57 = vadd.s32 %v9748_v10, %v9743_v28  ;;  %v9817_v36 = vmul.f32 %v3701_v40, %v3685_v30  ;;  %v4037_v11 = vrot.slane %v9792_v58, 1 }
 0x2d7   : > { %v1939_v48 = vsub.s32 0, %v1937_v25  ;;  %v9806_v14 = vpop.eup %7258  ;;  %vm1875_vm0 = vcmp.lt.s32.totalorder %v11193_v15, 0  ;;  %v3733_v59 = vmul.f32 %v3701_v40, %v9798_v7  ;;  %v3845_v6 = vrot.slane %v9778_v53, 5 }
 0x2d8   : > { %v1869_v41 = vxor.u32 2147483648, %v9806_v14  ;;  %v1862_v28 = vadd.s32 3, %v1858_v55  ;;  %v9826_v10 = vand.u32 3, %v1858_v55  ;;  %v3765_v22 = vmul.f32 2.0, %v9817_v36 }
 0x2d9   : > { %v6894_v29 = vmin.u32 %v1939_v48, %v1937_v25  ;;  %v3749_v43 = vsub.f32 1.0, %v3733_v59  ;;  %v1959_v47 = vsub.s32 4, %v9786_v2  ;;  %v4085_v17 = vrot.slane %v3685_v30, 6 }
 0x2da   : > { %v1863_v1 = vand.u32 3, %v1862_v28  ;;  %vm9851_vm4 = vcmp.le.f32.partialorder %v1873_v13, 0.7853982  ;;  %v3797_v48 = vmul.f32 %v3765_v22, %v9817_v36  ;;  %v3893_v54 = vrot.slane %v9798_v7, 2  ;;  %v9864_v13 = vpop.f32.mrf.mxu1 }
 0x2db   : > { %v1941_v0 = vclz %v6894_v29  ;;  %6988 = vmatmul.mubr.msk.bf16.gmra.mxu1 %vm11252_vm1, %v9702_v16  ;;  %vm3514_vm7 = vcmp.eq.s32.totalorder %v9826_v10, 0  ;;  %v9858_v29 = vpop.f32.mrf.mxu0  ;;  %v4133_v3 = vrot.slane %v3749_v43, 3  ;;  %vm11255_vm13 = vcmask 1041408  }
 0x2dc   : > { %4986 = vmatprep.mubr.bf16.mxu1 %v11133_v61  ;;  %v4251_v59 = vsel %vm11255_vm13, %v4037_v11, %v4085_v17  ;;  %vm1861_vm9 = vweird.f32 %v11198_v38  ;;  %vm1864_vm6 = vcmp.lt.s32.totalorder %v1863_v1, 2  ;;  %vm1865_vm14 = vcmp.eq.s32.totalorder %v1863_v1, 0 }
 0x2dd   : > { %v6895_v31 = vadd.s32 4294967294, %v1941_v0  ;;  %v3781_v0 = vmul.f32 %v3765_v22, %v3749_v43  ;;  %v9876_v28 = vpop.f32.mrf.mxu0 }
 0x2de   : > { %v7261_v42 = vpop.eup %7260 }
 0x2df   : > { %v7263_v23 = vpop.eup %7262  ;;  %v1765_v4 = vxor.u32 2147483648, %v7261_v42  ;;  %vm6896_vm10 = vcmp.lt.s32.totalorder %v6895_v31, 0 }
 0x2e0   : > { %v1762_v32 = vxor.u32 2147483648, %v7263_v23  ;;  %v1944_v19 = vsel %vm6896_vm10, 0, %v6895_v31  ;;  %vm11262_vm10 = vcmask 1043456  }
 0x2e1   : > { %v1766_v9 = vsel %vm1764_vm11, %v1765_v4, %v7263_v23  ;;  %v3416_v60 = vsel %vm3414_vm12, %v1765_v4, %v7263_v23  ;;  %v1945_v37 = vsub.s32 32, %v1944_v19  ;;  %v1946_v34 = vshll.u32 %v1937_v25, %v1944_v19  ;;  %vm11258_vm12 = vmmov %vm11255_vm13 }
 0x2e2   : > { %v1763_v5 = vsel %vm1761_vm8, %v7261_v42, %v1762_v32  ;;  %v3413_v35 = vsel %vm3411_vm15, %v7261_v42, %v1762_v32  ;;  %v1949_v49 = vsub.s32 4294967266, %v1944_v19  ;;  %v1960_v42 = vsel %vm1875_vm0, %v1959_v47, %v9786_v2  ;;  %v9898_v47 = vpop.f32.mrf.mxu0  ;;  %vm11264_vm13 = vmmov %vm11262_vm10 }
 0x2e3   : > { %v1767_v21 = vsel %vm1760_vm3, %v1763_v5, %v1766_v9  ;;  %v3417_v12 = vsel %vm3410_vm5, %v3413_v35, %v3416_v60  ;;  %v1947_v52 = vshrl.u32 %v1929_v57, %v1945_v37  ;;  %v3941_v57 = vrot.slane %v9817_v36, 7  ;;  %v9880_v37 = vpop.f32.mrf.mxu1 }
 0x2e4   : > { %v9841_v62 = vsel %vm1757_vm2, nan, %v1767_v21  ;;  %v9845_v56 = vsel %vm1757_vm2, nan, %v3417_v12  ;;  %v1950_v51 = vadd.s32 127, %v1949_v49  ;;  %v3813_v19 = vsub.f32 1.0, %v3797_v48 }
 0x2e5   : > { %v3638_v18 = vmul.f32 2.0, %v9841_v62  ;;  %v1948_v25 = vor.u32 %v1947_v52, %v1946_v34  ;;  %vm1868_vm2 = vcmp.eq.s32.totalorder %v1863_v1, 2  ;;  %vm3513_vm5 = vcmp.lt.s32.totalorder %v9826_v10, 2  ;;  %v9901_v48 = vpop.f32.mrf.mxu1  ;;  %v9918_v1 = vpop.f32.mrf.mxu0 }
 0x2e6   : > { %v1951_v44 = vshll.u32 %v1950_v51, 23  ;;  %vm11256_vm3 = vcmask 1044480   ;;  %v3989_v60 = vrot.slane %v3781_v0, 4  ;;  %v4038_v34 = vrot.slane %v9845_v56, 1 }
 0x2e7   : > { %v9861_v40 = vmul.f32 %v3638_v18, %v9845_v56  ;;  %v3670_v30 = vmul.f32 %v3638_v18, %v9841_v62  ;;  %v1955_v55 = vcvt.s32.f32 %v1948_v25  ;;  %v4268_v9 = vsel %vm11256_vm3, %v4251_v59, %v4133_v3  ;;  %vm11259_vm1 = vmmov %vm11256_vm3 }
 0x2e8   : > { %v1952_v31 = vor.u32 4788187, %v1951_v44  ;;  %vm11257_vm8 = vcmask 1040384   ;;  %v1867_v12 = vsel %vm1865_vm14, %v9806_v14, %v1866_v63  ;;  %v1870_v52 = vsel %vm1868_vm2, %v1869_v41, %v9696_v39 }
 0x2e9   : > { %v3686_v23 = vsub.f32 1.0, %v3670_v30  ;;  %v3702_v4 = vmul.f32 2.0, %v9861_v40  ;;  %v4200_v49 = vsel %vm11257_vm8, %v3893_v54, %v3941_v57  ;;  %v3516_v56 = vsel %vm3514_vm7, %v9806_v14, %v1866_v63  ;;  %vm11260_vm11 = vmmov %vm11257_vm8 }
 0x2ea   : > { %v1953_v32 = vand.u32 2147483647, %v1952_v31  ;;  %vm3517_vm15 = vcmp.eq.s32.totalorder %v9826_v10, 2  ;;  %v3846_v44 = vrot.slane %v9841_v62, 5  ;;  %v3894_v0 = vrot.slane %v9861_v40, 2 }
 0x2eb   : > { %v3718_v2 = vmul.f32 %v3702_v4, %v3686_v23  ;;  %v3734_v36 = vmul.f32 %v3702_v4, %v9861_v40  ;;  %v4086_v5 = vrot.slane %v3686_v23, 6  ;;  %v1871_v63 = vsel %vm1864_vm6, %v1867_v12, %v1870_v52 }
 0x2ec   : > { %v1956_v35 = vmul.f32 %v1955_v55, %v1953_v32  ;;  %v4317_v62 = vpack.c.bf16 %v3813_v19, %v4268_v9  ;;  %v3519_v40 = vsel %vm3517_vm15, %v1869_v41, %v9696_v39  ;;  %v1962_v19 = vsel %vm9851_vm4, 0, %v1960_v42  ;;  %v9942_v42 = vpop.f32.mrf.mxu0 }
 0x2ed   : > { %v3750_v22 = vsub.f32 1.0, %v3734_v36  ;;  %v3766_v21 = vmul.f32 2.0, %v3718_v2  ;;  %v3942_v51 = vrot.slane %v3718_v2, 7  ;;  %v4252_v30 = vsel %vm11258_vm12, %v4038_v34, %v4086_v5  ;;  %v9923_v36 = vpop.f32.mrf.mxu1 }
 0x2ee   : > { %v1957_v43 = vxor.u32 2147483648, %v1956_v35  ;;  %vm11263_vm7 = vcmask 1046528   ;;  %v4217_v14 = vsel %vm11264_vm13, %v4200_v49, %v3989_v60  ;;  %v9931_v39 = vsel %vm1861_vm9, nan, %v1871_v63 }
 0x2ef   : > { %v3798_v18 = vmul.f32 %v3766_v21, %v3718_v2  ;;  %v4134_v25 = vrot.slane %v3750_v22, 3  ;;  %v3782_v17 = vmul.f32 %v3766_v21, %v3750_v22  ;;  %v4201_v4 = vsel %vm11260_vm11, %v3894_v0, %v3942_v51  ;;  %vm11267_vm14 = vmmov %vm11263_vm7  ;;  %v9948_v22 = vpop.f32.mrf.mxu1  ;;  %v9957_v21 = vpop.f32.mrf.mxu0 }
 0x2f0   : > { %v1958_v3 = vsel %vm1875_vm0, %v1957_v43, %v1956_v35  ;;  %vm11261_vm0 = vcmask 1042432   ;;  %v4432_v5 = vand.u32 %v8241_v33, %v4317_v62  ;;  %vm11265_vm6 = vcmask 1045504  }
 0x2f1   : > { %v3814_v31 = vsub.f32 1.0, %v3798_v18  ;;  %v4269_v55 = vsel %vm11259_vm1, %v4252_v30, %v4134_v25  ;;  %v1961_v57 = vsel %vm9851_vm4, %v11193_v15, %v1958_v3  ;;  %v3990_v23 = vrot.slane %v3782_v17, 4  ;;  %vm11266_vm4 = vmmov %vm11261_vm0  ;;  %v9963_v43 = vpop.f32.mrf.mxu1  ;;  %v9965_v51 = vpop.f32.mrf.mxu0  ;;  %v9971_v18 = vld [vmem:[%s10949_s2] sm:$0xff]  }
 0x2f2   : > { %7264 = vcosq.f32 %v1961_v57  ;;  %v4167_v32 = vsel %vm11261_vm0, %v11204_v50, %v3846_v44  ;;  %v3520_v50 = vsel %vm3513_vm5, %v3516_v56, %v3519_v40  ;;  %v4166_v26 = vsel %vm11266_vm4, %v11181_v27, %v3845_v6  ;;  %vm11268_vm2 = vmmov %vm11265_vm6 }
 0x2f3   : > { %v4318_v59 = vpack.c.bf16 %v3814_v31, %v4269_v55  ;;  %7266 = vsinq.f32 %v1961_v57  ;;  %v4218_v2 = vsel %vm11262_vm10, %v4201_v4, %v3990_v23  ;;  %v4184_v35 = vsel %vm11265_vm6, %v4167_v32, %v3894_v0  ;;  %v9975_v25 = vpop.f32.mrf.mxu1  ;;  %v9978_v30 = vpop.f32.mrf.mxu0 }
 0x2f4   : > { %v4235_v9 = vsel %vm11263_vm7, %v4218_v2, %v4038_v34  ;;  %v1966_v60 = vadd.s32 3, %v1962_v19  ;;  %v4234_v49 = vsel %vm11267_vm14, %v4217_v14, %v4037_v11  ;;  %v3639_v10 = vmul.f32 2.0, %v9931_v39 }
 0x2f5   : > { %v4435_v41 = vand.u32 %v8241_v33, %v4318_v59  ;;  %v4302_v34 = vpack.c.bf16 %v4235_v9, %v4184_v35  ;;  %v9952_v53 = vsel %vm1861_vm9, nan, %v3520_v50  ;;  %v4183_v27 = vsel %vm11268_vm2, %v4166_v26, %v3893_v54  ;;  %v9983_v31 = vpop.f32.mrf.mxu0  ;;  %v9988_v4 = vpop.f32.mrf.mxu1 }
 0x2f6   : > { %v4301_v6 = vpack.c.bf16 %v4234_v49, %v4183_v27  ;;  %v1967_v58 = vand.u32 3, %v1966_v60  ;;  %v3615_v12 = vand.u32 3, %v1962_v19  ;;  %v9960_v11 = vmul.f32 %v3639_v10, %v9952_v53 }
 0x2f7   : > { %4893 = vmatprep.subr.bf16.mxu0 %v4435_v41  ;;  %v3671_v52 = vmul.f32 %v3639_v10, %v9931_v39  ;;  %vm11269_vm3 = vcmask 220160   ;;  %vm1965_vm11 = vweird.f32 %v11193_v15  ;;  %v9990_v32 = vpop.f32.mrf.mxu0  ;;  %v4039_v10 = vrot.slane %v9952_v53, 1 }
 0x2f8   : > { %4894 = vmatpush1.bf16.msra.mxu0 %v4432_v5  ;;  %vm1972_vm9 = vcmp.eq.s32.totalorder %v1967_v58, 2  ;;  %vm3620_vm5 = vcmp.eq.s32.totalorder %v3615_v12, 2  ;;  %v3703_v54 = vmul.f32 2.0, %v9960_v11  ;;  %vm1969_vm8 = vcmp.eq.s32.totalorder %v1967_v58, 0  ;;  %vm11270_vm0 = vmmov %vm11269_vm3  ;;  %v10000_v5 = vpop.f32.mrf.mxu1 }
 0x2f9   : > { %4895 = vmatprep.subr.bf16.mxu0 %v4302_v34  ;;  %v3687_v7 = vsub.f32 1.0, %v3671_v52  ;;  %vm3617_vm15 = vcmp.eq.s32.totalorder %v3615_v12, 0  ;;  %vm1968_vm12 = vcmp.lt.s32.totalorder %v1967_v58, 2  ;;  %vm3616_vm1 = vcmp.lt.s32.totalorder %v3615_v12, 2  ;;  %v9995_v14 = vpop.f32.mrf.mxu0  ;;  %vm11274_vm13 = vmmov %vm11270_vm0 }
 0x2fa   : > { %v3735_v62 = vmul.f32 %v3703_v54, %v9960_v11  ;;  %v10010_v52 = vpop.f32.mrf.mxu1  ;;  %vm11271_vm10 = vcmask 1041408   ;;  %vm11273_vm7 = vcmask 1044480   ;;  %vm11279_vm14 = vcmask 1040384  }
 0x2fb   : > { %v9985_v23 = vmul.f32 %v3703_v54, %v3687_v7  ;;  %v10004_v60 = vpop.f32.mrf.mxu0  ;;  %v4087_v27 = vrot.slane %v3687_v7, 6  ;;  %vm11276_vm6 = vmmov %vm11271_vm10  ;;  %vm11280_vm2 = vcmask 1043456  }
 0x2fc   : > { %4896 = vmatpush1.bf16.msra.mxu0 %v4301_v6  ;;  %v3751_v41 = vsub.f32 1.0, %v3735_v62  ;;  %vm11277_vm4 = vmmov %vm11273_vm7 }
 0x2fd   : > { %v3767_v50 = vmul.f32 2.0, %v9985_v23  ;;  %v10007_v6 = vpop.f32.mrf.mxu0 }
 0x2fe   : > { %v4135_v12 = vrot.slane %v3751_v41, 3 }
 0x2ff   : > { %v7265_v56 = vpop.eup %7264  ;;  %6989 = vmatmul.mubr.msk.bf16.vlgmr.msra.gmra.mxu0 %vm11269_vm3, %v9971_v18  ;;  %v3799_v58 = vmul.f32 %v3767_v50, %v9985_v23  ;;  %vm11283_vm3 = vmmov %vm11280_vm2 }
 0x300   : > { %v7267_v17 = vpop.eup %7266  ;;  %v1973_v44 = vxor.u32 2147483648, %v7265_v56  ;;  %4923 = vmatprep.mubr.bf16.mxu0 %v11133_v61 }
 0x301   : > { %v1970_v3 = vxor.u32 2147483648, %v7267_v17  ;;  %v3815_v7 = vsub.f32 1.0, %v3799_v58 }
 0x302   : > { %v1974_v0 = vsel %vm1972_vm9, %v1973_v44, %v7267_v17  ;;  %v3622_v63 = vsel %vm3620_vm5, %v1973_v44, %v7267_v17  ;;  %v10012_v17 = vpop.f32.mrf.mxu0  ;;  %vm11281_vm9 = vmmov %vm11279_vm14  ;;  %vm11282_vm5 = vcmask 1046528  }
 0x303   : > { %v1971_v55 = vsel %vm1969_vm8, %v7265_v56, %v1970_v3  ;;  %v3619_v57 = vsel %vm3617_vm15, %v7265_v56, %v1970_v3  ;;  %vm11284_vm8 = vcmask 1042432   ;;  %vm11285_vm15 = vcmask 1045504  }
 0x304   : > { %v1975_v40 = vsel %vm1968_vm12, %v1971_v55, %v1974_v0  ;;  %v3623_v59 = vsel %vm3616_vm1, %v3619_v57, %v3622_v63  ;;  %v3783_v0 = vmul.f32 %v3767_v50, %v3751_v41  ;;  %v4253_v57 = vsel %vm11271_vm10, %v4039_v10, %v4087_v27  ;;  %v10015_v53 = vpop.f32.mrf.mxu0  ;;  %vm11286_vm12 = vmmov %vm11270_vm0 }
 0x305   : > { %v9992_v2 = vsel %vm1965_vm11, nan, %v1975_v40  ;;  %v3624_v19 = vsel %vm1965_vm11, nan, %v3623_v59  ;;  %11272 = vst [vmem:[#allocation8_spill] sm:$0xff] %v10015_v53  ;;  %v4270_v62 = vsel %vm11273_vm7, %v4253_v57, %v4135_v12  ;;  %v10020_v59 = vpop.f32.mrf.mxu1  ;;  %v3943_v41 = vrot.slane %v9985_v23, 7  ;;  %vm11287_vm1 = vmmov %vm11282_vm5 }
 0x306   : > { %v3640_v9 = vmul.f32 2.0, %v9992_v2  ;;  %v4040_v44 = vrot.slane %v3624_v19, 1  ;;  %v10024_v50 = vpop.f32.mrf.mxu0  ;;  %v3895_v27 = vrot.slane %v9960_v11, 2  ;;  %v3991_v58 = vrot.slane %v3783_v0, 4  ;;  %vm11288_vm11 = vmmov %vm11284_vm8 }
 0x307   : > { %6990 = vmatmul.mubr.msk.bf16.gmra.mxu0 %vm11270_vm0, %v9621_v45  ;;  %11275 = vst [vmem:[#allocation6_spill] sm:$0xff] %v10024_v50  ;;  %v3848_v57 = vrot.slane %v9992_v2, 5  ;;  %vm11289_vm0 = vmmov %vm11285_vm15 }
 0x308   : > { %v3656_v35 = vmul.f32 %v3640_v9, %v3624_v19  ;;  %v3672_v26 = vmul.f32 %v3640_v9, %v9992_v2  ;;  %4933 = vmatprep.mubr.bf16.mxu0 %v11133_v61  ;;  %v10030_v53 = vpop.f32.mrf.mxu0  ;;  %vm11290_vm10 = vmmov %vm11286_vm12 }
 0x309   : > { %11278 = vst [vmem:[#allocation5_spill] sm:$0xff] %v10030_v53  ;;  %vm11291_vm7 = vmmov %vm11290_vm10 }
 0x30a   : > { %v3688_v34 = vsub.f32 1.0, %v3672_v26  ;;  %v3704_v49 = vmul.f32 2.0, %v3656_v35 }
 0x30c   : > { %v3720_v56 = vmul.f32 %v3704_v49, %v3688_v34  ;;  %v3736_v54 = vmul.f32 %v3704_v49, %v3656_v35  ;;  %v4088_v3 = vrot.slane %v3688_v34, 6  ;;  %v3896_v49 = vrot.slane %v3656_v35, 2 }
 0x30d   : > { %v4202_v35 = vsel %vm11281_vm9, %v3895_v27, %v3943_v41 }
 0x30e   : > { %v3752_v63 = vsub.f32 1.0, %v3736_v54  ;;  %v3768_v55 = vmul.f32 2.0, %v3720_v56  ;;  %v3944_v40 = vrot.slane %v3720_v56, 7  ;;  %v4254_v34 = vsel %vm11276_vm6, %v4040_v44, %v4088_v3 }
 0x30f   : > { %6991 = vmatmul.mubr.msk.bf16.gmra.mxu0 %vm11274_vm13, %v9659_v8  ;;  %v3847_v3 = vrot.slane %v9931_v39, 5  ;;  %v4219_v0 = vsel %vm11283_vm3, %v4202_v35, %v3991_v58  ;;  %vm11293_vm13 = vmmov %vm11291_vm7  ;;  %vm5259_vm6 = vcmask 523264  }
 0x310   : > { %v3800_v9 = vmul.f32 %v3768_v55, %v3720_v56  ;;  %v4136_v26 = vrot.slane %v3752_v63, 3  ;;  %v3784_v19 = vmul.f32 %v3768_v55, %v3752_v63  ;;  %4943 = vmatprep.mubr.bf16.mxu0 %v11133_v61  ;;  %v4319_v63 = vpack.c.bf16 %v3815_v7, %v4270_v62  ;;  %v4580_v55 = vpop.f32.mrf.mxu1  ;;  %v10043_v62 = vpop.permute.xlu1 %4357  ;;  %vm11302_vm3 = vmmov %vm11284_vm8 }
 0x311   : > { %v4203_v23 = vsel %vm11279_vm14, %v3896_v49, %v3944_v40  ;;  %v4169_v7 = vsel %vm11284_vm8, %v11193_v15, %v3848_v57  ;;  %v10045_v40 = vpop.permute.xlu0 %4352  ;;  %v4168_v15 = vsel %vm11288_vm11, %v11198_v38, %v3847_v3  ;;  %vm11298_vm14 = vmmov %vm11281_vm9 }
 0x312   : > { %v3816_v12 = vsub.f32 1.0, %v3800_v9  ;;  %v4271_v54 = vsel %vm11277_vm4, %v4254_v34, %v4136_v26  ;;  %v3992_v56 = vrot.slane %v3784_v19, 4  ;;  %v10038_v9 = vpop.f32.mrf.mxu0  ;;  %v4438_v26 = vand.u32 %v8241_v33, %v4319_v63  ;;  %v4582_v39 = vpop.f32.mrf.mxu1  ;;  %vm11294_vm4 = vmmov %vm11291_vm7 }
 0x313   : > { %v4186_v19 = vsel %vm11285_vm15, %v4169_v7, %v3896_v49  ;;  %v4510_v38 = vadd.f32 %v10004_v60, %v10045_v40  ;;  %v4514_v63 = vadd.f32 %v10012_v17, %v10043_v62  ;;  %vm11303_vm8 = vmmov %vm11302_vm3  ;;  %vm11304_vm15 = vcmask 1043456  }
 0x314   : > { %v4320_v8 = vpack.c.bf16 %v3816_v12, %v4271_v54  ;;  %v4220_v50 = vsel %vm11280_vm2, %v4203_v23, %v3992_v56  ;;  %v4584_v49 = vpop.f32.mrf.mxu1  ;;  %v10062_v12 = vpop.permute.xlu1 %4342  ;;  %v4581_v56 = vadd.f32 %v4580_v55, %v10045_v40  ;;  %vm11299_vm2 = vmmov %vm11281_vm9  ;;  %vm11300_vm9 = vcmask 1041408  }
 0x315   : > { %v4237_v11 = vsel %vm11282_vm5, %v4220_v50, %v4040_v44  ;;  %v10051_v44 = vpop.f32.mrf.mxu0  ;;  %v10064_v54 = vpop.permute.xlu0 %4347  ;;  %v4500_v60 = vadd.f32 %v9978_v30, %v10062_v12  ;;  %v4585_v7 = vadd.f32 %v4584_v49, %v10043_v62  ;;  %vm11301_vm5 = vmmov %vm11300_vm9 }
 0x316   : > { %v4441_v2 = vand.u32 %v8241_v33, %v4320_v8  ;;  %v4304_v41 = vpack.c.bf16 %v4237_v11, %v4186_v19  ;;  %v4236_v8 = vsel %vm11287_vm1, %v4219_v0, %v4039_v10  ;;  %v4185_v33 = vsel %vm11289_vm0, %v4168_v15, %v3895_v27  ;;  %v4586_v55 = vpop.f32.mrf.mxu1 }
 0x317   : > { %6992 = vmatmul.mubr.msk.bf16.gmra.mxu0 %vm11286_vm12, %v9702_v16  ;;  %v10057_v50 = vpop.f32.mrf.mxu0  ;;  %v4303_v34 = vpack.c.bf16 %v4236_v8, %v4185_v33  ;;  %v4508_v10 = vadd.f32 %v9995_v14, %v10045_v40  ;;  %v4512_v27 = vadd.f32 %v10007_v6, %v10043_v62  ;;  %v10083_v14 = vadd.f32 %v9965_v51, %v10062_v12  ;;  %vm11305_vm12 = vmmov %vm11304_vm15 }
 0x318   : > { %4966 = vmatprep.subr.bf16.mxu1 %v4441_v2  ;;  %5304 = vmatprep.mubr.bf16.mxu0 %v11133_v61  ;;  %v10089_v6 = vadd.f32 %v9988_v4, %v10062_v12  ;;  %v4504_v17 = vadd.f32 %v9990_v32, %v10064_v54  ;;  %v4577_v51 = vadd.f32 %v10020_v59, %v10064_v54  ;;  %v10100_v30 = vpop.permute.xlu1 %4332  ;;  %v5124_v4 = vmax.f32 %v4510_v38, 0.0 }
 0x319   : > { %4967 = vmatpush1.bf16.msra.mxu1 %v4438_v26  ;;  %v10060_v58 = vpop.f32.mrf.mxu0  ;;  %v5123_v35 = vmax.f32 %v4508_v10, 0.0  ;;  %v10102_v3 = vpop.permute.xlu0 %4337  ;;  %v5139_v0 = vmax.f32 %v4512_v27, 0.0  ;;  %v4583_v2 = vadd.f32 %v4582_v39, %v10045_v40  ;;  %v4502_v32 = vadd.f32 %v9983_v31, %v10064_v54 }
 0x31a   : > { %4968 = vmatprep.subr.bf16.mxu1 %v4304_v41  ;;  %v5140_v26 = vmax.f32 %v4514_v63, 0.0  ;;  %v4587_v19 = vadd.f32 %v4586_v55, %v10043_v62  ;;  %v5091_v41 = vmax.f32 %v10083_v14, 0.0  ;;  %v5092_v8 = vmax.f32 %v4500_v60, 0.0 }
 0x31b   : > { %v10068_v57 = vpop.f32.mrf.mxu0  ;;  %v5093_v15 = vmax.f32 %v10089_v6, 0.0  ;;  %v4575_v33 = vadd.f32 %v10010_v52, %v10064_v54  ;;  %v4494_v39 = vadd.f32 %v9957_v21, %v10102_v3  ;;  %v5110_v31 = vmax.f32 %v4577_v51, 0.0 }
 0x31c   : > { %v4488_v38 = vadd.f32 %v9898_v47, %v10100_v30  ;;  %v4490_v27 = vadd.f32 %v9918_v1, %v10100_v30  ;;  %v5141_v63 = vmax.f32 %v4585_v7, 0.0  ;;  %v4567_v52 = vadd.f32 %v9975_v25, %v10102_v3  ;;  %v10131_v55 = vpop.permute.xlu1 %4322 }
 0x31d   : > { %4969 = vmatpush1.bf16.msra.mxu1 %v4303_v34  ;;  %v10077_v23 = vpop.f32.mrf.mxu0  ;;  %v5108_v34 = vmax.f32 %v4504_v17, 0.0  ;;  %v5126_v14 = vmax.f32 %v4583_v2, 0.0  ;;  %v5142_v21 = vmax.f32 %v4587_v19, 0.0  ;;  %v5204_v60 = vpack.c.bf16 %v5140_v26, %v5124_v4  ;;  %v10133_v47 = vpop.permute.xlu0 %4327 }
 0x31e   : > { %v4563_v1 = vadd.f32 %v9948_v22, %v10100_v30  ;;  %v5109_v17 = vmax.f32 %v4575_v33, 0.0  ;;  %v4484_v25 = vadd.f32 %v9876_v28, %v10133_v47  ;;  %v5076_v51 = vmax.f32 %v4494_v39, 0.0 }
 0x31f   : > { %v10098_v11 = vpop.f32.mrf.mxu0  ;;  %5280 = vmatprep.subr.bf16.mxu0 %v5204_v60  ;;  %v5188_v4 = vpack.c.bf16 %v5108_v34, %v5092_v8  ;;  %v5206_v2 = vpack.c.bf16 %v5142_v21, %v5126_v14  ;;  %v5059_v7 = vmax.f32 %v4488_v38, 0.0  ;;  %v5060_v26 = vmax.f32 %v4490_v27, 0.0 }
 0x320   : > { %6993 = vmatmul.mubr.msk.bf16.vlgmr.msra.gmra.mxu1 %vm11290_vm10, %v9971_v18  ;;  %v4573_v18 = vadd.f32 %v10000_v5, %v10062_v12  ;;  %v5125_v5 = vmax.f32 %v4581_v56, 0.0  ;;  %v4492_v56 = vadd.f32 %v9942_v42, %v10102_v3  ;;  %v5107_v42 = vmax.f32 %v4502_v32, 0.0 }
 0x321   : > { %4996 = vmatprep.mubr.bf16.mxu1 %v11133_v61  ;;  %v10109_v59 = vpop.f32.mrf.mxu0  ;;  %v4565_v19 = vadd.f32 %v9963_v43, %v10102_v3  ;;  %v4478_v22 = vadd.f32 %v9821_v24, %v10131_v55  ;;  %5353 = vmatprep.subr.bf16.mxu1 %v5206_v2  ;;  %v4482_v32 = vadd.f32 %v9858_v29, %v10133_v47  ;;  %v5044_v39 = vmax.f32 %v4484_v25, 0.0 }
 0x322   : > { %v5094_v49 = vmax.f32 %v4573_v18, 0.0  ;;  %v5203_v18 = vpack.c.bf16 %v5139_v0, %v5123_v35  ;;  %v5205_v53 = vpack.c.bf16 %v5141_v63, %v5125_v5  ;;  %v5075_v35 = vmax.f32 %v4492_v56, 0.0  ;;  %v11292_v56 = vld [vmem:[#allocation13_spill] sm:$0xff] }
 0x323   : > { %v10117_v10 = vpop.f32.mrf.mxu0  ;;  %v5078_v0 = vmax.f32 %v4567_v52, 0.0  ;;  %v4557_v8 = vadd.f32 %v9901_v48, %v10133_v47  ;;  %v5187_v33 = vpack.c.bf16 %v5107_v42, %v5091_v41  ;;  %v4480_v43 = vadd.f32 %v9833_v46, %v10131_v55 }
 0x324   : > { %5281 = vmatpush1.bf16.msra.mxu0 %v5203_v18  ;;  %v5190_v28 = vpack.c.bf16 %v5110_v31, %v5094_v49  ;;  %5354 = vmatpush1.bf16.msra.mxu1 %v5205_v53  ;;  %v4561_v24 = vadd.f32 %v9923_v36, %v10100_v30  ;;  %v5062_v34 = vmax.f32 %v4563_v1, 0.0  ;;  %v5172_v38 = vpack.c.bf16 %v5076_v51, %v5060_v26 }
 0x325   : > { %v10127_v6 = vpop.f32.mrf.mxu0  ;;  %5282 = vmatprep.subr.bf16.mxu0 %v5188_v4  ;;  %v4551_v49 = vadd.f32 %v9837_v20, %v10131_v55  ;;  %v4553_v29 = vadd.f32 %v9864_v13, %v10131_v55  ;;  %v4555_v48 = vadd.f32 %v9880_v37, %v10133_v47  ;;  %v5077_v53 = vmax.f32 %v4565_v19, 0.0 }
 0x326   : > { %5355 = vmatprep.subr.bf16.mxu1 %v5190_v28  ;;  %v5027_v41 = vmax.f32 %v4478_v22, 0.0  ;;  %v5189_v31 = vpack.c.bf16 %v5109_v17, %v5093_v15  ;;  %v5028_v27 = vmax.f32 %v4480_v43, 0.0  ;;  %v5043_v63 = vmax.f32 %v4482_v32, 0.0 }
 0x327   : > { %v5046_v20 = vmax.f32 %v4557_v8, 0.0  ;;  %v5171_v52 = vpack.c.bf16 %v5075_v35, %v5059_v7  ;;  %v5174_v14 = vpack.c.bf16 %v5078_v0, %v5062_v34  ;;  %v5061_v13 = vmax.f32 %v4561_v24, 0.0  ;;  %v10178_v0 = vpop.permute.xlu1 %5251 }
 0x328   : > { %6994 = vmatmul.mubr.msk.bf16.gmra.mxu1 %vm11291_vm7, %v9621_v45  ;;  %v4655_v45 = vpop.f32.mrf.mxu0  ;;  %5283 = vmatpush1.bf16.msra.mxu0 %v5187_v33  ;;  %v5156_v37 = vpack.c.bf16 %v5044_v39, %v5028_v27  ;;  %v5030_v60 = vmax.f32 %v4553_v29, 0.0  ;;  %v5045_v1 = vmax.f32 %v4555_v48, 0.0  ;;  %v4650_v42 = vadd.f32 %v10117_v10, %v10064_v54  ;;  %vm11309_vm7 = vmmov %vm11289_vm0 }
 0x329   : > { %5006 = vmatprep.mubr.bf16.mxu1 %v11133_v61  ;;  %5284 = vmatprep.subr.bf16.mxu0 %v5172_v38  ;;  %v4656_v36 = vadd.f32 %v4655_v45, %v10045_v40  ;;  %v5173_v17 = vpack.c.bf16 %v5077_v53, %v5061_v13  ;;  %v4654_v18 = vadd.f32 %v10127_v6, %v10045_v40  ;;  %v5029_v26 = vmax.f32 %v4551_v49, 0.0  ;;  %v11295_v38 = vld [vmem:[#allocation6_spill] sm:$0xff] }
 0x32a   : > { %v4657_v5 = vpop.f32.mrf.mxu0  ;;  %5356 = vmatpush1.bf16.msra.mxu1 %v5189_v31  ;;  %v5155_v4 = vpack.c.bf16 %v5043_v63, %v5027_v41  ;;  %v4646_v45 = vadd.f32 %v10098_v11, %v10062_v12  ;;  %v5158_v7 = vpack.c.bf16 %v5046_v20, %v5030_v60  ;;  %v4648_v19 = vadd.f32 %v10109_v59, %v10064_v54 }
 0x32b   : > { %v4658_v21 = vadd.f32 %v4657_v5, %v10043_v62  ;;  %5357 = vmatprep.subr.bf16.mxu1 %v5174_v14  ;;  %v5128_v25 = vmax.f32 %v4656_v36, 0.0  ;;  %v4640_v6 = vadd.f32 %v10068_v57, %v10102_v3  ;;  %v5112_v28 = vmax.f32 %v4650_v42, 0.0  ;;  %v10206_v36 = vpop.permute.xlu0 %5253 }
 0x32c   : > { %v4659_v46 = vpop.f32.mrf.mxu0  ;;  %5285 = vmatpush1.bf16.msra.mxu0 %v5171_v52  ;;  %v10168_v2 = vpop.f32.mrf.mxu1  ;;  %v5157_v11 = vpack.c.bf16 %v5045_v1, %v5029_v26  ;;  %v4644_v32 = vadd.f32 %v10077_v23, %v10062_v12  ;;  %v5127_v8 = vmax.f32 %v4654_v18, 0.0  ;;  %v4636_v57 = vadd.f32 %v10057_v50, %v10100_v30 }
 0x32d   : > { %v4660_v15 = vadd.f32 %v4659_v46, %v10043_v62  ;;  %5286 = vmatprep.subr.bf16.mxu0 %v5156_v37  ;;  %v5143_v10 = vmax.f32 %v4658_v21, 0.0  ;;  %v5096_v33 = vmax.f32 %v4646_v45, 0.0  ;;  %v4638_v43 = vadd.f32 %v10060_v58, %v10102_v3  ;;  %v10216_v18 = vpop.permute.xlu1 %5255 }
 0x32e   : > { %5358 = vmatpush1.bf16.msra.mxu1 %v5173_v17  ;;  %v10174_v35 = vpop.f32.mrf.mxu1  ;;  %v5111_v5 = vmax.f32 %v4648_v19, 0.0  ;;  %v4630_v39 = vadd.f32 %v10038_v9, %v10133_v47  ;;  %v4634_v58 = vadd.f32 %v10051_v44, %v10100_v30  ;;  %v5095_v34 = vmax.f32 %v4644_v32, 0.0  ;;  %v11296_v9 = vld [vmem:[#allocation5_spill] sm:$0xff]  ;;  %v11297_v44 = vld [vmem:[#allocation8_spill] sm:$0xff] }
 0x32f   : > { %v5144_v51 = vmax.f32 %v4660_v15, 0.0  ;;  %5359 = vmatprep.subr.bf16.mxu1 %v5158_v7  ;;  %v5207_v23 = vpack.c.bf16 %v5143_v10, %v5127_v8  ;;  %v5192_v50 = vpack.c.bf16 %v5112_v28, %v5096_v33  ;;  %v4626_v49 = vadd.f32 %v11295_v38, %v10131_v55  ;;  %v10224_v7 = vpop.permute.xlu0 %5257 }
 0x330   : > { %6995 = vmatmul.mubr.msk.bf16.gmra.mxu1 %vm11293_vm13, %v11292_v56  ;;  %5287 = vmatpush1.bf16.msra.mxu0 %v5155_v4  ;;  %v10184_v59 = vpop.f32.mrf.mxu1  ;;  %v5064_v29 = vmax.f32 %v4636_v57, 0.0  ;;  %v4628_v53 = vadd.f32 %v11296_v9, %v10133_v47  ;;  %v5079_v46 = vmax.f32 %v4638_v43, 0.0  ;;  %v5191_v41 = vpack.c.bf16 %v5111_v5, %v5095_v34 }
 0x331   : > { %5016 = vmatprep.mubr.bf16.mxu1 %v11133_v61  ;;  %v5208_v22 = vpack.c.bf16 %v5144_v51, %v5128_v25  ;;  %v5048_v31 = vmax.f32 %v4630_v39, 0.0  ;;  %v4624_v63 = vadd.f32 %v11297_v44, %v10131_v55  ;;  %v5063_v20 = vmax.f32 %v4634_v58, 0.0 }
 0x332   : > { %5360 = vmatpush1.bf16.msra.mxu1 %v5157_v11  ;;  %v10194_v24 = vpop.f32.mrf.mxu1  ;;  %v5032_v52 = vmax.f32 %v4626_v49, 0.0  ;;  %v5047_v13 = vmax.f32 %v4628_v53, 0.0  ;;  %vm11306_vm1 = vcmask 1044480   ;;  %vm11308_vm10 = vcmask 1046528  }
 0x333   : > { %5426 = vmatprep.subr.bf16.mxu0 %v5208_v22  ;;  %6997 = vmatmul.mubr.msk.bf16.vlgmr.msra.gmra.mxu0 %vm5259_vm6, %v10178_v0  ;;  %v5175_v37 = vpack.c.bf16 %v5079_v46, %v5063_v20  ;;  %v5031_v60 = vmax.f32 %v4624_v63, 0.0  ;;  %v4703_v9 = vadd.f32 %v10194_v24, %v10133_v47  ;;  %v4701_v24 = vadd.f32 %v10184_v59, %v10133_v47  ;;  %vm11307_vm11 = vmmov %vm11306_vm1 }
 0x334   : > { %5314 = vmatprep.mubr.bf16.mxu0 %v11133_v61  ;;  %5427 = vmatpush1.bf16.msra.mxu0 %v5207_v23  ;;  %v10202_v48 = vpop.f32.mrf.mxu1  ;;  %v5160_v15 = vpack.c.bf16 %v5048_v31, %v5032_v52  ;;  %vm11310_vm13 = vmmov %vm11308_vm10 }
 0x335   : > { %5428 = vmatprep.subr.bf16.mxu0 %v5192_v50  ;;  %v5159_v42 = vpack.c.bf16 %v5047_v13, %v5031_v60  ;;  %v5050_v20 = vmax.f32 %v4703_v9, 0.0 }
 0x336   : > { %v4708_v27 = vpop.f32.mrf.mxu1 }
 0x337   : > { %v4709_v50 = vadd.f32 %v4708_v27, %v10100_v30  ;;  %v4699_v27 = vadd.f32 %v10174_v35, %v10131_v55 }
 0x338   : > { %6996 = vmatmul.mubr.msk.bf16.gmra.mxu1 %vm11294_vm4, %v9702_v16  ;;  %v5080_v16 = vmax.f32 %v4640_v6, 0.0  ;;  %5429 = vmatpush1.bf16.msra.mxu0 %v5191_v41  ;;  %v4710_v14 = vpop.f32.mrf.mxu1  ;;  %v4707_v41 = vadd.f32 %v10202_v48, %v10100_v30  ;;  %v4697_v48 = vadd.f32 %v10168_v2, %v10131_v55  ;;  %vm11312_vm4 = vmmov %vm11299_vm2 }
 0x339   : > { %5377 = vmatprep.mubr.bf16.mxu1 %v11133_v61  ;;  %v4711_v38 = vadd.f32 %v4710_v14, %v10102_v3  ;;  %v5034_v13 = vmax.f32 %v4699_v27, 0.0  ;;  %v7354_v27 = vld [vmem:[%s10950_s3 + $0x28] sm:$0xff] }
 0x33a   : > { %v5176_v56 = vpack.c.bf16 %v5080_v16, %v5064_v29  ;;  %v4712_v21 = vpop.f32.mrf.mxu1  ;;  %v5065_v14 = vmax.f32 %v4707_v41, 0.0 }
 0x33b   : > { %6998 = vmatmul.mubr.msk.bf16.gmra.mxu0 %vm5259_vm6, %v10206_v36  ;;  %v4713_v33 = vadd.f32 %v4712_v21, %v10102_v3  ;;  %v5081_v44 = vmax.f32 %v4711_v38, 0.0  ;;  %v5162_v21 = vpack.c.bf16 %v5050_v20, %v5034_v13  ;;  %v7355_v20 = vld [vmem:[%s10950_s3] sm:$0xff] }
 0x33c   : > { %5430 = vmatprep.subr.bf16.mxu0 %v5176_v56  ;;  %5324 = vmatprep.mubr.bf16.mxu0 %v11133_v61  ;;  %v5066_v56 = vmax.f32 %v4709_v50, 0.0 }
 0x33d   : > { %5431 = vmatpush1.bf16.msra.mxu0 %v5175_v37  ;;  %v5082_v53 = vmax.f32 %v4713_v33, 0.0  ;;  %v5049_v37 = vmax.f32 %v4701_v24, 0.0  ;;  %v5177_v35 = vpack.c.bf16 %v5081_v44, %v5065_v14 }
 0x33e   : > { %5432 = vmatprep.subr.bf16.mxu0 %v5160_v15  ;;  %v5033_v15 = vmax.f32 %v4697_v48, 0.0 }
 0x33f   : > { %v4716_v1 = vpop.f32.mrf.mxu1  ;;  %v5178_v52 = vpack.c.bf16 %v5082_v53, %v5066_v56 }
 0x340   : > { %7001 = vmatmul.mubr.msk.bf16.vlgmr.msra.gmra.mxu1 %vm5259_vm6, %v10178_v0  ;;  %v4717_v39 = vadd.f32 %v4716_v1, %v10062_v12  ;;  %v5161_v60 = vpack.c.bf16 %v5049_v37, %v5033_v15 }
 0x341   : > { %5387 = vmatprep.mubr.bf16.mxu1 %v11133_v61  ;;  %v4718_v17 = vpop.f32.mrf.mxu1  ;;  %5433 = vmatpush1.bf16.msra.mxu0 %v5159_v42 }
 0x342   : > { %v4719_v11 = vadd.f32 %v4718_v17, %v10062_v12  ;;  %v5097_v31 = vmax.f32 %v4717_v39, 0.0  ;;  %v7352_v39 = vld [vmem:[%s10950_s3 + $0x20] sm:$0xff] }
 0x343   : > { %v4720_v25 = vpop.f32.mrf.mxu1  ;;  %6999 = vmatmul.mubr.msk.bf16.gmra.mxu0 %vm5259_vm6, %v10216_v18 }
 0x344   : > { %5334 = vmatprep.mubr.bf16.mxu0 %v11133_v61  ;;  %v4721_v8 = vadd.f32 %v4720_v25, %v10064_v54  ;;  %v5098_v58 = vmax.f32 %v4719_v11, 0.0  ;;  %v7350_v11 = vld [vmem:[%s10950_s3 + $0x30] sm:$0xff] }
 0x345   : > { %v4722_v51 = vpop.f32.mrf.mxu1 }
 0x346   : > { %v4723_v19 = vadd.f32 %v4722_v51, %v10064_v54  ;;  %v5113_v49 = vmax.f32 %v4721_v8, 0.0 }
 0x348   : > { %7002 = vmatmul.mubr.msk.bf16.gmra.mxu1 %vm5259_vm6, %v10206_v36  ;;  %v4726_v4 = vpop.f32.mrf.mxu1  ;;  %v5114_v43 = vmax.f32 %v4723_v19, 0.0  ;;  %v5193_v63 = vpack.c.bf16 %v5113_v49, %v5097_v31 }
 0x349   : > { %5397 = vmatprep.mubr.bf16.mxu1 %v11133_v61  ;;  %v4727_v6 = vadd.f32 %v4726_v4, %v10045_v40 }
 0x34a   : > { %v4728_v45 = vpop.f32.mrf.mxu1  ;;  %v5194_v46 = vpack.c.bf16 %v5114_v43, %v5098_v58  ;;  %v7353_v58 = vld [vmem:[%s10950_s3 + $0x10] sm:$0xff] }
 0x34b   : > { %v4729_v10 = vadd.f32 %v4728_v45, %v10045_v40  ;;  %7000 = vmatmul.mubr.msk.bf16.gmra.mxu0 %vm5259_vm6, %v10224_v7  ;;  %v5129_v16 = vmax.f32 %v4727_v6, 0.0  ;;  %v7431_v6 = vmov 1  }
 0x34c   : > { %v4730_v26 = vpop.f32.mrf.mxu1  ;;  %5450 = vmatprep.mubr.bf16.mxu0 %v11133_v61  ;;  %7194 = vset.pattern.permute.xlu1 %v7431_v6 }
 0x34d   : > { %v4731_v22 = vadd.f32 %v4730_v26, %v10043_v62  ;;  %v5130_v5 = vmax.f32 %v4729_v10, 0.0  ;;  %7195 = vset.pattern.permute.xlu0 %v7431_v6  ;;  %5244 = vperm.xlu1 %7194, %v7350_v11  }
 0x34e   : > { %v4732_v28 = vpop.f32.mrf.mxu1 }
 0x34f   : > { %v4733_v32 = vadd.f32 %v4732_v28, %v10043_v62  ;;  %v5145_v57 = vmax.f32 %v4731_v22, 0.0 }
 0x350   : > { %7003 = vmatmul.mubr.msk.bf16.gmra.mxu1 %vm5259_vm6, %v10216_v18 }
 0x351   : > { %5407 = vmatprep.mubr.bf16.mxu1 %v11133_v61  ;;  %v5146_v23 = vmax.f32 %v4733_v32, 0.0  ;;  %v5209_v29 = vpack.c.bf16 %v5145_v57, %v5129_v16  ;;  %v7351_v32 = vld [vmem:[%s10950_s3 + $0x38] sm:$0xff]  ;;  %5236 = vperm.xlu1 %7194, %v7352_v39  }
 0x352   : > { %5248 = vperm.xlu0 %7195, %v7351_v32  }
 0x353   : > { %v5210_v34 = vpack.c.bf16 %v5146_v23, %v5130_v5  ;;  %7005 = vmatmul.mubr.msk.bf16.vlgmr.msra.gmra.mxu0 %vm5259_vm6, %v10178_v0 }
 0x354   : > { %5460 = vmatprep.mubr.bf16.mxu0 %v11133_v61 }
 0x355   : > { %5499 = vmatprep.subr.bf16.mxu1 %v5210_v34  ;;  %5240 = vperm.xlu1 %7194, %v7354_v27  }
 0x356   : > { %5500 = vmatpush1.bf16.msra.mxu1 %v5209_v29  ;;  %5228 = vperm.xlu0 %7195, %v7353_v58  }
 0x357   : > { %5501 = vmatprep.subr.bf16.mxu1 %v5194_v46 }
 0x358   : > { %7004 = vmatmul.mubr.msk.bf16.gmra.mxu1 %vm5259_vm6, %v10224_v7 }
 0x359   : > { %5523 = vmatprep.mubr.bf16.mxu1 %v11133_v61 }
 0x35a   : > { %5502 = vmatpush1.bf16.msra.mxu1 %v5193_v63  ;;  %5220 = vperm.xlu0 %7195, %v7355_v20  }
 0x35b   : > { %5503 = vmatprep.subr.bf16.mxu1 %v5178_v52  ;;  %7006 = vmatmul.mubr.msk.bf16.gmra.mxu0 %vm5259_vm6, %v10206_v36 }
 0x35c   : > { %5470 = vmatprep.mubr.bf16.mxu0 %v11133_v61 }
 0x35e   : > { %5504 = vmatpush1.bf16.msra.mxu1 %v5177_v35 }
 0x35f   : > { %5505 = vmatprep.subr.bf16.mxu1 %v5162_v21 }
 0x362   : > { %v10262_v59 = vpop.f32.mrf.mxu0  ;;  %5506 = vmatpush1.bf16.msra.mxu1 %v5161_v60 }
 0x363   : > { %7007 = vmatmul.mubr.msk.bf16.gmra.mxu0 %vm5259_vm6, %v10216_v18  ;;  %v4770_v6 = vadd.f32 %v10262_v59, %v10131_v55 }
 0x364   : > { %v10264_v1 = vpop.f32.mrf.mxu0  ;;  %5480 = vmatprep.mubr.bf16.mxu0 %v11133_v61 }
 0x365   : > { %7009 = vmatmul.mubr.msk.bf16.vlgmr.msra.gmra.mxu1 %vm5259_vm6, %v10178_v0 }
 0x366   : > { %v10266_v2 = vpop.f32.mrf.mxu0  ;;  %5533 = vmatprep.mubr.bf16.mxu1 %v11133_v61 }
 0x368   : > { %v4775_v42 = vpop.f32.mrf.mxu0 }
 0x369   : > { %v4776_v13 = vadd.f32 %v4775_v42, %v10133_v47  ;;  %v4774_v42 = vadd.f32 %v10266_v2, %v10133_v47 }
 0x36a   : > { %v4779_v17 = vpop.f32.mrf.mxu0 }
 0x36b   : > { %7008 = vmatmul.mubr.msk.bf16.gmra.mxu0 %vm5259_vm6, %v10224_v7  ;;  %v4780_v15 = vadd.f32 %v4779_v17, %v10100_v30 }
 0x36c   : > { %v4781_v25 = vpop.f32.mrf.mxu0  ;;  %5596 = vmatprep.mubr.bf16.mxu0 %v11133_v61 }
 0x36d   : > { %7010 = vmatmul.mubr.msk.bf16.gmra.mxu1 %vm5259_vm6, %v10206_v36  ;;  %v4782_v24 = vadd.f32 %v4781_v25, %v10100_v30  ;;  %v7356_v25 = vld [vmem:[%s10950_s3 + $0x18] sm:$0xff] }
 0x36e   : > { %v4783_v51 = vpop.f32.mrf.mxu0  ;;  %5543 = vmatprep.mubr.bf16.mxu1 %v11133_v61  ;;  %5232 = vperm.xlu1 %7194, %v7356_v25  }
 0x36f   : > { %v4784_v52 = vadd.f32 %v4783_v51, %v10102_v3  ;;  %v4772_v51 = vadd.f32 %v10264_v1, %v10131_v55  ;;  %v7357_v1 = vld [vmem:[%s10950_s3 + $0x8] sm:$0xff] }
 0x370   : > { %v4785_v4 = vpop.f32.mrf.mxu0 }
 0x371   : > { %v4786_v29 = vadd.f32 %v4785_v4, %v10102_v3  ;;  %v5068_v4 = vmax.f32 %v4782_v24, 0.0  ;;  %v5036_v11 = vmax.f32 %v4772_v51, 0.0 }
 0x372   : > { %v4789_v45 = vpop.f32.mrf.mxu0  ;;  %5224 = vperm.xlu1 %7194, %v7357_v1  }
 0x373   : > { %v4790_v41 = vadd.f32 %v4789_v45, %v10062_v12  ;;  %v5084_v35 = vmax.f32 %v4786_v29, 0.0 }
 0x374   : > { %v4791_v26 = vpop.f32.mrf.mxu0 }
 0x375   : > { %7011 = vmatmul.mubr.msk.bf16.gmra.mxu1 %vm5259_vm6, %v10216_v18  ;;  %v4792_v16 = vadd.f32 %v4791_v26, %v10062_v12  ;;  %v5099_v60 = vmax.f32 %v4790_v41, 0.0  ;;  %v5083_v26 = vmax.f32 %v4784_v52, 0.0 }
 0x376   : > { %v4793_v19 = vpop.f32.mrf.mxu0  ;;  %5553 = vmatprep.mubr.bf16.mxu1 %v11133_v61 }
 0x377   : > { %v4794_v34 = vadd.f32 %v4793_v19, %v10064_v54  ;;  %v5100_v44 = vmax.f32 %v4792_v16, 0.0 }
 0x378   : > { %v4795_v10 = vpop.f32.mrf.mxu0 }
 0x379   : > { %v4796_v57 = vadd.f32 %v4795_v10, %v10064_v54  ;;  %v5115_v48 = vmax.f32 %v4794_v34, 0.0  ;;  %v5052_v10 = vmax.f32 %v4776_v13, 0.0 }
 0x37a   : > { %v4799_v22 = vpop.f32.mrf.mxu0 }
 0x37b   : > { %v4800_v5 = vadd.f32 %v4799_v22, %v10045_v40  ;;  %v5116_v9 = vmax.f32 %v4796_v57, 0.0  ;;  %v5195_v19 = vpack.c.bf16 %v5115_v48, %v5099_v60  ;;  %v5180_v22 = vpack.c.bf16 %v5084_v35, %v5068_v4 }
 0x37c   : > { %v4801_v28 = vpop.f32.mrf.mxu0  ;;  %v5164_v57 = vpack.c.bf16 %v5052_v10, %v5036_v11 }
 0x37d   : > { %v4802_v33 = vadd.f32 %v4801_v28, %v10045_v40  ;;  %7012 = vmatmul.mubr.msk.bf16.gmra.mxu1 %vm5259_vm6, %v10224_v7  ;;  %v5131_v31 = vmax.f32 %v4800_v5, 0.0  ;;  %v5196_v21 = vpack.c.bf16 %v5116_v9, %v5100_v44  ;;  %v5067_v28 = vmax.f32 %v4780_v15, 0.0 }
 0x37e   : > { %v4803_v8 = vpop.f32.mrf.mxu0  ;;  %5669 = vmatprep.mubr.bf16.mxu1 %v11133_v61 }
 0x37f   : > { %v4804_v43 = vadd.f32 %v4803_v8, %v10043_v62  ;;  %v5132_v53 = vmax.f32 %v4802_v33, 0.0  ;;  %v5051_v8 = vmax.f32 %v4774_v42, 0.0  ;;  %v5179_v2 = vpack.c.bf16 %v5083_v26, %v5067_v28 }
 0x380   : > { %v4805_v23 = vpop.f32.mrf.mxu0 }
 0x381   : > { %v4806_v50 = vadd.f32 %v4805_v23, %v10043_v62  ;;  %v5147_v38 = vmax.f32 %v4804_v43, 0.0  ;;  %v5035_v43 = vmax.f32 %v4770_v6, 0.0 }
 0x383   : > { %v10305_v49 = vpop.f32.mrf.mxu1  ;;  %v5148_v46 = vmax.f32 %v4806_v50, 0.0  ;;  %v5211_v14 = vpack.c.bf16 %v5147_v38, %v5131_v31  ;;  %v5163_v23 = vpack.c.bf16 %v5051_v8, %v5035_v43 }
 0x384   : > { %v4843_v8 = vadd.f32 %v10305_v49, %v10131_v55 }
 0x385   : > { %v10312_v56 = vpop.f32.mrf.mxu1  ;;  %v5212_v63 = vpack.c.bf16 %v5148_v46, %v5132_v53 }
 0x387   : > { %v10320_v37 = vpop.f32.mrf.mxu1  ;;  %5572 = vmatprep.subr.bf16.mxu0 %v5212_v63 }
 0x388   : > { %5573 = vmatpush1.bf16.msra.mxu0 %v5211_v14  ;;  %v4847_v28 = vadd.f32 %v10320_v37, %v10133_v47  ;;  %v5037_v37 = vmax.f32 %v4843_v8, 0.0 }
 0x389   : > { %v4848_v45 = vpop.f32.mrf.mxu1  ;;  %5574 = vmatprep.subr.bf16.mxu0 %v5196_v21 }
 0x38a   : > { %v4849_v4 = vadd.f32 %v4848_v45, %v10133_v47 }
 0x38b   : > { %v4852_v17 = vpop.f32.mrf.mxu1 }
 0x38c   : > { %5575 = vmatpush1.bf16.msra.mxu0 %v5195_v19  ;;  %v4853_v19 = vadd.f32 %v4852_v17, %v10100_v30  ;;  %v5054_v45 = vmax.f32 %v4849_v4, 0.0 }
 0x38d   : > { %v4854_v32 = vpop.f32.mrf.mxu1  ;;  %5576 = vmatprep.subr.bf16.mxu0 %v5180_v22  ;;  %v4845_v22 = vadd.f32 %v10312_v56, %v10131_v55 }
 0x38e   : > { %v4855_v35 = vadd.f32 %v4854_v32, %v10100_v30 }
 0x38f   : > { %v4856_v33 = vpop.f32.mrf.mxu1  ;;  %v5038_v17 = vmax.f32 %v4845_v22, 0.0 }
 0x390   : > { %5577 = vmatpush1.bf16.msra.mxu0 %v5179_v2  ;;  %v4857_v60 = vadd.f32 %v4856_v33, %v10102_v3  ;;  %v5070_v6 = vmax.f32 %v4855_v35, 0.0  ;;  %v5069_v2 = vmax.f32 %v4853_v19, 0.0 }
 0x391   : > { %v4858_v5 = vpop.f32.mrf.mxu1  ;;  %5578 = vmatprep.subr.bf16.mxu0 %v5164_v57  ;;  %v5053_v57 = vmax.f32 %v4847_v28, 0.0  ;;  %v5166_v56 = vpack.c.bf16 %v5054_v45, %v5038_v17 }
 0x392   : > { %v4859_v63 = vadd.f32 %v4858_v5, %v10102_v3  ;;  %v5085_v1 = vmax.f32 %v4857_v60, 0.0 }
 0x393   : > { %v4862_v59 = vpop.f32.mrf.mxu1  ;;  %v5165_v43 = vpack.c.bf16 %v5053_v57, %v5037_v37 }
 0x394   : > { %5579 = vmatpush1.bf16.msra.mxu0 %v5163_v23  ;;  %v4863_v14 = vadd.f32 %v4862_v59, %v10062_v12  ;;  %v5086_v42 = vmax.f32 %v4859_v63, 0.0  ;;  %v5181_v33 = vpack.c.bf16 %v5085_v1, %v5069_v2 }
 0x395   : > { %v4864_v39 = vpop.f32.mrf.mxu1 }
 0x396   : > { %v4865_v31 = vadd.f32 %v4864_v39, %v10062_v12  ;;  %v5101_v10 = vmax.f32 %v4863_v14, 0.0  ;;  %v5182_v32 = vpack.c.bf16 %v5086_v42, %v5070_v6 }
 0x397   : > { %v4866_v16 = vpop.f32.mrf.mxu1  ;;  %7013 = vmatmul.mubr.msk.bf16.vlgmr.msra.gmra.mxu0 %vm5259_vm6, %v10178_v0 }
 0x398   : > { %5606 = vmatprep.mubr.bf16.mxu0 %v11133_v61  ;;  %v4867_v24 = vadd.f32 %v4866_v16, %v10064_v54  ;;  %v5102_v21 = vmax.f32 %v4865_v31, 0.0 }
 0x399   : > { %v4868_v50 = vpop.f32.mrf.mxu1 }
 0x39a   : > { %v4869_v29 = vadd.f32 %v4868_v50, %v10064_v54  ;;  %v5117_v25 = vmax.f32 %v4867_v24, 0.0 }
 0x39b   : > { %v4872_v58 = vpop.f32.mrf.mxu1 }
 0x39c   : > { %v4873_v46 = vadd.f32 %v4872_v58, %v10045_v40  ;;  %v5118_v20 = vmax.f32 %v4869_v29, 0.0  ;;  %v5197_v11 = vpack.c.bf16 %v5117_v25, %v5101_v10 }
 0x39d   : > { %v4874_v34 = vpop.f32.mrf.mxu1 }
 0x39e   : > { %v4875_v9 = vadd.f32 %v4874_v34, %v10045_v40  ;;  %v5133_v13 = vmax.f32 %v4873_v46, 0.0  ;;  %v5198_v26 = vpack.c.bf16 %v5118_v20, %v5102_v21 }
 0x39f   : > { %v4876_v38 = vpop.f32.mrf.mxu1  ;;  %7014 = vmatmul.mubr.msk.bf16.gmra.mxu0 %vm5259_vm6, %v10206_v36 }
 0x3a0   : > { %v4877_v53 = vadd.f32 %v4876_v38, %v10043_v62  ;;  %5616 = vmatprep.mubr.bf16.mxu0 %v11133_v61  ;;  %v5134_v52 = vmax.f32 %v4875_v9, 0.0 }
 0x3a1   : > { %v4878_v41 = vpop.f32.mrf.mxu1 }
 0x3a2   : > { %v4879_v27 = vadd.f32 %v4878_v41, %v10043_v62  ;;  %v5149_v44 = vmax.f32 %v4877_v53, 0.0 }
 0x3a4   : > { %v5150_v48 = vmax.f32 %v4879_v27, 0.0  ;;  %v5213_v51 = vpack.c.bf16 %v5149_v44, %v5133_v13 }
 0x3a6   : > { %v5214_v15 = vpack.c.bf16 %v5150_v48, %v5134_v52 }
 0x3a7   : > { %7015 = vmatmul.mubr.msk.bf16.gmra.mxu0 %vm5259_vm6, %v10216_v18 }
 0x3a8   : > { %5645 = vmatprep.subr.bf16.mxu1 %v5214_v15  ;;  %5626 = vmatprep.mubr.bf16.mxu0 %v11133_v61 }
 0x3a9   : > { %5646 = vmatpush1.bf16.msra.mxu1 %v5213_v51 }
 0x3aa   : > { %5647 = vmatprep.subr.bf16.mxu1 %v5198_v26 }
 0x3ad   : > { %5648 = vmatpush1.bf16.msra.mxu1 %v5197_v11 }
 0x3ae   : > { %5649 = vmatprep.subr.bf16.mxu1 %v5182_v32 }
 0x3af   : > { %7016 = vmatmul.mubr.msk.bf16.gmra.mxu0 %vm5259_vm6, %v10224_v7 }
 0x3b0   : > { %5742 = vmatprep.mubr.bf16.mxu0 %v11133_v61 }
 0x3b1   : > { %5650 = vmatpush1.bf16.msra.mxu1 %v5181_v33 }
 0x3b2   : > { %5651 = vmatprep.subr.bf16.mxu1 %v5166_v56 }
 0x3b5   : > { %5652 = vmatpush1.bf16.msra.mxu1 %v5165_v43 }
 0x3b8   : > { %7017 = vmatmul.mubr.msk.bf16.vlgmr.msra.gmra.mxu1 %vm5259_vm6, %v10178_v0 }
 0x3b9   : > { %5679 = vmatprep.mubr.bf16.mxu1 %v11133_v61 }
 0x3bf   : > { %v4915_v49 = vpop.f32.mrf.mxu0 }
 0x3c0   : > { %7018 = vmatmul.mubr.msk.bf16.gmra.mxu1 %vm5259_vm6, %v10206_v36 }
 0x3c1   : > { %v4917_v5 = vpop.f32.mrf.mxu0  ;;  %5689 = vmatprep.mubr.bf16.mxu1 %v11133_v61 }
 0x3c2   : > { %v4918_v2 = vadd.f32 %v4917_v5, %v10131_v55 }
 0x3c3   : > { %v4919_v23 = vpop.f32.mrf.mxu0 }
 0x3c4   : > { %v4920_v33 = vadd.f32 %v4919_v23, %v10133_v47 }
 0x3c5   : > { %v4921_v59 = vpop.f32.mrf.mxu0 }
 0x3c6   : > { %v4922_v28 = vadd.f32 %v4921_v59, %v10133_v47  ;;  %v5055_v5 = vmax.f32 %v4920_v33, 0.0 }
 0x3c7   : > { %v4925_v39 = vpop.f32.mrf.mxu0 }
 0x3c8   : > { %7019 = vmatmul.mubr.msk.bf16.gmra.mxu1 %vm5259_vm6, %v10216_v18  ;;  %v4926_v32 = vadd.f32 %v4925_v39, %v10100_v30  ;;  %v5056_v43 = vmax.f32 %v4922_v28, 0.0  ;;  %v5040_v39 = vmax.f32 %v4918_v2, 0.0 }
 0x3c9   : > { %v4927_v16 = vpop.f32.mrf.mxu0  ;;  %5699 = vmatprep.mubr.bf16.mxu1 %v11133_v61 }
 0x3ca   : > { %v4928_v42 = vadd.f32 %v4927_v16, %v10100_v30 }
 0x3cb   : > { %v4929_v50 = vpop.f32.mrf.mxu0 }
 0x3cc   : > { %v4930_v10 = vadd.f32 %v4929_v50, %v10102_v3  ;;  %v5072_v17 = vmax.f32 %v4928_v42, 0.0  ;;  %v4916_v50 = vadd.f32 %v4915_v49, %v10131_v55 }
 0x3cd   : > { %v4931_v58 = vpop.f32.mrf.mxu0 }
 0x3ce   : > { %v4932_v35 = vadd.f32 %v4931_v58, %v10102_v3  ;;  %v5087_v56 = vmax.f32 %v4930_v10, 0.0  ;;  %v5071_v58 = vmax.f32 %v4926_v32, 0.0 }
 0x3cf   : > { %v4935_v34 = vpop.f32.mrf.mxu0 }
 0x3d0   : > { %7020 = vmatmul.mubr.msk.bf16.gmra.mxu1 %vm5259_vm6, %v10224_v7  ;;  %v4936_v25 = vadd.f32 %v4935_v34, %v10062_v12  ;;  %v5088_v11 = vmax.f32 %v4932_v35, 0.0 }
 0x3d1   : > { %v4937_v38 = vpop.f32.mrf.mxu0  ;;  %5815 = vmatprep.mubr.bf16.mxu1 %v11133_v61 }
 0x3d2   : > { %v4938_v20 = vadd.f32 %v4937_v38, %v10062_v12  ;;  %v5103_v8 = vmax.f32 %v4936_v25, 0.0  ;;  %v5184_v16 = vpack.c.bf16 %v5088_v11, %v5072_v17  ;;  %v5183_v38 = vpack.c.bf16 %v5087_v56, %v5071_v58  ;;  %v10444_v58 = vpop.permute.xlu1 %5244 }
 0x3d3   : > { %v4939_v29 = vpop.f32.mrf.mxu0 }
 0x3d4   : > { %v4940_v48 = vadd.f32 %v4939_v29, %v10064_v54  ;;  %v5104_v26 = vmax.f32 %v4938_v20, 0.0  ;;  %v5168_v29 = vpack.c.bf16 %v5056_v43, %v5040_v39 }
 0x3d5   : > { %v4941_v9 = vpop.f32.mrf.mxu0 }
 0x3d6   : > { %v4942_v31 = vadd.f32 %v4941_v9, %v10064_v54  ;;  %v5119_v22 = vmax.f32 %v4940_v48, 0.0 }
 0x3d7   : > { %v4945_v53 = vpop.f32.mrf.mxu0 }
 0x3d8   : > { %v4946_v44 = vadd.f32 %v4945_v53, %v10045_v40  ;;  %v5120_v21 = vmax.f32 %v4942_v31, 0.0  ;;  %v5199_v37 = vpack.c.bf16 %v5119_v22, %v5103_v8  ;;  %v5039_v53 = vmax.f32 %v4916_v50, 0.0 }
 0x3d9   : > { %v4947_v46 = vpop.f32.mrf.mxu0 }
 0x3da   : > { %v4948_v27 = vadd.f32 %v4947_v46, %v10045_v40  ;;  %v5135_v51 = vmax.f32 %v4946_v44, 0.0  ;;  %v5200_v45 = vpack.c.bf16 %v5120_v21, %v5104_v26  ;;  %v5167_v46 = vpack.c.bf16 %v5055_v5, %v5039_v53 }
 0x3db   : > { %v4949_v41 = vpop.f32.mrf.mxu0 }
 0x3dc   : > { %v4950_v24 = vadd.f32 %v4949_v41, %v10043_v62  ;;  %v5136_v15 = vmax.f32 %v4948_v27, 0.0 }
 0x3dd   : > { %v4951_v63 = vpop.f32.mrf.mxu0 }
 0x3de   : > { %v4952_v52 = vadd.f32 %v4951_v63, %v10043_v62  ;;  %v5151_v14 = vmax.f32 %v4950_v24, 0.0 }
 0x3e0   : > { %v10385_v13 = vpop.f32.mrf.mxu1  ;;  %v5152_v60 = vmax.f32 %v4952_v52, 0.0  ;;  %v5215_v6 = vpack.c.bf16 %v5151_v14, %v5135_v51 }
 0x3e2   : > { %v10389_v4 = vpop.f32.mrf.mxu1  ;;  %v5216_v19 = vpack.c.bf16 %v5152_v60, %v5136_v15 }
 0x3e4   : > { %v10394_v1 = vpop.f32.mrf.mxu1  ;;  %5718 = vmatprep.subr.bf16.mxu0 %v5216_v19 }
 0x3e5   : > { %5719 = vmatpush1.bf16.msra.mxu0 %v5215_v6 }
 0x3e6   : > { %v10398_v57 = vpop.f32.mrf.mxu1  ;;  %5720 = vmatprep.subr.bf16.mxu0 %v5200_v45 }
 0x3e8   : > { %v10401_v59 = vpop.f32.mrf.mxu1 }
 0x3e9   : > { %5721 = vmatpush1.bf16.msra.mxu0 %v5199_v37 }
 0x3ea   : > { %v5000_v34 = vpop.f32.mrf.mxu1  ;;  %5722 = vmatprep.subr.bf16.mxu0 %v5184_v16 }
 0x3ec   : > { %v5002_v9 = vpop.f32.mrf.mxu1 }
 0x3ed   : > { %5723 = vmatpush1.bf16.msra.mxu0 %v5183_v38  ;;  %v5003_v33 = vadd.f32 %v5002_v9, %v10102_v3  ;;  %v4991_v38 = vadd.f32 %v10389_v4, %v10131_v55  ;;  %v4993_v9 = vadd.f32 %v10394_v1, %v10133_v47 }
 0x3ee   : > { %v5004_v23 = vpop.f32.mrf.mxu1  ;;  %5724 = vmatprep.subr.bf16.mxu0 %v5168_v29 }
 0x3ef   : > { %v5005_v22 = vadd.f32 %v5004_v23, %v10102_v3  ;;  %v4999_v3 = vadd.f32 %v10401_v59, %v10100_v30  ;;  %v5089_v53 = vmax.f32 %v5003_v33, 0.0  ;;  %v5057_v1 = vmax.f32 %v4993_v9, 0.0 }
 0x3f0   : > { %v5008_v41 = vpop.f32.mrf.mxu1 }
 0x3f1   : > { %5725 = vmatpush1.bf16.msra.mxu0 %v5167_v46  ;;  %v5090_v16 = vmax.f32 %v5005_v22, 0.0  ;;  %v10458_v46 = vpop.permute.xlu0 %5248  ;;  %v5073_v4 = vmax.f32 %v4999_v3, 0.0 }
 0x3f2   : > { %v5010_v31 = vpop.f32.mrf.mxu1 }
 0x3f3   : > { %v10407_v44 = vpop.f32.mrf.mxu0  ;;  %v5011_v25 = vadd.f32 %v5010_v31, %v10062_v12 }
 0x3f4   : > { %v5012_v27 = vpop.f32.mrf.mxu1  ;;  %7021 = vmatmul.mubr.msk.bf16.vlgmr.msra.gmra.mxu0 %vm5259_vm6, %v10178_v0 }
 0x3f5   : > { %5752 = vmatprep.mubr.bf16.mxu0 %v11133_v61  ;;  %v10409_v20 = vpop.f32.mrf.mxu0  ;;  %v5013_v26 = vadd.f32 %v5012_v27, %v10064_v54  ;;  %v5106_v2 = vmax.f32 %v5011_v25, 0.0  ;;  %v4989_v27 = vadd.f32 %v10385_v13, %v10131_v55  ;;  %v10473_v13 = vpop.permute.xlu0 %5228 }
 0x3f6   : > { %v5014_v49 = vpop.f32.mrf.mxu1 }
 0x3f7   : > { %v5015_v48 = vadd.f32 %v5014_v49, %v10064_v54  ;;  %v10417_v21 = vpop.f32.mrf.mxu0  ;;  %v5121_v56 = vmax.f32 %v5013_v26, 0.0  ;;  %v5041_v55 = vmax.f32 %v4989_v27, 0.0 }
 0x3f8   : > { %v5018_v24 = vpop.f32.mrf.mxu1 }
 0x3f9   : > { %v5019_v15 = vadd.f32 %v5018_v24, %v10045_v40  ;;  %v10422_v42 = vpop.f32.mrf.mxu0  ;;  %v5122_v6 = vmax.f32 %v5015_v48, 0.0  ;;  %v5042_v24 = vmax.f32 %v4991_v38, 0.0  ;;  %v5169_v25 = vpack.c.bf16 %v5057_v1, %v5041_v55 }
 0x3fa   : > { %v5020_v63 = vpop.f32.mrf.mxu1 }
 0x3fb   : > { %v5021_v14 = vadd.f32 %v5020_v63, %v10045_v40  ;;  %v10428_v45 = vpop.f32.mrf.mxu0  ;;  %v5009_v40 = vadd.f32 %v5008_v41, %v10062_v12  ;;  %v5137_v32 = vmax.f32 %v5019_v15, 0.0  ;;  %v4995_v12 = vadd.f32 %v10398_v57, %v10133_v47  ;;  %v10466_v63 = vpop.permute.xlu1 %5236 }
 0x3fc   : > { %v5022_v52 = vpop.f32.mrf.mxu1  ;;  %7022 = vmatmul.mubr.msk.bf16.gmra.mxu0 %vm5259_vm6, %v10206_v36  ;;  %v5202_v50 = vpack.c.bf16 %v5122_v6, %v5106_v2 }
 0x3fd   : > { %v5023_v35 = vadd.f32 %v5022_v52, %v10043_v62  ;;  %5762 = vmatprep.mubr.bf16.mxu0 %v11133_v61  ;;  %v5138_v28 = vmax.f32 %v5021_v14, 0.0  ;;  %v10434_v54 = vpop.f32.mrf.mxu0  ;;  %v5185_v52 = vpack.c.bf16 %v5089_v53, %v5073_v4 }
 0x3fe   : > { %v5024_v60 = vpop.f32.mrf.mxu1  ;;  %v5319_v4 = vadd.f32 %v10434_v54, %v10473_v13 }
 0x3ff   : > { %v5025_v51 = vadd.f32 %v5024_v60, %v10043_v62  ;;  %v5153_v19 = vmax.f32 %v5023_v35, 0.0  ;;  %v5001_v62 = vadd.f32 %v5000_v34, %v10100_v30  ;;  %v10446_v39 = vpop.f32.mrf.mxu0  ;;  %v5105_v34 = vmax.f32 %v5009_v40, 0.0  ;;  %v10479_v26 = vpop.permute.xlu1 %5240 }
 0x400   : > { %v10425_v10 = vpop.f32.mrf.mxu1  ;;  %v5058_v30 = vmax.f32 %v4995_v12, 0.0  ;;  %v10494_v12 = vadd.f32 %v10428_v45, %v10473_v13 }
 0x401   : > { %v5154_v11 = vmax.f32 %v5025_v51, 0.0  ;;  %v5217_v37 = vpack.c.bf16 %v5153_v19, %v5137_v32  ;;  %v5074_v57 = vmax.f32 %v5001_v62, 0.0  ;;  %v10454_v29 = vpop.f32.mrf.mxu0  ;;  %v5201_v23 = vpack.c.bf16 %v5121_v56, %v5105_v34 }
 0x402   : > { %v10431_v8 = vpop.f32.mrf.mxu1  ;;  %v5170_v14 = vpack.c.bf16 %v5058_v30, %v5042_v24 }
 0x403   : > { %v5218_v17 = vpack.c.bf16 %v5154_v11, %v5138_v28  ;;  %v5186_v59 = vpack.c.bf16 %v5090_v16, %v5074_v57  ;;  %v5326_v31 = vpop.f32.mrf.mxu0  ;;  %v10481_v28 = vpop.permute.xlu0 %5220 }
 0x404   : > { %7023 = vmatmul.mubr.msk.bf16.gmra.mxu0 %vm5259_vm6, %v10216_v18  ;;  %v10439_v43 = vpop.f32.mrf.mxu1  ;;  %v10490_v56 = vpop.permute.xlu1 %5232  ;;  %v5327_v16 = vadd.f32 %v5326_v31, %v10466_v63  ;;  %v10508_v45 = vadd.f32 %v10407_v44, %v10481_v28 }
 0x405   : > { %5791 = vmatprep.subr.bf16.mxu1 %v5218_v17  ;;  %5772 = vmatprep.mubr.bf16.mxu0 %v11133_v61  ;;  %v5328_v47 = vpop.f32.mrf.mxu0  ;;  %v5323_v31 = vadd.f32 %v10454_v29, %v10490_v56  ;;  %v5321_v24 = vadd.f32 %v10446_v39, %v10490_v56 }
 0x406   : > { %5792 = vmatpush1.bf16.msra.mxu1 %v5217_v37  ;;  %v10450_v5 = vpop.f32.mrf.mxu1  ;;  %v5920_v1 = vmax.f32 %v5327_v16, 0.0 }
 0x407   : > { %5793 = vmatprep.subr.bf16.mxu1 %v5202_v50  ;;  %v5330_v35 = vpop.f32.mrf.mxu0  ;;  %v5329_v50 = vadd.f32 %v5328_v47, %v10466_v63  ;;  %v5888_v47 = vmax.f32 %v10494_v12, 0.0  ;;  %v5904_v12 = vmax.f32 %v5321_v24, 0.0 }
 0x408   : > { %v10460_v41 = vpop.f32.mrf.mxu1  ;;  %v5331_v3 = vadd.f32 %v5330_v35, %v10479_v26  ;;  %v10522_v29 = vpop.permute.xlu1 %5224 }
 0x409   : > { %v5332_v60 = vpop.f32.mrf.mxu0 }
 0x40a   : > { %5794 = vmatpush1.bf16.msra.mxu1 %v5201_v23  ;;  %v10464_v49 = vpop.f32.mrf.mxu1  ;;  %v5333_v62 = vadd.f32 %v5332_v60, %v10479_v26 }
 0x40b   : > { %5795 = vmatprep.subr.bf16.mxu1 %v5186_v59  ;;  %v5336_v19 = vpop.f32.mrf.mxu0 }
 0x40c   : > { %7024 = vmatmul.mubr.msk.bf16.gmra.mxu0 %vm5259_vm6, %v10224_v7  ;;  %v10470_v48 = vpop.f32.mrf.mxu1  ;;  %v5337_v40 = vadd.f32 %v5336_v19, %v10444_v58  ;;  %v5937_v23 = vmax.f32 %v5333_v62, 0.0  ;;  %v5905_v62 = vmax.f32 %v5323_v31, 0.0 }
 0x40d   : > { %6088 = vmatprep.mubr.bf16.mxu0 %v11133_v61  ;;  %v5338_v6 = vpop.f32.mrf.mxu0 }
 0x40e   : > { %5796 = vmatpush1.bf16.msra.mxu1 %v5185_v52  ;;  %v10475_v15 = vpop.f32.mrf.mxu1  ;;  %v5339_v2 = vadd.f32 %v5338_v6, %v10444_v58  ;;  %v5952_v57 = vmax.f32 %v5337_v40, 0.0  ;;  %v5921_v52 = vmax.f32 %v5329_v50, 0.0 }
 0x40f   : > { %5797 = vmatprep.subr.bf16.mxu1 %v5170_v14  ;;  %v5340_v32 = vpop.f32.mrf.mxu0  ;;  %v5936_v14 = vmax.f32 %v5331_v3, 0.0  ;;  %v5311_v3 = vadd.f32 %v10417_v21, %v10522_v29  ;;  %v5856_v21 = vmax.f32 %v10508_v45, 0.0 }
 0x410   : > { %v10477_v51 = vpop.f32.mrf.mxu1  ;;  %v5341_v33 = vadd.f32 %v5340_v32, %v10458_v46  ;;  %v6017_v6 = vpack.c.bf16 %v5937_v23, %v5921_v52 }
 0x411   : > { %v5342_v37 = vpop.f32.mrf.mxu0 }
 0x412   : > { %5798 = vmatpush1.bf16.msra.mxu1 %v5169_v25  ;;  %v5401_v22 = vpop.f32.mrf.mxu1  ;;  %v5343_v38 = vadd.f32 %v5342_v37, %v10458_v46  ;;  %v5968_v9 = vmax.f32 %v5341_v33, 0.0  ;;  %v5889_v37 = vmax.f32 %v5319_v4, 0.0  ;;  %v5394_v4 = vadd.f32 %v10470_v48, %v10490_v56 }
 0x413   : > { %v10504_v53 = vpop.f32.mrf.mxu0  ;;  %v5390_v48 = vadd.f32 %v10460_v41, %v10473_v13 }
 0x414   : > { %v5403_v11 = vpop.f32.mrf.mxu1  ;;  %v5969_v30 = vmax.f32 %v5343_v38, 0.0  ;;  %v6032_v54 = vpack.c.bf16 %v5968_v9, %v5952_v57  ;;  %v5400_v9 = vadd.f32 %v10477_v51, %v10466_v63  ;;  %v5386_v51 = vadd.f32 %v10450_v5, %v10522_v29 }
 0x415   : > { %7025 = vmatmul.mubr.msk.bf16.vlgmr.msra.gmra.mxu1 %vm5259_vm6, %v10178_v0  ;;  %v10498_v0 = vadd.f32 %v10409_v20, %v10481_v28  ;;  %v5953_v20 = vmax.f32 %v5339_v2, 0.0  ;;  %v10512_v27 = vpop.f32.mrf.mxu0  ;;  %v5402_v2 = vadd.f32 %v5401_v22, %v10466_v63  ;;  %v5404_v16 = vadd.f32 %v5403_v11, %v10479_v26 }
 0x416   : > { %5825 = vmatprep.mubr.bf16.mxu1 %v11133_v61  ;;  %v5405_v17 = vpop.f32.mrf.mxu1  ;;  %v5922_v45 = vmax.f32 %v5400_v9, 0.0 }
 0x417   : > { %v5857_v44 = vmax.f32 %v10498_v0, 0.0  ;;  %v6033_v35 = vpack.c.bf16 %v5969_v30, %v5953_v20  ;;  %v5406_v60 = vadd.f32 %v5405_v17, %v10479_v26  ;;  %v10527_v19 = vpop.f32.mrf.mxu0  ;;  %v5396_v0 = vadd.f32 %v10475_v15, %v10490_v56 }
 0x418   : > { %v5409_v34 = vpop.f32.mrf.mxu1  ;;  %v6001_v20 = vpack.c.bf16 %v5905_v62, %v5889_v37  ;;  %v5392_v15 = vadd.f32 %v10464_v49, %v10473_v13  ;;  %v5923_v11 = vmax.f32 %v5402_v2, 0.0  ;;  %v5938_v24 = vmax.f32 %v5404_v16, 0.0 }
 0x419   : > { %v5410_v40 = vadd.f32 %v5409_v34, %v10444_v58  ;;  %6064 = vmatprep.subr.bf16.mxu0 %v6033_v35  ;;  %v10535_v33 = vpop.f32.mrf.mxu0  ;;  %v5939_v34 = vmax.f32 %v5406_v60, 0.0  ;;  %v5907_v49 = vmax.f32 %v5396_v0, 0.0  ;;  %v6000_v35 = vpack.c.bf16 %v5904_v12, %v5888_v47 }
 0x41a   : > { %v5411_v59 = vpop.f32.mrf.mxu1  ;;  %6065 = vmatpush1.bf16.msra.mxu0 %v6032_v54  ;;  %v5891_v54 = vmax.f32 %v5392_v15, 0.0  ;;  %v5384_v47 = vadd.f32 %v10439_v43, %v10522_v29  ;;  %v5875_v62 = vmax.f32 %v5386_v51, 0.0  ;;  %v10575_v43 = vld [vmem:[%s10949_s2 + $0x20] sm:$0x3] }
 0x41b   : > { %v5412_v25 = vadd.f32 %v5411_v59, %v10444_v58  ;;  %6066 = vmatprep.subr.bf16.mxu0 %v6017_v6  ;;  %v10542_v57 = vpop.f32.mrf.mxu0  ;;  %v5954_v23 = vmax.f32 %v5410_v40, 0.0  ;;  %v6019_v52 = vpack.c.bf16 %v5939_v34, %v5923_v11 }
 0x41c   : > { %v5413_v55 = vpop.f32.mrf.mxu1  ;;  %v6003_v6 = vpack.c.bf16 %v5907_v49, %v5891_v54  ;;  %v5874_v12 = vmax.f32 %v5384_v47, 0.0 }
 0x41d   : > { %7026 = vmatmul.mubr.msk.bf16.gmra.mxu1 %vm5259_vm6, %v10206_v36  ;;  %v5414_v39 = vadd.f32 %v5413_v55, %v10458_v46  ;;  %v5313_v36 = vadd.f32 %v10422_v42, %v10522_v29  ;;  %v6016_v42 = vpack.c.bf16 %v5936_v14, %v5920_v1  ;;  %v5955_v22 = vmax.f32 %v5412_v25, 0.0  ;;  %v10548_v31 = vpop.f32.mrf.mxu0 }
 0x41e   : > { %5835 = vmatprep.mubr.bf16.mxu1 %v11133_v61  ;;  %v5415_v32 = vpop.f32.mrf.mxu1  ;;  %v5872_v55 = vmax.f32 %v5311_v3, 0.0  ;;  %v5906_v25 = vmax.f32 %v5394_v4, 0.0 }
 0x41f   : > { %v5416_v17 = vadd.f32 %v5415_v32, %v10458_v46  ;;  %v5970_v50 = vmax.f32 %v5414_v39, 0.0  ;;  %v5873_v30 = vmax.f32 %v5313_v36, 0.0  ;;  %6067 = vmatpush1.bf16.msra.mxu0 %v6016_v42  ;;  %v10557_v14 = vpop.f32.mrf.mxu0  ;;  %v6018_v39 = vpack.c.bf16 %v5938_v24, %v5922_v45 }
 0x420   : > { %6068 = vmatprep.subr.bf16.mxu0 %v6001_v20  ;;  %v5984_v32 = vpack.c.bf16 %v5872_v55, %v5856_v21  ;;  %v5380_v36 = vadd.f32 %v10425_v10, %v10481_v28 }
 0x421   : > { %v5971_v38 = vmax.f32 %v5416_v17, 0.0  ;;  %v6034_v1 = vpack.c.bf16 %v5970_v50, %v5954_v23  ;;  %v5985_v60 = vpack.c.bf16 %v5873_v30, %v5857_v44  ;;  %v5468_v5 = vpop.f32.mrf.mxu0  ;;  %v5890_v44 = vmax.f32 %v5390_v48, 0.0 }
 0x422   : > { %v5858_v50 = vmax.f32 %v5380_v36, 0.0 }
 0x423   : > { %v6035_v59 = vpack.c.bf16 %v5971_v38, %v5955_v22  ;;  %6069 = vmatpush1.bf16.msra.mxu0 %v6000_v35  ;;  %v5472_v41 = vpop.f32.mrf.mxu0  ;;  %v6002_v37 = vpack.c.bf16 %v5906_v25, %v5890_v44  ;;  %v5469_v35 = vadd.f32 %v5468_v5, %v10490_v56  ;;  %v5465_v25 = vadd.f32 %v10548_v31, %v10473_v13 }
 0x424   : > { %6070 = vmatprep.subr.bf16.mxu0 %v5985_v60  ;;  %v5986_v34 = vpack.c.bf16 %v5874_v12, %v5858_v50  ;;  %v5473_v54 = vadd.f32 %v5472_v41, %v10466_v63  ;;  %v5459_v5 = vadd.f32 %v10535_v33, %v10522_v29  ;;  %v5463_v41 = vadd.f32 %v10542_v57, %v10473_v13 }
 0x425   : > { %7027 = vmatmul.mubr.msk.bf16.gmra.mxu1 %vm5259_vm6, %v10216_v18  ;;  %6105 = vmatprep.subr.bf16.mxu1 %v6035_v59  ;;  %v5382_v18 = vadd.f32 %v10431_v8, %v10481_v28  ;;  %v10566_v40 = vpop.f32.mrf.mxu1  ;;  %v5474_v8 = vpop.f32.mrf.mxu0  ;;  %v5909_v36 = vmax.f32 %v5469_v35, 0.0  ;;  %v5455_v31 = vadd.f32 %v10512_v27, %v10481_v28  ;;  %v5893_v12 = vmax.f32 %v5465_v25, 0.0 }
 0x426   : > { %5845 = vmatprep.mubr.bf16.mxu1 %v11133_v61  ;;  %6106 = vmatpush1.bf16.msra.mxu1 %v6034_v1  ;;  %v5475_v1 = vadd.f32 %v5474_v8, %v10466_v63  ;;  %v5453_v50 = vadd.f32 %v10504_v53, %v10481_v28  ;;  %v5892_v57 = vmax.f32 %v5463_v41, 0.0 }
 0x427   : > { %6107 = vmatprep.subr.bf16.mxu1 %v6019_v52  ;;  %v10570_v2 = vpop.f32.mrf.mxu1  ;;  %6071 = vmatpush1.bf16.msra.mxu0 %v5984_v32  ;;  %v5859_v17 = vmax.f32 %v5382_v18, 0.0  ;;  %v5476_v10 = vpop.f32.mrf.mxu0  ;;  %v5467_v32 = vadd.f32 %v10557_v14, %v10490_v56  ;;  %v5457_v14 = vadd.f32 %v10527_v19, %v10522_v29 }
 0x428   : > { %v5477_v49 = vadd.f32 %v5476_v10, %v10479_v26 }
 0x429   : > { %v10579_v0 = vpop.f32.mrf.mxu1  ;;  %v5987_v16 = vpack.c.bf16 %v5875_v62, %v5859_v17  ;;  %v5478_v42 = vpop.f32.mrf.mxu0  ;;  %v5908_v10 = vmax.f32 %v5467_v32, 0.0 }
 0x42a   : > { %6108 = vmatpush1.bf16.msra.mxu1 %v6018_v39  ;;  %7029 = vmatmul.mubr.msk.bf16.vlgmr.msra.gmra.mxu0 %vm5259_vm6, %v10575_v43  ;;  %v5479_v11 = vadd.f32 %v5478_v42, %v10479_v26  ;;  %v5925_v39 = vmax.f32 %v5475_v1, 0.0  ;;  %v5940_v62 = vmax.f32 %v5477_v49, 0.0  ;;  %v5877_v42 = vmax.f32 %v5459_v5, 0.0 }
 0x42b   : > { %6109 = vmatprep.subr.bf16.mxu1 %v6003_v6  ;;  %v10583_v3 = vpop.f32.mrf.mxu1  ;;  %6170 = vmatprep.mubr.bf16.mxu0 %v11133_v61  ;;  %v6004_v27 = vpack.c.bf16 %v5908_v10, %v5892_v57 }
 0x42c   : > { %v5941_v55 = vmax.f32 %v5479_v11, 0.0 }
 0x42d   : > { %7028 = vmatmul.mubr.msk.bf16.gmra.mxu1 %vm5259_vm6, %v10224_v7  ;;  %v10587_v22 = vpop.f32.mrf.mxu1  ;;  %v5482_v7 = vpop.f32.mrf.mxu0 }
 0x42e   : > { %6110 = vmatpush1.bf16.msra.mxu1 %v6002_v37  ;;  %6129 = vmatprep.mubr.bf16.mxu1 %v11133_v61  ;;  %v5483_v4 = vadd.f32 %v5482_v7, %v10444_v58  ;;  %v6021_v8 = vpack.c.bf16 %v5941_v55, %v5925_v39  ;;  %v5924_v37 = vmax.f32 %v5473_v54, 0.0 }
 0x42f   : > { %6111 = vmatprep.subr.bf16.mxu1 %v5987_v16  ;;  %v10589_v38 = vpop.f32.mrf.mxu1  ;;  %v5484_v9 = vpop.f32.mrf.mxu0 }
 0x430   : > { %v5485_v59 = vadd.f32 %v5484_v9, %v10444_v58  ;;  %v5956_v18 = vmax.f32 %v5483_v4, 0.0  ;;  %v6020_v33 = vpack.c.bf16 %v5940_v62, %v5924_v37  ;;  %v5861_v9 = vmax.f32 %v5455_v31, 0.0 }
 0x431   : > { %v10591_v23 = vpop.f32.mrf.mxu1  ;;  %v5486_v20 = vpop.f32.mrf.mxu0 }
 0x432   : > { %6112 = vmatpush1.bf16.msra.mxu1 %v5986_v34  ;;  %v5487_v30 = vadd.f32 %v5486_v20, %v10458_v46  ;;  %v5957_v45 = vmax.f32 %v5485_v59, 0.0  ;;  %v6005_v34 = vpack.c.bf16 %v5909_v36, %v5893_v12  ;;  %v5876_v20 = vmax.f32 %v5457_v14, 0.0 }
 0x433   : > { %v10597_v15 = vpop.f32.mrf.mxu1  ;;  %v5488_v21 = vpop.f32.mrf.mxu0  ;;  %v5989_v4 = vpack.c.bf16 %v5877_v42, %v5861_v9 }
 0x434   : > { %v5489_v24 = vadd.f32 %v5488_v21, %v10458_v46  ;;  %v5972_v52 = vmax.f32 %v5487_v30, 0.0  ;;  %v5860_v21 = vmax.f32 %v5453_v50, 0.0 }
 0x435   : > { %7030 = vmatmul.mubr.msk.bf16.vlgmr.msra.gmra.mxu1 %vm5259_vm6, %v10575_v43  ;;  %v5545_v51 = vpop.f32.mrf.mxu1 }
 0x436   : > { %6211 = vmatprep.mubr.bf16.mxu1 %v11133_v61  ;;  %v5973_v60 = vmax.f32 %v5489_v24, 0.0  ;;  %v6036_v44 = vpack.c.bf16 %v5972_v52, %v5956_v18  ;;  %v5988_v52 = vpack.c.bf16 %v5876_v20, %v5860_v21  ;;  %v5546_v25 = vadd.f32 %v5545_v51, %v10466_v63 }
 0x437   : > { %v5547_v48 = vpop.f32.mrf.mxu1  ;;  %v5536_v51 = vadd.f32 %v10587_v22, %v10473_v13  ;;  %v5526_v22 = vadd.f32 %v10566_v40, %v10481_v28 }
 0x438   : > { %v6037_v6 = vpack.c.bf16 %v5973_v60, %v5957_v45  ;;  %v5548_v1 = vadd.f32 %v5547_v48, %v10466_v63  ;;  %v5542_v45 = vadd.f32 %v10597_v15, %v10490_v56  ;;  %v5538_v48 = vadd.f32 %v10589_v38, %v10473_v13 }
 0x439   : > { %v5549_v47 = vpop.f32.mrf.mxu1  ;;  %v5532_v15 = vadd.f32 %v10583_v3, %v10522_v29  ;;  %v5528_v38 = vadd.f32 %v10570_v2, %v10481_v28  ;;  %v5530_v3 = vadd.f32 %v10579_v0, %v10522_v29  ;;  %v5894_v14 = vmax.f32 %v5536_v51, 0.0 }
 0x43a   : > { %6146 = vmatprep.subr.bf16.mxu0 %v6037_v6  ;;  %v5550_v35 = vadd.f32 %v5549_v47, %v10479_v26  ;;  %v5927_v6 = vmax.f32 %v5548_v1, 0.0  ;;  %v5540_v47 = vadd.f32 %v10591_v23, %v10490_v56  ;;  %v5911_v5 = vmax.f32 %v5542_v45, 0.0 }
 0x43b   : > { %v5551_v17 = vpop.f32.mrf.mxu1  ;;  %6147 = vmatpush1.bf16.msra.mxu0 %v6036_v44  ;;  %v5895_v23 = vmax.f32 %v5538_v48, 0.0  ;;  %v5879_v37 = vmax.f32 %v5532_v15, 0.0  ;;  %v5863_v12 = vmax.f32 %v5528_v38, 0.0 }
 0x43c   : > { %6148 = vmatprep.subr.bf16.mxu0 %v6021_v8  ;;  %v5552_v19 = vadd.f32 %v5551_v17, %v10479_v26  ;;  %v5942_v62 = vmax.f32 %v5550_v35, 0.0  ;;  %v5926_v8 = vmax.f32 %v5546_v25, 0.0  ;;  %v5910_v17 = vmax.f32 %v5540_v47, 0.0 }
 0x43d   : > { %v5555_v16 = vpop.f32.mrf.mxu1  ;;  %v6007_v31 = vpack.c.bf16 %v5911_v5, %v5895_v23  ;;  %v5991_v10 = vpack.c.bf16 %v5879_v37, %v5863_v12 }
 0x43e   : > { %v5556_v53 = vadd.f32 %v5555_v16, %v10444_v58  ;;  %v5943_v60 = vmax.f32 %v5552_v19, 0.0  ;;  %v6022_v41 = vpack.c.bf16 %v5942_v62, %v5926_v8  ;;  %v5878_v16 = vmax.f32 %v5530_v3, 0.0 }
 0x43f   : > { %v5557_v7 = vpop.f32.mrf.mxu1  ;;  %6149 = vmatpush1.bf16.msra.mxu0 %v6020_v33  ;;  %v6006_v2 = vpack.c.bf16 %v5910_v17, %v5894_v14  ;;  %v5862_v33 = vmax.f32 %v5526_v22, 0.0 }
 0x440   : > { %6150 = vmatprep.subr.bf16.mxu0 %v6005_v34  ;;  %v5558_v11 = vadd.f32 %v5557_v7, %v10444_v58  ;;  %v5958_v39 = vmax.f32 %v5556_v53, 0.0  ;;  %v6023_v36 = vpack.c.bf16 %v5943_v60, %v5927_v6 }
 0x441   : > { %v5559_v30 = vpop.f32.mrf.mxu1  ;;  %v5990_v42 = vpack.c.bf16 %v5878_v16, %v5862_v33 }
 0x442   : > { %v5560_v59 = vadd.f32 %v5559_v30, %v10458_v46  ;;  %v5959_v54 = vmax.f32 %v5558_v11, 0.0 }
 0x443   : > { %v5561_v24 = vpop.f32.mrf.mxu1  ;;  %6151 = vmatpush1.bf16.msra.mxu0 %v6004_v27 }
 0x444   : > { %v5562_v49 = vadd.f32 %v5561_v24, %v10458_v46  ;;  %v5974_v55 = vmax.f32 %v5560_v59, 0.0  ;;  %6152 = vmatprep.subr.bf16.mxu0 %v5989_v4 }
 0x446   : > { %v5975_v18 = vmax.f32 %v5562_v49, 0.0  ;;  %v6038_v44 = vpack.c.bf16 %v5974_v55, %v5958_v39 }
 0x447   : > { %6153 = vmatpush1.bf16.msra.mxu0 %v5988_v52 }
 0x448   : > { %v6039_v32 = vpack.c.bf16 %v5975_v18, %v5959_v54 }
 0x44a   : > { %6187 = vmatprep.subr.bf16.mxu1 %v6039_v32  ;;  %7031 = vmatmul.mubr.msk.bf16.vlgmr.msra.gmra.mxu0 %vm5259_vm6, %v10575_v43 }
 0x44b   : > { %6188 = vmatpush1.bf16.msra.mxu1 %v6038_v44  ;;  %6252 = vmatprep.mubr.bf16.mxu0 %v11133_v61 }
 0x44c   : > { %6189 = vmatprep.subr.bf16.mxu1 %v6023_v36 }
 0x44f   : > { %6190 = vmatpush1.bf16.msra.mxu1 %v6022_v41 }
 0x450   : > { %6191 = vmatprep.subr.bf16.mxu1 %v6007_v31 }
 0x453   : > { %6192 = vmatpush1.bf16.msra.mxu1 %v6006_v2 }
 0x454   : > { %6193 = vmatprep.subr.bf16.mxu1 %v5991_v10 }
 0x457   : > { %v5598_v50 = vpop.f32.mrf.mxu0  ;;  %6194 = vmatpush1.bf16.msra.mxu1 %v5990_v42 }
 0x458   : > { %v5599_v42 = vadd.f32 %v5598_v50, %v10481_v28  ;;  %v4288_v50 = vld [vmem:[%s10950_s3] sm:$0xf] }
 0x459   : > { %v5600_v0 = vpop.f32.mrf.mxu0 }
 0x45a   : > { %7032 = vmatmul.mubr.msk.bf16.vlgmr.msra.gmra.mxu1 %vm5259_vm6, %v10575_v43  ;;  %v5601_v37 = vadd.f32 %v5600_v0, %v10481_v28 }
 0x45b   : > { %v5602_v34 = vpop.f32.mrf.mxu0  ;;  %6293 = vmatprep.mubr.bf16.mxu1 %v11133_v61 }
 0x45c   : > { %v5603_v14 = vadd.f32 %v5602_v34, %v10522_v29 }
 0x45d   : > { %v5604_v7 = vpop.f32.mrf.mxu0 }
 0x45e   : > { %v5605_v8 = vadd.f32 %v5604_v7, %v10522_v29  ;;  %v5880_v0 = vmax.f32 %v5603_v14, 0.0 }
 0x45f   : > { %v5608_v40 = vpop.f32.mrf.mxu0 }
 0x460   : > { %v5609_v17 = vadd.f32 %v5608_v40, %v10473_v13  ;;  %v5881_v2 = vmax.f32 %v5605_v8, 0.0  ;;  %v5865_v40 = vmax.f32 %v5601_v37, 0.0 }
 0x461   : > { %v5610_v57 = vpop.f32.mrf.mxu0 }
 0x462   : > { %v5611_v62 = vadd.f32 %v5610_v57, %v10473_v13  ;;  %v5896_v7 = vmax.f32 %v5609_v17, 0.0 }
 0x463   : > { %v5612_v9 = vpop.f32.mrf.mxu0 }
 0x464   : > { %v5613_v5 = vadd.f32 %v5612_v9, %v10490_v56  ;;  %v5897_v31 = vmax.f32 %v5611_v62, 0.0 }
 0x465   : > { %v5614_v20 = vpop.f32.mrf.mxu0 }
 0x466   : > { %v5615_v18 = vadd.f32 %v5614_v20, %v10490_v56  ;;  %v5912_v12 = vmax.f32 %v5613_v5, 0.0  ;;  %v5993_v20 = vpack.c.bf16 %v5881_v2, %v5865_v40 }
 0x467   : > { %v5618_v30 = vpop.f32.mrf.mxu0 }
 0x468   : > { %v5619_v6 = vadd.f32 %v5618_v30, %v10466_v63  ;;  %v5913_v23 = vmax.f32 %v5615_v18, 0.0  ;;  %v6008_v9 = vpack.c.bf16 %v5912_v12, %v5896_v7 }
 0x469   : > { %v5620_v27 = vpop.f32.mrf.mxu0 }
 0x46a   : > { %v5621_v35 = vadd.f32 %v5620_v27, %v10466_v63  ;;  %v5928_v41 = vmax.f32 %v5619_v6, 0.0  ;;  %v6009_v33 = vpack.c.bf16 %v5913_v23, %v5897_v31  ;;  %v5864_v27 = vmax.f32 %v5599_v42, 0.0 }
 0x46b   : > { %v5622_v19 = vpop.f32.mrf.mxu0 }
 0x46c   : > { %v5623_v45 = vadd.f32 %v5622_v19, %v10479_v26  ;;  %v5929_v44 = vmax.f32 %v5621_v35, 0.0  ;;  %v5992_v19 = vpack.c.bf16 %v5880_v0, %v5864_v27 }
 0x46d   : > { %v5624_v11 = vpop.f32.mrf.mxu0 }
 0x46e   : > { %v5625_v53 = vadd.f32 %v5624_v11, %v10479_v26  ;;  %v5944_v36 = vmax.f32 %v5623_v45, 0.0 }
 0x46f   : > { %v5628_v59 = vpop.f32.mrf.mxu0 }
 0x470   : > { %v5629_v49 = vadd.f32 %v5628_v59, %v10444_v58  ;;  %v5945_v25 = vmax.f32 %v5625_v53, 0.0  ;;  %v6024_v16 = vpack.c.bf16 %v5944_v36, %v5928_v41 }
 0x471   : > { %v5630_v21 = vpop.f32.mrf.mxu0 }
 0x472   : > { %v5631_v24 = vadd.f32 %v5630_v21, %v10444_v58  ;;  %v5960_v32 = vmax.f32 %v5629_v49, 0.0  ;;  %v6025_v3 = vpack.c.bf16 %v5945_v25, %v5929_v44  ;;  %v7432_v21 = vmov 2  }
 0x473   : > { %v5632_v4 = vpop.f32.mrf.mxu0  ;;  %7196 = vset.pattern.permute.xlu0 %v7432_v21  ;;  %v7434_v49 = vmov 3  }
 0x474   : > { %v5633_v1 = vadd.f32 %v5632_v4, %v10458_v46  ;;  %v5961_v39 = vmax.f32 %v5631_v24, 0.0  ;;  %6050 = vperm.xlu0 %7196, %v4288_v50   ;;  %v7433_v4 = vmov 4   ;;  %v7358_v24 = vld [vmem:[%s10950_s3] sm:$0xff] }
 0x475   : > { %v5634_v52 = vpop.f32.mrf.mxu0  ;;  %7197 = vset.pattern.permute.xlu1 %v7433_v4 }
 0x476   : > { %v5635_v55 = vadd.f32 %v5634_v52, %v10458_v46  ;;  %v5976_v60 = vmax.f32 %v5633_v1, 0.0  ;;  %6541 = vperm.xlu1 %7197, %v7358_v24  }
 0x478   : > { %v10658_v54 = vpop.f32.mrf.mxu1  ;;  %v5977_v48 = vmax.f32 %v5635_v55, 0.0  ;;  %v6040_v51 = vpack.c.bf16 %v5976_v60, %v5960_v32  ;;  %7199 = vset.pattern.permute.xlu0 %v7434_v49 }
 0x47a   : > { %v10662_v47 = vpop.f32.mrf.mxu1  ;;  %v6041_v15 = vpack.c.bf16 %v5977_v48, %v5961_v39  ;;  %7198 = vset.pattern.permute.xlu1 %v7434_v49 }
 0x47b   : > { %6701 = vperm.xlu1 %7198, %v7358_v24   ;;  %v5674_v42 = vadd.f32 %v10662_v47, %v10481_v28 }
 0x47c   : > { %v10667_v38 = vpop.f32.mrf.mxu1  ;;  %6228 = vmatprep.subr.bf16.mxu0 %v6041_v15 }
 0x47d   : > { %6229 = vmatpush1.bf16.msra.mxu0 %v6040_v51  ;;  %v5676_v40 = vadd.f32 %v10667_v38, %v10522_v29 }
 0x47e   : > { %v10671_v22 = vpop.f32.mrf.mxu1  ;;  %6230 = vmatprep.subr.bf16.mxu0 %v6025_v3 }
 0x47f   : > { %v5678_v14 = vadd.f32 %v10671_v22, %v10522_v29  ;;  %v5882_v27 = vmax.f32 %v5676_v40, 0.0 }
 0x480   : > { %v10674_v10 = vpop.f32.mrf.mxu1 }
 0x481   : > { %6231 = vmatpush1.bf16.msra.mxu0 %v6024_v16  ;;  %v5682_v2 = vadd.f32 %v10674_v10, %v10473_v13  ;;  %v5867_v10 = vmax.f32 %v5674_v42, 0.0 }
 0x482   : > { %v5683_v57 = vpop.f32.mrf.mxu1  ;;  %6232 = vmatprep.subr.bf16.mxu0 %v6009_v33 }
 0x483   : > { %v5684_v23 = vadd.f32 %v5683_v57, %v10473_v13 }
 0x484   : > { %v5685_v30 = vpop.f32.mrf.mxu1 }
 0x485   : > { %6233 = vmatpush1.bf16.msra.mxu0 %v6008_v9  ;;  %v5686_v41 = vadd.f32 %v5685_v30, %v10490_v56  ;;  %v5899_v7 = vmax.f32 %v5684_v23, 0.0  ;;  %v5883_v9 = vmax.f32 %v5678_v14, 0.0  ;;  %v5898_v30 = vmax.f32 %v5682_v2, 0.0 }
 0x486   : > { %v5687_v34 = vpop.f32.mrf.mxu1  ;;  %6234 = vmatprep.subr.bf16.mxu0 %v5993_v20  ;;  %v5672_v20 = vadd.f32 %v10658_v54, %v10481_v28 }
 0x487   : > { %v5688_v44 = vadd.f32 %v5687_v34, %v10490_v56  ;;  %v5914_v57 = vmax.f32 %v5686_v41, 0.0 }
 0x488   : > { %v5691_v11 = vpop.f32.mrf.mxu1  ;;  %v5866_v47 = vmax.f32 %v5672_v20, 0.0 }
 0x489   : > { %6235 = vmatpush1.bf16.msra.mxu0 %v5992_v19  ;;  %v5692_v51 = vadd.f32 %v5691_v11, %v10466_v63  ;;  %v5915_v12 = vmax.f32 %v5688_v44, 0.0  ;;  %v6010_v34 = vpack.c.bf16 %v5914_v57, %v5898_v30  ;;  %v5995_v19 = vpack.c.bf16 %v5883_v9, %v5867_v10 }
 0x48a   : > { %v5693_v59 = vpop.f32.mrf.mxu1  ;;  %v5994_v11 = vpack.c.bf16 %v5882_v27, %v5866_v47 }
 0x48b   : > { %v5694_v48 = vadd.f32 %v5693_v59, %v10466_v63  ;;  %v5930_v33 = vmax.f32 %v5692_v51, 0.0  ;;  %v6011_v22 = vpack.c.bf16 %v5915_v12, %v5899_v7 }
 0x48c   : > { %v5695_v53 = vpop.f32.mrf.mxu1  ;;  %7033 = vmatmul.mubr.msk.bf16.vlgmr.msra.gmra.mxu0 %vm5259_vm6, %v10575_v43 }
 0x48d   : > { %6334 = vmatprep.mubr.bf16.mxu0 %v11133_v61  ;;  %v5696_v32 = vadd.f32 %v5695_v53, %v10479_v26  ;;  %v5931_v3 = vmax.f32 %v5694_v48, 0.0 }
 0x48e   : > { %v5697_v1 = vpop.f32.mrf.mxu1 }
 0x48f   : > { %v5698_v45 = vadd.f32 %v5697_v1, %v10479_v26  ;;  %v5946_v37 = vmax.f32 %v5696_v32, 0.0 }
 0x490   : > { %v5701_v52 = vpop.f32.mrf.mxu1 }
 0x491   : > { %v5702_v25 = vadd.f32 %v5701_v52, %v10444_v58  ;;  %v5947_v15 = vmax.f32 %v5698_v45, 0.0  ;;  %v6026_v0 = vpack.c.bf16 %v5946_v37, %v5930_v33 }
 0x492   : > { %v5703_v35 = vpop.f32.mrf.mxu1 }
 0x493   : > { %v5704_v60 = vadd.f32 %v5703_v35, %v10444_v58  ;;  %v5962_v8 = vmax.f32 %v5702_v25, 0.0  ;;  %v6027_v16 = vpack.c.bf16 %v5947_v15, %v5931_v3 }
 0x494   : > { %v5705_v55 = vpop.f32.mrf.mxu1 }
 0x495   : > { %v5706_v18 = vadd.f32 %v5705_v55, %v10458_v46  ;;  %v5963_v5 = vmax.f32 %v5704_v60, 0.0 }
 0x496   : > { %v5707_v39 = vpop.f32.mrf.mxu1 }
 0x497   : > { %v5708_v6 = vadd.f32 %v5707_v39, %v10458_v46  ;;  %v5978_v62 = vmax.f32 %v5706_v18, 0.0 }
 0x499   : > { %v5979_v36 = vmax.f32 %v5708_v6, 0.0  ;;  %v6042_v31 = vpack.c.bf16 %v5978_v62, %v5962_v8 }
 0x49b   : > { %v6043_v17 = vpack.c.bf16 %v5979_v36, %v5963_v5 }
 0x49d   : > { %6269 = vmatprep.subr.bf16.mxu1 %v6043_v17 }
 0x49e   : > { %6270 = vmatpush1.bf16.msra.mxu1 %v6042_v31 }
 0x49f   : > { %6271 = vmatprep.subr.bf16.mxu1 %v6027_v16 }
 0x4a2   : > { %6272 = vmatpush1.bf16.msra.mxu1 %v6026_v0 }
 0x4a3   : > { %6273 = vmatprep.subr.bf16.mxu1 %v6011_v22 }
 0x4a6   : > { %6274 = vmatpush1.bf16.msra.mxu1 %v6010_v34 }
 0x4a7   : > { %6275 = vmatprep.subr.bf16.mxu1 %v5995_v19 }
 0x4aa   : > { %6276 = vmatpush1.bf16.msra.mxu1 %v5994_v11 }
 0x4ad   : > { %7034 = vmatmul.mubr.msk.bf16.vlgmr.msra.gmra.mxu1 %vm5259_vm6, %v10575_v43 }
 0x4ae   : > { %6375 = vmatprep.mubr.bf16.mxu1 %v11133_v61 }
 0x4b4   : > { %v5744_v38 = vpop.f32.mrf.mxu0 }
 0x4b5   : > { %v5745_v47 = vadd.f32 %v5744_v38, %v10481_v28 }
 0x4b6   : > { %v5746_v50 = vpop.f32.mrf.mxu0 }
 0x4b7   : > { %v5747_v0 = vadd.f32 %v5746_v50, %v10481_v28 }
 0x4b8   : > { %v5748_v54 = vpop.f32.mrf.mxu0 }
 0x4b9   : > { %v5749_v20 = vadd.f32 %v5748_v54, %v10522_v29 }
 0x4ba   : > { %v5750_v59 = vpop.f32.mrf.mxu0 }
 0x4bb   : > { %v5751_v2 = vadd.f32 %v5750_v59, %v10522_v29  ;;  %v5869_v59 = vmax.f32 %v5747_v0, 0.0 }
 0x4bc   : > { %v5754_v21 = vpop.f32.mrf.mxu0 }
 0x4bd   : > { %v5755_v40 = vadd.f32 %v5754_v21, %v10473_v13  ;;  %v5885_v27 = vmax.f32 %v5751_v2, 0.0 }
 0x4be   : > { %v5756_v4 = vpop.f32.mrf.mxu0 }
 0x4bf   : > { %v5757_v41 = vadd.f32 %v5756_v4, %v10473_v13  ;;  %v5900_v11 = vmax.f32 %v5755_v40, 0.0  ;;  %v5884_v4 = vmax.f32 %v5749_v20, 0.0  ;;  %v5997_v50 = vpack.c.bf16 %v5885_v27, %v5869_v59 }
 0x4c0   : > { %v5758_v53 = vpop.f32.mrf.mxu0 }
 0x4c1   : > { %v5759_v14 = vadd.f32 %v5758_v53, %v10490_v56  ;;  %v5901_v9 = vmax.f32 %v5757_v41, 0.0 }
 0x4c2   : > { %v5760_v24 = vpop.f32.mrf.mxu0 }
 0x4c3   : > { %v5761_v5 = vadd.f32 %v5760_v24, %v10490_v56  ;;  %v5916_v30 = vmax.f32 %v5759_v14, 0.0 }
 0x4c4   : > { %v5764_v1 = vpop.f32.mrf.mxu0 }
 0x4c5   : > { %v5765_v23 = vadd.f32 %v5764_v1, %v10466_v63  ;;  %v5917_v42 = vmax.f32 %v5761_v5, 0.0  ;;  %v6012_v53 = vpack.c.bf16 %v5916_v30, %v5900_v11  ;;  %v5868_v1 = vmax.f32 %v5745_v47, 0.0 }
 0x4c6   : > { %v5766_v49 = vpop.f32.mrf.mxu0 }
 0x4c7   : > { %v5767_v6 = vadd.f32 %v5766_v49, %v10466_v63  ;;  %v5932_v57 = vmax.f32 %v5765_v23, 0.0  ;;  %v6013_v19 = vpack.c.bf16 %v5917_v42, %v5901_v9  ;;  %v5996_v54 = vpack.c.bf16 %v5884_v4, %v5868_v1 }
 0x4c8   : > { %v5768_v52 = vpop.f32.mrf.mxu0 }
 0x4c9   : > { %v5769_v62 = vadd.f32 %v5768_v52, %v10479_v26  ;;  %v5933_v37 = vmax.f32 %v5767_v6, 0.0 }
 0x4ca   : > { %v5770_v35 = vpop.f32.mrf.mxu0 }
 0x4cb   : > { %v5771_v18 = vadd.f32 %v5770_v35, %v10479_v26  ;;  %v5948_v12 = vmax.f32 %v5769_v62, 0.0 }
 0x4cc   : > { %v5774_v55 = vpop.f32.mrf.mxu0 }
 0x4cd   : > { %v5775_v39 = vadd.f32 %v5774_v55, %v10444_v58  ;;  %v5949_v36 = vmax.f32 %v5771_v18, 0.0  ;;  %v6028_v10 = vpack.c.bf16 %v5948_v12, %v5932_v57 }
 0x4ce   : > { %v5776_v45 = vpop.f32.mrf.mxu0 }
 0x4cf   : > { %v5777_v25 = vadd.f32 %v5776_v45, %v10444_v58  ;;  %v5964_v3 = vmax.f32 %v5775_v39, 0.0  ;;  %v6029_v7 = vpack.c.bf16 %v5949_v36, %v5933_v37 }
 0x4d0   : > { %v5778_v60 = vpop.f32.mrf.mxu0 }
 0x4d1   : > { %v5779_v61 = vadd.f32 %v5778_v60, %v10458_v46  ;;  %v5965_v51 = vmax.f32 %v5777_v25, 0.0 }
 0x4d2   : > { %v5780_v48 = vpop.f32.mrf.mxu0 }
 0x4d3   : > { %v5781_v32 = vadd.f32 %v5780_v48, %v10458_v46  ;;  %v5980_v44 = vmax.f32 %v5779_v61, 0.0 }
 0x4d5   : > { %v10717_v15 = vpop.f32.mrf.mxu1  ;;  %v5981_v8 = vmax.f32 %v5781_v32, 0.0  ;;  %v6044_v16 = vpack.c.bf16 %v5980_v44, %v5964_v3 }
 0x4d7   : > { %v10721_v17 = vpop.f32.mrf.mxu1  ;;  %v6045_v31 = vpack.c.bf16 %v5981_v8, %v5965_v51 }
 0x4d8   : > { %v5820_v27 = vadd.f32 %v10721_v17, %v10481_v28 }
 0x4d9   : > { %v10726_v33 = vpop.f32.mrf.mxu1  ;;  %6310 = vmatprep.subr.bf16.mxu0 %v6045_v31 }
 0x4da   : > { %6311 = vmatpush1.bf16.msra.mxu0 %v6044_v16 }
 0x4db   : > { %v5823_v22 = vpop.f32.mrf.mxu1  ;;  %6312 = vmatprep.subr.bf16.mxu0 %v6029_v7 }
 0x4dc   : > { %v5824_v0 = vadd.f32 %v5823_v22, %v10522_v29 }
 0x4dd   : > { %v5827_v34 = vpop.f32.mrf.mxu1 }
 0x4de   : > { %6313 = vmatpush1.bf16.msra.mxu0 %v6028_v10  ;;  %v5828_v30 = vadd.f32 %v5827_v34, %v10473_v13  ;;  %v5887_v59 = vmax.f32 %v5824_v0, 0.0 }
 0x4df   : > { %v5829_v21 = vpop.f32.mrf.mxu1  ;;  %6314 = vmatprep.subr.bf16.mxu0 %v6013_v19 }
 0x4e0   : > { %v5902_v4 = vmax.f32 %v5828_v30, 0.0 }
 0x4e1   : > { %v5831_v24 = vpop.f32.mrf.mxu1 }
 0x4e2   : > { %6315 = vmatpush1.bf16.msra.mxu0 %v6012_v53 }
 0x4e3   : > { %v5833_v49 = vpop.f32.mrf.mxu1  ;;  %6316 = vmatprep.subr.bf16.mxu0 %v5997_v50 }
 0x4e4   : > { %v5834_v41 = vadd.f32 %v5833_v49, %v10490_v56 }
 0x4e5   : > { %v5837_v52 = vpop.f32.mrf.mxu1 }
 0x4e6   : > { %6317 = vmatpush1.bf16.msra.mxu0 %v5996_v54  ;;  %v5838_v12 = vadd.f32 %v5837_v52, %v10466_v63  ;;  %v5919_v9 = vmax.f32 %v5834_v41, 0.0 }
 0x4e7   : > { %v5839_v35 = vpop.f32.mrf.mxu1 }
 0x4e8   : > { %v5840_v5 = vadd.f32 %v5839_v35, %v10466_v63  ;;  %v5934_v10 = vmax.f32 %v5838_v12, 0.0 }
 0x4e9   : > { %v5841_v55 = vpop.f32.mrf.mxu1  ;;  %7035 = vmatmul.mubr.msk.bf16.vlgmr.msra.gmra.mxu0 %vm5259_vm6, %v10575_v43 }
 0x4ea   : > { %v6090_v60 = vpop.f32.mrf.mxu0  ;;  %v5842_v8 = vadd.f32 %v5841_v55, %v10479_v26  ;;  %v5935_v42 = vmax.f32 %v5840_v5, 0.0 }
 0x4eb   : > { %v5843_v38 = vpop.f32.mrf.mxu1 }
 0x4ec   : > { %v6092_v25 = vpop.f32.mrf.mxu0  ;;  %v5844_v39 = vadd.f32 %v5843_v38, %v10479_v26  ;;  %v5950_v40 = vmax.f32 %v5842_v8, 0.0 }
 0x4ed   : > { %v5847_v45 = vpop.f32.mrf.mxu1 }
 0x4ee   : > { %v6094_v32 = vpop.f32.mrf.mxu0  ;;  %v5848_v62 = vadd.f32 %v5847_v45, %v10444_v58  ;;  %v5951_v37 = vmax.f32 %v5844_v39, 0.0  ;;  %v6030_v11 = vpack.c.bf16 %v5950_v40, %v5934_v10 }
 0x4ef   : > { %v5849_v18 = vpop.f32.mrf.mxu1 }
 0x4f0   : > { %v5850_v48 = vadd.f32 %v5849_v18, %v10444_v58  ;;  %v6095_v51 = vpop.f32.mrf.mxu0  ;;  %v5966_v16 = vmax.f32 %v5848_v62, 0.0  ;;  %v5830_v58 = vadd.f32 %v5829_v21, %v10473_v13  ;;  %v6031_v20 = vpack.c.bf16 %v5951_v37, %v5935_v42 }
 0x4f1   : > { %v5851_v61 = vpop.f32.mrf.mxu1  ;;  %v5818_v21 = vadd.f32 %v10717_v15, %v10481_v28  ;;  %v5871_v13 = vmax.f32 %v5820_v27, 0.0 }
 0x4f2   : > { %v5852_v6 = vadd.f32 %v5851_v61, %v10458_v46  ;;  %v5967_v31 = vmax.f32 %v5850_v48, 0.0  ;;  %v5903_v19 = vmax.f32 %v5830_v58, 0.0 }
 0x4f3   : > { %v5853_v44 = vpop.f32.mrf.mxu1  ;;  %v5999_v50 = vpack.c.bf16 %v5887_v59, %v5871_v13  ;;  %v5870_v17 = vmax.f32 %v5818_v21, 0.0 }
 0x4f4   : > { %v5854_v36 = vadd.f32 %v5853_v44, %v10458_v46  ;;  %v5982_v23 = vmax.f32 %v5852_v6, 0.0  ;;  %v5832_v46 = vadd.f32 %v5831_v24, %v10490_v56  ;;  %v5822_v56 = vadd.f32 %v10726_v33, %v10522_v29  ;;  %v6051_v29 = vpop.permute.xlu0 %6050 }
 0x4f5   : > { %v6131_v3 = vpop.f32.mrf.mxu1  ;;  %v6015_v22 = vpack.c.bf16 %v5919_v9, %v5903_v19  ;;  %v10753_v33 = vadd.f32 %v6090_v60, %v6051_v29  ;;  %v10757_v49 = vadd.f32 %v6092_v25, %v6051_v29 }
 0x4f6   : > { %v5983_v14 = vmax.f32 %v5854_v36, 0.0  ;;  %v6046_v57 = vpack.c.bf16 %v5982_v23, %v5966_v16  ;;  %v5918_v47 = vmax.f32 %v5832_v46, 0.0  ;;  %v5886_v34 = vmax.f32 %v5822_v56, 0.0 }
 0x4f7   : > { %v6133_v2 = vpop.f32.mrf.mxu1  ;;  %v10755_v1 = vadd.f32 %v6131_v3, %v6051_v29  ;;  %v6482_v15 = vrot.slane %v10753_v33, 3  ;;  %v6483_v52 = vrot.slane %v10757_v49, 3 }
 0x4f8   : > { %v6047_v7 = vpack.c.bf16 %v5983_v14, %v5967_v31  ;;  %v6014_v53 = vpack.c.bf16 %v5918_v47, %v5902_v4  ;;  %v5998_v24 = vpack.c.bf16 %v5886_v34, %v5870_v17  ;;  %v10759_v28 = vadd.f32 %v6133_v2, %v6051_v29 }
 0x4f9   : > { %v6135_v26 = vpop.f32.mrf.mxu1  ;;  %v6488_v54 = vrot.slane %v10755_v1, 2 }
 0x4fa   : > { %6351 = vmatprep.subr.bf16.mxu1 %v6047_v7  ;;  %v6489_v35 = vrot.slane %v10759_v28, 2 }
 0x4fb   : > { %6352 = vmatpush1.bf16.msra.mxu1 %v6046_v57  ;;  %v6136_v63 = vpop.f32.mrf.mxu1  ;;  %v6522_v55 = vsel %vm11298_vm14, %v6482_v15, %v6488_v54  ;;  %vm11313_vm14 = vmmov %vm11301_vm5 }
 0x4fc   : > { %6353 = vmatprep.subr.bf16.mxu1 %v6031_v20  ;;  %v6523_v38 = vsel %vm11299_vm2, %v6483_v52, %v6489_v35 }
 0x4ff   : > { %6354 = vmatpush1.bf16.msra.mxu1 %v6030_v11 }
 0x500   : > { %6355 = vmatprep.subr.bf16.mxu1 %v6015_v22 }
 0x503   : > { %6356 = vmatpush1.bf16.msra.mxu1 %v6014_v53 }
 0x504   : > { %6357 = vmatprep.subr.bf16.mxu1 %v5999_v50 }
 0x507   : > { %6358 = vmatpush1.bf16.msra.mxu1 %v5998_v24 }
 0x50a   : > { %7036 = vmatmul.mubr.msk.bf16.vlgmr.msra.gmra.mxu1 %vm5259_vm6, %v10575_v43  ;;  %v6172_v45 = vpop.f32.mrf.mxu0  ;;  %vm11311_vm6 = vmmov %vm11299_vm2 }
 0x50b   : > { %v10769_v60 = vadd.f32 %v6172_v45, %v6051_v29  ;;  %vm11314_vm2 = vmmov %vm11301_vm5 }
 0x50c   : > { %v6174_v18 = vpop.f32.mrf.mxu0 }
 0x50d   : > { %v6494_v25 = vrot.slane %v10769_v60, 1  ;;  %v10772_v61 = vadd.f32 %v6174_v18, %v6051_v29 }
 0x50e   : > { %v6176_v43 = vpop.f32.mrf.mxu0 }
 0x50f   : > { %v6524_v39 = vsel %vm11300_vm9, %v6522_v55, %v6494_v25  ;;  %v6495_v48 = vrot.slane %v10772_v61, 1  ;;  %vm11315_vm9 = vmmov %vm11305_vm12 }
 0x510   : > { %v6177_v6 = vpop.f32.mrf.mxu0 }
 0x511   : > { %v6525_v32 = vsel %vm11301_vm5, %v6523_v38, %v6495_v48  ;;  %v6542_v38 = vpop.permute.xlu1 %6541  ;;  %vm11316_vm5 = vmmov %vm11315_vm9 }
 0x51a   : > { %v6213_v62 = vpop.f32.mrf.mxu1 }
 0x51b   : > { %v10777_v44 = vadd.f32 %v6213_v62, %v6051_v29 }
 0x51c   : > { %v6215_v5 = vpop.f32.mrf.mxu1 }
 0x51d   : > { %v6526_v36 = vsel %vm11302_vm3, %v6524_v39, %v10777_v44  ;;  %v10781_v51 = vadd.f32 %v6215_v5, %v6051_v29  ;;  %vm11317_vm3 = vmmov %vm11312_vm4 }
 0x51e   : > { %v6217_v8 = vpop.f32.mrf.mxu1 }
 0x51f   : > { %v6527_v23 = vsel %vm11303_vm8, %v6525_v32, %v10781_v51  ;;  %vm11318_vm8 = vmmov %vm11317_vm3 }
 0x520   : > { %v6218_v3 = vpop.f32.mrf.mxu1 }
 0x54c   : > { %v6254_v41 = vpop.f32.mrf.mxu0 }
 0x54d   : > { %v10785_v37 = vadd.f32 %v6254_v41, %v6051_v29 }
 0x54e   : > { %v6256_v31 = vpop.f32.mrf.mxu0 }
 0x54f   : > { %v6500_v14 = vrot.slane %v10785_v37, 7  ;;  %v10788_v12 = vadd.f32 %v6256_v31, %v6051_v29  ;;  %v7037_v31 = vmul.f32 -1.442695, %v10753_v33  ;;  %v7043_v33 = vmul.f32 -1.442695, %v10777_v44 }
 0x550   : > { %v6258_v16 = vpop.f32.mrf.mxu0 }
 0x551   : > { %v6528_v2 = vsel %vm11304_vm15, %v6526_v36, %v6500_v14  ;;  %v6501_v58 = vrot.slane %v10788_v12, 7  ;;  %v7039_v14 = vmul.f32 -1.442695, %v10755_v1  ;;  %vm11319_vm15 = vcmask 1042432  }
 0x552   : > { %v6259_v42 = vpop.f32.mrf.mxu0 }
 0x553   : > { %v6529_v7 = vsel %vm11305_vm12, %v6527_v23, %v6501_v58  ;;  %vm11320_vm12 = vmmov %vm11319_vm15 }
 0x56d   : > { %v6295_v46 = vpop.f32.mrf.mxu1 }
 0x56e   : > { %v10793_v40 = vadd.f32 %v6295_v46, %v6051_v29  ;;  %v7041_v46 = vmul.f32 -1.442695, %v10769_v60  ;;  %v7046_v60 = vmul.f32 -1.442695, %v10788_v12 }
 0x56f   : > { %v6297_v57 = vpop.f32.mrf.mxu1 }
 0x570   : > { %v6506_v26 = vrot.slane %v10793_v40, 6  ;;  %v10796_v0 = vadd.f32 %v6297_v57, %v6051_v29 }
 0x571   : > { %v6299_v9 = vpop.f32.mrf.mxu1 }
 0x572   : > { %v6530_v20 = vsel %vm11306_vm1, %v6528_v2, %v6506_v26  ;;  %v6507_v30 = vrot.slane %v10796_v0, 6  ;;  %v7038_v2 = vmul.f32 -1.442695, %v10757_v49  ;;  %v7042_v9 = vmul.f32 -1.442695, %v10772_v61  ;;  %vm11321_vm1 = vmmov %vm11316_vm5 }
 0x573   : > { %v6300_v10 = vpop.f32.mrf.mxu1  ;;  %v7044_v49 = vmul.f32 -1.442695, %v10781_v51  ;;  %v7047_v61 = vmul.f32 -1.442695, %v10793_v40  ;;  %v7048_v44 = vmul.f32 -1.442695, %v10796_v0 }
 0x574   : > { %v6531_v63 = vsel %vm11307_vm11, %v6529_v7, %v6507_v30  ;;  %v7040_v7 = vmul.f32 -1.442695, %v10759_v28  ;;  %v7045_v10 = vmul.f32 -1.442695, %v10785_v37  ;;  %vm11322_vm11 = vmmov %vm11321_vm1 }
 0x5a9   : > { %v6336_v27 = vpop.f32.mrf.mxu0 }
 0x5aa   : > { %v10801_v11 = vadd.f32 %v6336_v27, %v6051_v29 }
 0x5ab   : > { %v6338_v19 = vpop.f32.mrf.mxu0 }
 0x5ac   : > { %v10803_v59 = vadd.f32 %v6338_v19, %v6051_v29  ;;  %v6512_v22 = vrot.slane %v10801_v11, 5 }
 0x5ad   : > { %v6340_v56 = vpop.f32.mrf.mxu0 }
 0x5ae   : > { %v6513_v13 = vrot.slane %v10803_v59, 5  ;;  %v6532_v17 = vsel %vm11289_vm0, %v6530_v20, %v6512_v22  ;;  %v7049_v56 = vmul.f32 -1.442695, %v10801_v11  ;;  %vm11323_vm0 = vcmask 1044480  }
 0x5af   : > { %v6341_v47 = vpop.f32.mrf.mxu0 }
 0x5b0   : > { %v6533_v52 = vsel %vm11309_vm7, %v6531_v63, %v6513_v13  ;;  %v7050_v47 = vmul.f32 -1.442695, %v10803_v59 }
 0x5ca   : > { %v6377_v21 = vpop.f32.mrf.mxu1 }
 0x5cb   : > { %v10806_v4 = vadd.f32 %v6377_v21, %v6051_v29 }
 0x5cc   : > { %v6379_v34 = vpop.f32.mrf.mxu1 }
 0x5cd   : > { %v6518_v53 = vrot.slane %v10806_v4, 4  ;;  %v10810_v50 = vadd.f32 %v6379_v34, %v6051_v29  ;;  %v7051_v22 = vmul.f32 -1.442695, %v10806_v4 }
 0x5ce   : > { %v6381_v24 = vpop.f32.mrf.mxu1 }
 0x5cf   : > { %v6519_v15 = vrot.slane %v10810_v50, 4  ;;  %v6534_v54 = vsel %vm11308_vm10, %v6532_v17, %v6518_v53  ;;  %v7052_v0 = vmul.f32 -1.442695, %v10810_v50  ;;  %vm11324_vm10 = vmmov %vm11323_vm0 }
 0x5d0   : > { %v6536_v35 = vmax.f32 %v6534_v54, 0.0  ;;  %v6382_v55 = vpop.f32.mrf.mxu1 }
 0x5d1   : > { %v6535_v45 = vsel %vm11310_vm13, %v6533_v52, %v6519_v15 }
 0x5d2   : > { %v6537_v18 = vmax.f32 %v6535_v45, 0.0  ;;  %v6538_v25 = vsub.f32 0.0, %v6536_v35 }
 0x5d4   : > { %v6539_v43 = vsub.f32 0.0, %v6537_v18  ;;  %v6544_v39 = vmul.f32 %v6542_v38, %v6538_v25 }
 0x5d6   : > { %v6545_v29 = vmul.f32 %v6542_v38, %v6539_v43  ;;  %v6546_v48 = vmul.f32 1.442695, %v6544_v39 }
 0x5d8   : > { %7268 = vpow2.f32 %v6546_v48  ;;  %v6548_v6 = vmul.f32 1.442695, %v6545_v29 }
 0x5da   : > { %7270 = vpow2.f32 %v6548_v6 }
 0x5e5   : > { %v10817_v32 = vpop.eup %7268 }
 0x5e6   : > { %v6550_v62 = vsub.f32 1.0, %v10817_v32 }
 0x5e7   : > { %v10820_v5 = vpop.eup %7270 }
 0x5e8   : > { %v6551_v36 = vsub.f32 1.0, %v10820_v5  ;;  %v6552_v8 = vsub.f32 1.0, %v6550_v62 }
 0x5ea   : > { %v6553_v23 = vsub.f32 1.0, %v6551_v36  ;;  %v6554_v3 = vadd.f32 1e-10, %v6552_v8 }
 0x5ec   : > { %v6555_v41 = vadd.f32 1e-10, %v6553_v23  ;;  %7272 = vlog2.f32 %v6554_v3 }
 0x5ee   : > { %7274 = vlog2.f32 %v6555_v41 }
 0x5ef   : > { %7276 = vpow2.f32 %v7037_v31 }
 0x5f0   : > { %7278 = vpow2.f32 %v7039_v14 }
 0x5f1   : > { %7280 = vpow2.f32 %v7038_v2 }
 0x5f2   : > { %7282 = vpow2.f32 %v7040_v7 }
 0x5f3   : > { %7284 = vpow2.f32 %v7041_v46 }
 0x5f4   : > { %7286 = vpow2.f32 %v7042_v9 }
 0x5f5   : > { %7288 = vpow2.f32 %v7043_v33 }
 0x5f6   : > { %7290 = vpow2.f32 %v7044_v49 }
 0x5f7   : > { %7292 = vpow2.f32 %v7045_v10 }
 0x5f8   : > { %7294 = vpow2.f32 %v7046_v60 }
 0x5f9   : > { %v7273_v16 = vpop.eup %7272  ;;  %7296 = vpow2.f32 %v7047_v61 }
 0x5fa   : > { %v6557_v58 = vmul.f32 0.6931472, %v7273_v16  ;;  %7298 = vpow2.f32 %v7048_v44 }
 0x5fb   : > { %v7275_v42 = vpop.eup %7274  ;;  %7300 = vpow2.f32 %v7049_v56 }
 0x5fc   : > { %v6559_v57 = vmul.f32 0.6931472, %v7275_v42  ;;  %v6562_v26 = vrot.slane %v6557_v58, 7  ;;  %v7277_v13 = vpop.eup %7276  ;;  %7302 = vpow2.f32 %v7050_v47  ;;  %v6604_v42 = vlaneseq }
 0x5fd   : > { %v7279_v34 = vpop.eup %7278  ;;  %v6432_v59 = vadd.f32 1.0, %v7277_v13  ;;  %7304 = vpow2.f32 %v7051_v22 }
 0x5fe   : > { %v6563_v20 = vrot.slane %v6559_v57, 7  ;;  %v6566_v1 = vsel %vm11311_vm6, 0.0, %v6562_v26  ;;  %v7281_v24 = vpop.eup %7280  ;;  %v6434_v54 = vadd.f32 1.0, %v7279_v34  ;;  %7306 = vpow2.f32 %v7052_v0 }
 0x5ff   : > { %v6568_v30 = vadd.f32 %v6566_v1, %v6557_v58  ;;  %v7283_v35 = vpop.eup %7282  ;;  %v6433_v38 = vadd.f32 1.0, %v7281_v24  ;;  %7308 = vrcp.f32 %v6432_v59  ;;  %v10851_v49 = vshrl.u32 %v6604_v42, 7 }
 0x600   : > { %v6567_v28 = vsel %vm11312_vm4, 0.0, %v6563_v20  ;;  %v7285_v55 = vpop.eup %7284  ;;  %7310 = vrcp.f32 %v6434_v54  ;;  %v6435_v39 = vadd.f32 1.0, %v7283_v35 }
 0x601   : > { %v6569_v63 = vadd.f32 %v6567_v28, %v6559_v57  ;;  %v6572_v27 = vrot.slane %v6568_v30, 6  ;;  %v7287_v18 = vpop.eup %7286  ;;  %v6436_v6 = vadd.f32 1.0, %v7285_v55  ;;  %v6618_v61 = vsub.s32 1, %v10851_v49 }
 0x602   : > { %v7289_v43 = vpop.eup %7288  ;;  %v6437_v3 = vadd.f32 1.0, %v7287_v18  ;;  %v6630_v44 = vsub.s32 2, %v10851_v49  ;;  %v6642_v56 = vsub.s32 3, %v10851_v49  ;;  %v6666_v47 = vsub.s32 5, %v10851_v49 }
 0x603   : > { %v6573_v19 = vrot.slane %v6569_v63, 6  ;;  %v6576_v51 = vsel %vm11313_vm14, 0.0, %v6572_v27  ;;  %v7291_v48 = vpop.eup %7290  ;;  %v6438_v31 = vadd.f32 1.0, %v7289_v43  ;;  %v6606_v27 = vsub.s32 0, %v10851_v49 }
 0x604   : > { %v6578_v37 = vadd.f32 %v6576_v51, %v6568_v30  ;;  %v7293_v23 = vpop.eup %7292  ;;  %v6439_v16 = vadd.f32 1.0, %v7291_v48  ;;  %v6702_v51 = vpop.permute.xlu1 %6701  ;;  %v6690_v13 = vsub.s32 7, %v10851_v49 }
 0x605   : > { %v6577_v12 = vsel %vm11314_vm2, 0.0, %v6573_v19  ;;  %v7295_v41 = vpop.eup %7294  ;;  %v6440_v58 = vadd.f32 1.0, %v7293_v23 }
 0x606   : > { %v6579_v21 = vadd.f32 %v6577_v12, %v6569_v63  ;;  %v6582_v40 = vrot.slane %v6578_v37, 4  ;;  %v7297_v14 = vpop.eup %7296  ;;  %v6441_v46 = vadd.f32 1.0, %v7295_v41 }
 0x607   : > { %v7299_v2 = vpop.eup %7298  ;;  %v6442_v26 = vadd.f32 1.0, %v7297_v14 }
 0x608   : > { %v6583_v53 = vrot.slane %v6579_v21, 4  ;;  %v6586_v11 = vsel %vm11315_vm9, 0.0, %v6582_v40  ;;  %v7301_v7 = vpop.eup %7300  ;;  %v6443_v33 = vadd.f32 1.0, %v7299_v2  ;;  %v6678_v40 = vsub.s32 6, %v10851_v49 }
 0x609   : > { %v6588_v17 = vadd.f32 %v6586_v11, %v6578_v37  ;;  %v7303_v57 = vpop.eup %7302  ;;  %v6444_v1 = vadd.f32 1.0, %v7301_v7  ;;  %v6654_v37 = vsub.s32 4, %v10851_v49 }
 0x60a   : > { %v6587_v15 = vsel %vm11316_vm5, 0.0, %v6583_v53  ;;  %v7305_v9 = vpop.eup %7304  ;;  %v6445_v30 = vadd.f32 1.0, %v7303_v57 }
 0x60b   : > { %v6589_v4 = vadd.f32 %v6587_v15, %v6579_v21  ;;  %v6592_v52 = vrot.slane %v6588_v17, 7  ;;  %v7307_v20 = vpop.eup %7306  ;;  %v6446_v10 = vadd.f32 1.0, %v7305_v9 }
 0x60c   : > { %v7309_v28 = vpop.eup %7308  ;;  %v6447_v60 = vadd.f32 1.0, %v7307_v20 }
 0x60d   : > { %v6593_v50 = vrot.slane %v6589_v4, 7  ;;  %v6596_v45 = vsel %vm11317_vm3, 0.0, %v6592_v52  ;;  %v7311_v63 = vpop.eup %7310 }
 0x60e   : > { %v6598_v25 = vmul.f32 1.442695, %v6596_v45 }
 0x60f   : > { %v6597_v29 = vsel %vm11318_vm8, 0.0, %v6593_v50 }
 0x610   : > { %7312 = vpow2.f32 %v6598_v25  ;;  %v6600_v8 = vmul.f32 1.442695, %v6597_v29 }
 0x611   : > { %7314 = vrcp.f32 %v6433_v38 }
 0x612   : > { %7316 = vpow2.f32 %v6600_v8 }
 0x613   : > { %7318 = vrcp.f32 %v6435_v39 }
 0x614   : > { %7320 = vrcp.f32 %v6436_v6 }
 0x615   : > { %7322 = vrcp.f32 %v6437_v3 }
 0x616   : > { %7324 = vrcp.f32 %v6438_v31 }
 0x617   : > { %7326 = vrcp.f32 %v6439_v16 }
 0x618   : > { %7328 = vrcp.f32 %v6440_v58 }
 0x619   : > { %7330 = vrcp.f32 %v6441_v46 }
 0x61a   : > { %7332 = vrcp.f32 %v6442_v26 }
 0x61b   : > { %7334 = vrcp.f32 %v6443_v33 }
 0x61c   : > { %7336 = vrcp.f32 %v6444_v1 }
 0x61d   : > { %v7313_v19 = vpop.eup %7312  ;;  %7338 = vrcp.f32 %v6445_v30 }
 0x61e   : > { %v7315_v12 = vpop.eup %7314  ;;  %7340 = vrcp.f32 %v6446_v10  ;;  %v10861_v22 = vmul.f32 %v7313_v19, %v6550_v62 }
 0x61f   : > { %v7317_v21 = vpop.eup %7316  ;;  %7342 = vrcp.f32 %v6447_v60 }
 0x620   : > { %v7319_v0 = vpop.eup %7318  ;;  %v10867_v34 = vmul.f32 %v7317_v21, %v6551_v36  ;;  %v6704_v53 = vmul.f32 %v6702_v51, %v10861_v22  ;;  %v6607_v11 = vrot.slane %v10861_v22, %v6606_v27  ;;  %v6619_v17 = vrot.slane %v10861_v22, %v6618_v61 }
 0x621   : > { %v7321_v32 = vpop.eup %7320  ;;  %v6631_v62 = vrot.slane %v10861_v22, %v6630_v44  ;;  %v6643_v24 = vrot.slane %v10861_v22, %v6642_v56  ;;  %v6655_v59 = vrot.slane %v10861_v22, %v6654_v37  ;;  %v6667_v15 = vrot.slane %v10861_v22, %v6666_v47 }
 0x622   : > { %v7323_v54 = vpop.eup %7322  ;;  %v6705_v5 = vmul.f32 %v6702_v51, %v10867_v34  ;;  %v6706_v36 = vrot.slane %v6704_v53, 4  ;;  %v6611_v4 = vrot.slane %v10867_v34, %v6606_v27  ;;  %v6612_v52 = vmul.f32 %v7309_v28, %v6607_v11 }
 0x623   : > { %v7325_v35 = vpop.eup %7324  ;;  %v6623_v55 = vrot.slane %v10867_v34, %v6618_v61  ;;  %v6624_v38 = vmul.f32 %v7311_v63, %v6619_v17  ;;  %v6635_v50 = vrot.slane %v10867_v34, %v6630_v44  ;;  %v6636_v45 = vmul.f32 %v7321_v32, %v6631_v62 }
 0x624   : > { %v7327_v18 = vpop.eup %7326  ;;  %v6707_v25 = vadd.f32 %v6706_v36, %v6704_v53  ;;  %v6712_v43 = vrot.slane %v6705_v5, 4  ;;  %v6613_v39 = vmul.f32 %v7315_v12, %v6611_v4  ;;  %v6647_v29 = vrot.slane %v10867_v34, %v6642_v56 }
 0x625   : > { %v7329_v48 = vpop.eup %7328  ;;  %v6625_v6 = vmul.f32 %v7319_v0, %v6623_v55  ;;  %v6626_v8 = vadd.f32 %v6624_v38, %v6612_v52  ;;  %v6637_v23 = vmul.f32 %v7323_v54, %v6635_v50  ;;  %v6648_v3 = vmul.f32 %v7325_v35, %v6643_v24 }
 0x626   : > { %v7331_v41 = vpop.eup %7330  ;;  %v6708_v31 = vrot.slane %v6707_v25, 2  ;;  %v6713_v14 = vadd.f32 %v6712_v43, %v6705_v5  ;;  %v6649_v16 = vmul.f32 %v7327_v18, %v6647_v29  ;;  %v6659_v2 = vrot.slane %v10867_v34, %v6654_v37 }
 0x627   : > { %v7333_v58 = vpop.eup %7332  ;;  %v6627_v42 = vadd.f32 %v6625_v6, %v6613_v39  ;;  %v6638_v7 = vadd.f32 %v6636_v45, %v6626_v8  ;;  %v6660_v46 = vmul.f32 %v7329_v48, %v6655_v59  ;;  %v6671_v57 = vrot.slane %v10867_v34, %v6666_v47 }
 0x628   : > { %v7335_v26 = vpop.eup %7334  ;;  %v6709_v9 = vadd.f32 %v6708_v31, %v6707_v25  ;;  %v6714_v33 = vrot.slane %v6713_v14, 2  ;;  %v6661_v20 = vmul.f32 %v7331_v41, %v6659_v2  ;;  %v6672_v1 = vmul.f32 %v7333_v58, %v6667_v15 }
 0x629   : > { %v7337_v49 = vpop.eup %7336  ;;  %v6639_v30 = vadd.f32 %v6637_v23, %v6627_v42  ;;  %v6650_v10 = vadd.f32 %v6648_v3, %v6638_v7  ;;  %v6673_v28 = vmul.f32 %v7335_v26, %v6671_v57  ;;  %v6679_v60 = vrot.slane %v10861_v22, %v6678_v40 }
 0x62a   : > { %v7339_v63 = vpop.eup %7338  ;;  %v6715_v27 = vadd.f32 %v6714_v33, %v6713_v14  ;;  %v6683_v61 = vrot.slane %v10867_v34, %v6678_v40  ;;  %v6691_v44 = vrot.slane %v10861_v22, %v6690_v13  ;;  %v6695_v47 = vrot.slane %v10867_v34, %v6690_v13 }
 0x62b   : > { %v7341_v19 = vpop.eup %7340  ;;  %v6651_v51 = vadd.f32 %v6649_v16, %v6639_v30  ;;  %v6662_v56 = vadd.f32 %v6660_v46, %v6650_v10  ;;  %v6684_v37 = vmul.f32 %v7337_v49, %v6679_v60  ;;  %v6710_v21 = vrot.slane %v6709_v9, 1 }
 0x62c   : > { %v7343_v12 = vpop.eup %7342  ;;  %v6685_v0 = vmul.f32 %v7339_v63, %v6683_v61  ;;  %v6696_v53 = vmul.f32 %v7341_v19, %v6691_v44  ;;  %v6718_v62 = vrot.slane %v10861_v22, 4  ;;  %v6724_v40 = vrot.slane %v10867_v34, 4 }
 0x62d   : > { %v6663_v11 = vadd.f32 %v6661_v20, %v6651_v51  ;;  %v6674_v17 = vadd.f32 %v6672_v1, %v6662_v56  ;;  %v6697_v32 = vmul.f32 %v7343_v12, %v6695_v47  ;;  %v6716_v24 = vrot.slane %v6715_v27, 1 }
 0x62e   : > { %v6719_v54 = vadd.f32 %v6718_v62, %v10861_v22  ;;  %v6725_v13 = vadd.f32 %v6724_v40, %v10867_v34  ;;  %v6711_v5 = vadd.f32 %v6710_v21, %v6709_v9 }
 0x62f   : > { %v6675_v59 = vadd.f32 %v6673_v28, %v6663_v11  ;;  %v6686_v15 = vadd.f32 %v6684_v37, %v6674_v17  ;;  %v6717_v55 = vadd.f32 %v6716_v24, %v6715_v27 }
 0x630   : > { %v6720_v52 = vrot.slane %v6719_v54, 2  ;;  %v6726_v35 = vrot.slane %v6725_v13, 2 }
 0x631   : > { %v6687_v36 = vadd.f32 %v6685_v0, %v6675_v59  ;;  %v6698_v4 = vadd.f32 %v6696_v53, %v6686_v15 }
 0x632   : > { %v6721_v50 = vadd.f32 %v6720_v52, %v6719_v54  ;;  %v6727_v18 = vadd.f32 %v6726_v35, %v6725_v13 }
 0x633   : > { %v6699_v38 = vadd.f32 %v6697_v32, %v6687_v36  ;;  %v6730_v45 = vsel %vm11319_vm15, %v6698_v4, %v6711_v5 }
 0x634   : > { %v6722_v25 = vrot.slane %v6721_v50, 1  ;;  %v6728_v43 = vrot.slane %v6727_v18, 1 }
 0x635   : > { %v6731_v22 = vsel %vm11320_vm12, %v6699_v38, %v6717_v55 }
 0x636   : > { %v6723_v34 = vadd.f32 %v6722_v25, %v6721_v50  ;;  %v6729_v39 = vadd.f32 %v6728_v43, %v6727_v18 }
 0x638   : > { %v6732_v29 = vsel %vm11321_vm1, %v6730_v45, %v6723_v34  ;;  %v6733_v48 = vsel %vm11322_vm11, %v6731_v22, %v6729_v39 }
 0x639   : > { %v6734_v6 = vsel %vm11323_vm0, %v6732_v29, 0.0  ;;  %v6735_v8 = vsel %vm11324_vm10, %v6733_v48, 0.0 }
 0x63a   : > { %6736 = vst [vmem:[%s207_s12] sm:$0xff] %v6734_v6  ;;  %6737 = vst [vmem:[%s207_s12 + $0x8] sm:$0xff] %v6735_v8 }
 0x63b   : > { %7372 = shalt.err (!%p7369_p3)
}
 0x63c   : > { %s7373_s30 = scalar_lea.hbm %s10903_s22, 256  ;;  %s7377_s7 = scalar_lea.hbm %s10951_s4, 512 }
 0x63d   : > { %p7374_p4 = scmp.ne.s32.totalorder %s10903_s22, %s7373_s30  ;;  %p7378_p9 = scmp.lt.s32.totalorder %s10903_s22, %s10951_s4 }
 0x63e   : > { %p7379_p10 = scmp.lt.s32.totalorder %s7377_s7, %s7373_s30 }
 0x63f   : > { %p7375_p7 = pnand %p7374_p4, %p7499_p5 }
 0x640   : > { %p7380_p11 = por %p7379_p10, %p7378_p9 }
 0x641   : > { %p7376_p8 = pneg %p7375_p7 }
 0x643   : > { %p7381_p12 = pnand %p7380_p11, %p7376_p8 }
 0x645   : > { %7384 = shalt.err (!%p7381_p12)
}
 0x646   : > { %7139 = dma.vmem_to_hbm [thread:$0]  (%p7499_p5), %s10905_s13, 256, %s10903_s22, %s6739_s19  }
 0x647 PF: > { %p7145_p13 = scmp.ge.s32.totalorder %s7419_s18, 2  ;;  %s6765_s10 = sand.u32 1, %s7407_s15  }
 0x648   : > { %s6766_s11 = scalar_lea.sflag [#allocation3], %s6765_s10 }
 0x649   : > { %p7142_p0 = pnand %p7145_p13, %p7503_p6 }
 0x64b   : > { %p7143_p1 = pneg %p7142_p0 }
 0x64d   : > { %7402 = dma.done.wait (%p7143_p1), %s6766_s11, 256  }
 0x64e   : > { %7404 = vsyncadd (%p7143_p1), %s6766_s11, 4294967040  ;;  %p14_p2 = scmp.ge.s32.totalorder %s7486_s21, 4   ;;  %s11325_s15 = smov %s7411_s16 }
 0x64f   : > { %s11326_s16 = smov %s7415_s17  ;;  %s11327_s17 = smov %s7497_s24 }
 0x650   : > { %s11328_s18 = smov %s7486_s21  ;;  %16 = sbr.rel (!%p14_p2) target bundleno = 3 (0x3), region = 74 }
 0x655   :  { %6771 = vsyncpa [#allocation3], 1 }
 0x656   :  { %6773 = vsyncpa [#allocation3 + $0x1], 1 }

</bundles_post_ra>
